<compile_context>
chip_gen: v7x
topology: tpu7x:2x2x1
jax: 0.10.0
libtpu: 0.0.40
codegen_flags: <defaults>
</compile_context>

<pallas_src>
import math
from functools import partial

import jax
import jax.numpy as jnp
from jax.experimental import pallas as pl
from jax.experimental.pallas import tpu as pltpu

# ----------------------------- configuration -------------------------------
N_ANCHOR = 9
N_ROIS = 256          # proposals kept per image from the RPN
N_SAMPLE_ROI = 128    # ProposalTargetCreator n_sample
N_CLASS = 5           # head classes (background + 4 fg)
RPN_SIGMA = 1.0
ROI_SIGMA = 1.0
LOC_NORMALIZE_STD = (0.1, 0.1, 0.2, 0.2)
CP = 128              # feature lanes: lane-dense, MXU-aligned
FEAT = 32             # real conv feature channels
HID = 64              # real head hidden width
C_IN = 4              # raw image channels
VMEM_LIMIT = 32 * 1024 * 1024

_TAPS = tuple((dh, dw) for dh in range(3) for dw in range(3))


def _round_up(x, m):
    return ((x + m - 1) // m) * m


# ================= Pallas kernels 1/2: packed-tap 3x3 convs =================
def _fill_im2col(x_ref, col_ref, H, W, C):
    """Stage the nine shifted taps of the halo tile into the packed im2col
    VMEM scratch: lane t*C+c <- x[dh+i, dw+j, c].  Padding lanes are zeroed
    every step (safe under megacore 'parallel' splitting of the image grid)."""
    Kp = col_ref.shape[-1]
    if Kp > 9 * C:
        col_ref[:, :, 9 * C:Kp] = jnp.zeros((H, W, Kp - 9 * C), col_ref.dtype)
    for t, (dh, dw) in enumerate(_TAPS):
        col_ref[:, :, t * C:(t + 1) * C] = x_ref[dh:dh + H, dw:dw + W, 0:C]


def _extract_conv_kernel(x_ref, w_ref, b_ref, o_ref, col_ref, *, H, W, C):
    """x_ref: (H+2, W+2, C) bf16 halo tile; w_ref: (Kp, F) bf16 packed taps;
    b_ref: (1, F) f32; o_ref: (H+2, W+2, F) bf16 -- written HALO-PADDED so the
    RPN conv can reuse it with no extra HBM pad."""
    Kp, F = w_ref.shape
    _fill_im2col(x_ref, col_ref, H, W, C)
    patch = col_ref[...].reshape(H * W, Kp)
    acc = jnp.dot(patch, w_ref[...], preferred_element_type=jnp.float32)
    acc = jnp.maximum(acc + b_ref[...], 0.0)
    o_ref[...] = jnp.zeros_like(o_ref)                       # halo border = 0
    o_ref[1:H + 1, 1:W + 1, :] = acc.reshape(H, W, F).astype(o_ref.dtype)


def _rpn_conv_proj_kernel(x_ref, w_ref, b_ref, pw_ref, pb_ref, o_ref, col_ref,
                          *, H, W, C):
    """Fused RPN 3x3 conv + relu + 1x1 loc/score projection: `mid` never
    leaves VMEM.  o_ref: (H*W, 128) f32 (36 loc + 18 score + pad lanes)."""
    Kp, F = w_ref.shape
    _fill_im2col(x_ref, col_ref, H, W, C)
    patch = col_ref[...].reshape(H * W, Kp)
    mid = jnp.dot(patch, w_ref[...], preferred_element_type=jnp.float32)
    mid = jnp.maximum(mid + b_ref[...], 0.0).astype(jnp.bfloat16)
    proj = jnp.dot(mid, pw_ref[...], preferred_element_type=jnp.float32)
    o_ref[...] = proj + pb_ref[...]


def extract_conv(xp, w, b):
    """xp: (N, H+2, W+2, C_IN) bf16 halo-padded raw input."""
    N, Hp2, Wp2, Cin = xp.shape
    H, W = Hp2 - 2, Wp2 - 2
    Kp, F = w.shape
    # TODO(synk): for realistic feature-map sizes add an H-tile grid axis with a
    # 2-row halo so a full-image block never exceeds v7x's 64 MiB VMEM.
    return pl.pallas_call(
        partial(_extract_conv_kernel, H=H, W=W, C=Cin),
        out_shape=jax.ShapeDtypeStruct((N, Hp2, Wp2, F), jnp.bfloat16),
        grid=(N,),
        in_specs=[
            pl.BlockSpec((None, Hp2, Wp2, Cin), lambda i: (i, 0, 0, 0)),
            pl.BlockSpec((Kp, F), lambda i: (0, 0)),
            pl.BlockSpec((1, F), lambda i: (0, 0)),
        ],
        out_specs=pl.BlockSpec((None, Hp2, Wp2, F), lambda i: (i, 0, 0, 0)),
        scratch_shapes=[pltpu.VMEM((H, W, Kp), jnp.bfloat16)],
        compiler_params=pltpu.CompilerParams(
            dimension_semantics=("parallel",), vmem_limit_bytes=VMEM_LIMIT),
        cost_estimate=pl.CostEstimate(
            flops=2 * N * H * W * Kp * F, transcendentals=0,
            bytes_accessed=xp.size * 2 + w.size * 2 + b.size * 4
                           + N * Hp2 * Wp2 * F * 2),
    )(xp, w, b)


def rpn_conv_proj(base_pad, w, b, pw, pb):
    """base_pad: (N, H+2, W+2, CP) bf16 halo-padded features (real C = FEAT)."""
    N, Hp2, Wp2, _ = base_pad.shape
    H, W = Hp2 - 2, Wp2 - 2
    Kp, F = w.shape
    return pl.pallas_call(
        partial(_rpn_conv_proj_kernel, H=H, W=W, C=FEAT),
        out_shape=jax.ShapeDtypeStruct((N, H * W, F), jnp.float32),
        grid=(N,),
        in_specs=[
            pl.BlockSpec((None, Hp2, Wp2, CP), lambda i: (i, 0, 0, 0)),
            pl.BlockSpec((Kp, F), lambda i: (0, 0)),
            pl.BlockSpec((1, F), lambda i: (0, 0)),
            pl.BlockSpec((F, F), lambda i: (0, 0)),
            pl.BlockSpec((1, F), lambda i: (0, 0)),
        ],
        out_specs=pl.BlockSpec((None, H * W, F), lambda i: (i, 0, 0)),
        scratch_shapes=[pltpu.VMEM((H, W, Kp), jnp.bfloat16)],
        compiler_params=pltpu.CompilerParams(
            dimension_semantics=("parallel",), vmem_limit_bytes=VMEM_LIMIT),
        cost_estimate=pl.CostEstimate(
            flops=2 * N * H * W * (Kp * F + F * F), transcendentals=0,
            bytes_accessed=base_pad.size * 2 + (w.size + pw.size) * 2
                           + (b.size + pb.size) * 4 + N * H * W * F * 4),
    )(base_pad, w, b, pw, pb)


# ================ Pallas kernel 3: fused head (fc1 + loc/score) ==============
def _head_kernel(x_ref, w1_ref, b1_ref, w2_ref, b2_ref, o_ref):
    h = jnp.dot(x_ref[...], w1_ref[...], preferred_element_type=jnp.float32)
    h = jnp.maximum(h + b1_ref[...], 0.0).astype(jnp.bfloat16)
    out = jnp.dot(h, w2_ref[...], preferred_element_type=jnp.float32)
    o_ref[...] = out + b2_ref[...]


def head_fused(pooled, w1, b1, w2, b2, tm=128):
    """Fused fc1(+relu) -> loc/score projection.  Single K block, so no
    K-grid accumulator machinery; M is tiled and megacore-parallel."""
    M, K = pooled.shape
    Mp = _round_up(M, tm)
    if Mp != M:
        pooled = jnp.pad(pooled, ((0, Mp - M), (0, 0)))
    out = pl.pallas_call(
        _head_kernel,
        out_shape=jax.ShapeDtypeStruct((Mp, CP), jnp.float32),
        grid=(Mp // tm,),
        in_specs=[
            pl.BlockSpec((tm, K), lambda i: (i, 0)),
            pl.BlockSpec((K, CP), lambda i: (0, 0)),
            pl.BlockSpec((1, CP), lambda i: (0, 0)),
            pl.BlockSpec((CP, CP), lambda i: (0, 0)),
            pl.BlockSpec((1, CP), lambda i: (0, 0)),
        ],
        out_specs=pl.BlockSpec((tm, CP), lambda i: (i, 0)),
        compiler_params=pltpu.CompilerParams(
            dimension_semantics=("parallel",), vmem_limit_bytes=VMEM_LIMIT),
        cost_estimate=pl.CostEstimate(
            flops=2 * Mp * K * CP + 2 * Mp * CP * CP, transcendentals=0,
            bytes_accessed=Mp * K * 2 + (K * CP + CP * CP) * 2 + 2 * CP * 4
                           + Mp * CP * 4),
    )(pooled, w1, b1, w2, b2)
    return out[:M]


# ===== Pallas kernel 4: per-image RPN losses (smooth-L1 + 2-class CE) ========
def _rpn_loss_kernel(pred_ref, gt_ref, pos_ref, s0_ref, s1_ref, lbl_ref,
                     out_ref, *, sigma_sq):
    inv = 1.0 / sigma_sq
    # smooth-L1 over positive anchors / max(#pos, 1)   (matches reference)
    diff = jnp.abs(gt_ref[...] - pred_ref[...])                 # (R4, 128)
    pos = pos_ref[...]
    l1 = jnp.where(diff < inv, 0.5 * sigma_sq * diff * diff,
                   diff - 0.5 * inv) * pos
    num_pos = jnp.sum(pos) * 0.25                               # pos repeats x4
    loc_loss = jnp.sum(l1) / jnp.maximum(num_pos, 1.0)

    # 2-class cross entropy with ignore_index = -1
    s0 = s0_ref[...]
    s1 = s1_ref[...]
    lbl = lbl_ref[...]
    valid = (lbl >= 0).astype(jnp.float32)
    m = jnp.maximum(s0, s1)
    lse = m + jnp.log(jnp.exp(s0 - m) + jnp.exp(s1 - m))
    picked = jnp.where(lbl == 1, s1, s0)
    ce = (lse - picked) * valid
    cls_loss = jnp.sum(ce) / jnp.maximum(jnp.sum(valid), 1.0)

    lane = jax.lax.broadcasted_iota(jnp.int32, out_ref.shape, 1)  # (8, 128)
    out_ref[...] = (jnp.where(lane == 0, loc_loss, 0.0)
                    + jnp.where(lane == 1, cls_loss, 0.0))


def _lane_rows(x2d, pad_value=0):
    """(n, L) -> (n, ceil(L/128), 128), padded with pad_value (lane-dense)."""
    n, L = x2d.shape
    Lp = _round_up(L, 128)
    if Lp != L:
        x2d = jnp.pad(x2d, ((0, 0), (0, Lp - L)), constant_values=pad_value)
    return x2d.reshape(n, Lp // 128, 128)


def rpn_losses(rpn_locs, rpn_scores, gt_locs, gt_labels, sigma):
    n, A, _ = rpn_locs.shape
    f32 = jnp.float32
    pred = _lane_rows(rpn_locs.astype(f32).reshape(n, A * 4))
    gt = _lane_rows(gt_locs.astype(f32).reshape(n, A * 4))
    pos = jnp.broadcast_to((gt_labels > 0)[:, :, None], (n, A, 4)).astype(f32)
    pos = _lane_rows(pos.reshape(n, A * 4))
    s0 = _lane_rows(rpn_scores[..., 0].astype(f32))
    s1 = _lane_rows(rpn_scores[..., 1].astype(f32))
    lbl = _lane_rows(gt_labels.astype(jnp.int32), pad_value=-1)

    def spec(x):
        r, c = x.shape[1], x.shape[2]
        return pl.BlockSpec((None, r, c), lambda i: (i, 0, 0))

    out = pl.pallas_call(
        partial(_rpn_loss_kernel, sigma_sq=float(sigma) ** 2),
        out_shape=jax.ShapeDtypeStruct((n, 8, 128), jnp.float32),
        grid=(n,),
        in_specs=[spec(pred), spec(gt), spec(pos), spec(s0), spec(s1), spec(lbl)],
        out_specs=pl.BlockSpec((None, 8, 128), lambda i: (i, 0, 0)),
        compiler_params=pltpu.CompilerParams(dimension_semantics=("parallel",)),
    )(pred, gt, pos, s0, s1, lbl)
    return out[:, 0, 0], out[:, 0, 1]


# ===== Pallas kernel 5: per-image ROI losses (smooth-L1 + C-class CE) ========
def _roi_loss_kernel(rl_ref, gl_ref, pos_ref, sc_ref, lbl_ref, valid_ref,
                     out_ref, *, sigma_sq):
    inv = 1.0 / sigma_sq
    diff = jnp.abs(gl_ref[...] - rl_ref[...])                   # (4, Sp)
    pos = pos_ref[...]                                          # (1, Sp)
    l1 = jnp.where(diff < inv, 0.5 * sigma_sq * diff * diff,
                   diff - 0.5 * inv) * pos
    num_pos = jnp.sum(pos)
    loc_loss = jnp.sum(l1) / jnp.maximum(num_pos, 1.0)

    s = sc_ref[...]                                             # (C, Sp)
    lbl = lbl_ref[...]                                          # (1, Sp)
    valid = valid_ref[...]                                      # (1, Sp)
    m = jnp.max(s, axis=0, keepdims=True)
    lse = m + jnp.log(jnp.sum(jnp.exp(s - m), axis=0, keepdims=True))
    cls_ids = jax.lax.broadcasted_iota(jnp.int32, s.shape, 0)
    picked = jnp.sum(s * (cls_ids == lbl).astype(jnp.float32),
                     axis=0, keepdims=True)
    ce = (lse - picked) * valid
    cls_loss = jnp.sum(ce) / jnp.maximum(jnp.sum(valid), 1.0)

    lane = jax.lax.broadcasted_iota(jnp.int32, out_ref.shape, 1)  # (8, 128)
    out_ref[...] = (jnp.where(lane == 0, loc_loss, 0.0)
                    + jnp.where(lane == 1, cls_loss, 0.0))


def roi_losses(roi_loc, gt_roi_loc, gt_roi_label, roi_scores, sigma):
    n, S, _ = roi_loc.shape
    Sp = _round_up(S, 128)
    f32 = jnp.float32

    def pad_s(x, val=0):
        if Sp != S:
            cfg = [(0, 0), (0, Sp - S)] + [(0, 0)] * (x.ndim - 2)
            x = jnp.pad(x, cfg, constant_values=val)
        return x

    rl = jnp.swapaxes(pad_s(roi_loc.astype(f32)), 1, 2)          # (n, 4, Sp)
    gl = jnp.swapaxes(pad_s(gt_roi_loc.astype(f32)), 1, 2)       # (n, 4, Sp)
    sc = jnp.swapaxes(pad_s(roi_scores.astype(f32)), 1, 2)       # (n, C, Sp)
    lbl = pad_s(gt_roi_label.astype(jnp.int32))[:, None, :]      # (n, 1, Sp)
    valid = pad_s(jnp.ones((n, S), f32))[:, None, :]             # (n, 1, Sp)
    pos = pad_s((gt_roi_label > 0).astype(f32))[:, None, :]      # (n, 1, Sp)

    def spec(x):
        r, c = x.shape[1], x.shape[2]
        return pl.BlockSpec((None, r, c), lambda i: (i, 0, 0))

    out = pl.pallas_call(
        partial(_roi_loss_kernel, sigma_sq=float(sigma) ** 2),
        out_shape=jax.ShapeDtypeStruct((n, 8, 128), jnp.float32),
        grid=(n,),
        in_specs=[spec(rl), spec(gl), spec(pos), spec(sc), spec(lbl), spec(valid)],
        out_specs=pl.BlockSpec((None, 8, 128), lambda i: (i, 0, 0)),
        compiler_params=pltpu.CompilerParams(dimension_semantics=("parallel",)),
    )(rl, gl, pos, sc, lbl, valid)
    return out[:, 0, 0], out[:, 0, 1]


# ----------------------------- bbox utilities ------------------------------
def bbox_iou(a, b):
    tl = jnp.maximum(a[:, None, :2], b[None, :, :2])
    br = jnp.minimum(a[:, None, 2:], b[None, :, 2:])
    inter = jnp.prod(br - tl, axis=2) * jnp.all(tl < br, axis=2)
    area_a = jnp.prod(a[:, 2:] - a[:, :2], axis=1)
    area_b = jnp.prod(b[:, 2:] - b[:, :2], axis=1)
    return inter / (area_a[:, None] + area_b[None, :] - inter)


def bbox2loc(src_bbox, dst_bbox):
    w = src_bbox[:, 2] - src_bbox[:, 0]
    h = src_bbox[:, 3] - src_bbox[:, 1]
    cx = src_bbox[:, 0] + 0.5 * w
    cy = src_bbox[:, 1] + 0.5 * h
    bw = dst_bbox[:, 2] - dst_bbox[:, 0]
    bh = dst_bbox[:, 3] - dst_bbox[:, 1]
    bcx = dst_bbox[:, 0] + 0.5 * bw
    bcy = dst_bbox[:, 1] + 0.5 * bh
    eps = jnp.finfo(jnp.float32).eps
    w = jnp.maximum(w, eps)
    h = jnp.maximum(h, eps)
    dx = (bcx - cx) / w
    dy = (bcy - cy) / h
    dw = jnp.log(bw / w)
    dh = jnp.log(bh / h)
    return jnp.stack([dx, dy, dw, dh], axis=1)


def loc2bbox(anchor, loc):
    w = anchor[:, 2] - anchor[:, 0]
    h = anchor[:, 3] - anchor[:, 1]
    cx = anchor[:, 0] + 0.5 * w
    cy = anchor[:, 1] + 0.5 * h
    ncx = loc[:, 0] * w + cx
    ncy = loc[:, 1] * h + cy
    nw = jnp.exp(loc[:, 2]) * w
    nh = jnp.exp(loc[:, 3]) * h
    return jnp.stack([ncx - 0.5 * nw, ncy - 0.5 * nh,
                      ncx + 0.5 * nw, ncy + 0.5 * nh], axis=1)


# ------------------------- target creators (glue, vmapped) ------------------
def anchor_target_creator(bbox, anchor, n_samples=256,
                          pos_iou_thresh=0.7, neg_iou_thresh=0.3, pos_ratio=0.5):
    # TODO(synk): the reference restricts labeling to anchors fully inside the
    # image; border anchors are kept here (synthetic anchors are near-inside).
    A = anchor.shape[0]
    G = bbox.shape[0]
    ious = bbox_iou(anchor, bbox)                            # (A, G)
    argmax_ious = jnp.argmax(ious, axis=1)
    max_ious = jnp.max(ious, axis=1)
    gt_argmax_ious = jnp.argmax(ious, axis=0)                # (G,)
    argmax_ious = argmax_ious.at[gt_argmax_ious].set(jnp.arange(G))

    label = jnp.full((A,), -1, jnp.int32)
    label = jnp.where(max_ious < neg_iou_thresh, 0, label)
    label = jnp.where(max_ious >= pos_iou_thresh, 1, label)
    label = label.at[gt_argmax_ious].set(1)

    # TODO(synk): np.random.choice subsampling replaced by deterministic first-k.
    n_pos = int(pos_ratio * n_samples)
    pos = label == 1
    pos_rank = jnp.cumsum(pos.astype(jnp.int32))
    label = jnp.where(pos & (pos_rank > n_pos), -1, label)
    n_pos_kept = jnp.sum((label == 1).astype(jnp.int32))
    n_neg = n_samples - n_pos_kept
    neg = label == 0
    neg_rank = jnp.cumsum(neg.astype(jnp.int32))
    label = jnp.where(neg & (neg_rank > n_neg), -1, label)

    loc = bbox2loc(anchor, bbox[argmax_ious])
    has_pos = jnp.any(label > 0)
    loc = jnp.where(has_pos, loc, jnp.zeros_like(anchor))
    return loc, label


def proposal_target_creator(roi, bbox, label, loc_normalize_std,
                            n_sample=N_SAMPLE_ROI, pos_ratio=0.5,
                            pos_iou_threshold=0.5, neg_hi=0.5, neg_lo=0.0):
    roi = jnp.concatenate([roi, bbox], axis=0)               # (R+G, 4)
    R = roi.shape[0]
    iou = bbox_iou(roi, bbox)
    gt_idx = jnp.argmax(iou, axis=1)
    max_iou = jnp.max(iou, axis=1)
    gt_roi_label = label[gt_idx] + 1

    pos_cap = int(round(n_sample * pos_ratio))
    pos_mask = max_iou >= pos_iou_threshold
    neg_mask = (max_iou < neg_hi) & (max_iou >= neg_lo)

    # TODO(synk): np.random.choice sampling replaced by deterministic first-k.
    pos_rank = jnp.cumsum(pos_mask.astype(jnp.int32))
    keep_pos = pos_mask & (pos_rank <= pos_cap)
    n_pos = jnp.sum(keep_pos.astype(jnp.int32))
    neg_rank = jnp.cumsum(neg_mask.astype(jnp.int32))
    keep_neg = neg_mask & (neg_rank <= (n_sample - n_pos))

    sort_key = jnp.where(keep_pos, pos_rank,
                         jnp.where(keep_neg, R + neg_rank,
                                   10 * R + jnp.arange(R, dtype=jnp.int32)))
    keep_index = jnp.argsort(sort_key)[:n_sample]

    sample_roi = roi[keep_index]
    gt_roi_loc = bbox2loc(sample_roi, bbox[gt_idx[keep_index]])
    gt_roi_loc = gt_roi_loc / jnp.asarray(loc_normalize_std, jnp.float32)
    gt_roi_label_k = gt_roi_label[keep_index]
    gt_roi_label_k = jnp.where(jnp.arange(n_sample) < n_pos, gt_roi_label_k, 0)
    return sample_roi, gt_roi_loc, gt_roi_label_k.astype(jnp.int32)


# --------------------------- synthetic FasterRCNN ---------------------------
def init_params(key, c_in=C_IN, feat=FEAT, hid=HID, n_class=N_CLASS):
    ks = jax.random.split(key, 7)
    w = lambda k, shape, s=0.05: jax.random.normal(k, shape, jnp.float32) * s
    return dict(
        extract_w=w(ks[0], (9 * c_in, feat)),
        extract_b=jnp.zeros((feat,), jnp.float32),
        rpn_conv_w=w(ks[1], (9 * feat, feat)),
        rpn_conv_b=jnp.zeros((feat,), jnp.float32),
        rpn_loc_w=w(ks[2], (feat, N_ANCHOR * 4), 0.01),
        rpn_loc_b=jnp.zeros((N_ANCHOR * 4,), jnp.float32),
        rpn_score_w=w(ks[3], (feat, N_ANCHOR * 2), 0.01),
        rpn_score_b=jnp.zeros((N_ANCHOR * 2,), jnp.float32),
        fc1_w=w(ks[4], (feat, hid)),
        fc1_b=jnp.zeros((hid,), jnp.float32),
        head_loc_w=w(ks[5], (hid, n_class * 4), 0.01),
        head_loc_b=jnp.zeros((n_class * 4,), jnp.float32),
        head_score_w=w(ks[6], (hid, n_class), 0.01),
        head_score_b=jnp.zeros((n_class,), jnp.float32),
    )


def prepare_params(raw, c_in=C_IN, feat=FEAT):
    """One-time weight padding / bf16 cast / loc+score fusion."""
    def padw(w, kp, np_):
        k, m = w.shape
        return jnp.pad(w, ((0, kp - k), (0, np_ - m))).astype(jnp.bfloat16)

    def padb(b, np_):
        return jnp.pad(b, (0, np_ - b.shape[0])).reshape(1, np_).astype(jnp.float32)

    # packed-tap conv weights: row index = tap*C_real + channel
    k_ex = _round_up(9 * c_in, 128)       # 36  -> 128
    k_rc = _round_up(9 * feat, 128)       # 288 -> 384
    rpn_proj_w = jnp.concatenate([raw["rpn_loc_w"], raw["rpn_score_w"]], axis=1)
    rpn_proj_b = jnp.concatenate([raw["rpn_loc_b"], raw["rpn_score_b"]], axis=0)
    head_w = jnp.concatenate([raw["head_loc_w"], raw["head_score_w"]], axis=1)
    head_b = jnp.concatenate([raw["head_loc_b"], raw["head_score_b"]], axis=0)

    return dict(
        extract_w=padw(raw["extract_w"], k_ex, CP),
        extract_b=padb(raw["extract_b"], CP),
        rpn_conv_w=padw(raw["rpn_conv_w"], k_rc, CP),
        rpn_conv_b=padb(raw["rpn_conv_b"], CP),
        rpn_proj_w=padw(rpn_proj_w, CP, CP), rpn_proj_b=padb(rpn_proj_b, CP),
        fc1_w=padw(raw["fc1_w"], CP, CP), fc1_b=padb(raw["fc1_b"], CP),
        head_w=padw(head_w, CP, CP), head_b=padb(head_b, CP),
    )


def generate_anchors(H, W, feat_stride=1.0):
    ratios = (0.5, 1.0, 2.0)
    scales = (2.0, 4.0, 8.0)
    base = []
    for r in ratios:
        for s in scales:
            bh = s * math.sqrt(r)
            bw = s * math.sqrt(1.0 / r)
            base.append((-bw / 2.0, -bh / 2.0, bw / 2.0, bh / 2.0))
    base = jnp.asarray(base, jnp.float32)                    # (9, 4)
    xs = (jnp.arange(W, dtype=jnp.float32) + 0.5) * feat_stride
    ys = (jnp.arange(H, dtype=jnp.float32) + 0.5) * feat_stride
    gx, gy = jnp.meshgrid(xs, ys)                            # (H, W)
    shifts = jnp.stack([gx, gy, gx, gy], axis=-1).reshape(-1, 4)
    return (shifts[:, None, :] + base[None, :, :]).reshape(-1, 4)


def extract_features(prep, imgs_nchw):
    x = jnp.transpose(imgs_nchw, (0, 2, 3, 1)).astype(jnp.bfloat16)   # NHWC bf16
    xp = jnp.pad(x, ((0, 0), (1, 1), (1, 1), (0, 0)))                 # raw halo
    return extract_conv(xp, prep["extract_w"], prep["extract_b"])     # halo-padded


def rpn_forward(prep, base_pad, img_size, scale):
    # `scale` gates the proposal min-size filter in the real model; the
    # synthetic RPN keeps a fixed number of proposals so it is unused here.
    n, Hp2, Wp2, _ = base_pad.shape
    H, W = Hp2 - 2, Wp2 - 2
    proj = rpn_conv_proj(base_pad, prep["rpn_conv_w"], prep["rpn_conv_b"],
                         prep["rpn_proj_w"], prep["rpn_proj_b"])
    A = H * W * N_ANCHOR
    rpn_locs = proj[:, :, :N_ANCHOR * 4].reshape(n, A, 4)
    rpn_scores = proj[:, :, N_ANCHOR * 4:N_ANCHOR * 6].reshape(n, A, 2)

    anchor = generate_anchors(H, W, feat_stride=1.0)         # (A, 4)
    img_h, img_w = img_size

    # TODO(synk): the reference ProposalCreator sorts by objectness + NMS; the
    # synthetic model keeps the first N_ROIS decoded anchors.
    def decode(loc):
        dec = loc2bbox(anchor, loc)
        return jnp.stack([jnp.clip(dec[:, 0], 0.0, float(img_w)),
                          jnp.clip(dec[:, 1], 0.0, float(img_h)),
                          jnp.clip(dec[:, 2], 0.0, float(img_w)),
                          jnp.clip(dec[:, 3], 0.0, float(img_h))],
                         axis=1)[:N_ROIS]

    rois = jax.vmap(decode)(rpn_locs)                        # (n, N_ROIS, 4)
    roi_indices = jnp.broadcast_to(
        jnp.arange(n, dtype=jnp.float32)[:, None], (n, N_ROIS))
    return rpn_locs, rpn_scores, rois, roi_indices, anchor[None]


def head_forward(prep, base_pad, sample_rois, sample_indexes):
    n_img, S, _ = sample_rois.shape
    Hp2, Wp2 = base_pad.shape[1], base_pad.shape[2]
    H, W = Hp2 - 2, Wp2 - 2
    rois = sample_rois.reshape(-1, 4)
    idx = sample_indexes.reshape(-1).astype(jnp.int32)
    cx = jnp.clip(((rois[:, 0] + rois[:, 2]) * 0.5).astype(jnp.int32), 0, W - 1) + 1
    cy = jnp.clip(((rois[:, 1] + rois[:, 3]) * 0.5).astype(jnp.int32), 0, H - 1) + 1
    # TODO(synk): a real RoIPool/RoIAlign would be a scalar-prefetch Pallas
    # gather (PrefetchScalarGridSpec + per-ROI row DMA fused into the head
    # matmul); the synthetic model keeps center-point feature sampling.
    pooled = base_pad[idx, cy, cx, :]                         # (n*S, CP) bf16
    out = head_fused(pooled, prep["fc1_w"], prep["fc1_b"],
                     prep["head_w"], prep["head_b"])          # (n*S, CP) f32
    roi_cls_locs = out[:, :N_CLASS * 4].reshape(n_img, S, N_CLASS * 4)
    roi_scores = out[:, N_CLASS * 4:N_CLASS * 4 + N_CLASS].reshape(n_img, S, N_CLASS)
    return roi_cls_locs, roi_scores


# ------------------------- FasterRCNNTrainer.forward ------------------------
def faster_rcnn_trainer_forward(prep, imgs, bboxes, labels, scale):
    n = imgs.shape[0]
    img_size = (imgs.shape[2], imgs.shape[3])

    base_pad = extract_features(prep, imgs)                           # 'extract'
    rpn_locs, rpn_scores, rois, roi_indices, anchor = rpn_forward(    # 'rpn'
        prep, base_pad, img_size, scale)
    anchor2d = anchor[0]

    # RPN targets (vmapped glue) + one gridded Pallas loss call
    gt_rpn_loc, gt_rpn_label = jax.vmap(
        lambda bb: anchor_target_creator(bb, anchor2d))(bboxes)
    rpn_loc_l, rpn_cls_l = rpn_losses(rpn_locs, rpn_scores, gt_rpn_loc,
                                      gt_rpn_label, RPN_SIGMA)

    # proposal targets (vmapped glue)
    sample_rois, gt_roi_locs, gt_roi_labels = jax.vmap(
        lambda r, bb, lb: proposal_target_creator(r, bb, lb, LOC_NORMALIZE_STD)
    )(rois, bboxes, labels)
    sample_indexes = jnp.broadcast_to(roi_indices[:, :1],
                                      (n, sample_rois.shape[1]))

    roi_cls_locs, roi_scores = head_forward(                          # 'head'
        prep, base_pad, sample_rois, sample_indexes)

    # ROI losses: one gridded Pallas call
    n_sample = roi_cls_locs.shape[1]
    roi_cls_loc = roi_cls_locs.reshape(n, n_sample, -1, 4)
    roi_loc = jnp.take_along_axis(
        roi_cls_loc, gt_roi_labels[:, :, None, None], axis=2)[:, :, 0, :]
    roi_loc_l, roi_cls_l = roi_losses(roi_loc, gt_roi_locs, gt_roi_labels,
                                      roi_scores, ROI_SIGMA)

    rpn_loc_loss = jnp.sum(rpn_loc_l) / n
    rpn_cls_loss = jnp.sum(rpn_cls_l) / n
    roi_loc_loss = jnp.sum(roi_loc_l) / n
    roi_cls_loss = jnp.sum(roi_cls_l) / n
    losses = [rpn_loc_loss, rpn_cls_loss, roi_loc_loss, roi_cls_loss]
    losses = losses + [sum(losses)]
    return losses
# TODO(synk): train_step (optimizer.zero_grad / backward / step) is host-side
# training glue and is intentionally not translated.


# --------------------------------- main -------------------------------------
if __name__ == "__main__":
    key = jax.random.PRNGKey(0)
    k_img, k_par = jax.random.split(key)

    # small shapes: batch=2, channels=4, spatial=16x16, 3 gt boxes per image
    imgs = jax.random.normal(k_img, (2, 4, 16, 16), jnp.float32)      # NCHW
    bboxes = jnp.asarray(
        [[[2.0, 3.0, 9.0, 11.0], [5.0, 1.0, 12.0, 7.0], [0.0, 8.0, 6.0, 15.0]],
         [[1.0, 1.0, 8.0, 8.0], [6.0, 4.0, 14.0, 13.0], [3.0, 9.0, 10.0, 15.0]]],
        jnp.float32)                                                   # (2, 3, 4)
    labels = jnp.asarray([[0, 2, 1], [3, 1, 0]], jnp.int32)            # (2, 3)
    scale = 1.0

    prep = prepare_params(init_params(k_par))

    fwd = jax.jit(faster_rcnn_trainer_forward)
    losses = fwd(prep, imgs, bboxes, labels, scale)
    total = jax.block_until_ready(losses[-1])
    assert bool(jnp.isfinite(total)), "non-finite total loss"
    print("KERNEL_OK")
</pallas_src>

<mosaic_0001>
module attributes {stable_mosaic.version = 11 : i64} {
  func.func @_extract_conv_kernel(%arg0: i32, %arg1: memref<1x18x18x4xbf16, #tpu.memory_space<vmem>>, %arg2: memref<128x128xbf16, #tpu.memory_space<vmem>>, %arg3: memref<1x128xf32, #tpu.memory_space<vmem>>, %arg4: memref<1x18x18x128xbf16, #tpu.memory_space<vmem>>, %arg5: memref<16x16x128xbf16, #tpu.memory_space<vmem>>) attributes {dimension_semantics = [#tpu.dimension_semantics<parallel>], iteration_bounds = array<i64: 2>, scalar_prefetch = 0 : i64, scratch_operands = 1 : i64, tpu.core_type = #tpu.core_type<tc>, window_params = [{transform_indices = @transform_0, window_bounds = array<i64: 1, 18, 18, 4>}, {pipeline_mode = #tpu.pipeline_mode<synchronous>, transform_indices = @transform_1, window_bounds = array<i64: 128, 128>}, {pipeline_mode = #tpu.pipeline_mode<synchronous>, transform_indices = @transform_2, window_bounds = array<i64: 1, 128>}, {transform_indices = @transform_3, window_bounds = array<i64: 1, 18, 18, 128>}]} {
    %cst = arith.constant 0.000000e+00 : bf16
    %0 = vector.broadcast %cst : bf16 to vector<16x16x92xbf16>
    %c0 = arith.constant 0 : index
    %c0_0 = arith.constant 0 : index
    %c36 = arith.constant 36 : index
    %1 = vector.load %arg5[%c0, %c0_0, %c36] : memref<16x16x128xbf16, #tpu.memory_space<vmem>>, vector<16x16x92xbf16>
    tpu.vector_store %arg5[%c0, %c0_0, %c36], %0 {strides = array<i32>} : memref<16x16x128xbf16, #tpu.memory_space<vmem>>, vector<16x16x92xbf16>,
    %c0_1 = arith.constant 0 : index
    %c0_2 = arith.constant 0 : index
    %c0_3 = arith.constant 0 : index
    %c0_4 = arith.constant 0 : index
    %2 = vector.load %arg1[%c0_1, %c0_2, %c0_3, %c0_4] : memref<1x18x18x4xbf16, #tpu.memory_space<vmem>>, vector<1x16x16x4xbf16>
    %3 = vector.shape_cast %2 : vector<1x16x16x4xbf16> to vector<16x16x4xbf16>
    %c0_5 = arith.constant 0 : index
    %c0_6 = arith.constant 0 : index
    %c0_7 = arith.constant 0 : index
    %4 = vector.load %arg5[%c0_5, %c0_6, %c0_7] : memref<16x16x128xbf16, #tpu.memory_space<vmem>>, vector<16x16x4xbf16>
    tpu.vector_store %arg5[%c0_5, %c0_6, %c0_7], %3 {strides = array<i32>} : memref<16x16x128xbf16, #tpu.memory_space<vmem>>, vector<16x16x4xbf16>,
    %c0_8 = arith.constant 0 : index
    %c0_9 = arith.constant 0 : index
    %c1 = arith.constant 1 : index
    %c0_10 = arith.constant 0 : index
    %5 = vector.load %arg1[%c0_8, %c0_9, %c1, %c0_10] : memref<1x18x18x4xbf16, #tpu.memory_space<vmem>>, vector<1x16x16x4xbf16>
    %6 = vector.shape_cast %5 : vector<1x16x16x4xbf16> to vector<16x16x4xbf16>
    %c0_11 = arith.constant 0 : index
    %c0_12 = arith.constant 0 : index
    %c4 = arith.constant 4 : index
    %7 = vector.load %arg5[%c0_11, %c0_12, %c4] : memref<16x16x128xbf16, #tpu.memory_space<vmem>>, vector<16x16x4xbf16>
    tpu.vector_store %arg5[%c0_11, %c0_12, %c4], %6 {strides = array<i32>} : memref<16x16x128xbf16, #tpu.memory_space<vmem>>, vector<16x16x4xbf16>,
    %c0_13 = arith.constant 0 : index
    %c0_14 = arith.constant 0 : index
    %c2 = arith.constant 2 : index
    %c0_15 = arith.constant 0 : index
    %8 = vector.load %arg1[%c0_13, %c0_14, %c2, %c0_15] : memref<1x18x18x4xbf16, #tpu.memory_space<vmem>>, vector<1x16x16x4xbf16>
    %9 = vector.shape_cast %8 : vector<1x16x16x4xbf16> to vector<16x16x4xbf16>
    %c0_16 = arith.constant 0 : index
    %c0_17 = arith.constant 0 : index
    %c8 = arith.constant 8 : index
    %10 = vector.load %arg5[%c0_16, %c0_17, %c8] : memref<16x16x128xbf16, #tpu.memory_space<vmem>>, vector<16x16x4xbf16>
    tpu.vector_store %arg5[%c0_16, %c0_17, %c8], %9 {strides = array<i32>} : memref<16x16x128xbf16, #tpu.memory_space<vmem>>, vector<16x16x4xbf16>,
    %c0_18 = arith.constant 0 : index
    %c1_19 = arith.constant 1 : index
    %c0_20 = arith.constant 0 : index
    %c0_21 = arith.constant 0 : index
    %11 = vector.load %arg1[%c0_18, %c1_19, %c0_20, %c0_21] : memref<1x18x18x4xbf16, #tpu.memory_space<vmem>>, vector<1x16x16x4xbf16>
    %12 = vector.shape_cast %11 : vector<1x16x16x4xbf16> to vector<16x16x4xbf16>
    %c0_22 = arith.constant 0 : index
    %c0_23 = arith.constant 0 : index
    %c12 = arith.constant 12 : index
    %13 = vector.load %arg5[%c0_22, %c0_23, %c12] : memref<16x16x128xbf16, #tpu.memory_space<vmem>>, vector<16x16x4xbf16>
    tpu.vector_store %arg5[%c0_22, %c0_23, %c12], %12 {strides = array<i32>} : memref<16x16x128xbf16, #tpu.memory_space<vmem>>, vector<16x16x4xbf16>,
    %c0_24 = arith.constant 0 : index
    %c1_25 = arith.constant 1 : index
    %c1_26 = arith.constant 1 : index
    %c0_27 = arith.constant 0 : index
    %14 = vector.load %arg1[%c0_24, %c1_25, %c1_26, %c0_27] : memref<1x18x18x4xbf16, #tpu.memory_space<vmem>>, vector<1x16x16x4xbf16>
    %15 = vector.shape_cast %14 : vector<1x16x16x4xbf16> to vector<16x16x4xbf16>
    %c0_28 = arith.constant 0 : index
    %c0_29 = arith.constant 0 : index
    %c16 = arith.constant 16 : index
    %16 = vector.load %arg5[%c0_28, %c0_29, %c16] : memref<16x16x128xbf16, #tpu.memory_space<vmem>>, vector<16x16x4xbf16>
    tpu.vector_store %arg5[%c0_28, %c0_29, %c16], %15 {strides = array<i32>} : memref<16x16x128xbf16, #tpu.memory_space<vmem>>, vector<16x16x4xbf16>,
    %c0_30 = arith.constant 0 : index
    %c1_31 = arith.constant 1 : index
    %c2_32 = arith.constant 2 : index
    %c0_33 = arith.constant 0 : index
    %17 = vector.load %arg1[%c0_30, %c1_31, %c2_32, %c0_33] : memref<1x18x18x4xbf16, #tpu.memory_space<vmem>>, vector<1x16x16x4xbf16>
    %18 = vector.shape_cast %17 : vector<1x16x16x4xbf16> to vector<16x16x4xbf16>
    %c0_34 = arith.constant 0 : index
    %c0_35 = arith.constant 0 : index
    %c20 = arith.constant 20 : index
    %19 = vector.load %arg5[%c0_34, %c0_35, %c20] : memref<16x16x128xbf16, #tpu.memory_space<vmem>>, vector<16x16x4xbf16>
    tpu.vector_store %arg5[%c0_34, %c0_35, %c20], %18 {strides = array<i32>} : memref<16x16x128xbf16, #tpu.memory_space<vmem>>, vector<16x16x4xbf16>,
    %c0_36 = arith.constant 0 : index
    %c2_37 = arith.constant 2 : index
    %c0_38 = arith.constant 0 : index
    %c0_39 = arith.constant 0 : index
    %20 = vector.load %arg1[%c0_36, %c2_37, %c0_38, %c0_39] : memref<1x18x18x4xbf16, #tpu.memory_space<vmem>>, vector<1x16x16x4xbf16>
    %21 = vector.shape_cast %20 : vector<1x16x16x4xbf16> to vector<16x16x4xbf16>
    %c0_40 = arith.constant 0 : index
    %c0_41 = arith.constant 0 : index
    %c24 = arith.constant 24 : index
    %22 = vector.load %arg5[%c0_40, %c0_41, %c24] : memref<16x16x128xbf16, #tpu.memory_space<vmem>>, vector<16x16x4xbf16>
    tpu.vector_store %arg5[%c0_40, %c0_41, %c24], %21 {strides = array<i32>} : memref<16x16x128xbf16, #tpu.memory_space<vmem>>, vector<16x16x4xbf16>,
    %c0_42 = arith.constant 0 : index
    %c2_43 = arith.constant 2 : index
    %c1_44 = arith.constant 1 : index
    %c0_45 = arith.constant 0 : index
    %23 = vector.load %arg1[%c0_42, %c2_43, %c1_44, %c0_45] : memref<1x18x18x4xbf16, #tpu.memory_space<vmem>>, vector<1x16x16x4xbf16>
    %24 = vector.shape_cast %23 : vector<1x16x16x4xbf16> to vector<16x16x4xbf16>
    %c0_46 = arith.constant 0 : index
    %c0_47 = arith.constant 0 : index
    %c28 = arith.constant 28 : index
    %25 = vector.load %arg5[%c0_46, %c0_47, %c28] : memref<16x16x128xbf16, #tpu.memory_space<vmem>>, vector<16x16x4xbf16>
    tpu.vector_store %arg5[%c0_46, %c0_47, %c28], %24 {strides = array<i32>} : memref<16x16x128xbf16, #tpu.memory_space<vmem>>, vector<16x16x4xbf16>,
    %c0_48 = arith.constant 0 : index
    %c2_49 = arith.constant 2 : index
    %c2_50 = arith.constant 2 : index
    %c0_51 = arith.constant 0 : index
    %26 = vector.load %arg1[%c0_48, %c2_49, %c2_50, %c0_51] : memref<1x18x18x4xbf16, #tpu.memory_space<vmem>>, vector<1x16x16x4xbf16>
    %27 = vector.shape_cast %26 : vector<1x16x16x4xbf16> to vector<16x16x4xbf16>
    %c0_52 = arith.constant 0 : index
    %c0_53 = arith.constant 0 : index
    %c32 = arith.constant 32 : index
    %28 = vector.load %arg5[%c0_52, %c0_53, %c32] : memref<16x16x128xbf16, #tpu.memory_space<vmem>>, vector<16x16x4xbf16>
    tpu.vector_store %arg5[%c0_52, %c0_53, %c32], %27 {strides = array<i32>} : memref<16x16x128xbf16, #tpu.memory_space<vmem>>, vector<16x16x4xbf16>,
    %c0_54 = arith.constant 0 : index
    %c0_55 = arith.constant 0 : index
    %c0_56 = arith.constant 0 : index
    %29 = vector.load %arg5[%c0_54, %c0_55, %c0_56] : memref<16x16x128xbf16, #tpu.memory_space<vmem>>, vector<16x16x128xbf16>
    %30 = vector.shape_cast %29 : vector<16x16x128xbf16> to vector<256x128xbf16>
    %c0_57 = arith.constant 0 : index
    %c0_58 = arith.constant 0 : index
    %31 = vector.load %arg2[%c0_57, %c0_58] : memref<128x128xbf16, #tpu.memory_space<vmem>>, vector<128x128xbf16>
    %cst_59 = arith.constant dense<0.000000e+00> : vector<256x128xf32>
    %32 = tpu.matmul %30, %31, %cst_59 {dimension_numbers = #tpu.dot_dimension_numbers<[1], [0], [0], [1], [0, 0, 1, 1], [], []>} : vector<256x128xbf16>, vector<128x128xbf16>, vector<256x128xf32> -> vector<256x128xf32>
    %c0_60 = arith.constant 0 : index
    %c0_61 = arith.constant 0 : index
    %33 = vector.load %arg3[%c0_60, %c0_61] : memref<1x128xf32, #tpu.memory_space<vmem>>, vector<1x128xf32>
    %34 = vector.broadcast %33 : vector<1x128xf32> to vector<256x128xf32>
    %35 = arith.addf %32, %34 : vector<256x128xf32>
    %cst_62 = arith.constant 0.000000e+00 : f32
    %36 = vector.broadcast %cst_62 : f32 to vector<256x128xf32>
    %37 = arith.maximumf %35, %36 : vector<256x128xf32>
    %cst_63 = arith.constant 0.000000e+00 : bf16
    %38 = vector.broadcast %cst_63 : bf16 to vector<18x18x128xbf16>
    %c0_64 = arith.constant 0 : index
    %c0_65 = arith.constant 0 : index
    %c0_66 = arith.constant 0 : index
    %c0_67 = arith.constant 0 : index
    %39 = vector.load %arg4[%c0_64, %c0_65, %c0_66, %c0_67] : memref<1x18x18x128xbf16, #tpu.memory_space<vmem>>, vector<1x18x18x128xbf16>
    %40 = vector.shape_cast %39 : vector<1x18x18x128xbf16> to vector<18x18x128xbf16>
    %41 = vector.shape_cast %38 : vector<18x18x128xbf16> to vector<1x18x18x128xbf16>
    tpu.vector_store %arg4[%c0_64, %c0_65, %c0_66, %c0_67], %41 {strides = array<i32>} : memref<1x18x18x128xbf16, #tpu.memory_space<vmem>>, vector<1x18x18x128xbf16>,
    %42 = vector.shape_cast %37 : vector<256x128xf32> to vector<16x16x128xf32>
    %43 = arith.truncf %42 : vector<16x16x128xf32> to vector<16x16x128xbf16>
    %c0_68 = arith.constant 0 : index
    %c1_69 = arith.constant 1 : index
    %c1_70 = arith.constant 1 : index
    %c0_71 = arith.constant 0 : index
    %44 = vector.load %arg4[%c0_68, %c1_69, %c1_70, %c0_71] : memref<1x18x18x128xbf16, #tpu.memory_space<vmem>>, vector<1x16x16x128xbf16>
    %45 = vector.shape_cast %44 : vector<1x16x16x128xbf16> to vector<16x16x128xbf16>
    %46 = vector.shape_cast %43 : vector<16x16x128xbf16> to vector<1x16x16x128xbf16>
    tpu.vector_store %arg4[%c0_68, %c1_69, %c1_70, %c0_71], %46 {strides = array<i32>} : memref<1x18x18x128xbf16, #tpu.memory_space<vmem>>, vector<1x16x16x128xbf16>,
    return
  }
  func.func @transform_0(%arg0: i32) -> (i32, i32, i32, i32) {
    %c0_i32 = arith.constant 0 : i32
    %c0_i32_0 = arith.constant 0 : i32
    %c0_i32_1 = arith.constant 0 : i32
    %c0_i32_2 = arith.constant 0 : i32
    return %arg0, %c0_i32, %c0_i32_0, %c0_i32_1 : i32, i32, i32, i32
  }
  func.func @transform_1(%arg0: i32) -> (i32, i32) {
    %c0_i32 = arith.constant 0 : i32
    %c0_i32_0 = arith.constant 0 : i32
    %c0_i32_1 = arith.constant 0 : i32
    return %c0_i32, %c0_i32_0 : i32, i32
  }
  func.func @transform_2(%arg0: i32) -> (i32, i32) {
    %c0_i32 = arith.constant 0 : i32
    %c0_i32_0 = arith.constant 0 : i32
    %c0_i32_1 = arith.constant 0 : i32
    return %c0_i32, %c0_i32_0 : i32, i32
  }
  func.func @transform_3(%arg0: i32) -> (i32, i32, i32, i32) {
    %c0_i32 = arith.constant 0 : i32
    %c0_i32_0 = arith.constant 0 : i32
    %c0_i32_1 = arith.constant 0 : i32
    %c0_i32_2 = arith.constant 0 : i32
    return %arg0, %c0_i32, %c0_i32_0, %c0_i32_1 : i32, i32, i32, i32
  }
}

module attributes {stable_mosaic.version = 11 : i64} {
  func.func @_rpn_conv_proj_kernel(%arg0: i32, %arg1: memref<1x18x18x128xbf16, #tpu.memory_space<vmem>>, %arg2: memref<384x128xbf16, #tpu.memory_space<vmem>>, %arg3: memref<1x128xf32, #tpu.memory_space<vmem>>, %arg4: memref<128x128xbf16, #tpu.memory_space<vmem>>, %arg5: memref<1x128xf32, #tpu.memory_space<vmem>>, %arg6: memref<1x256x128xf32, #tpu.memory_space<vmem>>, %arg7: memref<16x16x384xbf16, #tpu.memory_space<vmem>>) attributes {dimension_semantics = [#tpu.dimension_semantics<parallel>], iteration_bounds = array<i64: 2>, scalar_prefetch = 0 : i64, scratch_operands = 1 : i64, tpu.core_type = #tpu.core_type<tc>, window_params = [{transform_indices = @transform_0, window_bounds = array<i64: 1, 18, 18, 128>}, {pipeline_mode = #tpu.pipeline_mode<synchronous>, transform_indices = @transform_1, window_bounds = array<i64: 384, 128>}, {pipeline_mode = #tpu.pipeline_mode<synchronous>, transform_indices = @transform_2, window_bounds = array<i64: 1, 128>}, {pipeline_mode = #tpu.pipeline_mode<synchronous>, transform_indices = @transform_3, window_bounds = array<i64: 128, 128>}, {pipeline_mode = #tpu.pipeline_mode<synchronous>, transform_indices = @transform_4, window_bounds = array<i64: 1, 128>}, {transform_indices = @transform_5, window_bounds = array<i64: 1, 256, 128>}]} {
    %cst = arith.constant 0.000000e+00 : bf16
    %0 = vector.broadcast %cst : bf16 to vector<16x16x96xbf16>
    %c0 = arith.constant 0 : index
    %c0_0 = arith.constant 0 : index
    %c288 = arith.constant 288 : index
    %1 = vector.load %arg7[%c0, %c0_0, %c288] : memref<16x16x384xbf16, #tpu.memory_space<vmem>>, vector<16x16x96xbf16>
    tpu.vector_store %arg7[%c0, %c0_0, %c288], %0 {strides = array<i32>} : memref<16x16x384xbf16, #tpu.memory_space<vmem>>, vector<16x16x96xbf16>,
    %c0_1 = arith.constant 0 : index
    %c0_2 = arith.constant 0 : index
    %c0_3 = arith.constant 0 : index
    %c0_4 = arith.constant 0 : index
    %2 = vector.load %arg1[%c0_1, %c0_2, %c0_3, %c0_4] : memref<1x18x18x128xbf16, #tpu.memory_space<vmem>>, vector<1x16x16x32xbf16>
    %3 = vector.shape_cast %2 : vector<1x16x16x32xbf16> to vector<16x16x32xbf16>
    %c0_5 = arith.constant 0 : index
    %c0_6 = arith.constant 0 : index
    %c0_7 = arith.constant 0 : index
    %4 = vector.load %arg7[%c0_5, %c0_6, %c0_7] : memref<16x16x384xbf16, #tpu.memory_space<vmem>>, vector<16x16x32xbf16>
    tpu.vector_store %arg7[%c0_5, %c0_6, %c0_7], %3 {strides = array<i32>} : memref<16x16x384xbf16, #tpu.memory_space<vmem>>, vector<16x16x32xbf16>,
    %c0_8 = arith.constant 0 : index
    %c0_9 = arith.constant 0 : index
    %c1 = arith.constant 1 : index
    %c0_10 = arith.constant 0 : index
    %5 = vector.load %arg1[%c0_8, %c0_9, %c1, %c0_10] : memref<1x18x18x128xbf16, #tpu.memory_space<vmem>>, vector<1x16x16x32xbf16>
    %6 = vector.shape_cast %5 : vector<1x16x16x32xbf16> to vector<16x16x32xbf16>
    %c0_11 = arith.constant 0 : index
    %c0_12 = arith.constant 0 : index
    %c32 = arith.constant 32 : index
    %7 = vector.load %arg7[%c0_11, %c0_12, %c32] : memref<16x16x384xbf16, #tpu.memory_space<vmem>>, vector<16x16x32xbf16>
    tpu.vector_store %arg7[%c0_11, %c0_12, %c32], %6 {strides = array<i32>} : memref<16x16x384xbf16, #tpu.memory_space<vmem>>, vector<16x16x32xbf16>,
    %c0_13 = arith.constant 0 : index
    %c0_14 = arith.constant 0 : index
    %c2 = arith.constant 2 : index
    %c0_15 = arith.constant 0 : index
    %8 = vector.load %arg1[%c0_13, %c0_14, %c2, %c0_15] : memref<1x18x18x128xbf16, #tpu.memory_space<vmem>>, vector<1x16x16x32xbf16>
    %9 = vector.shape_cast %8 : vector<1x16x16x32xbf16> to vector<16x16x32xbf16>
    %c0_16 = arith.constant 0 : index
    %c0_17 = arith.constant 0 : index
    %c64 = arith.constant 64 : index
    %10 = vector.load %arg7[%c0_16, %c0_17, %c64] : memref<16x16x384xbf16, #tpu.memory_space<vmem>>, vector<16x16x32xbf16>
    tpu.vector_store %arg7[%c0_16, %c0_17, %c64], %9 {strides = array<i32>} : memref<16x16x384xbf16, #tpu.memory_space<vmem>>, vector<16x16x32xbf16>,
    %c0_18 = arith.constant 0 : index
    %c1_19 = arith.constant 1 : index
    %c0_20 = arith.constant 0 : index
    %c0_21 = arith.constant 0 : index
    %11 = vector.load %arg1[%c0_18, %c1_19, %c0_20, %c0_21] : memref<1x18x18x128xbf16, #tpu.memory_space<vmem>>, vector<1x16x16x32xbf16>
    %12 = vector.shape_cast %11 : vector<1x16x16x32xbf16> to vector<16x16x32xbf16>
    %c0_22 = arith.constant 0 : index
    %c0_23 = arith.constant 0 : index
    %c96 = arith.constant 96 : index
    %13 = vector.load %arg7[%c0_22, %c0_23, %c96] : memref<16x16x384xbf16, #tpu.memory_space<vmem>>, vector<16x16x32xbf16>
    tpu.vector_store %arg7[%c0_22, %c0_23, %c96], %12 {strides = array<i32>} : memref<16x16x384xbf16, #tpu.memory_space<vmem>>, vector<16x16x32xbf16>,
    %c0_24 = arith.constant 0 : index
    %c1_25 = arith.constant 1 : index
    %c1_26 = arith.constant 1 : index
    %c0_27 = arith.constant 0 : index
    %14 = vector.load %arg1[%c0_24, %c1_25, %c1_26, %c0_27] : memref<1x18x18x128xbf16, #tpu.memory_space<vmem>>, vector<1x16x16x32xbf16>
    %15 = vector.shape_cast %14 : vector<1x16x16x32xbf16> to vector<16x16x32xbf16>
    %c0_28 = arith.constant 0 : index
    %c0_29 = arith.constant 0 : index
    %c128 = arith.constant 128 : index
    %16 = vector.load %arg7[%c0_28, %c0_29, %c128] : memref<16x16x384xbf16, #tpu.memory_space<vmem>>, vector<16x16x32xbf16>
    tpu.vector_store %arg7[%c0_28, %c0_29, %c128], %15 {strides = array<i32>} : memref<16x16x384xbf16, #tpu.memory_space<vmem>>, vector<16x16x32xbf16>,
    %c0_30 = arith.constant 0 : index
    %c1_31 = arith.constant 1 : index
    %c2_32 = arith.constant 2 : index
    %c0_33 = arith.constant 0 : index
    %17 = vector.load %arg1[%c0_30, %c1_31, %c2_32, %c0_33] : memref<1x18x18x128xbf16, #tpu.memory_space<vmem>>, vector<1x16x16x32xbf16>
    %18 = vector.shape_cast %17 : vector<1x16x16x32xbf16> to vector<16x16x32xbf16>
    %c0_34 = arith.constant 0 : index
    %c0_35 = arith.constant 0 : index
    %c160 = arith.constant 160 : index
    %19 = vector.load %arg7[%c0_34, %c0_35, %c160] : memref<16x16x384xbf16, #tpu.memory_space<vmem>>, vector<16x16x32xbf16>
    tpu.vector_store %arg7[%c0_34, %c0_35, %c160], %18 {strides = array<i32>} : memref<16x16x384xbf16, #tpu.memory_space<vmem>>, vector<16x16x32xbf16>,
    %c0_36 = arith.constant 0 : index
    %c2_37 = arith.constant 2 : index
    %c0_38 = arith.constant 0 : index
    %c0_39 = arith.constant 0 : index
    %20 = vector.load %arg1[%c0_36, %c2_37, %c0_38, %c0_39] : memref<1x18x18x128xbf16, #tpu.memory_space<vmem>>, vector<1x16x16x32xbf16>
    %21 = vector.shape_cast %20 : vector<1x16x16x32xbf16> to vector<16x16x32xbf16>
    %c0_40 = arith.constant 0 : index
    %c0_41 = arith.constant 0 : index
    %c192 = arith.constant 192 : index
    %22 = vector.load %arg7[%c0_40, %c0_41, %c192] : memref<16x16x384xbf16, #tpu.memory_space<vmem>>, vector<16x16x32xbf16>
    tpu.vector_store %arg7[%c0_40, %c0_41, %c192], %21 {strides = array<i32>} : memref<16x16x384xbf16, #tpu.memory_space<vmem>>, vector<16x16x32xbf16>,
    %c0_42 = arith.constant 0 : index
    %c2_43 = arith.constant 2 : index
    %c1_44 = arith.constant 1 : index
    %c0_45 = arith.constant 0 : index
    %23 = vector.load %arg1[%c0_42, %c2_43, %c1_44, %c0_45] : memref<1x18x18x128xbf16, #tpu.memory_space<vmem>>, vector<1x16x16x32xbf16>
    %24 = vector.shape_cast %23 : vector<1x16x16x32xbf16> to vector<16x16x32xbf16>
    %c0_46 = arith.constant 0 : index
    %c0_47 = arith.constant 0 : index
    %c224 = arith.constant 224 : index
    %25 = vector.load %arg7[%c0_46, %c0_47, %c224] : memref<16x16x384xbf16, #tpu.memory_space<vmem>>, vector<16x16x32xbf16>
    tpu.vector_store %arg7[%c0_46, %c0_47, %c224], %24 {strides = array<i32>} : memref<16x16x384xbf16, #tpu.memory_space<vmem>>, vector<16x16x32xbf16>,
    %c0_48 = arith.constant 0 : index
    %c2_49 = arith.constant 2 : index
    %c2_50 = arith.constant 2 : index
    %c0_51 = arith.constant 0 : index
    %26 = vector.load %arg1[%c0_48, %c2_49, %c2_50, %c0_51] : memref<1x18x18x128xbf16, #tpu.memory_space<vmem>>, vector<1x16x16x32xbf16>
    %27 = vector.shape_cast %26 : vector<1x16x16x32xbf16> to vector<16x16x32xbf16>
    %c0_52 = arith.constant 0 : index
    %c0_53 = arith.constant 0 : index
    %c256 = arith.constant 256 : index
    %28 = vector.load %arg7[%c0_52, %c0_53, %c256] : memref<16x16x384xbf16, #tpu.memory_space<vmem>>, vector<16x16x32xbf16>
    tpu.vector_store %arg7[%c0_52, %c0_53, %c256], %27 {strides = array<i32>} : memref<16x16x384xbf16, #tpu.memory_space<vmem>>, vector<16x16x32xbf16>,
    %c0_54 = arith.constant 0 : index
    %c0_55 = arith.constant 0 : index
    %c0_56 = arith.constant 0 : index
    %29 = vector.load %arg7[%c0_54, %c0_55, %c0_56] : memref<16x16x384xbf16, #tpu.memory_space<vmem>>, vector<16x16x384xbf16>
    %30 = vector.shape_cast %29 : vector<16x16x384xbf16> to vector<256x384xbf16>
    %c0_57 = arith.constant 0 : index
    %c0_58 = arith.constant 0 : index
    %31 = vector.load %arg2[%c0_57, %c0_58] : memref<384x128xbf16, #tpu.memory_space<vmem>>, vector<384x128xbf16>
    %cst_59 = arith.constant dense<0.000000e+00> : vector<256x128xf32>
    %32 = tpu.matmul %30, %31, %cst_59 {dimension_numbers = #tpu.dot_dimension_numbers<[1], [0], [0], [1], [0, 0, 1, 1], [], []>} : vector<256x384xbf16>, vector<384x128xbf16>, vector<256x128xf32> -> vector<256x128xf32>
    %c0_60 = arith.constant 0 : index
    %c0_61 = arith.constant 0 : index
    %33 = vector.load %arg3[%c0_60, %c0_61] : memref<1x128xf32, #tpu.memory_space<vmem>>, vector<1x128xf32>
    %34 = vector.broadcast %33 : vector<1x128xf32> to vector<256x128xf32>
    %35 = arith.addf %32, %34 : vector<256x128xf32>
    %cst_62 = arith.constant 0.000000e+00 : f32
    %36 = vector.broadcast %cst_62 : f32 to vector<256x128xf32>
    %37 = arith.maximumf %35, %36 : vector<256x128xf32>
    %38 = arith.truncf %37 : vector<256x128xf32> to vector<256x128xbf16>
    %c0_63 = arith.constant 0 : index
    %c0_64 = arith.constant 0 : index
    %39 = vector.load %arg4[%c0_63, %c0_64] : memref<128x128xbf16, #tpu.memory_space<vmem>>, vector<128x128xbf16>
    %cst_65 = arith.constant dense<0.000000e+00> : vector<256x128xf32>
    %40 = tpu.matmul %38, %39, %cst_65 {dimension_numbers = #tpu.dot_dimension_numbers<[1], [0], [0], [1], [0, 0, 1, 1], [], []>} : vector<256x128xbf16>, vector<128x128xbf16>, vector<256x128xf32> -> vector<256x128xf32>
    %c0_66 = arith.constant 0 : index
    %c0_67 = arith.constant 0 : index
    %41 = vector.load %arg5[%c0_66, %c0_67] : memref<1x128xf32, #tpu.memory_space<vmem>>, vector<1x128xf32>
    %42 = vector.broadcast %41 : vector<1x128xf32> to vector<256x128xf32>
    %43 = arith.addf %40, %42 : vector<256x128xf32>
    %c0_68 = arith.constant 0 : index
    %c0_69 = arith.constant 0 : index
    %c0_70 = arith.constant 0 : index
    %44 = vector.load %arg6[%c0_68, %c0_69, %c0_70] : memref<1x256x128xf32, #tpu.memory_space<vmem>>, vector<1x256x128xf32>
    %45 = vector.shape_cast %44 : vector<1x256x128xf32> to vector<256x128xf32>
    %46 = vector.shape_cast %43 : vector<256x128xf32> to vector<1x256x128xf32>
    tpu.vector_store %arg6[%c0_68, %c0_69, %c0_70], %46 {strides = array<i32>} : memref<1x256x128xf32, #tpu.memory_space<vmem>>, vector<1x256x128xf32>,
    return
  }
  func.func @transform_0(%arg0: i32) -> (i32, i32, i32, i32) {
    %c0_i32 = arith.constant 0 : i32
    %c0_i32_0 = arith.constant 0 : i32
    %c0_i32_1 = arith.constant 0 : i32
    %c0_i32_2 = arith.constant 0 : i32
    return %arg0, %c0_i32, %c0_i32_0, %c0_i32_1 : i32, i32, i32, i32
  }
  func.func @transform_1(%arg0: i32) -> (i32, i32) {
    %c0_i32 = arith.constant 0 : i32
    %c0_i32_0 = arith.constant 0 : i32
    %c0_i32_1 = arith.constant 0 : i32
    return %c0_i32, %c0_i32_0 : i32, i32
  }
  func.func @transform_2(%arg0: i32) -> (i32, i32) {
    %c0_i32 = arith.constant 0 : i32
    %c0_i32_0 = arith.constant 0 : i32
    %c0_i32_1 = arith.constant 0 : i32
    return %c0_i32, %c0_i32_0 : i32, i32
  }
  func.func @transform_3(%arg0: i32) -> (i32, i32) {
    %c0_i32 = arith.constant 0 : i32
    %c0_i32_0 = arith.constant 0 : i32
    %c0_i32_1 = arith.constant 0 : i32
    return %c0_i32, %c0_i32_0 : i32, i32
  }
  func.func @transform_4(%arg0: i32) -> (i32, i32) {
    %c0_i32 = arith.constant 0 : i32
    %c0_i32_0 = arith.constant 0 : i32
    %c0_i32_1 = arith.constant 0 : i32
    return %c0_i32, %c0_i32_0 : i32, i32
  }
  func.func @transform_5(%arg0: i32) -> (i32, i32, i32) {
    %c0_i32 = arith.constant 0 : i32
    %c0_i32_0 = arith.constant 0 : i32
    %c0_i32_1 = arith.constant 0 : i32
    return %arg0, %c0_i32, %c0_i32_0 : i32, i32, i32
  }
}

module attributes {stable_mosaic.version = 11 : i64} {
  func.func @_head_kernel(%arg0: i32, %arg1: memref<128x128xbf16, #tpu.memory_space<vmem>>, %arg2: memref<128x128xbf16, #tpu.memory_space<vmem>>, %arg3: memref<1x128xf32, #tpu.memory_space<vmem>>, %arg4: memref<128x128xbf16, #tpu.memory_space<vmem>>, %arg5: memref<1x128xf32, #tpu.memory_space<vmem>>, %arg6: memref<128x128xf32, #tpu.memory_space<vmem>>) attributes {dimension_semantics = [#tpu.dimension_semantics<parallel>], iteration_bounds = array<i64: 2>, scalar_prefetch = 0 : i64, scratch_operands = 0 : i64, tpu.core_type = #tpu.core_type<tc>, window_params = [{transform_indices = @transform_0, window_bounds = array<i64: 128, 128>}, {pipeline_mode = #tpu.pipeline_mode<synchronous>, transform_indices = @transform_1, window_bounds = array<i64: 128, 128>}, {pipeline_mode = #tpu.pipeline_mode<synchronous>, transform_indices = @transform_2, window_bounds = array<i64: 1, 128>}, {pipeline_mode = #tpu.pipeline_mode<synchronous>, transform_indices = @transform_3, window_bounds = array<i64: 128, 128>}, {pipeline_mode = #tpu.pipeline_mode<synchronous>, transform_indices = @transform_4, window_bounds = array<i64: 1, 128>}, {transform_indices = @transform_5, window_bounds = array<i64: 128, 128>}]} {
    %c0 = arith.constant 0 : index
    %c0_0 = arith.constant 0 : index
    %0 = vector.load %arg1[%c0, %c0_0] : memref<128x128xbf16, #tpu.memory_space<vmem>>, vector<128x128xbf16>
    %c0_1 = arith.constant 0 : index
    %c0_2 = arith.constant 0 : index
    %1 = vector.load %arg2[%c0_1, %c0_2] : memref<128x128xbf16, #tpu.memory_space<vmem>>, vector<128x128xbf16>
    %cst = arith.constant dense<0.000000e+00> : vector<128x128xf32>
    %2 = tpu.matmul %0, %1, %cst {dimension_numbers = #tpu.dot_dimension_numbers<[1], [0], [0], [1], [0, 0, 1, 1], [], []>} : vector<128x128xbf16>, vector<128x128xbf16>, vector<128x128xf32> -> vector<128x128xf32>
    %c0_3 = arith.constant 0 : index
    %c0_4 = arith.constant 0 : index
    %3 = vector.load %arg3[%c0_3, %c0_4] : memref<1x128xf32, #tpu.memory_space<vmem>>, vector<1x128xf32>
    %4 = vector.broadcast %3 : vector<1x128xf32> to vector<128x128xf32>
    %5 = arith.addf %2, %4 : vector<128x128xf32>
    %cst_5 = arith.constant 0.000000e+00 : f32
    %6 = vector.broadcast %cst_5 : f32 to vector<128x128xf32>
    %7 = arith.maximumf %5, %6 : vector<128x128xf32>
    %8 = arith.truncf %7 : vector<128x128xf32> to vector<128x128xbf16>
    %c0_6 = arith.constant 0 : index
    %c0_7 = arith.constant 0 : index
    %9 = vector.load %arg4[%c0_6, %c0_7] : memref<128x128xbf16, #tpu.memory_space<vmem>>, vector<128x128xbf16>
    %cst_8 = arith.constant dense<0.000000e+00> : vector<128x128xf32>
    %10 = tpu.matmul %8, %9, %cst_8 {dimension_numbers = #tpu.dot_dimension_numbers<[1], [0], [0], [1], [0, 0, 1, 1], [], []>} : vector<128x128xbf16>, vector<128x128xbf16>, vector<128x128xf32> -> vector<128x128xf32>
    %c0_9 = arith.constant 0 : index
    %c0_10 = arith.constant 0 : index
    %11 = vector.load %arg5[%c0_9, %c0_10] : memref<1x128xf32, #tpu.memory_space<vmem>>, vector<1x128xf32>
    %12 = vector.broadcast %11 : vector<1x128xf32> to vector<128x128xf32>
    %13 = arith.addf %10, %12 : vector<128x128xf32>
    %c0_11 = arith.constant 0 : index
    %c0_12 = arith.constant 0 : index
    %14 = vector.load %arg6[%c0_11, %c0_12] : memref<128x128xf32, #tpu.memory_space<vmem>>, vector<128x128xf32>
    tpu.vector_store %arg6[%c0_11, %c0_12], %13 {strides = array<i32>} : memref<128x128xf32, #tpu.memory_space<vmem>>, vector<128x128xf32>,
    return
  }
  func.func @transform_0(%arg0: i32) -> (i32, i32) {
    %c0_i32 = arith.constant 0 : i32
    %c0_i32_0 = arith.constant 0 : i32
    return %arg0, %c0_i32 : i32, i32
  }
  func.func @transform_1(%arg0: i32) -> (i32, i32) {
    %c0_i32 = arith.constant 0 : i32
    %c0_i32_0 = arith.constant 0 : i32
    %c0_i32_1 = arith.constant 0 : i32
    return %c0_i32, %c0_i32_0 : i32, i32
  }
  func.func @transform_2(%arg0: i32) -> (i32, i32) {
    %c0_i32 = arith.constant 0 : i32
    %c0_i32_0 = arith.constant 0 : i32
    %c0_i32_1 = arith.constant 0 : i32
    return %c0_i32, %c0_i32_0 : i32, i32
  }
  func.func @transform_3(%arg0: i32) -> (i32, i32) {
    %c0_i32 = arith.constant 0 : i32
    %c0_i32_0 = arith.constant 0 : i32
    %c0_i32_1 = arith.constant 0 : i32
    return %c0_i32, %c0_i32_0 : i32, i32
  }
  func.func @transform_4(%arg0: i32) -> (i32, i32) {
    %c0_i32 = arith.constant 0 : i32
    %c0_i32_0 = arith.constant 0 : i32
    %c0_i32_1 = arith.constant 0 : i32
    return %c0_i32, %c0_i32_0 : i32, i32
  }
  func.func @transform_5(%arg0: i32) -> (i32, i32) {
    %c0_i32 = arith.constant 0 : i32
    %c0_i32_0 = arith.constant 0 : i32
    return %arg0, %c0_i32 : i32, i32
  }
}

module attributes {stable_mosaic.version = 11 : i64} {
  func.func @_roi_loss_kernel(%arg0: i32, %arg1: memref<1x4x128xf32, #tpu.memory_space<vmem>>, %arg2: memref<1x4x128xf32, #tpu.memory_space<vmem>>, %arg3: memref<1x1x128xf32, #tpu.memory_space<vmem>>, %arg4: memref<1x5x128xf32, #tpu.memory_space<vmem>>, %arg5: memref<1x1x128xi32, #tpu.memory_space<vmem>>, %arg6: memref<1x1x128xf32, #tpu.memory_space<vmem>>, %arg7: memref<1x8x128xf32, #tpu.memory_space<vmem>>) attributes {dimension_semantics = [#tpu.dimension_semantics<parallel>], iteration_bounds = array<i64: 2>, scalar_prefetch = 0 : i64, scratch_operands = 0 : i64, tpu.core_type = #tpu.core_type<tc>, window_params = [{transform_indices = @transform_0, window_bounds = array<i64: 1, 4, 128>}, {transform_indices = @transform_1, window_bounds = array<i64: 1, 4, 128>}, {transform_indices = @transform_2, window_bounds = array<i64: 1, 1, 128>}, {transform_indices = @transform_3, window_bounds = array<i64: 1, 5, 128>}, {transform_indices = @transform_4, window_bounds = array<i64: 1, 1, 128>}, {transform_indices = @transform_5, window_bounds = array<i64: 1, 1, 128>}, {transform_indices = @transform_6, window_bounds = array<i64: 1, 8, 128>}]} {
    %c0 = arith.constant 0 : index
    %c0_0 = arith.constant 0 : index
    %c0_1 = arith.constant 0 : index
    %0 = vector.load %arg2[%c0, %c0_0, %c0_1] : memref<1x4x128xf32, #tpu.memory_space<vmem>>, vector<1x4x128xf32>
    %1 = vector.shape_cast %0 : vector<1x4x128xf32> to vector<4x128xf32>
    %c0_2 = arith.constant 0 : index
    %c0_3 = arith.constant 0 : index
    %c0_4 = arith.constant 0 : index
    %2 = vector.load %arg1[%c0_2, %c0_3, %c0_4] : memref<1x4x128xf32, #tpu.memory_space<vmem>>, vector<1x4x128xf32>
    %3 = vector.shape_cast %2 : vector<1x4x128xf32> to vector<4x128xf32>
    %4 = arith.subf %1, %3 : vector<4x128xf32>
    %5 = math.absf %4 : vector<4x128xf32>
    %c0_5 = arith.constant 0 : index
    %c0_6 = arith.constant 0 : index
    %c0_7 = arith.constant 0 : index
    %6 = vector.load %arg3[%c0_5, %c0_6, %c0_7] : memref<1x1x128xf32, #tpu.memory_space<vmem>>, vector<1x1x128xf32>
    %7 = vector.shape_cast %6 : vector<1x1x128xf32> to vector<1x128xf32>
    %cst = arith.constant 1.000000e+00 : f32
    %8 = vector.broadcast %cst : f32 to vector<4x128xf32>
    %9 = arith.cmpf olt, %5, %8 : vector<4x128xf32>
    %cst_8 = arith.constant 5.000000e-01 : f32
    %10 = vector.broadcast %cst_8 : f32 to vector<4x128xf32>
    %11 = arith.mulf %10, %5 : vector<4x128xf32>
    %12 = arith.mulf %11, %5 : vector<4x128xf32>
    %cst_9 = arith.constant 5.000000e-01 : f32
    %13 = vector.broadcast %cst_9 : f32 to vector<4x128xf32>
    %14 = arith.subf %5, %13 : vector<4x128xf32>
    %15 = arith.select %9, %12, %14 : vector<4x128xi1>, vector<4x128xf32>
    %16 = vector.broadcast %7 : vector<1x128xf32> to vector<4x128xf32>
    %17 = arith.mulf %15, %16 : vector<4x128xf32>
    %18 = vector.shape_cast %7 : vector<1x128xf32> to vector<1x1x128xf32>
    %cst_10 = arith.constant dense<0.000000e+00> : vector<1xf32>
    %19 = vector.multi_reduction <add>, %18, %cst_10 [1, 2] : vector<1x1x128xf32> to vector<1xf32>
    %20 = vector.shape_cast %19 : vector<1xf32> to vector<1x1x1xf32>
    %21 = vector.extract %20[0, 0, 0] : f32 from vector<1x1x1xf32>
    %22 = vector.shape_cast %17 : vector<4x128xf32> to vector<1x4x128xf32>
    %cst_11 = arith.constant dense<0.000000e+00> : vector<1xf32>
    %23 = vector.multi_reduction <add>, %22, %cst_11 [1, 2] : vector<1x4x128xf32> to vector<1xf32>
    %24 = vector.shape_cast %23 : vector<1xf32> to vector<1x1x1xf32>
    %25 = vector.extract %24[0, 0, 0] : f32 from vector<1x1x1xf32>
    %cst_12 = arith.constant 1.000000e+00 : f32
    %26 = arith.maximumf %21, %cst_12 : f32
    %27 = arith.divf %25, %26 : f32
    %c0_13 = arith.constant 0 : index
    %c0_14 = arith.constant 0 : index
    %c0_15 = arith.constant 0 : index
    %28 = vector.load %arg4[%c0_13, %c0_14, %c0_15] : memref<1x5x128xf32, #tpu.memory_space<vmem>>, vector<1x5x128xf32>
    %29 = vector.shape_cast %28 : vector<1x5x128xf32> to vector<5x128xf32>
    %c0_16 = arith.constant 0 : index
    %c0_17 = arith.constant 0 : index
    %c0_18 = arith.constant 0 : index
    %30 = vector.load %arg5[%c0_16, %c0_17, %c0_18] : memref<1x1x128xi32, #tpu.memory_space<vmem>>, vector<1x1x128xi32>
    %31 = vector.shape_cast %30 : vector<1x1x128xi32> to vector<1x128xi32>
    %c0_19 = arith.constant 0 : index
    %c0_20 = arith.constant 0 : index
    %c0_21 = arith.constant 0 : index
    %32 = vector.load %arg6[%c0_19, %c0_20, %c0_21] : memref<1x1x128xf32, #tpu.memory_space<vmem>>, vector<1x1x128xf32>
    %33 = vector.shape_cast %32 : vector<1x1x128xf32> to vector<1x128xf32>
    %cst_22 = arith.constant dense<0xFF800000> : vector<128xf32>
    %34 = vector.multi_reduction <maximumf>, %29, %cst_22 [0] : vector<5x128xf32> to vector<128xf32>
    %35 = vector.shape_cast %34 : vector<128xf32> to vector<1x128xf32>
    %36 = vector.broadcast %35 : vector<1x128xf32> to vector<5x128xf32>
    %37 = arith.subf %29, %36 : vector<5x128xf32>
    %38 = math.exp %37 : vector<5x128xf32>
    %cst_23 = arith.constant dense<0.000000e+00> : vector<128xf32>
    %39 = vector.multi_reduction <add>, %38, %cst_23 [0] : vector<5x128xf32> to vector<128xf32>
    %40 = vector.shape_cast %39 : vector<128xf32> to vector<1x128xf32>
    %41 = math.log %40 : vector<1x128xf32>
    %42 = arith.addf %35, %41 : vector<1x128xf32>
    %43 = tpu.iota {dimensions = array<i32: 0>} : vector<5x128xi32>
    %44 = vector.broadcast %31 : vector<1x128xi32> to vector<5x128xi32>
    %45 = arith.cmpi eq, %43, %44 : vector<5x128xi32>
    %46 = arith.extui %45 : vector<5x128xi1> to vector<5x128xi32>
    %47 = arith.sitofp %46 : vector<5x128xi32> to vector<5x128xf32>
    %48 = arith.mulf %29, %47 : vector<5x128xf32>
    %cst_24 = arith.constant dense<0.000000e+00> : vector<128xf32>
    %49 = vector.multi_reduction <add>, %48, %cst_24 [0] : vector<5x128xf32> to vector<128xf32>
    %50 = vector.shape_cast %49 : vector<128xf32> to vector<1x128xf32>
    %51 = arith.subf %42, %50 : vector<1x128xf32>
    %52 = arith.mulf %51, %33 : vector<1x128xf32>
    %53 = vector.shape_cast %52 : vector<1x128xf32> to vector<1x1x128xf32>
    %cst_25 = arith.constant dense<0.000000e+00> : vector<1xf32>
    %54 = vector.multi_reduction <add>, %53, %cst_25 [1, 2] : vector<1x1x128xf32> to vector<1xf32>
    %55 = vector.shape_cast %54 : vector<1xf32> to vector<1x1x1xf32>
    %56 = vector.extract %55[0, 0, 0] : f32 from vector<1x1x1xf32>
    %57 = vector.shape_cast %33 : vector<1x128xf32> to vector<1x1x128xf32>
    %cst_26 = arith.constant dense<0.000000e+00> : vector<1xf32>
    %58 = vector.multi_reduction <add>, %57, %cst_26 [1, 2] : vector<1x1x128xf32> to vector<1xf32>
    %59 = vector.shape_cast %58 : vector<1xf32> to vector<1x1x1xf32>
    %60 = vector.extract %59[0, 0, 0] : f32 from vector<1x1x1xf32>
    %cst_27 = arith.constant 1.000000e+00 : f32
    %61 = arith.maximumf %60, %cst_27 : f32
    %62 = arith.divf %56, %61 : f32
    %63 = tpu.iota {dimensions = array<i32: 1>} : vector<8x128xi32>
    %c0_i32 = arith.constant 0 : i32
    %64 = vector.broadcast %c0_i32 : i32 to vector<8x128xi32>
    %65 = arith.cmpi eq, %63, %64 : vector<8x128xi32>
    %cst_28 = arith.constant 0.000000e+00 : f32
    %66 = vector.broadcast %27 : f32 to vector<8x128xf32>
    %67 = vector.broadcast %cst_28 : f32 to vector<8x128xf32>
    %68 = arith.select %65, %66, %67 : vector<8x128xi1>, vector<8x128xf32>
    %c1_i32 = arith.constant 1 : i32
    %69 = vector.broadcast %c1_i32 : i32 to vector<8x128xi32>
    %70 = arith.cmpi eq, %63, %69 : vector<8x128xi32>
    %cst_29 = arith.constant 0.000000e+00 : f32
    %71 = vector.broadcast %62 : f32 to vector<8x128xf32>
    %72 = vector.broadcast %cst_29 : f32 to vector<8x128xf32>
    %73 = arith.select %70, %71, %72 : vector<8x128xi1>, vector<8x128xf32>
    %74 = arith.addf %68, %73 : vector<8x128xf32>
    %c0_30 = arith.constant 0 : index
    %c0_31 = arith.constant 0 : index
    %c0_32 = arith.constant 0 : index
    %75 = vector.load %arg7[%c0_30, %c0_31, %c0_32] : memref<1x8x128xf32, #tpu.memory_space<vmem>>, vector<1x8x128xf32>
    %76 = vector.shape_cast %75 : vector<1x8x128xf32> to vector<8x128xf32>
    %77 = vector.shape_cast %74 : vector<8x128xf32> to vector<1x8x128xf32>
    tpu.vector_store %arg7[%c0_30, %c0_31, %c0_32], %77 {strides = array<i32>} : memref<1x8x128xf32, #tpu.memory_space<vmem>>, vector<1x8x128xf32>,
    return
  }
  func.func @transform_0(%arg0: i32) -> (i32, i32, i32) {
    %c0_i32 = arith.constant 0 : i32
    %c0_i32_0 = arith.constant 0 : i32
    %c0_i32_1 = arith.constant 0 : i32
    return %arg0, %c0_i32, %c0_i32_0 : i32, i32, i32
  }
  func.func @transform_1(%arg0: i32) -> (i32, i32, i32) {
    %c0_i32 = arith.constant 0 : i32
    %c0_i32_0 = arith.constant 0 : i32
    %c0_i32_1 = arith.constant 0 : i32
    return %arg0, %c0_i32, %c0_i32_0 : i32, i32, i32
  }
  func.func @transform_2(%arg0: i32) -> (i32, i32, i32) {
    %c0_i32 = arith.constant 0 : i32
    %c0_i32_0 = arith.constant 0 : i32
    %c0_i32_1 = arith.constant 0 : i32
    return %arg0, %c0_i32, %c0_i32_0 : i32, i32, i32
  }
  func.func @transform_3(%arg0: i32) -> (i32, i32, i32) {
    %c0_i32 = arith.constant 0 : i32
    %c0_i32_0 = arith.constant 0 : i32
    %c0_i32_1 = arith.constant 0 : i32
    return %arg0, %c0_i32, %c0_i32_0 : i32, i32, i32
  }
  func.func @transform_4(%arg0: i32) -> (i32, i32, i32) {
    %c0_i32 = arith.constant 0 : i32
    %c0_i32_0 = arith.constant 0 : i32
    %c0_i32_1 = arith.constant 0 : i32
    return %arg0, %c0_i32, %c0_i32_0 : i32, i32, i32
  }
  func.func @transform_5(%arg0: i32) -> (i32, i32, i32) {
    %c0_i32 = arith.constant 0 : i32
    %c0_i32_0 = arith.constant 0 : i32
    %c0_i32_1 = arith.constant 0 : i32
    return %arg0, %c0_i32, %c0_i32_0 : i32, i32, i32
  }
  func.func @transform_6(%arg0: i32) -> (i32, i32, i32) {
    %c0_i32 = arith.constant 0 : i32
    %c0_i32_0 = arith.constant 0 : i32
    %c0_i32_1 = arith.constant 0 : i32
    return %arg0, %c0_i32, %c0_i32_0 : i32, i32, i32
  }
}

module attributes {stable_mosaic.version = 11 : i64} {
  func.func @_rpn_loss_kernel(%arg0: i32, %arg1: memref<1x72x128xf32, #tpu.memory_space<vmem>>, %arg2: memref<1x72x128xf32, #tpu.memory_space<vmem>>, %arg3: memref<1x72x128xf32, #tpu.memory_space<vmem>>, %arg4: memref<1x18x128xf32, #tpu.memory_space<vmem>>, %arg5: memref<1x18x128xf32, #tpu.memory_space<vmem>>, %arg6: memref<1x18x128xi32, #tpu.memory_space<vmem>>, %arg7: memref<1x8x128xf32, #tpu.memory_space<vmem>>) attributes {dimension_semantics = [#tpu.dimension_semantics<parallel>], iteration_bounds = array<i64: 2>, scalar_prefetch = 0 : i64, scratch_operands = 0 : i64, tpu.core_type = #tpu.core_type<tc>, window_params = [{transform_indices = @transform_0, window_bounds = array<i64: 1, 72, 128>}, {transform_indices = @transform_1, window_bounds = array<i64: 1, 72, 128>}, {transform_indices = @transform_2, window_bounds = array<i64: 1, 72, 128>}, {transform_indices = @transform_3, window_bounds = array<i64: 1, 18, 128>}, {transform_indices = @transform_4, window_bounds = array<i64: 1, 18, 128>}, {transform_indices = @transform_5, window_bounds = array<i64: 1, 18, 128>}, {transform_indices = @transform_6, window_bounds = array<i64: 1, 8, 128>}]} {
    %c0 = arith.constant 0 : index
    %c0_0 = arith.constant 0 : index
    %c0_1 = arith.constant 0 : index
    %0 = vector.load %arg2[%c0, %c0_0, %c0_1] : memref<1x72x128xf32, #tpu.memory_space<vmem>>, vector<1x72x128xf32>
    %1 = vector.shape_cast %0 : vector<1x72x128xf32> to vector<72x128xf32>
    %c0_2 = arith.constant 0 : index
    %c0_3 = arith.constant 0 : index
    %c0_4 = arith.constant 0 : index
    %2 = vector.load %arg1[%c0_2, %c0_3, %c0_4] : memref<1x72x128xf32, #tpu.memory_space<vmem>>, vector<1x72x128xf32>
    %3 = vector.shape_cast %2 : vector<1x72x128xf32> to vector<72x128xf32>
    %4 = arith.subf %1, %3 : vector<72x128xf32>
    %5 = math.absf %4 : vector<72x128xf32>
    %c0_5 = arith.constant 0 : index
    %c0_6 = arith.constant 0 : index
    %c0_7 = arith.constant 0 : index
    %6 = vector.load %arg3[%c0_5, %c0_6, %c0_7] : memref<1x72x128xf32, #tpu.memory_space<vmem>>, vector<1x72x128xf32>
    %7 = vector.shape_cast %6 : vector<1x72x128xf32> to vector<72x128xf32>
    %cst = arith.constant 1.000000e+00 : f32
    %8 = vector.broadcast %cst : f32 to vector<72x128xf32>
    %9 = arith.cmpf olt, %5, %8 : vector<72x128xf32>
    %cst_8 = arith.constant 5.000000e-01 : f32
    %10 = vector.broadcast %cst_8 : f32 to vector<72x128xf32>
    %11 = arith.mulf %10, %5 : vector<72x128xf32>
    %12 = arith.mulf %11, %5 : vector<72x128xf32>
    %cst_9 = arith.constant 5.000000e-01 : f32
    %13 = vector.broadcast %cst_9 : f32 to vector<72x128xf32>
    %14 = arith.subf %5, %13 : vector<72x128xf32>
    %15 = arith.select %9, %12, %14 : vector<72x128xi1>, vector<72x128xf32>
    %16 = arith.mulf %15, %7 : vector<72x128xf32>
    %17 = vector.shape_cast %7 : vector<72x128xf32> to vector<1x72x128xf32>
    %cst_10 = arith.constant dense<0.000000e+00> : vector<1xf32>
    %18 = vector.multi_reduction <add>, %17, %cst_10 [1, 2] : vector<1x72x128xf32> to vector<1xf32>
    %19 = vector.shape_cast %18 : vector<1xf32> to vector<1x1x1xf32>
    %20 = vector.extract %19[0, 0, 0] : f32 from vector<1x1x1xf32>
    %cst_11 = arith.constant 2.500000e-01 : f32
    %21 = arith.mulf %20, %cst_11 : f32
    %22 = vector.shape_cast %16 : vector<72x128xf32> to vector<1x72x128xf32>
    %cst_12 = arith.constant dense<0.000000e+00> : vector<1xf32>
    %23 = vector.multi_reduction <add>, %22, %cst_12 [1, 2] : vector<1x72x128xf32> to vector<1xf32>
    %24 = vector.shape_cast %23 : vector<1xf32> to vector<1x1x1xf32>
    %25 = vector.extract %24[0, 0, 0] : f32 from vector<1x1x1xf32>
    %cst_13 = arith.constant 1.000000e+00 : f32
    %26 = arith.maximumf %21, %cst_13 : f32
    %27 = arith.divf %25, %26 : f32
    %c0_14 = arith.constant 0 : index
    %c0_15 = arith.constant 0 : index
    %c0_16 = arith.constant 0 : index
    %28 = vector.load %arg4[%c0_14, %c0_15, %c0_16] : memref<1x18x128xf32, #tpu.memory_space<vmem>>, vector<1x18x128xf32>
    %29 = vector.shape_cast %28 : vector<1x18x128xf32> to vector<18x128xf32>
    %c0_17 = arith.constant 0 : index
    %c0_18 = arith.constant 0 : index
    %c0_19 = arith.constant 0 : index
    %30 = vector.load %arg5[%c0_17, %c0_18, %c0_19] : memref<1x18x128xf32, #tpu.memory_space<vmem>>, vector<1x18x128xf32>
    %31 = vector.shape_cast %30 : vector<1x18x128xf32> to vector<18x128xf32>
    %c0_20 = arith.constant 0 : index
    %c0_21 = arith.constant 0 : index
    %c0_22 = arith.constant 0 : index
    %32 = vector.load %arg6[%c0_20, %c0_21, %c0_22] : memref<1x18x128xi32, #tpu.memory_space<vmem>>, vector<1x18x128xi32>
    %33 = vector.shape_cast %32 : vector<1x18x128xi32> to vector<18x128xi32>
    %c0_i32 = arith.constant 0 : i32
    %34 = vector.broadcast %c0_i32 : i32 to vector<18x128xi32>
    %35 = arith.cmpi sge, %33, %34 : vector<18x128xi32>
    %36 = arith.extui %35 : vector<18x128xi1> to vector<18x128xi32>
    %37 = arith.sitofp %36 : vector<18x128xi32> to vector<18x128xf32>
    %38 = arith.maximumf %29, %31 : vector<18x128xf32>
    %39 = arith.subf %29, %38 : vector<18x128xf32>
    %40 = math.exp %39 : vector<18x128xf32>
    %41 = arith.subf %31, %38 : vector<18x128xf32>
    %42 = math.exp %41 : vector<18x128xf32>
    %43 = arith.addf %40, %42 : vector<18x128xf32>
    %44 = math.log %43 : vector<18x128xf32>
    %45 = arith.addf %38, %44 : vector<18x128xf32>
    %c1_i32 = arith.constant 1 : i32
    %46 = vector.broadcast %c1_i32 : i32 to vector<18x128xi32>
    %47 = arith.cmpi eq, %33, %46 : vector<18x128xi32>
    %48 = arith.select %47, %31, %29 : vector<18x128xi1>, vector<18x128xf32>
    %49 = arith.subf %45, %48 : vector<18x128xf32>
    %50 = arith.mulf %49, %37 : vector<18x128xf32>
    %51 = vector.shape_cast %50 : vector<18x128xf32> to vector<1x18x128xf32>
    %cst_23 = arith.constant dense<0.000000e+00> : vector<1xf32>
    %52 = vector.multi_reduction <add>, %51, %cst_23 [1, 2] : vector<1x18x128xf32> to vector<1xf32>
    %53 = vector.shape_cast %52 : vector<1xf32> to vector<1x1x1xf32>
    %54 = vector.extract %53[0, 0, 0] : f32 from vector<1x1x1xf32>
    %55 = vector.shape_cast %37 : vector<18x128xf32> to vector<1x18x128xf32>
    %cst_24 = arith.constant dense<0.000000e+00> : vector<1xf32>
    %56 = vector.multi_reduction <add>, %55, %cst_24 [1, 2] : vector<1x18x128xf32> to vector<1xf32>
    %57 = vector.shape_cast %56 : vector<1xf32> to vector<1x1x1xf32>
    %58 = vector.extract %57[0, 0, 0] : f32 from vector<1x1x1xf32>
    %cst_25 = arith.constant 1.000000e+00 : f32
    %59 = arith.maximumf %58, %cst_25 : f32
    %60 = arith.divf %54, %59 : f32
    %61 = tpu.iota {dimensions = array<i32: 1>} : vector<8x128xi32>
    %c0_i32_26 = arith.constant 0 : i32
    %62 = vector.broadcast %c0_i32_26 : i32 to vector<8x128xi32>
    %63 = arith.cmpi eq, %61, %62 : vector<8x128xi32>
    %cst_27 = arith.constant 0.000000e+00 : f32
    %64 = vector.broadcast %27 : f32 to vector<8x128xf32>
    %65 = vector.broadcast %cst_27 : f32 to vector<8x128xf32>
    %66 = arith.select %63, %64, %65 : vector<8x128xi1>, vector<8x128xf32>
    %c1_i32_28 = arith.constant 1 : i32
    %67 = vector.broadcast %c1_i32_28 : i32 to vector<8x128xi32>
    %68 = arith.cmpi eq, %61, %67 : vector<8x128xi32>
    %cst_29 = arith.constant 0.000000e+00 : f32
    %69 = vector.broadcast %60 : f32 to vector<8x128xf32>
    %70 = vector.broadcast %cst_29 : f32 to vector<8x128xf32>
    %71 = arith.select %68, %69, %70 : vector<8x128xi1>, vector<8x128xf32>
    %72 = arith.addf %66, %71 : vector<8x128xf32>
    %c0_30 = arith.constant 0 : index
    %c0_31 = arith.constant 0 : index
    %c0_32 = arith.constant 0 : index
    %73 = vector.load %arg7[%c0_30, %c0_31, %c0_32] : memref<1x8x128xf32, #tpu.memory_space<vmem>>, vector<1x8x128xf32>
    %74 = vector.shape_cast %73 : vector<1x8x128xf32> to vector<8x128xf32>
    %75 = vector.shape_cast %72 : vector<8x128xf32> to vector<1x8x128xf32>
    tpu.vector_store %arg7[%c0_30, %c0_31, %c0_32], %75 {strides = array<i32>} : memref<1x8x128xf32, #tpu.memory_space<vmem>>, vector<1x8x128xf32>,
    return
  }
  func.func @transform_0(%arg0: i32) -> (i32, i32, i32) {
    %c0_i32 = arith.constant 0 : i32
    %c0_i32_0 = arith.constant 0 : i32
    %c0_i32_1 = arith.constant 0 : i32
    return %arg0, %c0_i32, %c0_i32_0 : i32, i32, i32
  }
  func.func @transform_1(%arg0: i32) -> (i32, i32, i32) {
    %c0_i32 = arith.constant 0 : i32
    %c0_i32_0 = arith.constant 0 : i32
    %c0_i32_1 = arith.constant 0 : i32
    return %arg0, %c0_i32, %c0_i32_0 : i32, i32, i32
  }
  func.func @transform_2(%arg0: i32) -> (i32, i32, i32) {
    %c0_i32 = arith.constant 0 : i32
    %c0_i32_0 = arith.constant 0 : i32
    %c0_i32_1 = arith.constant 0 : i32
    return %arg0, %c0_i32, %c0_i32_0 : i32, i32, i32
  }
  func.func @transform_3(%arg0: i32) -> (i32, i32, i32) {
    %c0_i32 = arith.constant 0 : i32
    %c0_i32_0 = arith.constant 0 : i32
    %c0_i32_1 = arith.constant 0 : i32
    return %arg0, %c0_i32, %c0_i32_0 : i32, i32, i32
  }
  func.func @transform_4(%arg0: i32) -> (i32, i32, i32) {
    %c0_i32 = arith.constant 0 : i32
    %c0_i32_0 = arith.constant 0 : i32
    %c0_i32_1 = arith.constant 0 : i32
    return %arg0, %c0_i32, %c0_i32_0 : i32, i32, i32
  }
  func.func @transform_5(%arg0: i32) -> (i32, i32, i32) {
    %c0_i32 = arith.constant 0 : i32
    %c0_i32_0 = arith.constant 0 : i32
    %c0_i32_1 = arith.constant 0 : i32
    return %arg0, %c0_i32, %c0_i32_0 : i32, i32, i32
  }
  func.func @transform_6(%arg0: i32) -> (i32, i32, i32) {
    %c0_i32 = arith.constant 0 : i32
    %c0_i32_0 = arith.constant 0 : i32
    %c0_i32_1 = arith.constant 0 : i32
    return %arg0, %c0_i32, %c0_i32_0 : i32, i32, i32
  }
}

</mosaic_0001>

<bundles_post_ra>
// kernel: faster_rcnn_trainer_forward.5
= control target key start
LH: loop header
LB: loop body
LE: loop exit
PB: predicated region body
PF: predicated region fallthrough
CT: control target
= control target key end

     0   :  { %8 = vsyncpa [#allocation4], 0  ;;  %s6079_s0 = inlined_call_operand.vmem [shape: bf16[2,18,18,4], index: 0, kind: input, shape index: {}]   ;;  %s6080_s1 = inlined_call_operand.hbm [shape: bf16[128,128], index: 1, kind: input, shape index: {}]   ;;  %s6081_s2 = inlined_call_operand.hbm [shape: f32[1,128], index: 2, kind: input, shape index: {}]   ;;  %s6082_s3 = inlined_call_operand.vmem [shape: bf16[2,18,18,128], index: 3, kind: output, shape index: {}]  }
   0x1   :  { %9 = vsyncpa [#allocation6], 0  ;;  %s4978_s12 = smov 0  }
   0x2 LB: > { %s4984_s13 = sadd.s32 4294967295, %s4943_s12   ;;  %p3836_p0 = scmp.ge.s32.totalorder %s4943_s12, 1  ;;  %s4943_s12 = sphi %s4978_s12, %s15_s12  }
   0x3   : > { %p114_p1 = scmp.lt.s32.totalorder %s4943_s12, 3  ;;  %s4945_s14 = smov [#allocation3]  }
   0x4   : > { %s126_s15 = sshll.u32 %s4945_s14, 4  ;;  %p6083_p3 = scmp.eq.s32.totalorder %s4984_s13, 0  ;;  %s127_s15 = int_to_ptr.vmem [resolvable:$true] %s126_s15 }
   0x5   : > { %p4988_p2 = pnand %p3836_p0, %p114_p1  ;;  %s4946_s17 = smov [#allocation5]  }
   0x6   : > { %s140_s18 = sshll.u32 %s4946_s17, 4  ;;  %s4873_s22 = scalar_lea.hbm %s6080_s1, 1024  ;;  %s5001_s18 = int_to_ptr.vmem [resolvable:$true] %s140_s18 }
   0x7   : > { %s6085_s16 = scalar_select %p4988_p2, 1, 0 }
   0x8   : > { %p4593_p4 = pneg %p4988_p2  ;;  %p4874_p6 = scmp.ne.s32.totalorder %s6080_s1, %s4873_s22 }
   0x9   : > { %p4880_p10 = scmp.lt.u32.totalorder %s4873_s22, %s6080_s1 }
   0xa   : > { %p4997_p5 = pnand %p6083_p3, %p4593_p4 }
   0xc   : > { %p4875_p7 = pneg %p4997_p5 }
   0xe   : > { %p4876_p8 = pnand %p4875_p7, %p4874_p6 }
  0x10   : > { %p4877_p9 = pneg %p4876_p8 }
  0x12   : > { %p4882_p11 = pnand %p4880_p10, %p4877_p9 }
  0x14   : > { %4885 = shalt.err (!%p4882_p11)
}
  0x15   : > { %s4886_s27 = scalar_lea.vmem %s127_s15, 1024  ;;  %p4894_p1 = scmp.lt.s32.totalorder %s127_s15, %s127_s15 }
  0x16   : > { %p4887_p12 = scmp.ne.s32.totalorder %s127_s15, %s4886_s27  ;;  %p4895_p4 = scmp.lt.s32.totalorder %s4886_s27, %s4886_s27 }
  0x18   : > { %p4889_p13 = pnand %p4887_p12, %p4875_p7  ;;  %p4896_p3 = por %p4895_p4, %p4894_p1 }
  0x1a   : > { %p4890_p0 = pneg %p4889_p13 }
  0x1c   : > { %p4897_p2 = pnand %p4896_p3, %p4890_p0 }
  0x1e   : > { %4900 = shalt.err (!%p4897_p2)
}
  0x1f   : > { %s4947_s28 = smov 64   ;;  %s4948_s29 = smov 4  }
  0x20   : > { %4596 = dma.hbm_to_vmem [thread:$0]  (!%p4997_p5), %s6080_s1, 1024, %s127_s15, [#allocation4], %s4947_s28, %s4947_s28, %s4948_s29  }
  0x21   : > { %s4901_s7 = scalar_lea.hbm %s6081_s2, 16 }
  0x22   : > { %p4902_p6 = scmp.ne.s32.totalorder %s6081_s2, %s4901_s7  ;;  %p4908_p8 = scmp.lt.u32.totalorder %s4901_s7, %s6081_s2 }
  0x24   : > { %p4904_p2 = pnand %p4902_p6, %p4875_p7 }
  0x26   : > { %p4905_p3 = pneg %p4904_p2 }
  0x28   : > { %p4910_p9 = pnand %p4908_p8, %p4905_p3 }
  0x2a   : > { %4913 = shalt.err (!%p4910_p9)
}
  0x2b   : > { %s4914_s14 = scalar_lea.vmem %s5001_s18, 16  ;;  %s4921_s15 = scalar_lea.vmem %s5001_s18, 32 }
  0x2c   : > { %p4915_p10 = scmp.ne.s32.totalorder %s5001_s18, %s4914_s14  ;;  %p4922_p13 = scmp.lt.s32.totalorder %s5001_s18, %s5001_s18 }
  0x2d   : > { %p4923_p0 = scmp.lt.s32.totalorder %s4921_s15, %s4914_s14 }
  0x2e   : > { %p4917_p11 = pnand %p4915_p10, %p4875_p7 }
  0x2f   : > { %p4924_p1 = por %p4923_p0, %p4922_p13 }
  0x30   : > { %p4918_p12 = pneg %p4917_p11 }
  0x32   : > { %p4925_p4 = pnand %p4924_p1, %p4918_p12 }
  0x34   : > { %4928 = shalt.err (!%p4925_p4)
}
  0x35   : > { %4599 = dma.hbm_to_vmem [thread:$0]  (!%p4997_p5), %s6081_s2, 16, %s5001_s18, [#allocation6]  }
  0x36   : > { %p6087_p6 = scmp.ne.s32.totalorder %s6085_s16, 0 }
  0x37   : > { %p6088_p7 = scmp.eq.s32.totalorder (!%p6087_p6), %s4984_s13, 0 }
  0x38   : > { %161 = sbr.rel (%p6087_p6) target bundleno = 714 (0x2ca), region = 32 }
  0x3f   : > { %4934 = dma.done.wait (%p6088_p7), [#allocation4], 1024   ;;  %p6089_p2 = pmov %p6088_p7 }
  0x41   : > { %4936 = vsyncadd (%p6089_p2), [#allocation4], 4294966272  ;;  %p6090_p3 = pmov %p6089_p2 }
  0x42   : > { %p6091_p8 = pmov %p6089_p2 }
  0x43   : > { %4938 = dma.done.wait (%p6090_p3), [#allocation6], 16  }
  0x44   : > { %4940 = vsyncadd (%p6091_p8), [#allocation6], 4294967280  ;;  %p189_p9 = scmp.lt.s32.totalorder %s4984_s13, 1  ;;  %vm972_vm0 = vcmask 1046528   ;;  %v4949_v0 = vmov 0   ;;  %s4950_s24 = smov 12  }
  0x45   : > { %vm538_vm1 = vsmask.f32 7424  ;;  %s4951_s25 = smov 8   ;;  %s4952_s26 = smov 4   ;;  %vm200_vm2 = vcmask 1047840   ;;  %vm345_vm3 = vcmask 31744  }
  0x46   : > { %s6099_s13 = smov (!%p189_p9, %s4984_s13), 1  ;;  %s4953_s27 = smov 16   ;;  %vm779_vm4 = vcmask 64544   ;;  %vm1069_vm5 = vcmask 97344   ;;  %202 = vst.msk [vmem:[#allocation2 + $0x8] sm:$0xff] %vm200_vm2, %v4949_v0  ;;  %201 = vst.msk [vmem:[#allocation2] sm:$0xff] %vm200_vm2, %v4949_v0 }
  0x47   : > { %s4584_s18 = smul.u32 216, %s6099_s13  ;;  %s4954_s28 = smov 20   ;;  %203 = vst.msk [vmem:[#allocation2 + $0x10] sm:$0xff] %vm200_vm2, %v4949_v0  ;;  %204 = vst.msk [vmem:[#allocation2 + $0x18] sm:$0xff] %vm200_vm2, %v4949_v0  ;;  %vm1247_vm6 = vcmask 130144   ;;  %vm1680_vm7 = vcmask 162944  }
  0x48   : > { %s4955_s29 = smov 24   ;;  %s4956_s30 = smov 28   ;;  %205 = vst.msk [vmem:[#allocation2 + $0x20] sm:$0xff] %vm200_vm2, %v4949_v0  ;;  %206 = vst.msk [vmem:[#allocation2 + $0x28] sm:$0xff] %vm200_vm2, %v4949_v0  ;;  %vm1969_vm8 = vcmask 195744   ;;  %vm2147_vm9 = vcmask 228544  }
  0x49   : > { %s5066_s21 = scalar_lea.vmem %s6082_s3, %s4584_s18  ;;  %s5071_s13 = scalar_lea.vmem %s6079_s0, %s4584_s18  ;;  %207 = vst.msk [vmem:[#allocation2 + $0x30] sm:$0xff] %vm200_vm2, %v4949_v0  ;;  %208 = vst.msk [vmem:[#allocation2 + $0x38] sm:$0xff] %vm200_vm2, %v4949_v0  ;;  %vm2580_vm10 = vcmask 261344   ;;  %vm2869_vm11 = vcmask 294144   ;;  %vm3640_vm12 = vcmask 1043456  }
  0x4a   : > { %3166 = vst [vmem:[%s5066_s21] sm:$0xf] %v4949_v0  ;;  %3167 = vst [vmem:[%s5066_s21 + $0x4] sm:$0xf] %v4949_v0  ;;  %v4625_v1 = vld [vmem:[%s5071_s13 + $0x6c] sm:$0xff]   ;;  %v4627_v3 = vld [vmem:[%s5071_s13 + $0x60] sm:$0xfe]  }
  0x4b   : > { %3168 = vst [vmem:[%s5066_s21 + $0x8] sm:$0x1] %v4949_v0  ;;  %3217 = vst [vmem:[%s5066_s21 + $0xcc] sm:$0xf] %v4949_v0  ;;  %v4626_v2 = vld [vmem:[%s5071_s13 + $0xc] sm:$0xff]   ;;  %1215 = vrot.lane.b32.xlu1 %v4625_v1, %s4950_s24  ;;  %v997_v6 = vrot.slane %v4627_v3, 1 }
  0x4c   : > { %3218 = vst [vmem:[%s5066_s21 + $0xd0] sm:$0xf] %v4949_v0  ;;  %3219 = vst [vmem:[%s5066_s21 + $0xd4] sm:$0x1] %v4949_v0  ;;  %1199 = vrot.lane.b32.xlu0 %v4626_v2, %s4950_s24  ;;  %v4635_v5 = vld [vmem:[%s5071_s13 + $0xc] sm:$0xff]   ;;  %s4957_s4 = smov 32  }
  0x4d   : > { %3169 = vst [vmem:[%s5066_s21 + $0xc] sm:$0xf] %v4949_v0  ;;  %3170 = vst [vmem:[%s5066_s21 + $0x10] sm:$0xf] %v4949_v0  ;;  %v4629_v8 = vld [vmem:[%s5071_s13] sm:$0xfe]  }
  0x4e   : > { %3171 = vst [vmem:[%s5066_s21 + $0x14] sm:$0x1] %v4949_v0  ;;  %3172 = vst [vmem:[%s5066_s21 + $0x18] sm:$0xf] %v4949_v0  ;;  %v552_v10 = vshrl.u32 %v4635_v5, 16  ;;  %v973_v12 = vrot.slane %v4629_v8, 1 }
  0x4f   : > { %3173 = vst [vmem:[%s5066_s21 + $0x1c] sm:$0xf] %v4949_v0  ;;  %3174 = vst [vmem:[%s5066_s21 + $0x20] sm:$0x1] %v4949_v0  ;;  %v4631_v13 = vld [vmem:[%s5071_s13 + $0x6c] sm:$0xfe]  }
  0x50   : > { %3175 = vst [vmem:[%s5066_s21 + $0x24] sm:$0xf] %v4949_v0  ;;  %3176 = vst [vmem:[%s5066_s21 + $0x28] sm:$0xf] %v4949_v0  ;;  %v554_v14 = vshll.u32 %v4635_v5, 16  ;;  %v1000_v17 = vrot.slane %v4631_v13, 1 }
  0x51   : > { %3177 = vst [vmem:[%s5066_s21 + $0x2c] sm:$0x1] %v4949_v0  ;;  %3178 = vst [vmem:[%s5066_s21 + $0x30] sm:$0xf] %v4949_v0  ;;  %v4633_v21 = vld [vmem:[%s5071_s13 + $0xc] sm:$0xfe]  }
  0x52   : > { %3179 = vst [vmem:[%s5066_s21 + $0x34] sm:$0xf] %v4949_v0  ;;  %3180 = vst [vmem:[%s5066_s21 + $0x38] sm:$0x1] %v4949_v0  ;;  %v556_v18 = vrot.slane %v554_v14, 1  ;;  %v976_v24 = vrot.slane %v4633_v21, 1 }
  0x53   : > { %3181 = vst [vmem:[%s5066_s21 + $0x3c] sm:$0xf] %v4949_v0  ;;  %3182 = vst [vmem:[%s5066_s21 + $0x40] sm:$0xf] %v4949_v0  ;;  %v4637_v27 = vld [vmem:[%s5071_s13] sm:$0xff]   ;;  %v4639_v37 = vld [vmem:[%s5071_s13 + $0x6c] sm:$0xff]  }
  0x54   : > { %3183 = vst [vmem:[%s5066_s21 + $0x44] sm:$0x1] %v4949_v0  ;;  %3184 = vst [vmem:[%s5066_s21 + $0x48] sm:$0xf] %v4949_v0  ;;  %v557_v28 = vor.u32 %v556_v18, %v552_v10  ;;  %v540_v32 = vshrl.u32 %v4637_v27, 16  ;;  %v542_v33 = vshll.u32 %v4637_v27, 16 }
  0x55   : > { %3185 = vst [vmem:[%s5066_s21 + $0x4c] sm:$0xf] %v4949_v0  ;;  %3186 = vst [vmem:[%s5066_s21 + $0x50] sm:$0x1] %v4949_v0  ;;  %v4641_v39 = vld [vmem:[%s5071_s13 + $0x60] sm:$0xff]   ;;  %v648_v43 = vshrl.u32 %v4639_v37, 16 }
  0x56   : > { %3187 = vst [vmem:[%s5066_s21 + $0x54] sm:$0xf] %v4949_v0  ;;  %3188 = vst [vmem:[%s5066_s21 + $0x58] sm:$0xf] %v4949_v0  ;;  %v544_v35 = vrot.slane %v542_v33, 1  ;;  %v650_v44 = vshll.u32 %v4639_v37, 16 }
  0x57   : > { %3189 = vst [vmem:[%s5066_s21 + $0x5c] sm:$0x1] %v4949_v0  ;;  %3190 = vst [vmem:[%s5066_s21 + $0x60] sm:$0xf] %v4949_v0  ;;  %v636_v48 = vshrl.u32 %v4641_v39, 16  ;;  %v638_v49 = vshll.u32 %v4641_v39, 16 }
  0x58   : > { %3191 = vst [vmem:[%s5066_s21 + $0x64] sm:$0xf] %v4949_v0  ;;  %3192 = vst [vmem:[%s5066_s21 + $0x68] sm:$0x1] %v4949_v0  ;;  %v545_v41 = vor.u32 %v544_v35, %v540_v32  ;;  %v652_v50 = vrot.slane %v650_v44, 1  ;;  %v4645_v54 = vld [vmem:[%s5071_s13 + $0x6c] sm:$0xff]  }
  0x59   : > { %3193 = vst [vmem:[%s5066_s21 + $0x6c] sm:$0xf] %v4949_v0  ;;  %3194 = vst [vmem:[%s5066_s21 + $0x70] sm:$0xf] %v4949_v0  ;;  %v640_v53 = vrot.slane %v638_v49, 1  ;;  %v4643_v59 = vld [vmem:[%s5071_s13 + $0x78] sm:$0xff]  }
  0x5a   : > { %3195 = vst [vmem:[%s5066_s21 + $0x74] sm:$0x1] %v4949_v0  ;;  %3196 = vst [vmem:[%s5066_s21 + $0x78] sm:$0xf] %v4949_v0  ;;  %v653_v55 = vor.u32 %v652_v50, %v648_v43  ;;  %v1537_v60 = vshrl.u32 %v4645_v54, 16  ;;  %v1539_v61 = vshll.u32 %v4645_v54, 16 }
  0x5b   : > { %3197 = vst [vmem:[%s5066_s21 + $0x7c] sm:$0xf] %v4949_v0  ;;  %3198 = vst [vmem:[%s5066_s21 + $0x80] sm:$0x1] %v4949_v0  ;;  %v641_v58 = vor.u32 %v640_v53, %v636_v48  ;;  %v4644_v63 = vld [vmem:[%s5071_s13 + $0x18] sm:$0xff]   ;;  %v4647_v2 = vld [vmem:[%s5071_s13 + $0xc] sm:$0xff]  }
  0x5c   : > { %3199 = vst [vmem:[%s5066_s21 + $0x84] sm:$0xf] %v4949_v0  ;;  %3200 = vst [vmem:[%s5066_s21 + $0x88] sm:$0xf] %v4949_v0  ;;  %v1443_v8 = vshll.u32 %v4647_v2, 16  ;;  %v4667_v54 = vld [vmem:[%s5071_s13 + $0x18] sm:$0xff]  }
  0x5d   : > { %3201 = vst [vmem:[%s5066_s21 + $0x8c] sm:$0x1] %v4949_v0  ;;  %3202 = vst [vmem:[%s5066_s21 + $0x90] sm:$0xf] %v4949_v0  ;;  %v4659_v48 = vld [vmem:[%s5071_s13 + $0x18] sm:$0xfe]  }
  0x5e   : > { %3203 = vst [vmem:[%s5066_s21 + $0x94] sm:$0xf] %v4949_v0  ;;  %3204 = vst [vmem:[%s5066_s21 + $0x98] sm:$0x1] %v4949_v0  ;;  %v1445_v13 = vrot.slane %v1443_v8, 1  ;;  %v1876_v50 = vrot.slane %v4659_v48, 1 }
  0x5f   : > { %3205 = vst [vmem:[%s5066_s21 + $0x9c] sm:$0xf] %v4949_v0  ;;  %3206 = vst [vmem:[%s5066_s21 + $0xa0] sm:$0xf] %v4949_v0  ;;  %vm3641_vm13 = vsmask.f32 7938 }
  0x60   : > { %3207 = vst [vmem:[%s5066_s21 + $0xa4] sm:$0x1] %v4949_v0  ;;  %3208 = vst [vmem:[%s5066_s21 + $0xa8] sm:$0xf] %v4949_v0  ;;  %vm3316_vm14 = vsmask.f32 256 }
  0x61   : > { %3209 = vst [vmem:[%s5066_s21 + $0xac] sm:$0xf] %v4949_v0  ;;  %3210 = vst [vmem:[%s5066_s21 + $0xb0] sm:$0x1] %v4949_v0  ;;  %vm3317_vm15 = vsmask.f32 4368 }
  0x62   : > { %3211 = vst [vmem:[%s5066_s21 + $0xb4] sm:$0xf] %v4949_v0  ;;  %3212 = vst [vmem:[%s5066_s21 + $0xb8] sm:$0xf] %v4949_v0 }
  0x63   : > { %3213 = vst [vmem:[%s5066_s21 + $0xbc] sm:$0x1] %v4949_v0  ;;  %3214 = vst [vmem:[%s5066_s21 + $0xc0] sm:$0xf] %v4949_v0 }
  0x64   : > { %3215 = vst [vmem:[%s5066_s21 + $0xc4] sm:$0xf] %v4949_v0  ;;  %3216 = vst [vmem:[%s5066_s21 + $0xc8] sm:$0x1] %v4949_v0 }
  0x65   : > { %v4628_v4 = vld [vmem:[%s5071_s13 + $0x68] ss:$0 sps:$4 sm:$0x11]   ;;  %v4632_v16 = vld [vmem:[%s5071_s13 + $0x74] ss:$0 sps:$4 sm:$0x11]  }
  0x66   : > { %v998_v7 = vrot.slane %v4628_v4, 1  ;;  %v4630_v9 = vld [vmem:[%s5071_s13 + $0x8] ss:$0 sps:$4 sm:$0x11]   ;;  %v1001_v20 = vrot.slane %v4632_v16, 1  ;;  %v1541_v4 = vrot.slane %v1539_v61, 1 }
  0x67   : > { %v974_v15 = vrot.slane %v4630_v9, 1  ;;  %v4634_v22 = vld [vmem:[%s5071_s13 + $0x14] ss:$0 sps:$4 sm:$0x11]   ;;  %v4649_v9 = vld [vmem:[%s5071_s13 + $0x78] sm:$0xff]   ;;  %v2341_v61 = vshrl.u32 %v4667_v54, 16 }
  0x68   : > { %v999_v11 = vsel %vm972_vm0, %v997_v6, %v998_v7  ;;  %v1002_v23 = vsel %vm972_vm0, %v1000_v17, %v1001_v20  ;;  %v977_v25 = vrot.slane %v4634_v22, 1  ;;  %v4636_v26 = vld [vmem:[%s5071_s13 + $0x14] ss:$0 sps:$4 sm:$0x11]   ;;  %v1441_v7 = vshrl.u32 %v4647_v2, 16  ;;  %v4651_v16 = vld [vmem:[%s5071_s13 + $0x18] sm:$0xff]  }
  0x69   : > { %1037 = vrot.lane.b32.xlu1 %v999_v11, %s4951_s25  ;;  %v975_v19 = vsel %vm972_vm0, %v973_v12, %v974_v15  ;;  %v559_v30 = vshll.u32 %v4636_v26, 16  ;;  %v4638_v31 = vld [vmem:[%s5071_s13 + $0x8] ss:$0 sps:$4 sm:$0x11]   ;;  %v1542_v10 = vor.u32 %v1541_v4, %v1537_v60  ;;  %v1549_v14 = vshrl.u32 %v4649_v9, 16  ;;  %209 = vst.msk [vmem:[#allocation2 + $0x40] sm:$0xff] %vm200_vm2, %v4949_v0 }
  0x6a   : > { %1021 = vrot.lane.b32.xlu0 %v975_v19, %s4951_s25  ;;  %v978_v29 = vsel %vm972_vm0, %v976_v24, %v977_v25  ;;  %v547_v36 = vshll.u32 %v4638_v31, 16  ;;  %v4640_v38 = vld [vmem:[%s5071_s13 + $0x74] ss:$0 sps:$4 sm:$0x11]   ;;  %v1551_v15 = vshll.u32 %v4649_v9, 16  ;;  %v1446_v20 = vor.u32 %v1445_v13, %v1441_v7  ;;  %v4664_v4 = vld [vmem:[%s5071_s13 + $0x24] sm:$0xff]  }
  0x6b   : > { %v561_v34 = vrot.slane %v559_v30, 1  ;;  %v655_v45 = vshll.u32 %v4640_v38, 16  ;;  %v4642_v46 = vld [vmem:[%s5071_s13 + $0x68] ss:$0 sps:$4 sm:$0x11]   ;;  %v1455_v24 = vshll.u32 %v4651_v16, 16 }
  0x6c   : > { %v549_v42 = vrot.slane %v547_v36, 1  ;;  %v643_v52 = vshll.u32 %v4642_v46, 16  ;;  %v4646_v57 = vld [vmem:[%s5071_s13 + $0x74] ss:$0 sps:$4 sm:$0x11]   ;;  %v1553_v21 = vrot.slane %v1551_v15, 1 }
  0x6d   : > { %1039 = vrot.lane.b32.xlu1 %v1002_v23, %s4951_s25  ;;  %v562_v40 = vsel %vm538_vm1, %v557_v28, %v561_v34  ;;  %v657_v51 = vrot.slane %v655_v45, 1  ;;  %v1544_v1 = vshll.u32 %v4646_v57, 16  ;;  %v4648_v5 = vld [vmem:[%s5071_s13 + $0x14] ss:$0 sps:$4 sm:$0x11]   ;;  %v1453_v23 = vshrl.u32 %v4651_v16, 16 }
  0x6e   : > { %1023 = vrot.lane.b32.xlu0 %v978_v29, %s4951_s25  ;;  %v550_v47 = vsel %vm538_vm1, %v545_v41, %v549_v42  ;;  %v645_v56 = vrot.slane %v643_v52, 1  ;;  %v1448_v11 = vshll.u32 %v4648_v5, 16  ;;  %v4650_v12 = vld [vmem:[%s5071_s13 + $0x80] ss:$0 sps:$4 sm:$0x11]   ;;  %v1554_v27 = vor.u32 %v1553_v21, %v1549_v14  ;;  %v4662_v57 = vld [vmem:[%s5071_s13 + $0x18] sm:$0xff]  }
  0x6f   : > { %v658_v62 = vsel %vm538_vm1, %v653_v55, %v657_v51  ;;  %v1546_v6 = vrot.slane %v1544_v1, 1  ;;  %v1556_v19 = vshll.u32 %v4650_v12, 16  ;;  %v4652_v22 = vld [vmem:[%s5071_s13 + $0x20] ss:$0 sps:$4 sm:$0x11]   ;;  %v1457_v28 = vrot.slane %v1455_v24, 1 }
  0x70   : > { %v646_v3 = vsel %vm538_vm1, %v641_v58, %v645_v56  ;;  %v1450_v18 = vrot.slane %v1448_v11, 1  ;;  %v1460_v29 = vshll.u32 %v4652_v22, 16  ;;  %v4653_v30 = vld [vmem:[%s5071_s13 + $0x6c] sm:$0xfe]   ;;  %v4657_v42 = vld [vmem:[%s5071_s13 + $0x78] sm:$0xfe]  }
  0x71   : > { %733 = vrot.lane.b32.xlu1 %v562_v40, %s4952_s26  ;;  %v1547_v17 = vsel %vm538_vm1, %v1542_v10, %v1546_v6  ;;  %v1558_v25 = vrot.slane %v1556_v19, 1  ;;  %v4654_v31 = vld [vmem:[%s5071_s13 + $0x74] ss:$0 sps:$4 sm:$0x11]   ;;  %v1458_v33 = vor.u32 %v1457_v28, %v1453_v23  ;;  %v1897_v35 = vrot.slane %v4653_v30, 1  ;;  %v4665_v51 = vld [vmem:[%s5071_s13 + $0x78] sm:$0xff]  }
  0x72   : > { %731 = vrot.lane.b32.xlu0 %v550_v47, %s4952_s26  ;;  %v1451_v26 = vsel %vm538_vm1, %v1446_v20, %v1450_v18  ;;  %v1462_v34 = vrot.slane %v1460_v29, 1  ;;  %v4655_v36 = vld [vmem:[%s5071_s13 + $0xc] sm:$0xfe]   ;;  %v1898_v37 = vrot.slane %v4654_v31, 1  ;;  %v1900_v46 = vrot.slane %v4657_v42, 1  ;;  %v4661_v55 = vld [vmem:[%s5071_s13 + $0x78] sm:$0xff]  }
  0x73   : > { %v1559_v32 = vsel %vm538_vm1, %v1554_v27, %v1558_v25  ;;  %v4656_v38 = vld [vmem:[%s5071_s13 + $0x14] ss:$0 sps:$4 sm:$0x11]   ;;  %v1873_v40 = vrot.slane %v4655_v36, 1  ;;  %v2437_v58 = vshrl.u32 %v4665_v51, 16  ;;  %v4663_v1 = vld [vmem:[%s5071_s13 + $0x84] sm:$0xff]  }
  0x74   : > { %v1463_v39 = vsel %vm538_vm1, %v1458_v33, %v1462_v34  ;;  %v1874_v41 = vrot.slane %v4656_v38, 1  ;;  %v4658_v43 = vld [vmem:[%s5071_s13 + $0x80] ss:$0 sps:$4 sm:$0x11]   ;;  %v1899_v44 = vsel %vm972_vm0, %v1897_v35, %v1898_v37  ;;  %v4669_v6 = vld [vmem:[%s5071_s13 + $0x84] sm:$0xff]   ;;  %v4679_v35 = vld [vmem:[%s5071_s13 + $0x18] sm:$0xff]  }
  0x75   : > { %749 = vrot.lane.b32.xlu1 %v658_v62, %s4952_s26  ;;  %v1901_v47 = vrot.slane %v4658_v43, 1  ;;  %v4660_v49 = vld [vmem:[%s5071_s13 + $0x20] ss:$0 sps:$4 sm:$0x11]   ;;  %v4671_v10 = vld [vmem:[%s5071_s13 + $0x24] sm:$0xff]   ;;  %v2449_v12 = vshrl.u32 %v4669_v6, 16 }
  0x76   : > { %747 = vrot.lane.b32.xlu0 %v646_v3, %s4952_s26  ;;  %v1875_v45 = vsel %vm972_vm0, %v1873_v40, %v1874_v41  ;;  %v1877_v53 = vrot.slane %v4660_v49, 1  ;;  %v4666_v60 = vld [vmem:[%s5071_s13 + $0x80] ss:$0 sps:$4 sm:$0x11]   ;;  %v2451_v13 = vshll.u32 %v4669_v6, 16  ;;  %v2353_v20 = vshrl.u32 %v4671_v10, 16 }
  0x77   : > { %v1902_v52 = vsel %vm972_vm0, %v1900_v46, %v1901_v47  ;;  %v2444_v2 = vshll.u32 %v4666_v60, 16  ;;  %v4668_v3 = vld [vmem:[%s5071_s13 + $0x20] ss:$0 sps:$4 sm:$0x11]   ;;  %v2355_v21 = vshll.u32 %v4671_v10, 16  ;;  %v564_v49 = vshrl.u32 %v4679_v35, 16 }
  0x78   : > { %v1878_v56 = vsel %vm972_vm0, %v1876_v50, %v1877_v53  ;;  %v2348_v8 = vshll.u32 %v4668_v3, 16  ;;  %v4670_v9 = vld [vmem:[%s5071_s13 + $0x8c] ss:$0 sps:$4 sm:$0x11]   ;;  %v2453_v18 = vrot.slane %v2451_v13, 1  ;;  %v566_v50 = vshll.u32 %v4679_v35, 16 }
  0x79   : > { %1217 = vrot.lane.b32.xlu1 %v4643_v59, %s4950_s24  ;;  %v2439_v59 = vshll.u32 %v4665_v51, 16  ;;  %v2446_v7 = vrot.slane %v2444_v2, 1  ;;  %v2456_v16 = vshll.u32 %v4670_v9, 16  ;;  %v4672_v19 = vld [vmem:[%s5071_s13 + $0x2c] ss:$0 sps:$4 sm:$0x11]  }
  0x7a   : > { %1201 = vrot.lane.b32.xlu0 %v4644_v63, %s4950_s24  ;;  %v2343_v63 = vshll.u32 %v4667_v54, 16  ;;  %v2350_v15 = vrot.slane %v2348_v8, 1  ;;  %v2454_v25 = vor.u32 %v2453_v18, %v2449_v12  ;;  %v2360_v27 = vshll.u32 %v4672_v19, 16  ;;  %v4673_v28 = vld [vmem:[%s5071_s13 + $0x78] sm:$0xfe]   ;;  %v4687_v60 = vld [vmem:[%s5071_s13 + $0x24] sm:$0xff]  }
  0x7b   : > { %v2441_v62 = vrot.slane %v2439_v59, 1  ;;  %v2458_v22 = vrot.slane %v2456_v16, 1  ;;  %v4674_v30 = vld [vmem:[%s5071_s13 + $0x80] ss:$0 sps:$4 sm:$0x11]   ;;  %v2797_v34 = vrot.slane %v4673_v28, 1 }
  0x7c   : > { %v2345_v5 = vrot.slane %v2343_v63, 1  ;;  %v2362_v33 = vrot.slane %v2360_v27, 1  ;;  %v2798_v36 = vrot.slane %v4674_v30, 1  ;;  %v4675_v37 = vld [vmem:[%s5071_s13 + $0x18] sm:$0xfe]   ;;  %210 = vst.msk [vmem:[#allocation2 + $0x48] sm:$0xff] %vm200_vm2, %v4949_v0 }
  0x7d   : > { %1648 = vrot.lane.b32.xlu1 %v1547_v17, %s4953_s27  ;;  %v2442_v11 = vor.u32 %v2441_v62, %v2437_v58  ;;  %v4677_v17 = vld [vmem:[%s5071_s13 + $0x78] sm:$0xff]   ;;  %v4676_v38 = vld [vmem:[%s5071_s13 + $0x20] ss:$0 sps:$4 sm:$0x11]   ;;  %v2773_v41 = vrot.slane %v4675_v37, 1  ;;  %211 = vst.msk [vmem:[#allocation2 + $0x50] sm:$0xff] %vm200_vm2, %v4949_v0 }
  0x7e   : > { %1632 = vrot.lane.b32.xlu0 %v1451_v26, %s4953_s27  ;;  %v2346_v14 = vor.u32 %v2345_v5, %v2341_v61  ;;  %v660_v23 = vshrl.u32 %v4677_v17, 16  ;;  %v2357_v26 = vrot.slane %v2355_v21, 1  ;;  %v662_v31 = vshll.u32 %v4677_v17, 16  ;;  %v4678_v43 = vld [vmem:[%s5071_s13 + $0x80] ss:$0 sps:$4 sm:$0x11]  }
  0x7f   : > { %v2447_v24 = vsel %vm538_vm1, %v2442_v11, %v2446_v7  ;;  %v2774_v42 = vrot.slane %v4676_v38, 1  ;;  %v4680_v46 = vld [vmem:[%s5071_s13 + $0x20] ss:$0 sps:$4 sm:$0x11]   ;;  %v2799_v47 = vsel %vm972_vm0, %v2797_v34, %v2798_v36  ;;  %v4681_v54 = vld [vmem:[%s5071_s13 + $0x84] sm:$0xfe]  }
  0x80   : > { %v2351_v29 = vsel %vm538_vm1, %v2346_v14, %v2350_v15  ;;  %v571_v53 = vshll.u32 %v4680_v46, 16  ;;  %v2800_v59 = vrot.slane %v4681_v54, 1  ;;  %v4684_v2 = vld [vmem:[%s5071_s13 + $0x2c] ss:$0 sps:$4 sm:$0x11]   ;;  %v576_v14 = vshrl.u32 %v4687_v60, 16 }
  0x81   : > { %1650 = vrot.lane.b32.xlu1 %v1559_v32, %s4953_s27  ;;  %v2358_v32 = vor.u32 %v2357_v26, %v2353_v20  ;;  %v2775_v51 = vsel %vm972_vm0, %v2773_v41, %v2774_v42  ;;  %v2777_v5 = vrot.slane %v4684_v2, 1  ;;  %v4686_v6 = vld [vmem:[%s5071_s13 + $0x8c] ss:$0 sps:$4 sm:$0x11]   ;;  %v578_v15 = vshll.u32 %v4687_v60, 16  ;;  %v4697_v46 = vld [vmem:[%s5071_s13 + $0x84] sm:$0xff]  }
  0x82   : > { %1634 = vrot.lane.b32.xlu0 %v1463_v39, %s4953_s27  ;;  %v2459_v39 = vsel %vm538_vm1, %v2454_v25, %v2458_v22  ;;  %v573_v58 = vrot.slane %v571_v53, 1  ;;  %v679_v10 = vshll.u32 %v4686_v6, 16  ;;  %v4688_v11 = vld [vmem:[%s5071_s13 + $0x2c] ss:$0 sps:$4 sm:$0x11]   ;;  %v4699_v54 = vld [vmem:[%s5071_s13 + $0x90] sm:$0xff]  }
  0x83   : > { %v2363_v40 = vsel %vm538_vm1, %v2358_v32, %v2362_v33  ;;  %v583_v17 = vshll.u32 %v4688_v11, 16  ;;  %v580_v19 = vrot.slane %v578_v15, 1  ;;  %v4689_v20 = vld [vmem:[%s5071_s13 + $0x78] sm:$0xfe]   ;;  %v4693_v34 = vld [vmem:[%s5071_s13 + $0x84] sm:$0xfe]  }
  0x84   : > { %v681_v16 = vrot.slane %v679_v10, 1  ;;  %v4690_v21 = vld [vmem:[%s5071_s13 + $0x80] ss:$0 sps:$4 sm:$0x11]   ;;  %v1003_v25 = vrot.slane %v4689_v20, 1  ;;  %v1006_v37 = vrot.slane %v4693_v34, 1 }
  0x85   : > { %1937 = vrot.lane.b32.xlu1 %v1899_v44, %s4954_s28  ;;  %v664_v44 = vrot.slane %v662_v31, 1  ;;  %v585_v22 = vrot.slane %v583_v17, 1  ;;  %v1004_v26 = vrot.slane %v4690_v21, 1  ;;  %v4691_v27 = vld [vmem:[%s5071_s13 + $0x18] sm:$0xfe]   ;;  %v4701_v31 = vld [vmem:[%s5071_s13 + $0x84] sm:$0xff]  }
  0x86   : > { %1921 = vrot.lane.b32.xlu0 %v1875_v45, %s4954_s28  ;;  %v667_v45 = vshll.u32 %v4678_v43, 16  ;;  %v4692_v28 = vld [vmem:[%s5071_s13 + $0x20] ss:$0 sps:$4 sm:$0x11]   ;;  %v979_v30 = vrot.slane %v4691_v27, 1  ;;  %v1561_v41 = vshrl.u32 %v4701_v31, 16 }
  0x87   : > { %v665_v48 = vor.u32 %v664_v44, %v660_v23  ;;  %v1005_v32 = vsel %vm972_vm0, %v1003_v25, %v1004_v26  ;;  %v980_v33 = vrot.slane %v4692_v28, 1  ;;  %v4694_v35 = vld [vmem:[%s5071_s13 + $0x8c] ss:$0 sps:$4 sm:$0x11]   ;;  %v1563_v44 = vshll.u32 %v4701_v31, 16  ;;  %v4721_v28 = vld [vmem:[%s5071_s13 + $0x90] sm:$0xff]  }
  0x88   : > { %v1007_v38 = vrot.slane %v4694_v35, 1  ;;  %v4709_v17 = vld [vmem:[%s5071_s13 + $0x84] sm:$0xfe]   ;;  %v4712_v25 = vld [vmem:[%s5071_s13 + $0x2c] ss:$0 sps:$4 sm:$0x11]  }
  0x89   : > { %1939 = vrot.lane.b32.xlu1 %v1902_v52, %s4954_s28  ;;  %v669_v52 = vrot.slane %v667_v45, 1  ;;  %v981_v36 = vsel %vm972_vm0, %v979_v30, %v980_v33  ;;  %v1903_v21 = vrot.slane %v4709_v17, 1  ;;  %v4713_v30 = vld [vmem:[%s5071_s13 + $0x90] sm:$0xfe]   ;;  %212 = vst.msk [vmem:[#allocation2 + $0x58] sm:$0xff] %vm200_vm2, %v4949_v0  ;;  %213 = vst.msk [vmem:[#allocation2 + $0x60] sm:$0xff] %vm200_vm2, %v4949_v0 }
  0x8a   : > { %1923 = vrot.lane.b32.xlu0 %v1878_v56, %s4954_s28  ;;  %v568_v56 = vrot.slane %v566_v50, 1  ;;  %v1008_v42 = vsel %vm972_vm0, %v1006_v37, %v1007_v38  ;;  %v1565_v50 = vrot.slane %v1563_v44, 1  ;;  %v4714_v31 = vld [vmem:[%s5071_s13 + $0x98] ss:$0 sps:$4 sm:$0x11]   ;;  %v1906_v33 = vrot.slane %v4713_v30, 1 }
  0x8b   : > { %v670_v61 = vsel %vm538_vm1, %v665_v48, %v669_v52  ;;  %v4698_v48 = vld [vmem:[%s5071_s13 + $0x24] sm:$0xff]   ;;  %v4702_v52 = vld [vmem:[%s5071_s13 + $0x8c] ss:$0 sps:$4 sm:$0x11]   ;;  %v1907_v34 = vrot.slane %v4714_v31, 1  ;;  %v2461_v38 = vshrl.u32 %v4721_v28, 16 }
  0x8c   : > { %v569_v62 = vor.u32 %v568_v56, %v564_v49  ;;  %v1568_v56 = vshll.u32 %v4702_v52, 16  ;;  %v1566_v60 = vor.u32 %v1565_v50, %v1561_v41  ;;  %v4715_v35 = vld [vmem:[%s5071_s13 + $0x30] sm:$0xfe]   ;;  %v4716_v37 = vld [vmem:[%s5071_s13 + $0x38] ss:$0 sps:$4 sm:$0x11]  }
  0x8d   : > { %2115 = vrot.lane.b32.xlu1 %v4661_v55, %s4955_s29  ;;  %v4685_v55 = vld [vmem:[%s5071_s13 + $0x84] sm:$0xff]   ;;  %v1883_v41 = vrot.slane %v4716_v37, 1  ;;  %v4724_v52 = vld [vmem:[%s5071_s13 + $0x38] ss:$0 sps:$4 sm:$0x11]   ;;  %214 = vst.msk [vmem:[#allocation2 + $0x68] sm:$0xff] %vm200_vm2, %v4949_v0 }
  0x8e   : > { %2099 = vrot.lane.b32.xlu0 %v4662_v57, %s4955_s29  ;;  %v4682_v57 = vld [vmem:[%s5071_s13 + $0x8c] ss:$0 sps:$4 sm:$0x11]   ;;  %v574_v3 = vsel %vm538_vm1, %v569_v62, %v573_v58  ;;  %v672_v7 = vshrl.u32 %v4685_v55, 16  ;;  %v674_v8 = vshll.u32 %v4685_v55, 16  ;;  %v4700_v55 = vld [vmem:[%s5071_s13 + $0x30] sm:$0xff]  }
  0x8f   : > { %v2801_v63 = vrot.slane %v4682_v57, 1  ;;  %v4704_v57 = vld [vmem:[%s5071_s13 + $0x2c] ss:$0 sps:$4 sm:$0x11]   ;;  %215 = vst.msk [vmem:[#allocation2 + $0x70] sm:$0xff] %vm200_vm2, %v4949_v0  ;;  %216 = vst.msk [vmem:[#allocation2 + $0x78] sm:$0xff] %vm200_vm2, %v4949_v0 }
  0x90   : > { %v676_v13 = vrot.slane %v674_v8, 1  ;;  %v1472_v62 = vshll.u32 %v4704_v57, 16  ;;  %v4744_v0 = vld [vmem:[%s5071_s13 + $0x60] sm:$0xff]   ;;  %vm5861_vm2 = vmor %vm3316_vm14, %vm3317_vm15 }
  0x91   : > { %2117 = vrot.lane.b32.xlu1 %v4663_v1, %s4955_s29  ;;  %v4683_v1 = vld [vmem:[%s5071_s13 + $0x24] sm:$0xfe]   ;;  %v2802_v9 = vsel %vm972_vm0, %v2800_v59, %v2801_v63  ;;  %v4705_v59 = vld [vmem:[%s5071_s13 + $0x90] sm:$0xff]   ;;  %v4706_v63 = vld [vmem:[%s5071_s13 + $0x98] ss:$0 sps:$4 sm:$0x11]  }
  0x92   : > { %2101 = vrot.lane.b32.xlu0 %v4664_v4, %s4955_s29  ;;  %v2776_v4 = vrot.slane %v4683_v1, 1  ;;  %v677_v18 = vor.u32 %v676_v13, %v672_v7  ;;  %v1573_v1 = vshrl.u32 %v4705_v59, 16  ;;  %v1580_v6 = vshll.u32 %v4706_v63, 16  ;;  %v4708_v7 = vld [vmem:[%s5071_s13 + $0x38] ss:$0 sps:$4 sm:$0x11]  }
  0x93   : > { %v1484_v13 = vshll.u32 %v4708_v7, 16  ;;  %354 = vst.msk [vmem:[#allocation2 + $0x40] sm:$0xff] %vm345_vm3, %v4744_v0 }
  0x94   : > { %v2778_v12 = vsel %vm972_vm0, %v2776_v4, %v2777_v5  ;;  %v682_v23 = vsel %vm538_vm1, %v677_v18, %v681_v16  ;;  %v4707_v4 = vld [vmem:[%s5071_s13 + $0x30] sm:$0xff]   ;;  %v1474_v5 = vrot.slane %v1472_v62, 1  ;;  %v4710_v18 = vld [vmem:[%s5071_s13 + $0x8c] ss:$0 sps:$4 sm:$0x11]  }
  0x95   : > { %2548 = vrot.lane.b32.xlu1 %v2447_v24, %s4956_s30  ;;  %v581_v24 = vor.u32 %v580_v19, %v576_v14  ;;  %v1479_v10 = vshll.u32 %v4707_v4, 16  ;;  %v1486_v19 = vrot.slane %v1484_v13, 1 }
  0x96   : > { %2532 = vrot.lane.b32.xlu0 %v2351_v29, %s4956_s30 }
  0x97   : > { %v586_v29 = vsel %vm538_vm1, %v581_v24, %v585_v22  ;;  %v1481_v16 = vrot.slane %v1479_v10, 1  ;;  %v4711_v22 = vld [vmem:[%s5071_s13 + $0x24] sm:$0xfe]   ;;  %v1904_v24 = vrot.slane %v4710_v18, 1 }
  0x98   : > { %v1879_v27 = vrot.slane %v4711_v22, 1 }
  0x99   : > { %2550 = vrot.lane.b32.xlu1 %v2459_v39, %s4956_s30  ;;  %v4695_v39 = vld [vmem:[%s5071_s13 + $0x24] sm:$0xfe]  }
  0x9a   : > { %2534 = vrot.lane.b32.xlu0 %v2363_v40, %s4956_s30  ;;  %v4696_v40 = vld [vmem:[%s5071_s13 + $0x2c] ss:$0 sps:$4 sm:$0x11]   ;;  %v982_v43 = vrot.slane %v4695_v39, 1  ;;  %v1882_v39 = vrot.slane %v4715_v35, 1 }
  0x9b   : > { %v983_v45 = vrot.slane %v4696_v40, 1  ;;  %v2463_v40 = vshll.u32 %v4721_v28, 16 }
  0x9c   : > { %v1884_v44 = vsel %vm972_vm0, %v1882_v39, %v1883_v41  ;;  %v4736_v39 = vld [vmem:[%s5071_s13 + $0x38] ss:$0 sps:$4 sm:$0x11]   ;;  %v4737_v41 = vld [vmem:[%s5071_s13 + $0xc] sm:$0xff]  }
  0x9d   : > { %2837 = vrot.lane.b32.xlu1 %v2799_v47, %s4957_s4  ;;  %v4703_v47 = vld [vmem:[%s5071_s13 + $0x24] sm:$0xff]   ;;  %v984_v49 = vsel %vm972_vm0, %v982_v43, %v983_v45  ;;  %v1908_v43 = vsel %vm972_vm0, %v1906_v33, %v1907_v34  ;;  %v4717_v45 = vld [vmem:[%s5071_s13 + $0x90] sm:$0xff]   ;;  %v4734_v33 = vld [vmem:[%s5071_s13 + $0x98] ss:$0 sps:$4 sm:$0x11]   ;;  %347 = vst.msk [vmem:[#allocation2 + $0x8] sm:$0xff] %vm345_vm3, %v4737_v41 }
  0x9e   : > { %2821 = vrot.lane.b32.xlu0 %v2775_v51, %s4957_s4  ;;  %v1465_v51 = vshrl.u32 %v4703_v47, 16  ;;  %v1467_v53 = vshll.u32 %v4703_v47, 16 }
  0xa0   : > { %v1469_v58 = vrot.slane %v1467_v53, 1 }
  0xa1   : > { %751 = vrot.lane.b32.xlu1 %v670_v61, %s4952_s26  ;;  %v1570_v61 = vrot.slane %v1568_v56, 1  ;;  %v4720_v56 = vld [vmem:[%s5071_s13 + $0x3c] sm:$0xff]  }
  0xa2   : > { %735 = vrot.lane.b32.xlu0 %v574_v3, %s4952_s26  ;;  %v1470_v2 = vor.u32 %v1469_v58, %v1465_v51  ;;  %v1575_v3 = vshll.u32 %v4705_v59, 16  ;;  %v2372_v58 = vshll.u32 %v4724_v52, 16  ;;  %v4726_v59 = vld [vmem:[%s5071_s13 + $0xa4] ss:$0 sps:$4 sm:$0x11]   ;;  %v4743_v52 = vld [vmem:[%s5071_s13 + $0x6c] sm:$0xff]  }
  0xa3   : > { %v1571_v11 = vsel %vm538_vm1, %v1566_v60, %v1570_v61  ;;  %v4727_v61 = vld [vmem:[%s5071_s13 + $0x3c] sm:$0xff]   ;;  %355 = vst.msk [vmem:[#allocation2 + $0x48] sm:$0xff] %vm345_vm3, %v4743_v52  ;;  %v4759_v52 = vld [vmem:[%s5071_s13 + $0xa8] sm:$0xff]  }
  0xa4   : > { %v1577_v8 = vrot.slane %v1575_v3, 1  ;;  %v1475_v14 = vsel %vm538_vm1, %v1470_v2, %v1474_v5  ;;  %v2374_v63 = vrot.slane %v2372_v58, 1  ;;  %v2480_v2 = vshll.u32 %v4726_v59, 16  ;;  %v4728_v3 = vld [vmem:[%s5071_s13 + $0x44] ss:$0 sps:$4 sm:$0x11]  }
  0xa5   : > { %2839 = vrot.lane.b32.xlu1 %v2802_v9, %s4957_s4  ;;  %v1477_v9 = vshrl.u32 %v4707_v4, 16  ;;  %v2377_v7 = vshrl.u32 %v4727_v61, 16  ;;  %v4741_v59 = vld [vmem:[%s5071_s13 + $0x3c] sm:$0xfe]  }
  0xa6   : > { %2823 = vrot.lane.b32.xlu0 %v2778_v12, %s4957_s4  ;;  %v1582_v12 = vrot.slane %v1580_v6, 1  ;;  %v1578_v15 = vor.u32 %v1577_v8, %v1573_v1  ;;  %v2379_v8 = vshll.u32 %v4727_v61, 16  ;;  %v2482_v10 = vrot.slane %v2480_v2, 1  ;;  %v4742_v61 = vld [vmem:[%s5071_s13 + $0x44] ss:$0 sps:$4 sm:$0x11]  }
  0xa7   : > { %v1482_v20 = vor.u32 %v1481_v16, %v1477_v9  ;;  %v4733_v9 = vld [vmem:[%s5071_s13 + $0x90] sm:$0xff]  }
  0xa8   : > { %v2381_v13 = vrot.slane %v2379_v8, 1 }
  0xa9   : > { %753 = vrot.lane.b32.xlu1 %v682_v23, %s4952_s26  ;;  %v1583_v23 = vsel %vm538_vm1, %v1578_v15, %v1582_v12  ;;  %v1487_v26 = vsel %vm538_vm1, %v1482_v20, %v1486_v19  ;;  %v5383_v12 = vld [vmem:[%s5071_s13 + $0x30] sm:$0xff]   ;;  %v4730_v15 = vld [vmem:[%s5071_s13 + $0x98] ss:$0 sps:$4 sm:$0x11]   ;;  %v684_v20 = vshrl.u32 %v4733_v9, 16 }
  0xaa   : > { %737 = vrot.lane.b32.xlu0 %v586_v29, %s4952_s26  ;;  %v1880_v29 = vrot.slane %v4712_v25, 1  ;;  %v2382_v22 = vor.u32 %v2381_v13, %v2377_v7  ;;  %v4731_v25 = vld [vmem:[%s5071_s13 + $0x30] sm:$0xfe]   ;;  %v588_v30 = vshrl.u32 %v5383_v12, 16  ;;  %v590_v35 = vshll.u32 %v5383_v12, 16 }
  0xab   : > { %v4746_v7 = vld [vmem:[%s5071_s13 + $0xa4] ss:$0 sps:$4 sm:$0x11]  }
  0xac   : > { %v4748_v12 = vld [vmem:[%s5071_s13 + $0x44] ss:$0 sps:$4 sm:$0x11]  }
  0xad   : > { %1041 = vrot.lane.b32.xlu1 %v1005_v32, %s4951_s25  ;;  %v1905_v32 = vsel %vm972_vm0, %v1903_v21, %v1904_v24  ;;  %v2804_v24 = vrot.slane %v4730_v15, 1 }
  0xae   : > { %1025 = vrot.lane.b32.xlu0 %v981_v36, %s4951_s25  ;;  %v1881_v36 = vsel %vm972_vm0, %v1879_v27, %v1880_v29  ;;  %v686_v27 = vshll.u32 %v4733_v9, 16  ;;  %v2779_v29 = vrot.slane %v4731_v25, 1 }
  0xb0   : > { %v688_v34 = vrot.slane %v686_v27, 1 }
  0xb1   : > { %1043 = vrot.lane.b32.xlu1 %v1008_v42, %s4951_s25  ;;  %v4723_v42 = vld [vmem:[%s5071_s13 + $0x30] sm:$0xff]  }
  0xb2   : > { %1027 = vrot.lane.b32.xlu0 %v984_v49, %s4951_s25  ;;  %v2365_v47 = vshrl.u32 %v4723_v42, 16  ;;  %v4722_v49 = vld [vmem:[%s5071_s13 + $0x98] ss:$0 sps:$4 sm:$0x11]   ;;  %v2367_v50 = vshll.u32 %v4723_v42, 16 }
  0xb3   : > { %v2468_v51 = vshll.u32 %v4722_v49, 16  ;;  %v4738_v49 = vld [vmem:[%s5071_s13] sm:$0xff]  }
  0xb4   : > { %v2369_v53 = vrot.slane %v2367_v50, 1  ;;  %346 = vst.msk [vmem:[#allocation2] sm:$0xff] %vm345_vm3, %v4738_v49 }
  0xb5   : > { %1219 = vrot.lane.b32.xlu1 %v4697_v46, %s4950_s24  ;;  %v2465_v46 = vrot.slane %v2463_v40, 1  ;;  %v2470_v57 = vrot.slane %v2468_v51, 1  ;;  %v592_v40 = vrot.slane %v590_v35, 1 }
  0xb6   : > { %1203 = vrot.lane.b32.xlu0 %v4698_v48, %s4950_s24  ;;  %v4718_v48 = vld [vmem:[%s5071_s13 + $0x30] sm:$0xff]   ;;  %v2370_v4 = vor.u32 %v2369_v53, %v2365_v47  ;;  %v4739_v53 = vld [vmem:[%s5071_s13 + $0x9c] sm:$0xfe]  }
  0xb7   : > { %v2466_v62 = vor.u32 %v2465_v46, %v2461_v38  ;;  %v691_v38 = vshll.u32 %v4734_v33, 16  ;;  %v595_v46 = vshll.u32 %v4736_v39, 16  ;;  %v4755_v39 = vld [vmem:[%s5071_s13 + $0x3c] sm:$0xfe]  }
  0xb8   : > { %v2375_v21 = vsel %vm538_vm1, %v2370_v4, %v2374_v63  ;;  %v2782_v63 = vrot.slane %v4741_v59, 1  ;;  %v2783_v4 = vrot.slane %v4742_v61, 1  ;;  %v4760_v59 = vld [vmem:[%s5071_s13 + $0x48] sm:$0xff]   ;;  %v4765_v61 = vld [vmem:[#allocation3] sm:$0xff]  }
  0xb9   : > { %1221 = vrot.lane.b32.xlu1 %v4699_v54, %s4950_s24  ;;  %v4725_v54 = vld [vmem:[%s5071_s13 + $0x9c] sm:$0xff]   ;;  %v2471_v16 = vsel %vm538_vm1, %v2466_v62, %v2470_v57  ;;  %v597_v51 = vrot.slane %v595_v46, 1  ;;  %v2806_v57 = vrot.slane %v4739_v53, 1  ;;  %4520 = vmatprep.subr.bf16.mxu0 %v4765_v61 }
  0xba   : > { %1205 = vrot.lane.b32.xlu0 %v4700_v55, %s4950_s24  ;;  %v4719_v55 = vld [vmem:[%s5071_s13 + $0x9c] sm:$0xff]   ;;  %v2475_v60 = vshll.u32 %v4725_v54, 16  ;;  %v2473_v1 = vshrl.u32 %v4725_v54, 16  ;;  %v4740_v54 = vld [vmem:[%s5071_s13 + $0xa4] ss:$0 sps:$4 sm:$0x11]   ;;  %v2784_v9 = vsel %vm972_vm0, %v2782_v63, %v2783_v4  ;;  %4568 = vmatprep.subr.bf16.mxu1 %v4765_v61 }
  0xbb   : > { %v2807_v58 = vrot.slane %v4740_v54, 1  ;;  %v4745_v62 = vld [vmem:[%s5071_s13 + $0x9c] sm:$0xff]   ;;  %v4762_v54 = vld [vmem:[%s5071_s13 + $0xa4] ss:$0 sps:$4 sm:$0x11]   ;;  %4521 = vmatpush3.bf16.msra.mxu0 %v4765_v61  ;;  %4576 = vmatpush3.bf16.msra.mxu1 %v4765_v61 }
  0xbc   : > { %v2477_v6 = vrot.slane %v2475_v60, 1  ;;  %v698_v8 = vshll.u32 %v4745_v62, 16  ;;  %v4761_v53 = vld [vmem:[%s5071_s13 + $0x9c] sm:$0xff]  }
  0xbd   : > { %1652 = vrot.lane.b32.xlu1 %v1571_v11, %s4953_s27  ;;  %v5379_v5 = vpop.permute.xlu1 %1215  ;;  %v2384_v11 = vshll.u32 %v4728_v3, 16  ;;  %v2808_v3 = vsel %vm972_vm0, %v2806_v57, %v2807_v58  ;;  %v1585_v0 = vshrl.u32 %v4761_v53, 16  ;;  %v4763_v57 = vld [vmem:[%s5071_s13 + $0x3c] sm:$0xff]  }
  0xbe   : > { %1636 = vrot.lane.b32.xlu0 %v1475_v14, %s4953_s27  ;;  %v4729_v14 = vld [vmem:[%s5071_s13 + $0x90] sm:$0xfe]   ;;  %v5390_v17 = vpop.permute.xlu0 %1199  ;;  %v2478_v18 = vor.u32 %v2477_v6, %v2473_v1  ;;  %v4747_v1 = vld [vmem:[%s5071_s13 + $0x3c] sm:$0xff]   ;;  %v696_v6 = vshrl.u32 %v4745_v62, 16 }
  0xbf   : > { %v2386_v19 = vrot.slane %v2384_v11, 1  ;;  %v703_v11 = vshll.u32 %v4746_v7, 16  ;;  %v600_v13 = vshrl.u32 %v4747_v1, 16 }
  0xc0   : > { %v2483_v31 = vsel %vm538_vm1, %v2478_v18, %v2482_v10  ;;  %v700_v10 = vrot.slane %v698_v8, 1 }
  0xc1   : > { %1654 = vrot.lane.b32.xlu1 %v1583_v23, %s4953_s27  ;;  %v2803_v23 = vrot.slane %v4729_v14, 1  ;;  %v602_v14 = vshll.u32 %v4747_v1, 16  ;;  %v705_v18 = vrot.slane %v703_v11, 1 }
  0xc2   : > { %1638 = vrot.lane.b32.xlu0 %v1487_v26, %s4953_s27  ;;  %v4732_v26 = vld [vmem:[%s5071_s13 + $0x38] ss:$0 sps:$4 sm:$0x11]  }
  0xc3   : > { %v2805_v42 = vsel %vm972_vm0, %v2803_v23, %v2804_v24  ;;  %v4750_v23 = vld [vmem:[%s5071_s13 + $0x98] ss:$0 sps:$4 sm:$0x11]  }
  0xc4   : > { %v1010_v27 = vrot.slane %v4750_v23, 1 }
  0xc5   : > { %1941 = vrot.lane.b32.xlu1 %v1905_v32, %s4954_s28  ;;  %v2780_v32 = vrot.slane %v4732_v26, 1 }
  0xc6   : > { %1925 = vrot.lane.b32.xlu0 %v1881_v36, %s4954_s28  ;;  %v2387_v36 = vsel %vm538_vm1, %v2382_v22, %v2386_v19  ;;  %v607_v19 = vshll.u32 %v4748_v12, 16  ;;  %v604_v22 = vrot.slane %v602_v14, 1  ;;  %v4768_v14 = vld [vmem:[%s5071_s13 + $0x48] sm:$0xff]  }
  0xc7   : > { %v2781_v47 = vsel %vm972_vm0, %v2779_v29, %v2780_v32  ;;  %v4751_v29 = vld [vmem:[%s5071_s13 + $0x30] sm:$0xfe]   ;;  %v1503_v23 = vshll.u32 %v4768_v14, 16 }
  0xc8   : > { %v609_v24 = vrot.slane %v607_v19, 1  ;;  %v605_v26 = vor.u32 %v604_v22, %v600_v13  ;;  %v1501_v22 = vshrl.u32 %v4768_v14, 16 }
  0xc9   : > { %1943 = vrot.lane.b32.xlu1 %v1908_v43, %s4954_s28 }
  0xca   : > { %1927 = vrot.lane.b32.xlu0 %v1884_v44, %s4954_s28  ;;  %v689_v44 = vor.u32 %v688_v34, %v684_v20  ;;  %v4749_v20 = vld [vmem:[%s5071_s13 + $0x90] sm:$0xfe]   ;;  %v610_v32 = vsel %vm538_vm1, %v605_v26, %v609_v24  ;;  %v985_v34 = vrot.slane %v4751_v29, 1 }
  0xcb   : > { %v1009_v25 = vrot.slane %v4749_v20, 1  ;;  %v4769_v20 = vld [vmem:[%s5071_s13 + $0x50] ss:$0 sps:$4 sm:$0x11]  }
  0xcc   : > { %v1508_v26 = vshll.u32 %v4769_v20, 16 }
  0xcd   : > { %2119 = vrot.lane.b32.xlu1 %v4717_v45, %s4955_s29  ;;  %v693_v45 = vrot.slane %v691_v38, 1 }
  0xce   : > { %2103 = vrot.lane.b32.xlu0 %v4718_v48, %s4955_s29  ;;  %v593_v48 = vor.u32 %v592_v40, %v588_v30  ;;  %v4752_v30 = vld [vmem:[%s5071_s13 + $0x38] ss:$0 sps:$4 sm:$0x11]  }
  0xcf   : > { %v986_v35 = vrot.slane %v4752_v30, 1  ;;  %v1505_v30 = vrot.slane %v1503_v23, 1 }
  0xd1   : > { %2121 = vrot.lane.b32.xlu1 %v4719_v55, %s4955_s29  ;;  %v694_v55 = vsel %vm538_vm1, %v689_v44, %v693_v45  ;;  %v988_v44 = vrot.slane %v4755_v39, 1 }
  0xd2   : > { %2105 = vrot.lane.b32.xlu0 %v4720_v56, %s4955_s29  ;;  %v598_v56 = vsel %vm538_vm1, %v593_v48, %v597_v51 }
  0xd5   : > { %2552 = vrot.lane.b32.xlu1 %v2471_v16, %s4956_s30  ;;  %v701_v16 = vor.u32 %v700_v10, %v696_v6  ;;  %v4766_v6 = vld [vmem:[%s5071_s13 + $0xa8] sm:$0xff]  }
  0xd6   : > { %2536 = vrot.lane.b32.xlu0 %v2375_v21, %s4956_s30  ;;  %v1597_v12 = vshrl.u32 %v4766_v6, 16  ;;  %v1599_v13 = vshll.u32 %v4766_v6, 16 }
  0xd9   : > { %2554 = vrot.lane.b32.xlu1 %v2483_v31, %s4956_s30 }
  0xda   : > { %2538 = vrot.lane.b32.xlu0 %v2387_v36, %s4956_s30  ;;  %v4753_v36 = vld [vmem:[%s5071_s13 + $0x9c] sm:$0xfe]  }
  0xdb   : > { %v5396_v28 = vpop.permute.xlu1 %1037  ;;  %v1012_v38 = vrot.slane %v4753_v36, 1 }
  0xdc   : > { %v5404_v37 = vpop.permute.xlu0 %1021 }
  0xdd   : > { %2841 = vrot.lane.b32.xlu1 %v2805_v42, %s4957_s4  ;;  %v4756_v42 = vld [vmem:[%s5071_s13 + $0x44] ss:$0 sps:$4 sm:$0x11]  }
  0xde   : > { %2825 = vrot.lane.b32.xlu0 %v2781_v47, %s4957_s4  ;;  %v989_v46 = vrot.slane %v4756_v42, 1  ;;  %v4757_v47 = vld [vmem:[%s5071_s13 + $0x9c] sm:$0xff]  }
  0xdf   : > { %v5411_v43 = vpop.permute.xlu1 %1039 }
  0xe0   : > { %v1024_v50 = vpop.permute.xlu0 %1023  ;;  %v990_v48 = vsel %vm972_vm0, %v988_v44, %v989_v46 }
  0xe1   : > { %755 = vrot.lane.b32.xlu1 %v694_v55, %s4952_s26  ;;  %v1587_v55 = vshll.u32 %v4761_v53, 16 }
  0xe2   : > { %739 = vrot.lane.b32.xlu0 %v598_v56, %s4952_s26  ;;  %v1592_v56 = vshll.u32 %v4762_v54, 16  ;;  %v4778_v54 = vld [vmem:[%s5071_s13 + $0x48] sm:$0xfe]  }
  0xe3   : > { %v734_v60 = vpop.permute.xlu1 %733  ;;  %v1589_v63 = vrot.slane %v1587_v55, 1  ;;  %v4781_v55 = vld [vmem:[%s5071_s13 + $0xa8] sm:$0xff]  }
  0xe4   : > { %781 = vst.msk [vmem:[#allocation2 + $0x8] sm:$0xff] %vm779_vm4, %v734_v60  ;;  %v732_v2 = vpop.permute.xlu0 %731  ;;  %v4764_v60 = vld [vmem:[%s5071_s13 + $0x44] ss:$0 sps:$4 sm:$0x11]   ;;  %v1594_v1 = vrot.slane %v1592_v56, 1 }
  0xe5   : > { %1071 = vst.msk [vmem:[#allocation2 + $0x8] sm:$0xff] %vm1069_vm5, %v1024_v50  ;;  %2843 = vrot.lane.b32.xlu1 %v2808_v3, %s4957_s4  ;;  %v4758_v50 = vld [vmem:[%s5071_s13 + $0x3c] sm:$0xff]   ;;  %v1491_v3 = vshll.u32 %v4763_v57, 16  ;;  %v1496_v4 = vshll.u32 %v4764_v60, 16  ;;  %v1590_v7 = vor.u32 %v1589_v63, %v1585_v0  ;;  %v4782_v63 = vld [vmem:[%s5071_s13 + $0x48] sm:$0xff]  }
  0xe6   : > { %780 = vst.msk [vmem:[#allocation2] sm:$0xff] %vm779_vm4, %v732_v2  ;;  %2827 = vrot.lane.b32.xlu0 %v2784_v9, %s4957_s4  ;;  %v1489_v2 = vshrl.u32 %v4763_v57, 16  ;;  %v4767_v9 = vld [vmem:[%s5071_s13 + $0xb0] ss:$0 sps:$4 sm:$0x11]   ;;  %v1888_v57 = vrot.slane %v4778_v54, 1 }
  0xe7   : > { %1070 = vst.msk [vmem:[#allocation2] sm:$0xff] %vm1069_vm5, %v5404_v37  ;;  %v750_v15 = vpop.permute.xlu1 %749  ;;  %v4754_v37 = vld [vmem:[%s5071_s13 + $0xa4] ss:$0 sps:$4 sm:$0x11]   ;;  %v1493_v8 = vrot.slane %v1491_v3, 1  ;;  %v1498_v11 = vrot.slane %v1496_v4, 1 }
  0xe8   : > { %1248 = vst.msk [vmem:[#allocation2] sm:$0xff] %vm1247_vm6, %v5390_v17  ;;  %v748_v21 = vpop.permute.xlu0 %747  ;;  %v706_v17 = vsel %vm538_vm1, %v701_v16, %v705_v18  ;;  %v1013_v41 = vrot.slane %v4754_v37, 1  ;;  %v1595_v16 = vsel %vm538_vm1, %v1590_v7, %v1594_v1  ;;  %v1604_v19 = vshll.u32 %v4767_v9, 16  ;;  %v4779_v0 = vld [vmem:[%s5071_s13 + $0x50] ss:$0 sps:$4 sm:$0x11]  }
  0xe9   : > { %789 = vst.msk [vmem:[#allocation2 + $0x48] sm:$0xff] %vm779_vm4, %v750_v15  ;;  %788 = vst.msk [vmem:[#allocation2 + $0x40] sm:$0xff] %vm779_vm4, %v748_v21  ;;  %757 = vrot.lane.b32.xlu1 %v706_v17, %s4952_s26  ;;  %v1494_v18 = vor.u32 %v1493_v8, %v1489_v2  ;;  %v1601_v21 = vrot.slane %v1599_v13, 1  ;;  %v4770_v17 = vld [vmem:[#allocation3 + $0x8] sm:$0xff]   ;;  %v4784_v1 = vld [vmem:[%s5071_s13 + $0xb4] sm:$0xff]  }
  0xea   : > { %1079 = vst.msk [vmem:[#allocation2 + $0x48] sm:$0xff] %vm1069_vm5, %v5411_v43  ;;  %1078 = vst.msk [vmem:[#allocation2 + $0x40] sm:$0xff] %vm1069_vm5, %v5396_v28  ;;  %v1011_v28 = vsel %vm972_vm0, %v1009_v25, %v1010_v27  ;;  %741 = vrot.lane.b32.xlu0 %v610_v32, %s4952_s26  ;;  %v1014_v45 = vsel %vm972_vm0, %v1012_v38, %v1013_v41  ;;  %v1606_v25 = vrot.slane %v1604_v19, 1  ;;  %4522 = vmatprep.subr.bf16.mxu0 %v4770_v17  ;;  %v4775_v41 = vld [vmem:[#allocation3 + $0x10] sm:$0xff]   ;;  %v4786_v4 = vld [vmem:[%s5071_s13 + $0x78] sm:$0xff]  }
  0xeb   : > { %v1218_v31 = vpop.permute.xlu1 %1217  ;;  %1256 = vst.msk [vmem:[#allocation2 + $0x40] sm:$0xff] %vm1247_vm6, %v5379_v5  ;;  %v987_v5 = vsel %vm972_vm0, %v985_v34, %v986_v35  ;;  %v1499_v24 = vsel %vm538_vm1, %v1494_v18, %v1498_v11  ;;  %v1602_v29 = vor.u32 %v1601_v21, %v1597_v12  ;;  %4569 = vmatprep.subr.bf16.mxu1 %v4770_v17  ;;  %v1510_v32 = vrot.slane %v1508_v26, 1  ;;  %v4785_v3 = vld [vmem:[%s5071_s13 + $0x54] sm:$0xff]   ;;  %v4788_v8 = vld [vmem:[#allocation3 + $0x28] sm:$0xff]  }
  0xec   : > { %1257 = vst.msk [vmem:[#allocation2 + $0x48] sm:$0xff] %vm1247_vm6, %v1218_v31  ;;  %v1202_v33 = vpop.permute.xlu0 %1201  ;;  %4523 = vmatpush3.bf16.msra.mxu0 %v4770_v17  ;;  %4577 = vmatpush3.bf16.msra.mxu1 %v4770_v17  ;;  %v1506_v35 = vor.u32 %v1505_v30, %v1501_v22  ;;  %v4787_v7 = vld [vmem:[%s5071_s13 + $0x18] sm:$0xff]   ;;  %v4789_v9 = vld [vmem:[%s5071_s13 + $0xa8] sm:$0xff]   ;;  %v4792_v18 = vld [vmem:[%s5071_s13 + $0x50] ss:$0 sps:$4 sm:$0x11]  }
  0xed   : > { %1249 = vst.msk [vmem:[#allocation2 + $0x8] sm:$0xff] %vm1247_vm6, %v1202_v33  ;;  %1045 = vrot.lane.b32.xlu1 %v1011_v28, %s4951_s25  ;;  %v4771_v33 = vld [vmem:[%s5071_s13 + $0x9c] sm:$0xfe]   ;;  %v4772_v28 = vld [vmem:[%s5071_s13 + $0xa4] ss:$0 sps:$4 sm:$0x11]   ;;  %v1607_v34 = vsel %vm538_vm1, %v1602_v29, %v1606_v25  ;;  %4524 = vmatprep.subr.bf16.mxu0 %v4775_v41 }
  0xee   : > { %1029 = vrot.lane.b32.xlu0 %v987_v5, %s4951_s25  ;;  %v1909_v36 = vrot.slane %v4771_v33, 1  ;;  %v1910_v37 = vrot.slane %v4772_v28, 1  ;;  %v4773_v5 = vld [vmem:[%s5071_s13 + $0x3c] sm:$0xfe]   ;;  %v1511_v38 = vsel %vm538_vm1, %v1506_v35, %v1510_v32  ;;  %4570 = vmatprep.subr.bf16.mxu1 %v4775_v41  ;;  %356 = vst.msk [vmem:[#allocation2 + $0x50] sm:$0xff] %vm345_vm3, %v4786_v4  ;;  %348 = vst.msk [vmem:[#allocation2 + $0x10] sm:$0xff] %vm345_vm3, %v4787_v7 }
  0xef   : > { %v1649_v40 = vpop.permute.xlu1 %1648  ;;  %v1885_v44 = vrot.slane %v4773_v5, 1  ;;  %v2485_v13 = vshrl.u32 %v4789_v9, 16  ;;  %v2487_v14 = vshll.u32 %v4789_v9, 16  ;;  %v4793_v19 = vld [vmem:[#allocation3 + $0x30] sm:$0xff]   ;;  %v2396_v17 = vshll.u32 %v4792_v18, 16 }
  0xf0   : > { %1689 = vst.msk [vmem:[#allocation2 + $0x40] sm:$0xff] %vm1680_vm7, %v1649_v40  ;;  %v1633_v43 = vpop.permute.xlu0 %1632  ;;  %v4774_v40 = vld [vmem:[%s5071_s13 + $0x44] ss:$0 sps:$4 sm:$0x11]   ;;  %4525 = vmatpush3.bf16.msra.mxu0 %v4775_v41  ;;  %4578 = vmatpush3.bf16.msra.mxu1 %v4775_v41  ;;  %v4796_v28 = vld [vmem:[%s5071_s13 + $0x54] sm:$0xff]  }
  0xf1   : > { %1681 = vst.msk [vmem:[#allocation2] sm:$0xff] %vm1680_vm7, %v1633_v43  ;;  %1047 = vrot.lane.b32.xlu1 %v1014_v45, %s4951_s25  ;;  %v1911_v43 = vsel %vm972_vm0, %v1909_v36, %v1910_v37  ;;  %v4780_v45 = vld [vmem:[#allocation3 + $0x18] sm:$0xff]   ;;  %v1886_v46 = vrot.slane %v4774_v40, 1  ;;  %v2489_v20 = vrot.slane %v2487_v14, 1  ;;  %v2398_v33 = vrot.slane %v2396_v17, 1 }
  0xf2   : > { %1031 = vrot.lane.b32.xlu0 %v990_v48, %s4951_s25  ;;  %v4777_v48 = vld [vmem:[%s5071_s13 + $0xb0] ss:$0 sps:$4 sm:$0x11]   ;;  %4526 = vmatprep.subr.bf16.mxu0 %v4780_v45  ;;  %v4795_v32 = vld [vmem:[%s5071_s13 + $0xbc] ss:$0 sps:$4 sm:$0x11]  }
  0xf3   : > { %v1651_v49 = vpop.permute.xlu1 %1650  ;;  %v1913_v53 = vrot.slane %v4777_v48, 1  ;;  %4571 = vmatprep.subr.bf16.mxu1 %v4780_v45  ;;  %v2490_v26 = vor.u32 %v2489_v20, %v2485_v13  ;;  %v2504_v5 = vshll.u32 %v4795_v32, 16  ;;  %v2403_v40 = vshll.u32 %v4796_v28, 16 }
  0xf4   : > { %1690 = vst.msk [vmem:[#allocation2 + $0x48] sm:$0xff] %vm1680_vm7, %v1651_v49  ;;  %v1635_v51 = vpop.permute.xlu0 %1634  ;;  %v1887_v49 = vsel %vm972_vm0, %v1885_v44, %v1886_v46  ;;  %4527 = vmatpush3.bf16.msra.mxu0 %v4780_v45  ;;  %4579 = vmatpush3.bf16.msra.mxu1 %v4780_v45  ;;  %v4798_v44 = vld [vmem:[%s5071_s13 + $0x84] sm:$0xff]  }
  0xf5   : > { %1682 = vst.msk [vmem:[#allocation2 + $0x8] sm:$0xff] %vm1680_vm7, %v1635_v51  ;;  %1223 = vrot.lane.b32.xlu1 %v4757_v47, %s4950_s24  ;;  %v4776_v47 = vld [vmem:[%s5071_s13 + $0xa8] sm:$0xfe]   ;;  %v2506_v46 = vrot.slane %v2504_v5, 1 }
  0xf6   : > { %1207 = vrot.lane.b32.xlu0 %v4758_v50, %s4950_s24  ;;  %v1912_v51 = vrot.slane %v4776_v47, 1  ;;  %v2405_v47 = vrot.slane %v2403_v40, 1  ;;  %357 = vst.msk [vmem:[#allocation2 + $0x58] sm:$0xff] %vm345_vm3, %v4798_v44  ;;  %v4814_v40 = vld [vmem:[%s5071_s13 + $0xbc] ss:$0 sps:$4 sm:$0x11]  }
  0xf7   : > { %v1938_v58 = vpop.permute.xlu1 %1937 }
  0xf8   : > { %1978 = vst.msk [vmem:[#allocation2 + $0x40] sm:$0xff] %vm1969_vm8, %v1938_v58  ;;  %v1922_v62 = vpop.permute.xlu0 %1921  ;;  %v1914_v56 = vsel %vm972_vm0, %v1912_v51, %v1913_v53  ;;  %v1889_v58 = vrot.slane %v4779_v0, 1  ;;  %v4800_v51 = vld [vmem:[#allocation3 + $0x38] sm:$0xff]  }
  0xf9   : > { %1970 = vst.msk [vmem:[#allocation2] sm:$0xff] %vm1969_vm8, %v1922_v62  ;;  %1225 = vrot.lane.b32.xlu1 %v4759_v52, %s4950_s24  ;;  %v4783_v62 = vld [vmem:[#allocation3 + $0x20] sm:$0xff]  }
  0xfa   : > { %1209 = vrot.lane.b32.xlu0 %v4760_v59, %s4950_s24  ;;  %v1890_v60 = vsel %vm972_vm0, %v1888_v57, %v1889_v58  ;;  %4528 = vmatprep.subr.bf16.mxu0 %v4783_v62 }
  0xfb   : > { %v1940_v10 = vpop.permute.xlu1 %1939  ;;  %4572 = vmatprep.subr.bf16.mxu1 %v4783_v62  ;;  %4529 = vmatpush3.bf16.msra.mxu0 %v4783_v62 }
  0xfc   : > { %1979 = vst.msk [vmem:[#allocation2 + $0x48] sm:$0xff] %vm1969_vm8, %v1940_v10  ;;  %v1924_v15 = vpop.permute.xlu0 %1923  ;;  %4580 = vmatpush3.bf16.msra.mxu1 %v4783_v62  ;;  %v4790_v10 = vld [vmem:[%s5071_s13 + $0xb0] ss:$0 sps:$4 sm:$0x11]   ;;  %4530 = vmatprep.subr.bf16.mxu0 %v4788_v8  ;;  %v4803_v62 = vld [vmem:[%s5071_s13 + $0x48] sm:$0xfe]  }
  0xfd   : > { %1971 = vst.msk [vmem:[#allocation2 + $0x8] sm:$0xff] %vm1969_vm8, %v1924_v15  ;;  %1656 = vrot.lane.b32.xlu1 %v1595_v16, %s4953_s27  ;;  %4573 = vmatprep.subr.bf16.mxu1 %v4788_v8  ;;  %v2492_v15 = vshll.u32 %v4790_v10, 16  ;;  %v4791_v16 = vld [vmem:[%s5071_s13 + $0x48] sm:$0xff]   ;;  %v2785_v4 = vrot.slane %v4803_v62, 1 }
  0xfe   : > { %1640 = vrot.lane.b32.xlu0 %v1499_v24, %s4953_s27  ;;  %v2389_v22 = vshrl.u32 %v4791_v16, 16  ;;  %v2391_v23 = vshll.u32 %v4791_v16, 16  ;;  %v4806_v10 = vld [vmem:[%s5071_s13 + $0xb0] ss:$0 sps:$4 sm:$0x11]  }
  0xff   : > { %v2116_v27 = vpop.permute.xlu1 %2115  ;;  %4531 = vmatpush3.bf16.msra.mxu0 %v4788_v8  ;;  %v2494_v21 = vrot.slane %v2492_v15, 1  ;;  %v715_v15 = vshll.u32 %v4806_v10, 16  ;;  %v4808_v16 = vld [vmem:[%s5071_s13 + $0x50] ss:$0 sps:$4 sm:$0x11]  }
 0x100   : > { %2156 = vst.msk [vmem:[#allocation2 + $0x40] sm:$0xff] %vm2147_vm9, %v2116_v27  ;;  %v2100_v31 = vpop.permute.xlu0 %2099  ;;  %4581 = vmatpush3.bf16.msra.mxu1 %v4788_v8  ;;  %4532 = vmatprep.subr.bf16.mxu0 %v4793_v19  ;;  %v2393_v27 = vrot.slane %v2391_v23, 1  ;;  %v619_v17 = vshll.u32 %v4808_v16, 16  ;;  %v4822_v10 = vld [vmem:[%s5071_s13 + $0xbc] ss:$0 sps:$4 sm:$0x11]  }
 0x101   : > { %2148 = vst.msk [vmem:[#allocation2] sm:$0xff] %vm2147_vm9, %v2100_v31  ;;  %1658 = vrot.lane.b32.xlu1 %v1607_v34, %s4953_s27  ;;  %4574 = vmatprep.subr.bf16.mxu1 %v4793_v19  ;;  %v4794_v31 = vld [vmem:[%s5071_s13 + $0xb4] sm:$0xff]   ;;  %v2495_v34 = vsel %vm538_vm1, %v2490_v26, %v2494_v21  ;;  %v717_v23 = vrot.slane %v715_v15, 1  ;;  %v4824_v16 = vld [vmem:[%s5071_s13 + $0x5c] ss:$0 sps:$4 sm:$0x11]  }
 0x102   : > { %1642 = vrot.lane.b32.xlu0 %v1511_v38, %s4953_s27  ;;  %v2394_v35 = vor.u32 %v2393_v27, %v2389_v22  ;;  %v2497_v36 = vshrl.u32 %v4794_v31, 16  ;;  %v2499_v37 = vshll.u32 %v4794_v31, 16  ;;  %v4797_v38 = vld [vmem:[%s5071_s13 + $0x5c] ss:$0 sps:$4 sm:$0x11]  }
 0x103   : > { %v2118_v39 = vpop.permute.xlu1 %2117  ;;  %4533 = vmatpush3.bf16.msra.mxu0 %v4793_v19  ;;  %v2408_v48 = vshll.u32 %v4797_v38, 16  ;;  %v4810_v27 = vld [vmem:[%s5071_s13 + $0xbc] ss:$0 sps:$4 sm:$0x11]   ;;  %v4823_v15 = vld [vmem:[%s5071_s13 + $0x54] sm:$0xfe]  }
 0x104   : > { %2157 = vst.msk [vmem:[#allocation2 + $0x48] sm:$0xff] %vm2147_vm9, %v2118_v39  ;;  %v2102_v42 = vpop.permute.xlu0 %2101  ;;  %4582 = vmatpush3.bf16.msra.mxu1 %v4793_v19  ;;  %v2401_v39 = vshrl.u32 %v4796_v28, 16  ;;  %4534 = vmatprep.subr.bf16.mxu0 %v4800_v51  ;;  %v2813_v28 = vrot.slane %v4810_v27, 1 }
 0x105   : > { %2149 = vst.msk [vmem:[#allocation2 + $0x8] sm:$0xff] %vm2147_vm9, %v2102_v42  ;;  %1945 = vrot.lane.b32.xlu1 %v1911_v43, %s4954_s28  ;;  %v2399_v42 = vsel %vm538_vm1, %v2394_v35, %v2398_v33  ;;  %v2501_v43 = vrot.slane %v2499_v37, 1  ;;  %v2410_v53 = vrot.slane %v2408_v48, 1  ;;  %4575 = vmatprep.subr.bf16.mxu1 %v4800_v51  ;;  %v4812_v35 = vld [vmem:[%s5071_s13 + $0x5c] ss:$0 sps:$4 sm:$0x11]  }
 0x106   : > { %1929 = vrot.lane.b32.xlu0 %v1887_v49, %s4954_s28  ;;  %v4799_v49 = vld [vmem:[%s5071_s13 + $0x24] sm:$0xff]  }
 0x107   : > { %v2549_v50 = vpop.permute.xlu1 %2548  ;;  %349 = vst.msk [vmem:[#allocation2 + $0x18] sm:$0xff] %vm345_vm3, %v4799_v49  ;;  %4535 = vmatpush3.bf16.msra.mxu0 %v4800_v51 }
 0x108   : > { %2589 = vst.msk [vmem:[#allocation2 + $0x40] sm:$0xff] %vm2580_vm10, %v2549_v50  ;;  %v2533_v52 = vpop.permute.xlu0 %2532  ;;  %v2502_v50 = vor.u32 %v2501_v43, %v2497_v36  ;;  %4583 = vmatpush3.bf16.msra.mxu1 %v4800_v51 }
 0x109   : > { %2581 = vst.msk [vmem:[#allocation2] sm:$0xff] %vm2580_vm10, %v2533_v52  ;;  %1947 = vrot.lane.b32.xlu1 %v1914_v56, %s4954_s28  ;;  %v2406_v52 = vor.u32 %v2405_v47, %v2401_v39  ;;  %v2789_v39 = vrot.slane %v4812_v35, 1  ;;  %v4816_v47 = vld [vmem:[%s5071_s13 + $0x5c] ss:$0 sps:$4 sm:$0x11]  }
 0x10a   : > { %1931 = vrot.lane.b32.xlu0 %v1890_v60, %s4954_s28  ;;  %v2507_v0 = vsel %vm538_vm1, %v2502_v50, %v2506_v46  ;;  %v727_v46 = vshll.u32 %v4814_v40, 16 }
 0x10b   : > { %v2551_v59 = vpop.permute.xlu1 %2550  ;;  %v2411_v58 = vsel %vm538_vm1, %v2406_v52, %v2410_v53  ;;  %v631_v53 = vshll.u32 %v4816_v47, 16 }
 0x10c   : > { %2590 = vst.msk [vmem:[#allocation2 + $0x48] sm:$0xff] %vm2580_vm10, %v2551_v59  ;;  %v2535_v61 = vpop.permute.xlu0 %2534  ;;  %v4802_v59 = vld [vmem:[%s5071_s13 + $0xb0] ss:$0 sps:$4 sm:$0x11]   ;;  %v729_v52 = vrot.slane %v727_v46, 1 }
 0x10d   : > { %2582 = vst.msk [vmem:[#allocation2 + $0x8] sm:$0xff] %vm2580_vm10, %v2535_v61  ;;  %2123 = vrot.lane.b32.xlu1 %v4781_v55, %s4955_s29  ;;  %v4801_v55 = vld [vmem:[%s5071_s13 + $0xa8] sm:$0xfe]  }
 0x10e   : > { %2107 = vrot.lane.b32.xlu0 %v4782_v63, %s4955_s29  ;;  %v2809_v61 = vrot.slane %v4801_v55, 1  ;;  %v4805_v63 = vld [vmem:[%s5071_s13 + $0xa8] sm:$0xff]  }
 0x10f   : > { %v2838_v2 = vpop.permute.xlu1 %2837  ;;  %v4817_v55 = vld [vmem:[%s5071_s13 + $0xa8] sm:$0xfe]  }
 0x110   : > { %2878 = vst.msk [vmem:[#allocation2 + $0x40] sm:$0xff] %vm2869_vm11, %v2838_v2  ;;  %v2822_v6 = vpop.permute.xlu0 %2821  ;;  %v4804_v2 = vld [vmem:[%s5071_s13 + $0x50] ss:$0 sps:$4 sm:$0x11]   ;;  %v1015_v62 = vrot.slane %v4817_v55, 1 }
 0x111   : > { %2870 = vst.msk [vmem:[#allocation2] sm:$0xff] %vm2869_vm11, %v2822_v6  ;;  %2125 = vrot.lane.b32.xlu1 %v4784_v1, %s4955_s29  ;;  %v2810_v1 = vrot.slane %v4802_v59, 1  ;;  %v708_v6 = vshrl.u32 %v4805_v63, 16  ;;  %v2786_v9 = vrot.slane %v4804_v2, 1 }
 0x112   : > { %2109 = vrot.lane.b32.xlu0 %v4785_v3, %s4955_s29  ;;  %v4820_v2 = vld [vmem:[%s5071_s13 + $0x50] ss:$0 sps:$4 sm:$0x11]   ;;  %v4836_v55 = vld [vmem:[%s5071_s13 + $0x68] ss:$0 sps:$4 sm:$0x11]  }
 0x113   : > { %v752_v11 = vpop.permute.xlu1 %751  ;;  %v2811_v8 = vsel %vm972_vm0, %v2809_v61, %v2810_v1  ;;  %v2787_v13 = vsel %vm972_vm0, %v2785_v4, %v2786_v9  ;;  %v4819_v1 = vld [vmem:[%s5071_s13 + $0x48] sm:$0xfe]   ;;  %v4821_v9 = vld [vmem:[%s5071_s13 + $0xb4] sm:$0xfe]  }
 0x114   : > { %790 = vst.msk [vmem:[#allocation2 + $0x50] sm:$0xff] %vm779_vm4, %v752_v11  ;;  %v736_v12 = vpop.permute.xlu0 %735  ;;  %v710_v11 = vshll.u32 %v4805_v63, 16 }
 0x115   : > { %782 = vst.msk [vmem:[#allocation2 + $0x10] sm:$0xff] %vm779_vm4, %v736_v12  ;;  %2556 = vrot.lane.b32.xlu1 %v2495_v34, %s4956_s30  ;;  %v4807_v12 = vld [vmem:[%s5071_s13 + $0x48] sm:$0xff]   ;;  %v4811_v34 = vld [vmem:[%s5071_s13 + $0x54] sm:$0xfe]  }
 0x116   : > { %2540 = vrot.lane.b32.xlu0 %v2399_v42, %s4956_s30  ;;  %v712_v14 = vrot.slane %v710_v11, 1  ;;  %v612_v19 = vshrl.u32 %v4807_v12, 16  ;;  %v614_v20 = vshll.u32 %v4807_v12, 16  ;;  %v2788_v38 = vrot.slane %v4811_v34, 1 }
 0x117   : > { %v2840_v24 = vpop.permute.xlu1 %2839  ;;  %v2894_v25 = vld [vmem:[#allocation2 + $0x40] sm:$0xff] }
 0x118   : > { %2879 = vst.msk [vmem:[#allocation2 + $0x48] sm:$0xff] %vm2869_vm11, %v2840_v24  ;;  %v2824_v29 = vpop.permute.xlu0 %2823  ;;  %v2886_v30 = vld [vmem:[#allocation2] sm:$0xff]  ;;  %4552 = vmatprep.mubr.bf16.mxu1 %v2894_v25  ;;  %v713_v22 = vor.u32 %v712_v14, %v708_v6  ;;  %v4809_v24 = vld [vmem:[%s5071_s13 + $0xb4] sm:$0xfe]   ;;  %v616_v26 = vrot.slane %v614_v20, 1  ;;  %v991_v6 = vrot.slane %v4819_v1, 1 }
 0x119   : > { %2871 = vst.msk [vmem:[#allocation2 + $0x8] sm:$0xff] %vm2869_vm11, %v2824_v29  ;;  %4536 = vmatprep.mubr.bf16.mxu0 %v2886_v30  ;;  %2558 = vrot.lane.b32.xlu1 %v2507_v0, %s4956_s30  ;;  %v4813_v25 = vld [vmem:[%s5071_s13 + $0xb4] sm:$0xff]   ;;  %v621_v30 = vrot.slane %v619_v17, 1  ;;  %v2812_v31 = vrot.slane %v4809_v24, 1  ;;  %v1019_v14 = vrot.slane %v4822_v10, 1  ;;  %v995_v24 = vrot.slane %v4824_v16, 1 }
 0x11a   : > { %2542 = vrot.lane.b32.xlu0 %v2411_v58, %s4956_s30  ;;  %v718_v29 = vsel %vm538_vm1, %v713_v22, %v717_v23  ;;  %v617_v33 = vor.u32 %v616_v26, %v612_v19  ;;  %v720_v42 = vshrl.u32 %v4813_v25, 16  ;;  %v722_v43 = vshll.u32 %v4813_v25, 16  ;;  %v4829_v19 = vld [vmem:[%s5071_s13 + $0xb4] sm:$0xff]   ;;  %v4838_v1 = vld [vmem:[%s5071_s13 + $0xbc] ss:$0 sps:$4 sm:$0x11]  }
 0x11b   : > { %v754_v41 = vpop.permute.xlu1 %753  ;;  %v2814_v5 = vsel %vm972_vm0, %v2812_v31, %v2813_v28  ;;  %v633_v58 = vrot.slane %v631_v53, 1  ;;  %v4825_v22 = vld [vmem:[%s5071_s13 + $0xb4] sm:$0xff]   ;;  %v1609_v25 = vshrl.u32 %v4829_v19, 16  ;;  %v4840_v10 = vld [vmem:[%s5071_s13 + $0x5c] ss:$0 sps:$4 sm:$0x11]  }
 0x11c   : > { %v738_v45 = vpop.permute.xlu0 %737  ;;  %791 = vst.msk [vmem:[#allocation2 + $0x58] sm:$0xff] %vm779_vm4, %v754_v41  ;;  %v622_v37 = vsel %vm538_vm1, %v617_v33, %v621_v30  ;;  %v4815_v41 = vld [vmem:[%s5071_s13 + $0x54] sm:$0xff]   ;;  %v724_v49 = vrot.slane %v722_v43, 1  ;;  %v4830_v33 = vld [vmem:[%s5071_s13 + $0xbc] ss:$0 sps:$4 sm:$0x11]  }
 0x11d   : > { %783 = vst.msk [vmem:[#allocation2 + $0x18] sm:$0xff] %vm779_vm4, %v738_v45  ;;  %2845 = vrot.lane.b32.xlu1 %v2811_v8, %s4957_s4  ;;  %v2790_v45 = vsel %vm972_vm0, %v2788_v38, %v2789_v39  ;;  %v624_v50 = vshrl.u32 %v4815_v41, 16  ;;  %v626_v51 = vshll.u32 %v4815_v41, 16  ;;  %v992_v8 = vrot.slane %v4820_v2, 1  ;;  %v4831_v17 = vld [vmem:[%s5071_s13 + $0x54] sm:$0xff]   ;;  %v4835_v39 = vld [vmem:[%s5071_s13 + $0x60] sm:$0xff]  }
 0x11e   : > { %2829 = vrot.lane.b32.xlu0 %v2787_v13, %s4957_s4  ;;  %v1018_v13 = vrot.slane %v4821_v9, 1  ;;  %v4826_v26 = vld [vmem:[%s5071_s13 + $0x54] sm:$0xff]   ;;  %v1513_v30 = vshrl.u32 %v4831_v17, 16  ;;  %v1515_v28 = vshll.u32 %v4831_v17, 16  ;;  %v1527_v53 = vshll.u32 %v4835_v39, 16 }
 0x11f   : > { %v1042_v54 = vpop.permute.xlu1 %1041  ;;  %v2895_v57 = vld [vmem:[#allocation2 + $0x48] sm:$0xff]  ;;  %v628_v0 = vrot.slane %v626_v51, 1  ;;  %v993_v12 = vsel %vm972_vm0, %v991_v6, %v992_v8  ;;  %v4839_v8 = vld [vmem:[%s5071_s13 + $0x54] sm:$0xfe]  }
 0x120   : > { %1080 = vst.msk [vmem:[#allocation2 + $0x50] sm:$0xff] %vm1069_vm5, %v1042_v54  ;;  %v1026_v56 = vpop.permute.xlu0 %1025  ;;  %v2887_v60 = vld [vmem:[#allocation2 + $0x8] sm:$0xff]  ;;  %4553 = vmatmul.mubr.bf16.vlgmr.msra.gmra.mrb[0].mxu1 %v2895_v57  ;;  %v725_v54 = vor.u32 %v724_v49, %v720_v42  ;;  %v1020_v20 = vsel %vm972_vm0, %v1018_v13, %v1019_v14  ;;  %v1517_v38 = vrot.slane %v1515_v28, 1  ;;  %v4828_v42 = vld [vmem:[%s5071_s13 + $0x60] sm:$0xff]   ;;  %v1891_v13 = vrot.slane %v4839_v8, 1 }
 0x121   : > { %1072 = vst.msk [vmem:[#allocation2 + $0x10] sm:$0xff] %vm1069_vm5, %v1026_v56  ;;  %4537 = vmatmul.mubr.bf16.vlgmr.msra.gmra.mrb[0].mxu0 %v2887_v60  ;;  %759 = vrot.lane.b32.xlu1 %v718_v29, %s4952_s26  ;;  %v4818_v56 = vld [vmem:[%s5071_s13 + $0xb0] ss:$0 sps:$4 sm:$0x11]   ;;  %v629_v61 = vor.u32 %v628_v0, %v624_v50  ;;  %v1611_v29 = vshll.u32 %v4829_v19, 16  ;;  %v1892_v14 = vrot.slane %v4840_v10, 1 }
 0x122   : > { %743 = vrot.lane.b32.xlu0 %v622_v37, %s4952_s26  ;;  %v730_v60 = vsel %vm538_vm1, %v725_v54, %v729_v52  ;;  %v1016_v63 = vrot.slane %v4818_v56, 1  ;;  %v1616_v37 = vshll.u32 %v4830_v33, 16  ;;  %v1518_v47 = vor.u32 %v1517_v38, %v1513_v30  ;;  %v4842_v16 = vld [vmem:[%s5071_s13 + $0xc8] ss:$0 sps:$4 sm:$0x11]   ;;  %v4845_v33 = vld [vmem:[%s5071_s13 + $0xc0] sm:$0xff]  }
 0x123   : > { %v1044_v3 = vpop.permute.xlu1 %1043  ;;  %v1613_v35 = vrot.slane %v1611_v29, 1  ;;  %v1525_v52 = vshrl.u32 %v4835_v39, 16  ;;  %v1893_v17 = vsel %vm972_vm0, %v1891_v13, %v1892_v14  ;;  %v4853_v38 = vld [vmem:[%s5071_s13 + $0x60] sm:$0xff]  }
 0x124   : > { %1081 = vst.msk [vmem:[#allocation2 + $0x58] sm:$0xff] %vm1069_vm5, %v1044_v3  ;;  %v1028_v7 = vpop.permute.xlu0 %1027  ;;  %v634_v3 = vsel %vm538_vm1, %v629_v61, %v633_v58  ;;  %v1017_v4 = vsel %vm972_vm0, %v1015_v62, %v1016_v63  ;;  %v1618_v43 = vrot.slane %v1616_v37, 1  ;;  %v1529_v58 = vrot.slane %v1527_v53, 1  ;;  %v4837_v63 = vld [vmem:[%s5071_s13 + $0xb4] sm:$0xfe]  }
 0x125   : > { %1073 = vst.msk [vmem:[#allocation2 + $0x18] sm:$0xff] %vm1069_vm5, %v1028_v7  ;;  %2847 = vrot.lane.b32.xlu1 %v2814_v5, %s4957_s4  ;;  %v4832_v5 = vld [vmem:[%s5071_s13 + $0x5c] ss:$0 sps:$4 sm:$0x11]   ;;  %v1614_v40 = vor.u32 %v1613_v35, %v1609_v25  ;;  %v1532_v62 = vshll.u32 %v4836_v55, 16  ;;  %v1915_v6 = vrot.slane %v4837_v63, 1 }
 0x126   : > { %2831 = vrot.lane.b32.xlu0 %v2790_v45, %s4957_s4  ;;  %v4834_v45 = vld [vmem:[%s5071_s13 + $0xc8] ss:$0 sps:$4 sm:$0x11]   ;;  %v1530_v2 = vor.u32 %v1529_v58, %v1525_v52  ;;  %v4849_v25 = vld [vmem:[%s5071_s13 + $0x90] sm:$0xff]   ;;  %v4846_v35 = vld [vmem:[%s5071_s13 + $0x60] sm:$0xff]  }
 0x127   : > { %v1220_v18 = vpop.permute.xlu1 %1219  ;;  %v1628_v51 = vshll.u32 %v4834_v45, 16  ;;  %v1619_v54 = vsel %vm538_vm1, %v1614_v40, %v1618_v43  ;;  %358 = vst.msk [vmem:[#allocation2 + $0x60] sm:$0xff] %vm345_vm3, %v4849_v25  ;;  %v4848_v45 = vld [vmem:[%s5071_s13 + $0x6c] sm:$0xff]   ;;  %v4859_v58 = vld [vmem:[%s5071_s13 + $0x9c] sm:$0xff]  }
 0x128   : > { %1258 = vst.msk [vmem:[#allocation2 + $0x50] sm:$0xff] %vm1247_vm6, %v1220_v18  ;;  %v1204_v21 = vpop.permute.xlu0 %1203  ;;  %v4857_v55 = vld [vmem:[%s5071_s13 + $0x6c] sm:$0xff]   ;;  %v4860_v63 = vld [vmem:[%s5071_s13 + $0x3c] sm:$0xff]  }
 0x129   : > { %1250 = vst.msk [vmem:[#allocation2 + $0x10] sm:$0xff] %vm1247_vm6, %v1204_v21  ;;  %761 = vrot.lane.b32.xlu1 %v730_v60, %s4952_s26  ;;  %v994_v21 = vrot.slane %v4823_v15, 1  ;;  %v4841_v15 = vld [vmem:[%s5071_s13 + $0xc0] sm:$0xfe]  }
 0x12a   : > { %745 = vrot.lane.b32.xlu0 %v634_v3, %s4952_s26  ;;  %359 = vst.msk [vmem:[#allocation2 + $0x68] sm:$0xff] %vm345_vm3, %v4859_v58  ;;  %351 = vst.msk [vmem:[#allocation2 + $0x28] sm:$0xff] %vm345_vm3, %v4860_v63  ;;  %v4863_v25 = vld [vmem:[%s5071_s13 + $0x60] sm:$0xfe]  }
 0x12b   : > { %v1222_v32 = vpop.permute.xlu1 %1221  ;;  %v996_v27 = vsel %vm972_vm0, %v994_v21, %v995_v24  ;;  %v1919_v21 = vrot.slane %v4842_v16, 1  ;;  %v4844_v24 = vld [vmem:[%s5071_s13 + $0x68] ss:$0 sps:$4 sm:$0x11]  }
 0x12c   : > { %1259 = vst.msk [vmem:[#allocation2 + $0x58] sm:$0xff] %vm1247_vm6, %v1222_v32  ;;  %v1206_v36 = vpop.permute.xlu0 %1205  ;;  %v4827_v32 = vld [vmem:[%s5071_s13 + $0xc0] sm:$0xff]   ;;  %v1895_v30 = vrot.slane %v4844_v24, 1 }
 0x12d   : > { %1251 = vst.msk [vmem:[#allocation2 + $0x18] sm:$0xff] %vm1247_vm6, %v1206_v36  ;;  %1049 = vrot.lane.b32.xlu1 %v1017_v4, %s4951_s25  ;;  %v4833_v36 = vld [vmem:[%s5071_s13 + $0xc0] sm:$0xff]   ;;  %v1534_v4 = vrot.slane %v1532_v62, 1 }
 0x12e   : > { %1033 = vrot.lane.b32.xlu0 %v993_v12, %s4951_s25  ;;  %v1623_v49 = vshll.u32 %v4833_v36, 16 }
 0x12f   : > { %v1653_v44 = vpop.permute.xlu1 %1652  ;;  %v1535_v12 = vsel %vm538_vm1, %v1530_v2, %v1534_v4  ;;  %v4858_v2 = vld [vmem:[%s5071_s13 + $0x74] ss:$0 sps:$4 sm:$0x11]   ;;  %v2427_v4 = vshll.u32 %v4857_v55, 16 }
 0x130   : > { %1691 = vst.msk [vmem:[#allocation2 + $0x50] sm:$0xff] %vm1680_vm7, %v1653_v44  ;;  %v1637_v48 = vpop.permute.xlu0 %1636  ;;  %v1520_v44 = vshll.u32 %v4832_v5, 16  ;;  %v1625_v0 = vrot.slane %v1623_v49, 1  ;;  %v2432_v13 = vshll.u32 %v4858_v2, 16 }
 0x131   : > { %1683 = vst.msk [vmem:[#allocation2 + $0x10] sm:$0xff] %vm1680_vm7, %v1637_v48  ;;  %1051 = vrot.lane.b32.xlu1 %v1020_v20, %s4951_s25  ;;  %v1621_v48 = vshrl.u32 %v4833_v36, 16  ;;  %v1918_v20 = vrot.slane %v4841_v15, 1  ;;  %v4852_v36 = vld [vmem:[%s5071_s13 + $0xc8] ss:$0 sps:$4 sm:$0x11]  }
 0x132   : > { %1035 = vrot.lane.b32.xlu0 %v996_v27, %s4951_s25  ;;  %v1522_v50 = vrot.slane %v1520_v44, 1  ;;  %v4850_v27 = vld [vmem:[%s5071_s13 + $0x30] sm:$0xff]   ;;  %v2516_v43 = vshll.u32 %v4852_v36, 16  ;;  %v4854_v44 = vld [vmem:[%s5071_s13 + $0x68] ss:$0 sps:$4 sm:$0x11]  }
 0x133   : > { %v1655_v57 = vpop.permute.xlu1 %1654  ;;  %v1626_v61 = vor.u32 %v1625_v0, %v1621_v48  ;;  %v1920_v29 = vsel %vm972_vm0, %v1918_v20, %v1919_v21  ;;  %350 = vst.msk [vmem:[#allocation2 + $0x20] sm:$0xff] %vm345_vm3, %v4850_v27  ;;  %v2420_v52 = vshll.u32 %v4854_v44, 16  ;;  %v4856_v0 = vld [vmem:[%s5071_s13 + $0xd4] ss:$0 sps:$4 sm:$0x11]   ;;  %v2434_v16 = vrot.slane %v2432_v13, 1 }
 0x134   : > { %1692 = vst.msk [vmem:[#allocation2 + $0x58] sm:$0xff] %vm1680_vm7, %v1655_v57  ;;  %v1639_v59 = vpop.permute.xlu0 %1638  ;;  %v1630_v57 = vrot.slane %v1628_v51, 1  ;;  %v1523_v60 = vsel %vm538_vm1, %v1518_v47, %v1522_v50  ;;  %v2415_v47 = vshll.u32 %v4853_v38, 16  ;;  %v2518_v51 = vrot.slane %v2516_v43, 1  ;;  %v4869_v27 = vld [vmem:[%s5071_s13 + $0xa8] sm:$0xff]   ;;  %v4872_v43 = vld [vmem:[%s5071_s13 + $0x54] sm:$0xff]  }
 0x135   : > { %1684 = vst.msk [vmem:[#allocation2 + $0x18] sm:$0xff] %vm1680_vm7, %v1639_v59  ;;  %1227 = vrot.lane.b32.xlu1 %v4825_v22, %s4950_s24  ;;  %v4843_v22 = vld [vmem:[%s5071_s13 + $0x60] sm:$0xfe]   ;;  %v2528_v62 = vshll.u32 %v4856_v0, 16 }
 0x136   : > { %1211 = vrot.lane.b32.xlu0 %v4826_v26, %s4950_s24  ;;  %v1631_v3 = vsel %vm538_vm1, %v1626_v61, %v1630_v57  ;;  %v1894_v26 = vrot.slane %v4843_v22, 1  ;;  %v2417_v53 = vrot.slane %v2415_v47, 1  ;;  %v2422_v57 = vrot.slane %v2420_v52, 1  ;;  %360 = vst.msk [vmem:[#allocation2 + $0x70] sm:$0xff] %vm345_vm3, %v4869_v27  ;;  %353 = vst.msk [vmem:[#allocation2 + $0x38] sm:$0xff] %vm345_vm3, %v4872_v43 }
 0x137   : > { %v1942_v7 = vpop.permute.xlu1 %1941  ;;  %v4866_v36 = vld [vmem:[%s5071_s13 + $0xd4] ss:$0 sps:$4 sm:$0x11]  }
 0x138   : > { %1980 = vst.msk [vmem:[#allocation2 + $0x50] sm:$0xff] %vm1969_vm8, %v1942_v7  ;;  %v1926_v11 = vpop.permute.xlu0 %1925  ;;  %v1916_v7 = vrot.slane %v4838_v1, 1 }
 0x139   : > { %1972 = vst.msk [vmem:[#allocation2 + $0x10] sm:$0xff] %vm1969_vm8, %v1926_v11  ;;  %1229 = vrot.lane.b32.xlu1 %v4827_v32, %s4950_s24  ;;  %v4851_v32 = vld [vmem:[%s5071_s13 + $0xc0] sm:$0xff]  }
 0x13a   : > { %1213 = vrot.lane.b32.xlu0 %v4828_v42, %s4950_s24  ;;  %v2509_v37 = vshrl.u32 %v4851_v32, 16  ;;  %v2511_v5 = vshll.u32 %v4851_v32, 16  ;;  %v2791_v32 = vrot.slane %v4863_v25, 1 }
 0x13b   : > { %v1944_v18 = vpop.permute.xlu1 %1943 }
 0x13c   : > { %1981 = vst.msk [vmem:[#allocation2 + $0x58] sm:$0xff] %vm1969_vm8, %v1944_v18  ;;  %v1928_v23 = vpop.permute.xlu0 %1927  ;;  %v1917_v18 = vsel %vm972_vm0, %v1915_v6, %v1916_v7  ;;  %v2513_v42 = vrot.slane %v2511_v5, 1 }
 0x13d   : > { %1973 = vst.msk [vmem:[#allocation2 + $0x18] sm:$0xff] %vm1969_vm8, %v1928_v23  ;;  %1660 = vrot.lane.b32.xlu1 %v1619_v54, %s4953_s27  ;;  %v4855_v54 = vld [vmem:[%s5071_s13 + $0xcc] sm:$0xff]  }
 0x13e   : > { %1644 = vrot.lane.b32.xlu0 %v1523_v60, %s4953_s27  ;;  %v2514_v50 = vor.u32 %v2513_v42, %v2509_v37  ;;  %v2521_v60 = vshrl.u32 %v4855_v54, 16  ;;  %v2523_v61 = vshll.u32 %v4855_v54, 16 }
 0x13f   : > { %v2120_v31 = vpop.permute.xlu1 %2119 }
 0x140   : > { %2158 = vst.msk [vmem:[#allocation2 + $0x50] sm:$0xff] %vm2147_vm9, %v2120_v31  ;;  %v2104_v34 = vpop.permute.xlu0 %2103  ;;  %v2519_v1 = vsel %vm538_vm1, %v2514_v50, %v2518_v51  ;;  %v2525_v8 = vrot.slane %v2523_v61, 1 }
 0x141   : > { %2150 = vst.msk [vmem:[#allocation2 + $0x10] sm:$0xff] %vm2147_vm9, %v2104_v34  ;;  %1662 = vrot.lane.b32.xlu1 %v1631_v3, %s4953_s27  ;;  %v1896_v34 = vsel %vm972_vm0, %v1894_v26, %v1895_v30  ;;  %v2425_v3 = vshrl.u32 %v4857_v55, 16  ;;  %v4870_v30 = vld [vmem:[%s5071_s13 + $0x48] sm:$0xff]  }
 0x142   : > { %1646 = vrot.lane.b32.xlu0 %v1535_v12, %s4953_s27  ;;  %v2429_v12 = vrot.slane %v2427_v4, 1  ;;  %v2526_v14 = vor.u32 %v2525_v8, %v2521_v60  ;;  %352 = vst.msk [vmem:[#allocation2 + $0x30] sm:$0xff] %vm345_vm3, %v4870_v30 }
 0x143   : > { %v2122_v41 = vpop.permute.xlu1 %2121 }
 0x144   : > { %2159 = vst.msk [vmem:[#allocation2 + $0x58] sm:$0xff] %vm2147_vm9, %v2122_v41  ;;  %v2106_v46 = vpop.permute.xlu0 %2105  ;;  %v4847_v41 = vld [vmem:[%s5071_s13 + $0xcc] sm:$0xff]   ;;  %v2430_v15 = vor.u32 %v2429_v12, %v2425_v3 }
 0x145   : > { %2151 = vst.msk [vmem:[#allocation2 + $0x18] sm:$0xff] %vm2147_vm9, %v2106_v46  ;;  %1949 = vrot.lane.b32.xlu1 %v1917_v18, %s4954_s28  ;;  %v2413_v46 = vshrl.u32 %v4853_v38, 16  ;;  %v4861_v18 = vld [vmem:[%s5071_s13 + $0xc0] sm:$0xfe]  }
 0x146   : > { %1933 = vrot.lane.b32.xlu0 %v1893_v17, %s4954_s28  ;;  %v2815_v17 = vrot.slane %v4861_v18, 1 }
 0x147   : > { %v2553_v56 = vpop.permute.xlu1 %2552 }
 0x148   : > { %2591 = vst.msk [vmem:[#allocation2 + $0x50] sm:$0xff] %vm2580_vm10, %v2553_v56  ;;  %v2537_v59 = vpop.permute.xlu0 %2536 }
 0x149   : > { %2583 = vst.msk [vmem:[#allocation2 + $0x10] sm:$0xff] %vm2580_vm10, %v2537_v59  ;;  %1951 = vrot.lane.b32.xlu1 %v1920_v29, %s4954_s28  ;;  %v2418_v59 = vor.u32 %v2417_v53, %v2413_v46  ;;  %v4864_v29 = vld [vmem:[%s5071_s13 + $0x68] ss:$0 sps:$4 sm:$0x11]  }
 0x14a   : > { %1935 = vrot.lane.b32.xlu0 %v1896_v34, %s4954_s28  ;;  %v2792_v34 = vrot.slane %v4864_v29, 1 }
 0x14b   : > { %v2555_v9 = vpop.permute.xlu1 %2554 }
 0x14c   : > { %2592 = vst.msk [vmem:[#allocation2 + $0x58] sm:$0xff] %vm2580_vm10, %v2555_v9  ;;  %v2539_v11 = vpop.permute.xlu0 %2538  ;;  %v2530_v9 = vrot.slane %v2528_v62, 1  ;;  %v2793_v5 = vsel %vm972_vm0, %v2791_v32, %v2792_v34 }
 0x14d   : > { %2584 = vst.msk [vmem:[#allocation2 + $0x18] sm:$0xff] %vm2580_vm10, %v2539_v11  ;;  %2127 = vrot.lane.b32.xlu1 %v4845_v33, %s4955_s29  ;;  %v2423_v11 = vsel %vm538_vm1, %v2418_v59, %v2422_v57 }
 0x14e   : > { %2111 = vrot.lane.b32.xlu0 %v4846_v35, %s4955_s29  ;;  %v2531_v21 = vsel %vm538_vm1, %v2526_v14, %v2530_v9  ;;  %v4865_v35 = vld [vmem:[%s5071_s13 + $0xcc] sm:$0xfe]  }
 0x14f   : > { %v2842_v19 = vpop.permute.xlu1 %2841  ;;  %v2818_v38 = vrot.slane %v4865_v35, 1 }
 0x150   : > { %2880 = vst.msk [vmem:[#allocation2 + $0x50] sm:$0xff] %vm2869_vm11, %v2842_v19  ;;  %v2826_v23 = vpop.permute.xlu0 %2825  ;;  %v4862_v19 = vld [vmem:[%s5071_s13 + $0xc8] ss:$0 sps:$4 sm:$0x11]  }
 0x151   : > { %2872 = vst.msk [vmem:[#allocation2 + $0x10] sm:$0xff] %vm2869_vm11, %v2826_v23  ;;  %2129 = vrot.lane.b32.xlu1 %v4847_v41, %s4955_s29  ;;  %v2435_v23 = vsel %vm538_vm1, %v2430_v15, %v2434_v16  ;;  %v2816_v24 = vrot.slane %v4862_v19, 1  ;;  %v4868_v41 = vld [vmem:[%s5071_s13 + $0x74] ss:$0 sps:$4 sm:$0x11]   ;;  %vm5852_vm1 = vmand %vm3640_vm12, %vm3641_vm13 }
 0x152   : > { %2113 = vrot.lane.b32.xlu0 %v4848_v45, %s4955_s29  ;;  %v2795_v47 = vrot.slane %v4868_v41, 1 }
 0x153   : > { %v756_v31 = vpop.permute.xlu1 %755 }
 0x154   : > { %792 = vst.msk [vmem:[#allocation2 + $0x60] sm:$0xff] %vm779_vm4, %v756_v31  ;;  %v740_v28 = vpop.permute.xlu0 %739  ;;  %v2817_v31 = vsel %vm972_vm0, %v2815_v17, %v2816_v24 }
 0x155   : > { %784 = vst.msk [vmem:[#allocation2 + $0x20] sm:$0xff] %vm779_vm4, %v740_v28  ;;  %2560 = vrot.lane.b32.xlu1 %v2519_v1, %s4956_s30  ;;  %v4871_v28 = vld [vmem:[%s5071_s13 + $0xb4] sm:$0xff]  }
 0x156   : > { %2544 = vrot.lane.b32.xlu0 %v2423_v11, %s4956_s30  ;;  %361 = vst.msk [vmem:[#allocation2 + $0x78] sm:$0xff] %vm345_vm3, %v4871_v28 }
 0x157   : > { %v2844_v39 = vpop.permute.xlu1 %2843  ;;  %v2896_v49 = vld [vmem:[#allocation2 + $0x50] sm:$0xff] }
 0x158   : > { %2881 = vst.msk [vmem:[#allocation2 + $0x58] sm:$0xff] %vm2869_vm11, %v2844_v39  ;;  %v2828_v40 = vpop.permute.xlu0 %2827  ;;  %v2888_v48 = vld [vmem:[#allocation2 + $0x10] sm:$0xff]  ;;  %4556 = vmatprep.mubr.bf16.mxu1 %v2896_v49  ;;  %v2819_v39 = vrot.slane %v4866_v36, 1 }
 0x159   : > { %2873 = vst.msk [vmem:[#allocation2 + $0x18] sm:$0xff] %vm2869_vm11, %v2828_v40  ;;  %4540 = vmatprep.mubr.bf16.mxu0 %v2888_v48  ;;  %2562 = vrot.lane.b32.xlu1 %v2531_v21, %s4956_s30  ;;  %v4867_v40 = vld [vmem:[%s5071_s13 + $0x6c] sm:$0xfe]  }
 0x15a   : > { %2546 = vrot.lane.b32.xlu0 %v2435_v23, %s4956_s30  ;;  %v2820_v44 = vsel %vm972_vm0, %v2818_v38, %v2819_v39  ;;  %v2794_v45 = vrot.slane %v4867_v40, 1 }
 0x15b   : > { %v758_v56 = vpop.permute.xlu1 %757 }
 0x15c   : > { %v742_v6 = vpop.permute.xlu0 %741  ;;  %793 = vst.msk [vmem:[#allocation2 + $0x68] sm:$0xff] %vm779_vm4, %v758_v56  ;;  %v2796_v48 = vsel %vm972_vm0, %v2794_v45, %v2795_v47  ;;  %vm3647_vm0 = vcmask 1040384  }
 0x15d   : > { %785 = vst.msk [vmem:[#allocation2 + $0x28] sm:$0xff] %vm779_vm4, %v742_v6  ;;  %2849 = vrot.lane.b32.xlu1 %v2817_v31, %s4957_s4  ;;  %vm5870_vm3 = vmand %vm3647_vm0, %vm3316_vm14 }
 0x15e   : > { %2833 = vrot.lane.b32.xlu0 %v2793_v5, %s4957_s4 }
 0x15f   : > { %v2897_v7 = vld [vmem:[#allocation2 + $0x58] sm:$0xff]  ;;  %v1046_v10 = vpop.permute.xlu1 %1045 }
 0x160   : > { %4557 = vmatmul.mubr.bf16.gmra.mrb[4].mxu1 %v2897_v7  ;;  %1082 = vst.msk [vmem:[#allocation2 + $0x60] sm:$0xff] %vm1069_vm5, %v1046_v10  ;;  %v1030_v20 = vpop.permute.xlu0 %1029  ;;  %v2889_v26 = vld [vmem:[#allocation2 + $0x18] sm:$0xff] }
 0x161   : > { %1074 = vst.msk [vmem:[#allocation2 + $0x20] sm:$0xff] %vm1069_vm5, %v1030_v20  ;;  %4541 = vmatmul.mubr.bf16.gmra.mrb[4].mxu0 %v2889_v26  ;;  %2851 = vrot.lane.b32.xlu1 %v2820_v44, %s4957_s4 }
 0x162   : > { %2835 = vrot.lane.b32.xlu0 %v2796_v48, %s4957_s4 }
 0x163   : > { %v1048_v22 = vpop.permute.xlu1 %1047 }
 0x164   : > { %1083 = vst.msk [vmem:[#allocation2 + $0x68] sm:$0xff] %vm1069_vm5, %v1048_v22  ;;  %v1032_v33 = vpop.permute.xlu0 %1031 }
 0x165   : > { %1075 = vst.msk [vmem:[#allocation2 + $0x28] sm:$0xff] %vm1069_vm5, %v1032_v33 }
 0x167   : > { %v1224_v37 = vpop.permute.xlu1 %1223 }
 0x168   : > { %1260 = vst.msk [vmem:[#allocation2 + $0x60] sm:$0xff] %vm1247_vm6, %v1224_v37  ;;  %v1208_v42 = vpop.permute.xlu0 %1207 }
 0x169   : > { %1252 = vst.msk [vmem:[#allocation2 + $0x20] sm:$0xff] %vm1247_vm6, %v1208_v42 }
 0x16b   : > { %v1226_v46 = vpop.permute.xlu1 %1225 }
 0x16c   : > { %1261 = vst.msk [vmem:[#allocation2 + $0x68] sm:$0xff] %vm1247_vm6, %v1226_v46  ;;  %v1210_v49 = vpop.permute.xlu0 %1209  ;;  %v5840_v46 = vld [vmem:[#allocation5] ss:$0 sm:$0xff] }
 0x16d   : > { %1253 = vst.msk [vmem:[#allocation2 + $0x28] sm:$0xff] %vm1247_vm6, %v1210_v49 }
 0x16f   : > { %v1657_v50 = vpop.permute.xlu1 %1656 }
 0x170   : > { %1693 = vst.msk [vmem:[#allocation2 + $0x60] sm:$0xff] %vm1680_vm7, %v1657_v50  ;;  %v1641_v51 = vpop.permute.xlu0 %1640 }
 0x171   : > { %1685 = vst.msk [vmem:[#allocation2 + $0x20] sm:$0xff] %vm1680_vm7, %v1641_v51 }
 0x173   : > { %v1659_v52 = vpop.permute.xlu1 %1658 }
 0x174   : > { %1694 = vst.msk [vmem:[#allocation2 + $0x68] sm:$0xff] %vm1680_vm7, %v1659_v52  ;;  %v1643_v53 = vpop.permute.xlu0 %1642 }
 0x175   : > { %1686 = vst.msk [vmem:[#allocation2 + $0x28] sm:$0xff] %vm1680_vm7, %v1643_v53 }
 0x177   : > { %v1946_v54 = vpop.permute.xlu1 %1945 }
 0x178   : > { %1982 = vst.msk [vmem:[#allocation2 + $0x60] sm:$0xff] %vm1969_vm8, %v1946_v54  ;;  %v1930_v0 = vpop.permute.xlu0 %1929 }
 0x179   : > { %1974 = vst.msk [vmem:[#allocation2 + $0x20] sm:$0xff] %vm1969_vm8, %v1930_v0 }
 0x17b   : > { %v1948_v55 = vpop.permute.xlu1 %1947 }
 0x17c   : > { %1983 = vst.msk [vmem:[#allocation2 + $0x68] sm:$0xff] %vm1969_vm8, %v1948_v55  ;;  %v1932_v56 = vpop.permute.xlu0 %1931 }
 0x17d   : > { %1975 = vst.msk [vmem:[#allocation2 + $0x28] sm:$0xff] %vm1969_vm8, %v1932_v56 }
 0x17f   : > { %v2124_v57 = vpop.permute.xlu1 %2123 }
 0x180   : > { %2160 = vst.msk [vmem:[#allocation2 + $0x60] sm:$0xff] %vm2147_vm9, %v2124_v57  ;;  %v2108_v58 = vpop.permute.xlu0 %2107 }
 0x181   : > { %2152 = vst.msk [vmem:[#allocation2 + $0x20] sm:$0xff] %vm2147_vm9, %v2108_v58 }
 0x183   : > { %v2126_v59 = vpop.permute.xlu1 %2125 }
 0x184   : > { %2161 = vst.msk [vmem:[#allocation2 + $0x68] sm:$0xff] %vm2147_vm9, %v2126_v59  ;;  %v2110_v60 = vpop.permute.xlu0 %2109 }
 0x185   : > { %2153 = vst.msk [vmem:[#allocation2 + $0x28] sm:$0xff] %vm2147_vm9, %v2110_v60 }
 0x187   : > { %v2557_v61 = vpop.permute.xlu1 %2556 }
 0x188   : > { %2593 = vst.msk [vmem:[#allocation2 + $0x60] sm:$0xff] %vm2580_vm10, %v2557_v61  ;;  %v2541_v62 = vpop.permute.xlu0 %2540 }
 0x189   : > { %2585 = vst.msk [vmem:[#allocation2 + $0x20] sm:$0xff] %vm2580_vm10, %v2541_v62 }
 0x18b   : > { %v2559_v63 = vpop.permute.xlu1 %2558 }
 0x18c   : > { %2594 = vst.msk [vmem:[#allocation2 + $0x68] sm:$0xff] %vm2580_vm10, %v2559_v63  ;;  %v2543_v1 = vpop.permute.xlu0 %2542 }
 0x18d   : > { %2586 = vst.msk [vmem:[#allocation2 + $0x28] sm:$0xff] %vm2580_vm10, %v2543_v1 }
 0x18f   : > { %v2846_v2 = vpop.permute.xlu1 %2845 }
 0x190   : > { %2882 = vst.msk [vmem:[#allocation2 + $0x60] sm:$0xff] %vm2869_vm11, %v2846_v2  ;;  %v2830_v3 = vpop.permute.xlu0 %2829 }
 0x191   : > { %2874 = vst.msk [vmem:[#allocation2 + $0x20] sm:$0xff] %vm2869_vm11, %v2830_v3 }
 0x193   : > { %v760_v4 = vpop.permute.xlu1 %759 }
 0x194   : > { %794 = vst.msk [vmem:[#allocation2 + $0x70] sm:$0xff] %vm779_vm4, %v760_v4  ;;  %v744_v7 = vpop.permute.xlu0 %743 }
 0x195   : > { %786 = vst.msk [vmem:[#allocation2 + $0x30] sm:$0xff] %vm779_vm4, %v744_v7 }
 0x197   : > { %v2898_v6 = vld [vmem:[#allocation2 + $0x60] sm:$0xff]  ;;  %v2848_v8 = vpop.permute.xlu1 %2847 }
 0x198   : > { %4560 = vmatprep.mubr.bf16.mxu1 %v2898_v6  ;;  %v2890_v9 = vld [vmem:[#allocation2 + $0x20] sm:$0xff]  ;;  %2883 = vst.msk [vmem:[#allocation2 + $0x68] sm:$0xff] %vm2869_vm11, %v2848_v8  ;;  %v2832_v10 = vpop.permute.xlu0 %2831 }
 0x199   : > { %4544 = vmatprep.mubr.bf16.mxu0 %v2890_v9  ;;  %2875 = vst.msk [vmem:[#allocation2 + $0x28] sm:$0xff] %vm2869_vm11, %v2832_v10 }
 0x19b   : > { %v762_v11 = vpop.permute.xlu1 %761 }
 0x19c   : > { %795 = vst.msk [vmem:[#allocation2 + $0x78] sm:$0xff] %vm779_vm4, %v762_v11  ;;  %v746_v12 = vpop.permute.xlu0 %745 }
 0x19d   : > { %787 = vst.msk [vmem:[#allocation2 + $0x38] sm:$0xff] %vm779_vm4, %v746_v12 }
 0x19f   : > { %v2899_v13 = vld [vmem:[#allocation2 + $0x68] sm:$0xff]  ;;  %v1050_v14 = vpop.permute.xlu1 %1049 }
 0x1a0   : > { %4561 = vmatmul.mubr.bf16.gmra.mrb[8].mxu1 %v2899_v13  ;;  %1084 = vst.msk [vmem:[#allocation2 + $0x70] sm:$0xff] %vm1069_vm5, %v1050_v14  ;;  %v2891_v15 = vld [vmem:[#allocation2 + $0x28] sm:$0xff]  ;;  %v1034_v16 = vpop.permute.xlu0 %1033 }
 0x1a1   : > { %4545 = vmatmul.mubr.bf16.gmra.mrb[8].mxu0 %v2891_v15  ;;  %1076 = vst.msk [vmem:[#allocation2 + $0x30] sm:$0xff] %vm1069_vm5, %v1034_v16 }
 0x1a3   : > { %v1052_v18 = vpop.permute.xlu1 %1051 }
 0x1a4   : > { %1085 = vst.msk [vmem:[#allocation2 + $0x78] sm:$0xff] %vm1069_vm5, %v1052_v18  ;;  %v1036_v19 = vpop.permute.xlu0 %1035  ;;  %v4387_v18 = vld [vmem:[%s5066_s21 + $0x18] sm:$0xf] }
 0x1a5   : > { %1077 = vst.msk [vmem:[#allocation2 + $0x38] sm:$0xff] %vm1069_vm5, %v1036_v19 }
 0x1a7   : > { %v1228_v20 = vpop.permute.xlu1 %1227 }
 0x1a8   : > { %1262 = vst.msk [vmem:[#allocation2 + $0x70] sm:$0xff] %vm1247_vm6, %v1228_v20  ;;  %v1212_v21 = vpop.permute.xlu0 %1211 }
 0x1a9   : > { %1254 = vst.msk [vmem:[#allocation2 + $0x30] sm:$0xff] %vm1247_vm6, %v1212_v21 }
 0x1ab   : > { %v1230_v22 = vpop.permute.xlu1 %1229 }
 0x1ac   : > { %1263 = vst.msk [vmem:[#allocation2 + $0x78] sm:$0xff] %vm1247_vm6, %v1230_v22  ;;  %v1214_v23 = vpop.permute.xlu0 %1213 }
 0x1ad   : > { %1255 = vst.msk [vmem:[#allocation2 + $0x38] sm:$0xff] %vm1247_vm6, %v1214_v23 }
 0x1af   : > { %v1661_v17 = vpop.permute.xlu1 %1660 }
 0x1b0   : > { %1695 = vst.msk [vmem:[#allocation2 + $0x70] sm:$0xff] %vm1680_vm7, %v1661_v17  ;;  %v1645_v24 = vpop.permute.xlu0 %1644  ;;  %v4427_v17 = vld [vmem:[%s5066_s21 + $0x78] sm:$0xf] }
 0x1b1   : > { %1687 = vst.msk [vmem:[#allocation2 + $0x30] sm:$0xff] %vm1680_vm7, %v1645_v24 }
 0x1b3   : > { %v1663_v25 = vpop.permute.xlu1 %1662 }
 0x1b4   : > { %1696 = vst.msk [vmem:[#allocation2 + $0x78] sm:$0xff] %vm1680_vm7, %v1663_v25  ;;  %v1647_v26 = vpop.permute.xlu0 %1646 }
 0x1b5   : > { %1688 = vst.msk [vmem:[#allocation2 + $0x38] sm:$0xff] %vm1680_vm7, %v1647_v26 }
 0x1b7   : > { %v1950_v27 = vpop.permute.xlu1 %1949 }
 0x1b8   : > { %1984 = vst.msk [vmem:[#allocation2 + $0x70] sm:$0xff] %vm1969_vm8, %v1950_v27  ;;  %v1934_v29 = vpop.permute.xlu0 %1933 }
 0x1b9   : > { %1976 = vst.msk [vmem:[#allocation2 + $0x30] sm:$0xff] %vm1969_vm8, %v1934_v29  ;;  %v4382_v29 = vld [vmem:[%s5066_s21 + $0xc] sm:$0xf] }
 0x1bb   : > { %v1952_v30 = vpop.permute.xlu1 %1951 }
 0x1bc   : > { %1985 = vst.msk [vmem:[#allocation2 + $0x78] sm:$0xff] %vm1969_vm8, %v1952_v30  ;;  %v1936_v31 = vpop.permute.xlu0 %1935 }
 0x1bd   : > { %1977 = vst.msk [vmem:[#allocation2 + $0x38] sm:$0xff] %vm1969_vm8, %v1936_v31 }
 0x1bf   : > { %v2128_v32 = vpop.permute.xlu1 %2127 }
 0x1c0   : > { %2162 = vst.msk [vmem:[#allocation2 + $0x70] sm:$0xff] %vm2147_vm9, %v2128_v32  ;;  %v2112_v33 = vpop.permute.xlu0 %2111 }
 0x1c1   : > { %2154 = vst.msk [vmem:[#allocation2 + $0x30] sm:$0xff] %vm2147_vm9, %v2112_v33 }
 0x1c3   : > { %v2130_v28 = vpop.permute.xlu1 %2129 }
 0x1c4   : > { %2163 = vst.msk [vmem:[#allocation2 + $0x78] sm:$0xff] %vm2147_vm9, %v2130_v28  ;;  %v2114_v34 = vpop.permute.xlu0 %2113 }
 0x1c5   : > { %2155 = vst.msk [vmem:[#allocation2 + $0x38] sm:$0xff] %vm2147_vm9, %v2114_v34  ;;  %v4422_v34 = vld [vmem:[%s5066_s21 + $0x6c] sm:$0xf] }
 0x1c7   : > { %v2561_v35 = vpop.permute.xlu1 %2560 }
 0x1c8   : > { %2595 = vst.msk [vmem:[#allocation2 + $0x70] sm:$0xff] %vm2580_vm10, %v2561_v35  ;;  %v2545_v36 = vpop.permute.xlu0 %2544 }
 0x1c9   : > { %2587 = vst.msk [vmem:[#allocation2 + $0x30] sm:$0xff] %vm2580_vm10, %v2545_v36 }
 0x1cb   : > { %v2563_v37 = vpop.permute.xlu1 %2562 }
 0x1cc   : > { %2596 = vst.msk [vmem:[#allocation2 + $0x78] sm:$0xff] %vm2580_vm10, %v2563_v37  ;;  %v2547_v5 = vpop.permute.xlu0 %2546 }
 0x1cd   : > { %2588 = vst.msk [vmem:[#allocation2 + $0x38] sm:$0xff] %vm2580_vm10, %v2547_v5 }
 0x1cf   : > { %v2850_v38 = vpop.permute.xlu1 %2849 }
 0x1d0   : > { %2884 = vst.msk [vmem:[#allocation2 + $0x70] sm:$0xff] %vm2869_vm11, %v2850_v38  ;;  %v2834_v39 = vpop.permute.xlu0 %2833 }
 0x1d1   : > { %2876 = vst.msk [vmem:[#allocation2 + $0x30] sm:$0xff] %vm2869_vm11, %v2834_v39 }
 0x1d3   : > { %v2852_v40 = vpop.permute.xlu1 %2851 }
 0x1d4   : > { %2885 = vst.msk [vmem:[#allocation2 + $0x78] sm:$0xff] %vm2869_vm11, %v2852_v40  ;;  %v2836_v41 = vpop.permute.xlu0 %2835 }
 0x1d5   : > { %2877 = vst.msk [vmem:[#allocation2 + $0x38] sm:$0xff] %vm2869_vm11, %v2836_v41  ;;  %v4390_v41 = vld [vmem:[%s5066_s21 + $0x20] sm:$0x1] }
 0x1d7   : > { %v2900_v42 = vld [vmem:[#allocation2 + $0x70] sm:$0xff] }
 0x1d8   : > { %4564 = vmatprep.mubr.bf16.mxu1 %v2900_v42  ;;  %v2892_v43 = vld [vmem:[#allocation2 + $0x30] sm:$0xff] }
 0x1d9   : > { %4548 = vmatprep.mubr.bf16.mxu0 %v2892_v43 }
 0x1db   : > { %v2901_v44 = vld [vmem:[#allocation2 + $0x78] sm:$0xff] }
 0x1dc   : > { %4565 = vmatmul.mubr.bf16.gmra.mrb[12].mxu1 %v2901_v44  ;;  %v2893_v45 = vld [vmem:[#allocation2 + $0x38] sm:$0xff] }
 0x1dd   : > { %4549 = vmatmul.mubr.bf16.gmra.mrb[12].mxu0 %v2893_v45 }
 0x1f3   : > { %v4554_v49 = vpop.f32.mrb[0].mxu1 }
 0x1f4   : > { %v4538_v47 = vpop.f32.mrb[0].mxu0  ;;  %v3080_v51 = vadd.f32 %v4554_v49, %v5840_v46  ;;  %v3071_v53 = vpop.f32.mrb[1].mxu1 }
 0x1f5   : > { %v3016_v48 = vadd.f32 %v4538_v47, %v5840_v46  ;;  %v3007_v50 = vpop.f32.mrb[1].mxu0  ;;  %v3072_v55 = vadd.f32 %v5840_v46, %v3071_v53  ;;  %v4555_v57 = vpop.f32.mrb[2].mxu1 }
 0x1f6   : > { %v3008_v52 = vadd.f32 %v5840_v46, %v3007_v50  ;;  %v4539_v54 = vpop.f32.mrb[2].mxu0  ;;  %v3152_v59 = vmax.f32 %v3080_v51, 0.0  ;;  %v3083_v61 = vadd.f32 %v4555_v57, %v5840_v46  ;;  %v3074_v63 = vpop.f32.mrb[3].mxu1 }
 0x1f7   : > { %v3136_v0 = vmax.f32 %v3016_v48, 0.0  ;;  %v3019_v56 = vadd.f32 %v4539_v54, %v5840_v46  ;;  %v3010_v58 = vpop.f32.mrb[3].mxu0  ;;  %v3150_v2 = vmax.f32 %v3072_v55, 0.0  ;;  %v3075_v36 = vadd.f32 %v5840_v46, %v3074_v63  ;;  %v4430_v54 = vld [vmem:[%s5066_s21 + $0x80] sm:$0x1] }
 0x1f8   : > { %v3134_v60 = vmax.f32 %v3008_v52, 0.0  ;;  %v3011_v62 = vadd.f32 %v5840_v46, %v3010_v58  ;;  %v4482_v4 = vpack.c.bf16 %v3152_v59, %v3152_v59  ;;  %v3153_v7 = vmax.f32 %v3083_v61, 0.0  ;;  %v4385_v63 = vld [vmem:[%s5066_s21 + $0x14] sm:$0x1] }
 0x1f9   : > { %v4466_v1 = vpack.c.bf16 %v3136_v0, %v3136_v0  ;;  %v3137_v3 = vmax.f32 %v3019_v56, 0.0  ;;  %v4480_v9 = vpack.c.bf16 %v3150_v2, %v3150_v2  ;;  %v3151_v53 = vmax.f32 %v3075_v36, 0.0 }
 0x1fa   : > { %v4464_v6 = vpack.c.bf16 %v3134_v60, %v3134_v60  ;;  %v3135_v11 = vmax.f32 %v3011_v62, 0.0  ;;  %v3473_v13 = vshrl.u32 %v4482_v4, 16  ;;  %v3476_v14 = vshll.u32 %v4482_v4, 16 }
 0x1fb   : > { %v3337_v8 = vshrl.u32 %v4466_v1, 16  ;;  %v4467_v10 = vpack.c.bf16 %v3137_v3, %v3137_v3  ;;  %v3340_v12 = vshll.u32 %v4466_v1, 16  ;;  %v3456_v20 = vshrl.u32 %v4480_v9, 16 }
 0x1fc   : > { %v3320_v15 = vshrl.u32 %v4464_v6, 16  ;;  %v3323_v19 = vshll.u32 %v4464_v6, 16  ;;  %v3475_v23 = vrot.slane %v3473_v13, 7  ;;  %v3459_v25 = vshll.u32 %v4480_v9, 16 }
 0x1fd   : > { %v3339_v16 = vrot.slane %v3337_v8, 7  ;;  %v3345_v21 = vshrl.u32 %v4467_v10, 16  ;;  %v4483_v26 = vpack.c.bf16 %v3153_v7, %v3153_v7  ;;  %v3458_v30 = vrot.slane %v3456_v20, 7 }
 0x1fe   : > { %v3322_v24 = vrot.slane %v3320_v15, 7  ;;  %v3348_v32 = vshll.u32 %v4467_v10, 16  ;;  %v3478_v33 = vor.u32 %v3476_v14, %v3475_v23  ;;  %v4465_v49 = vpack.c.bf16 %v3135_v11, %v3135_v11  ;;  %v4425_v10 = vld [vmem:[%s5066_s21 + $0x74] sm:$0x1] }
 0x1ff   : > { %v3342_v27 = vor.u32 %v3340_v12, %v3339_v16  ;;  %v3347_v31 = vrot.slane %v3345_v21, 7  ;;  %v3343_v37 = vrot.slane %v3339_v16, 4  ;;  %v3461_v38 = vor.u32 %v3459_v25, %v3458_v30 }
 0x200   : > { %v3325_v28 = vor.u32 %v3323_v19, %v3322_v24  ;;  %v3709_v42 = vsel %vm5852_vm1, %v3478_v33, %v4427_v17  ;;  %v3481_v45 = vshrl.u32 %v4483_v26, 16  ;;  %v3484_v52 = vshll.u32 %v4483_v26, 16 }
 0x201   : > { %v3653_v5 = vsel %vm5852_vm1, %v3342_v27, %v4387_v18  ;;  %v3350_v39 = vor.u32 %v3348_v32, %v3347_v31  ;;  %v3352_v44 = vrot.slane %v3347_v31, 4  ;;  %4428 = vst [vmem:[%s5066_s21 + $0x78] sm:$0xf] %v3709_v42  ;;  %v3702_v47 = vsel %vm5852_vm1, %v3461_v38, %v4422_v34 }
 0x202   : > { %4388 = vst [vmem:[%s5066_s21 + $0x18] sm:$0xf] %v3653_v5  ;;  %v3644_v43 = vsel %vm5852_vm1, %v3325_v28, %v4382_v29  ;;  %4423 = vst [vmem:[%s5066_s21 + $0x6c] sm:$0xf] %v3702_v47  ;;  %v3483_v51 = vrot.slane %v3481_v45, 7  ;;  %v3328_v0 = vshrl.u32 %v4465_v49, 16  ;;  %v4481_v58 = vpack.c.bf16 %v3151_v53, %v3151_v53 }
 0x203   : > { %4383 = vst [vmem:[%s5066_s21 + $0xc] sm:$0xf] %v3644_v43  ;;  %v3351_v48 = vsel %vm5861_vm2, %v3343_v37, %v3350_v39  ;;  %v3657_v50 = vsel %vm5870_vm3, %v3352_v44, %v4390_v41  ;;  %v3479_v55 = vrot.slane %v3475_v23, 4  ;;  %v3331_v60 = vshll.u32 %v4465_v49, 16  ;;  %v4437_v47 = vld [vmem:[%s5066_s21 + $0x90] sm:$0xf] }
 0x204   : > { %4389 = vst [vmem:[%s5066_s21 + $0x1c] sm:$0xf] %v3351_v48  ;;  %4391 = vst [vmem:[%s5066_s21 + $0x20] sm:$0x1] %v3657_v50  ;;  %v3486_v56 = vor.u32 %v3484_v52, %v3483_v51  ;;  %v3488_v57 = vrot.slane %v3483_v51, 4  ;;  %v3330_v59 = vrot.slane %v3328_v0, 7 }
 0x205   : > { %v3464_v1 = vshrl.u32 %v4481_v58, 16  ;;  %v3326_v2 = vrot.slane %v3322_v24, 4  ;;  %v3467_v7 = vshll.u32 %v4481_v58, 16  ;;  %v3462_v11 = vrot.slane %v3458_v30, 4 }
 0x206   : > { %v3487_v61 = vsel %vm5861_vm2, %v3479_v55, %v3486_v56  ;;  %v3713_v62 = vsel %vm5870_vm3, %v3488_v57, %v4430_v54  ;;  %v3333_v3 = vor.u32 %v3331_v60, %v3330_v59  ;;  %v3335_v4 = vrot.slane %v3330_v59, 4  ;;  %v4432_v54 = vld [vmem:[%s5066_s21 + $0x84] sm:$0xf] }
 0x207   : > { %4429 = vst [vmem:[%s5066_s21 + $0x7c] sm:$0xf] %v3487_v61  ;;  %4431 = vst [vmem:[%s5066_s21 + $0x80] sm:$0x1] %v3713_v62  ;;  %v3466_v6 = vrot.slane %v3464_v1, 7 }
 0x208   : > { %v3334_v8 = vsel %vm5861_vm2, %v3326_v2, %v3333_v3  ;;  %v3650_v9 = vsel %vm5870_vm3, %v3335_v4, %v4385_v63 }
 0x209   : > { %4384 = vst [vmem:[%s5066_s21 + $0x10] sm:$0xf] %v3334_v8  ;;  %4386 = vst [vmem:[%s5066_s21 + $0x14] sm:$0x1] %v3650_v9  ;;  %v3469_v12 = vor.u32 %v3467_v7, %v3466_v6  ;;  %v3471_v13 = vrot.slane %v3466_v6, 4 }
 0x20a   : > { %v4440_v6 = vld [vmem:[%s5066_s21 + $0x98] sm:$0x1] }
 0x20b   : > { %v3470_v14 = vsel %vm5861_vm2, %v3462_v11, %v3469_v12  ;;  %v3706_v15 = vsel %vm5870_vm3, %v3471_v13, %v4425_v10  ;;  %v4397_v11 = vld [vmem:[%s5066_s21 + $0x30] sm:$0xf] }
 0x20c   : > { %4424 = vst [vmem:[%s5066_s21 + $0x70] sm:$0xf] %v3470_v14  ;;  %4426 = vst [vmem:[%s5066_s21 + $0x74] sm:$0x1] %v3706_v15 }
 0x233   : > { %v4558_v16 = vpop.f32.mrb[4].mxu1 }
 0x234   : > { %v3096_v18 = vadd.f32 %v4558_v16, %v5840_v46  ;;  %v3087_v19 = vpop.f32.mrb[5].mxu1  ;;  %v4542_v30 = vpop.f32.mrb[4].mxu0 }
 0x235   : > { %v3088_v20 = vadd.f32 %v5840_v46, %v3087_v19  ;;  %v4559_v21 = vpop.f32.mrb[6].mxu1  ;;  %v3032_v33 = vadd.f32 %v4542_v30, %v5840_v46  ;;  %v3023_v34 = vpop.f32.mrb[5].mxu0 }
 0x236   : > { %v3156_v23 = vmax.f32 %v3096_v18, 0.0  ;;  %v3099_v17 = vadd.f32 %v4559_v21, %v5840_v46  ;;  %v3090_v24 = vpop.f32.mrb[7].mxu1  ;;  %v3024_v5 = vadd.f32 %v5840_v46, %v3023_v34  ;;  %v4543_v39 = vpop.f32.mrb[6].mxu0  ;;  %v4392_v18 = vld [vmem:[%s5066_s21 + $0x24] sm:$0xf] }
 0x237   : > { %v3154_v25 = vmax.f32 %v3088_v20, 0.0  ;;  %v3091_v26 = vadd.f32 %v5840_v46, %v3090_v24  ;;  %v3140_v41 = vmax.f32 %v3032_v33, 0.0  ;;  %v3035_v43 = vadd.f32 %v4543_v39, %v5840_v46  ;;  %v3026_v45 = vpop.f32.mrb[7].mxu0  ;;  %v4400_v24 = vld [vmem:[%s5066_s21 + $0x38] sm:$0x1] }
 0x238   : > { %v4486_v27 = vpack.c.bf16 %v3156_v23, %v3156_v23  ;;  %v3157_v29 = vmax.f32 %v3099_v17, 0.0  ;;  %v3138_v48 = vmax.f32 %v3024_v5, 0.0  ;;  %v3027_v59 = vadd.f32 %v5840_v46, %v3026_v45 }
 0x239   : > { %v4484_v31 = vpack.c.bf16 %v3154_v25, %v3154_v25  ;;  %v3155_v32 = vmax.f32 %v3091_v26, 0.0  ;;  %v4470_v52 = vpack.c.bf16 %v3140_v41, %v3140_v41  ;;  %v3141_v0 = vmax.f32 %v3035_v43, 0.0  ;;  %v4395_v43 = vld [vmem:[%s5066_s21 + $0x2c] sm:$0x1] }
 0x23a   : > { %v3507_v28 = vshrl.u32 %v4486_v27, 16  ;;  %v4487_v36 = vpack.c.bf16 %v3157_v29, %v3157_v29  ;;  %v3510_v37 = vshll.u32 %v4486_v27, 16  ;;  %v4468_v56 = vpack.c.bf16 %v3138_v48, %v3138_v48 }
 0x23b   : > { %v3490_v38 = vshrl.u32 %v4484_v31, 16  ;;  %v3493_v50 = vshll.u32 %v4484_v31, 16  ;;  %v4485_v51 = vpack.c.bf16 %v3155_v32, %v3155_v32  ;;  %v3371_v60 = vshrl.u32 %v4470_v52, 16  ;;  %v4435_v32 = vld [vmem:[%s5066_s21 + $0x8c] sm:$0x1] }
 0x23c   : > { %v3509_v42 = vrot.slane %v3507_v28, 7  ;;  %v3515_v44 = vshrl.u32 %v4487_v36, 16  ;;  %v3518_v55 = vshll.u32 %v4487_v36, 16  ;;  %v4471_v63 = vpack.c.bf16 %v3141_v0, %v3141_v0 }
 0x23d   : > { %v5920_v49 = vrot.slane %v3490_v38, 7  ;;  %v3374_v1 = vshll.u32 %v4470_v52, 16  ;;  %v3354_v2 = vshrl.u32 %v4468_v56, 16  ;;  %v3373_v7 = vrot.slane %v3371_v60, 7 }
 0x23e   : > { %v3512_v53 = vor.u32 %v3510_v37, %v3509_v42  ;;  %v3517_v58 = vrot.slane %v3515_v44, 7  ;;  %v3513_v61 = vrot.slane %v3509_v42, 4  ;;  %v3357_v8 = vshll.u32 %v4468_v56, 16 }
 0x23f   : > { %v3495_v57 = vor.u32 %v3493_v50, %v5920_v49  ;;  %v3379_v9 = vshrl.u32 %v4471_v63, 16  ;;  %v3356_v12 = vrot.slane %v3354_v2, 7  ;;  %v3139_v14 = vmax.f32 %v3027_v59, 0.0 }
 0x240   : > { %v3723_v62 = vsel %vm5852_vm1, %v3512_v53, %v4437_v47  ;;  %v3520_v4 = vor.u32 %v3518_v55, %v3517_v58  ;;  %v3522_v10 = vrot.slane %v3517_v58, 4  ;;  %v3498_v15 = vshrl.u32 %v4485_v51, 16 }
 0x241   : > { %4438 = vst [vmem:[%s5066_s21 + $0x90] sm:$0xf] %v3723_v62  ;;  %v3716_v3 = vsel %vm5852_vm1, %v3495_v57, %v4432_v54  ;;  %v3376_v16 = vor.u32 %v3374_v1, %v3373_v7  ;;  %v3381_v19 = vrot.slane %v3379_v9, 7  ;;  %v3382_v20 = vshll.u32 %v4471_v63, 16 }
 0x242   : > { %4433 = vst [vmem:[%s5066_s21 + $0x84] sm:$0xf] %v3716_v3  ;;  %v3521_v13 = vsel %vm5861_vm2, %v3513_v61, %v3520_v4  ;;  %v3727_v21 = vsel %vm5870_vm3, %v3522_v10, %v4440_v6  ;;  %v3377_v23 = vrot.slane %v3373_v7, 4  ;;  %v3359_v17 = vor.u32 %v3357_v8, %v3356_v12 }
 0x243   : > { %4439 = vst [vmem:[%s5066_s21 + $0x94] sm:$0xf] %v3521_v13  ;;  %4441 = vst [vmem:[%s5066_s21 + $0x98] sm:$0x1] %v3727_v21  ;;  %v4469_v25 = vpack.c.bf16 %v3139_v14, %v3139_v14  ;;  %v3500_v26 = vrot.slane %v3498_v15, 7  ;;  %v3667_v27 = vsel %vm5852_vm1, %v3376_v16, %v4397_v11  ;;  %v3384_v29 = vor.u32 %v3382_v20, %v3381_v19 }
 0x244   : > { %v3386_v30 = vrot.slane %v3381_v19, 4  ;;  %v3501_v31 = vshll.u32 %v4485_v51, 16  ;;  %4398 = vst [vmem:[%s5066_s21 + $0x30] sm:$0xf] %v3667_v27  ;;  %v3660_v33 = vsel %vm5852_vm1, %v3359_v17, %v4392_v18  ;;  %v3496_v36 = vrot.slane %v5920_v49, 4 }
 0x245   : > { %v3362_v28 = vshrl.u32 %v4469_v25, 16  ;;  %v3505_v34 = vrot.slane %v3500_v26, 4  ;;  %4393 = vst [vmem:[%s5066_s21 + $0x24] sm:$0xf] %v3660_v33  ;;  %v3385_v37 = vsel %vm5861_vm2, %v3377_v23, %v3384_v29  ;;  %v3365_v41 = vshll.u32 %v4469_v25, 16 }
 0x246   : > { %v3671_v5 = vsel %vm5870_vm3, %v3386_v30, %v4400_v24  ;;  %v3503_v38 = vor.u32 %v3501_v31, %v3500_v26  ;;  %4399 = vst [vmem:[%s5066_s21 + $0x34] sm:$0xf] %v3385_v37  ;;  %v3360_v45 = vrot.slane %v3356_v12, 4  ;;  %v4447_v23 = vld [vmem:[%s5066_s21 + $0xa8] sm:$0xf] }
 0x247   : > { %4401 = vst [vmem:[%s5066_s21 + $0x38] sm:$0x1] %v3671_v5  ;;  %v3364_v39 = vrot.slane %v3362_v28, 7  ;;  %v3720_v42 = vsel %vm5870_vm3, %v3505_v34, %v4435_v32  ;;  %v4442_v30 = vld [vmem:[%s5066_s21 + $0x9c] sm:$0xf] }
 0x248   : > { %v3504_v44 = vsel %vm5861_vm2, %v3496_v36, %v3503_v38  ;;  %4436 = vst [vmem:[%s5066_s21 + $0x8c] sm:$0x1] %v3720_v42  ;;  %v4407_v36 = vld [vmem:[%s5066_s21 + $0x48] sm:$0xf]  ;;  %v4402_v42 = vld [vmem:[%s5066_s21 + $0x3c] sm:$0xf] }
 0x249   : > { %v3367_v47 = vor.u32 %v3365_v41, %v3364_v39  ;;  %v3369_v48 = vrot.slane %v3364_v39, 4  ;;  %4434 = vst [vmem:[%s5066_s21 + $0x88] sm:$0xf] %v3504_v44 }
 0x24b   : > { %v3368_v49 = vsel %vm5861_vm2, %v3360_v45, %v3367_v47  ;;  %v3664_v50 = vsel %vm5870_vm3, %v3369_v48, %v4395_v43  ;;  %v4450_v47 = vld [vmem:[%s5066_s21 + $0xb0] sm:$0x1] }
 0x24c   : > { %4394 = vst [vmem:[%s5066_s21 + $0x28] sm:$0xf] %v3368_v49  ;;  %4396 = vst [vmem:[%s5066_s21 + $0x2c] sm:$0x1] %v3664_v50  ;;  %v4410_v50 = vld [vmem:[%s5066_s21 + $0x50] sm:$0x1] }
 0x273   : > { %v4562_v51 = vpop.f32.mrb[8].mxu1 }
 0x274   : > { %v3112_v52 = vadd.f32 %v4562_v51, %v5840_v46  ;;  %v3103_v53 = vpop.f32.mrb[9].mxu1  ;;  %v4546_v55 = vpop.f32.mrb[8].mxu0 }
 0x275   : > { %v3104_v54 = vadd.f32 %v5840_v46, %v3103_v53  ;;  %v4563_v0 = vpop.f32.mrb[10].mxu1  ;;  %v3048_v59 = vadd.f32 %v4546_v55, %v5840_v46  ;;  %v3039_v60 = vpop.f32.mrb[9].mxu0 }
 0x276   : > { %v3160_v56 = vmax.f32 %v3112_v52, 0.0  ;;  %v3115_v57 = vadd.f32 %v4563_v0, %v5840_v46  ;;  %v3106_v58 = vpop.f32.mrb[11].mxu1  ;;  %v3040_v1 = vadd.f32 %v5840_v46, %v3039_v60  ;;  %v4547_v2 = vpop.f32.mrb[10].mxu0 }
 0x277   : > { %v3158_v61 = vmax.f32 %v3104_v54, 0.0  ;;  %v3107_v62 = vadd.f32 %v5840_v46, %v3106_v58  ;;  %v3144_v4 = vmax.f32 %v3048_v59, 0.0  ;;  %v3051_v7 = vadd.f32 %v4547_v2, %v5840_v46  ;;  %v3042_v8 = vpop.f32.mrb[11].mxu0 }
 0x278   : > { %v4490_v63 = vpack.c.bf16 %v3160_v56, %v3160_v56  ;;  %v3161_v3 = vmax.f32 %v3115_v57, 0.0  ;;  %v3142_v10 = vmax.f32 %v3040_v1, 0.0  ;;  %v3043_v55 = vadd.f32 %v5840_v46, %v3042_v8 }
 0x279   : > { %v4488_v6 = vpack.c.bf16 %v3158_v61, %v3158_v61  ;;  %v4474_v12 = vpack.c.bf16 %v3144_v4, %v3144_v4  ;;  %v3145_v14 = vmax.f32 %v3051_v7, 0.0  ;;  %v3159_v15 = vmax.f32 %v3107_v62, 0.0 }
 0x27a   : > { %v3541_v9 = vshrl.u32 %v4490_v63, 16  ;;  %v4491_v11 = vpack.c.bf16 %v3161_v3, %v3161_v3  ;;  %v3544_v18 = vshll.u32 %v4490_v63, 16  ;;  %v4472_v19 = vpack.c.bf16 %v3142_v10, %v3142_v10 }
 0x27b   : > { %v3524_v13 = vshrl.u32 %v4488_v6, 16  ;;  %v3405_v21 = vshrl.u32 %v4474_v12, 16  ;;  %v3527_v24 = vshll.u32 %v4488_v6, 16  ;;  %v4475_v25 = vpack.c.bf16 %v3145_v14, %v3145_v14  ;;  %v4445_v6 = vld [vmem:[%s5066_s21 + $0xa4] sm:$0x1] }
 0x27c   : > { %v3543_v16 = vrot.slane %v3541_v9, 7  ;;  %v3549_v20 = vshrl.u32 %v4491_v11, 16  ;;  %v3408_v26 = vshll.u32 %v4474_v12, 16  ;;  %v3388_v29 = vshrl.u32 %v4472_v19, 16  ;;  %v4405_v12 = vld [vmem:[%s5066_s21 + $0x44] sm:$0x1] }
 0x27d   : > { %v3526_v17 = vrot.slane %v3524_v13, 7  ;;  %v3552_v31 = vshll.u32 %v4491_v11, 16  ;;  %v3407_v32 = vrot.slane %v3405_v21, 7  ;;  %v3413_v34 = vshrl.u32 %v4475_v25, 16 }
 0x27e   : > { %v3546_v27 = vor.u32 %v3544_v18, %v3543_v16  ;;  %v3547_v33 = vrot.slane %v3543_v16, 4  ;;  %v3390_v5 = vrot.slane %v3388_v29, 7  ;;  %v3391_v38 = vshll.u32 %v4472_v19, 16 }
 0x27f   : > { %v3529_v28 = vor.u32 %v3527_v24, %v3526_v17  ;;  %v3551_v39 = vrot.slane %v3549_v20, 7  ;;  %v3410_v41 = vor.u32 %v3408_v26, %v3407_v32  ;;  %v3415_v44 = vrot.slane %v3413_v34, 7 }
 0x280   : > { %v3737_v37 = vsel %vm5852_vm1, %v3546_v27, %v4447_v23  ;;  %v3416_v45 = vshll.u32 %v4475_v25, 16  ;;  %v3411_v48 = vrot.slane %v3407_v32, 4  ;;  %v3393_v49 = vor.u32 %v3391_v38, %v3390_v5 }
 0x281   : > { %4448 = vst [vmem:[%s5066_s21 + $0xa8] sm:$0xf] %v3737_v37  ;;  %v3730_v43 = vsel %vm5852_vm1, %v3529_v28, %v4442_v30  ;;  %v3554_v51 = vor.u32 %v3552_v31, %v3551_v39  ;;  %v3556_v52 = vrot.slane %v3551_v39, 4  ;;  %v3681_v53 = vsel %vm5852_vm1, %v3410_v41, %v4407_v36 }
 0x282   : > { %4443 = vst [vmem:[%s5066_s21 + $0x9c] sm:$0xf] %v3730_v43  ;;  %v3418_v54 = vor.u32 %v3416_v45, %v3415_v44  ;;  %v3420_v0 = vrot.slane %v3415_v44, 4  ;;  %4408 = vst [vmem:[%s5066_s21 + $0x48] sm:$0xf] %v3681_v53  ;;  %v3674_v56 = vsel %vm5852_vm1, %v3393_v49, %v4402_v42  ;;  %v4489_v59 = vpack.c.bf16 %v3159_v15, %v3159_v15 }
 0x283   : > { %v3555_v57 = vsel %vm5861_vm2, %v3547_v33, %v3554_v51  ;;  %v3741_v58 = vsel %vm5870_vm3, %v3556_v52, %v4450_v47  ;;  %4403 = vst [vmem:[%s5066_s21 + $0x3c] sm:$0xf] %v3674_v56  ;;  %v3143_v62 = vmax.f32 %v3043_v55, 0.0  ;;  %v3530_v7 = vrot.slane %v3526_v17, 4  ;;  %v4457_v55 = vld [vmem:[%s5066_s21 + $0xc0] sm:$0xf] }
 0x284   : > { %v3419_v60 = vsel %vm5861_vm2, %v3411_v48, %v3418_v54  ;;  %v3685_v61 = vsel %vm5870_vm3, %v3420_v0, %v4410_v50  ;;  %4449 = vst [vmem:[%s5066_s21 + $0xac] sm:$0xf] %v3555_v57  ;;  %4451 = vst [vmem:[%s5066_s21 + $0xb0] sm:$0x1] %v3741_v58  ;;  %v3532_v63 = vshrl.u32 %v4489_v59, 16  ;;  %v3535_v3 = vshll.u32 %v4489_v59, 16 }
 0x285   : > { %4409 = vst [vmem:[%s5066_s21 + $0x4c] sm:$0xf] %v3419_v60  ;;  %4411 = vst [vmem:[%s5066_s21 + $0x50] sm:$0x1] %v3685_v61  ;;  %v4473_v1 = vpack.c.bf16 %v3143_v62, %v3143_v62  ;;  %v3394_v15 = vrot.slane %v3390_v5, 4 }
 0x286   : > { %v3534_v2 = vrot.slane %v3532_v63, 7  ;;  %v4452_v63 = vld [vmem:[%s5066_s21 + $0xb4] sm:$0xf] }
 0x287   : > { %v3396_v4 = vshrl.u32 %v4473_v1, 16  ;;  %v3399_v11 = vshll.u32 %v4473_v1, 16 }
 0x288   : > { %v3537_v8 = vor.u32 %v3535_v3, %v3534_v2  ;;  %v3539_v9 = vrot.slane %v3534_v2, 4  ;;  %v4417_v2 = vld [vmem:[%s5066_s21 + $0x60] sm:$0xf] }
 0x289   : > { %v3398_v10 = vrot.slane %v3396_v4, 7 }
 0x28a   : > { %v3538_v13 = vsel %vm5861_vm2, %v3530_v7, %v3537_v8  ;;  %v3734_v14 = vsel %vm5870_vm3, %v3539_v9, %v4445_v6  ;;  %v4412_v9 = vld [vmem:[%s5066_s21 + $0x54] sm:$0xf] }
 0x28b   : > { %v3401_v16 = vor.u32 %v3399_v11, %v3398_v10  ;;  %v3403_v18 = vrot.slane %v3398_v10, 4  ;;  %4444 = vst [vmem:[%s5066_s21 + $0xa0] sm:$0xf] %v3538_v13  ;;  %4446 = vst [vmem:[%s5066_s21 + $0xa4] sm:$0x1] %v3734_v14 }
 0x28d   : > { %v3402_v19 = vsel %vm5861_vm2, %v3394_v15, %v3401_v16  ;;  %v3678_v20 = vsel %vm5870_vm3, %v3403_v18, %v4405_v12  ;;  %v4420_v15 = vld [vmem:[%s5066_s21 + $0x68] sm:$0x1] }
 0x28e   : > { %4404 = vst [vmem:[%s5066_s21 + $0x40] sm:$0xf] %v3402_v19  ;;  %4406 = vst [vmem:[%s5066_s21 + $0x44] sm:$0x1] %v3678_v20 }
 0x2af   : > { %v4566_v21 = vpop.f32.mrb[12].mxu1 }
 0x2b0   : > { %v3128_v23 = vadd.f32 %v4566_v21, %v5840_v46  ;;  %v3119_v17 = vpop.f32.mrb[13].mxu1  ;;  %v4550_v24 = vpop.f32.mrb[12].mxu0 }
 0x2b1   : > { %v3120_v25 = vadd.f32 %v5840_v46, %v3119_v17  ;;  %v4567_v26 = vpop.f32.mrb[14].mxu1  ;;  %v3064_v27 = vadd.f32 %v4550_v24, %v5840_v46  ;;  %v3055_v30 = vpop.f32.mrb[13].mxu0 }
 0x2b2   : > { %v3164_v29 = vmax.f32 %v3128_v23, 0.0  ;;  %v3131_v31 = vadd.f32 %v4567_v26, %v5840_v46  ;;  %v3122_v32 = vpop.f32.mrb[15].mxu1  ;;  %v3056_v33 = vadd.f32 %v5840_v46, %v3055_v30  ;;  %v4551_v34 = vpop.f32.mrb[14].mxu0  ;;  %v4460_v23 = vld [vmem:[%s5066_s21 + $0xc8] sm:$0x1] }
 0x2b3   : > { %v3162_v28 = vmax.f32 %v3120_v25, 0.0  ;;  %v3148_v36 = vmax.f32 %v3064_v27, 0.0  ;;  %v3067_v5 = vadd.f32 %v4551_v34, %v5840_v46  ;;  %v3058_v39 = vpop.f32.mrb[15].mxu0  ;;  %v3123_v47 = vadd.f32 %v5840_v46, %v3122_v32 }
 0x2b4   : > { %v4494_v37 = vpack.c.bf16 %v3164_v29, %v3164_v29  ;;  %v3165_v38 = vmax.f32 %v3131_v31, 0.0  ;;  %v3146_v41 = vmax.f32 %v3056_v33, 0.0  ;;  %v3059_v51 = vadd.f32 %v5840_v46, %v3058_v39 }
 0x2b5   : > { %v4492_v42 = vpack.c.bf16 %v3162_v28, %v3162_v28  ;;  %v4478_v43 = vpack.c.bf16 %v3148_v36, %v3148_v36  ;;  %v3149_v45 = vmax.f32 %v3067_v5, 0.0  ;;  %v3163_v6 = vmax.f32 %v3123_v47, 0.0 }
 0x2b6   : > { %v3575_v44 = vshrl.u32 %v4494_v37, 16  ;;  %v4476_v48 = vpack.c.bf16 %v3146_v41, %v3146_v41  ;;  %v4495_v50 = vpack.c.bf16 %v3165_v38, %v3165_v38  ;;  %v3578_v54 = vshll.u32 %v4494_v37, 16  ;;  %v4455_v38 = vld [vmem:[%s5066_s21 + $0xbc] sm:$0x1] }
 0x2b7   : > { %v3558_v49 = vshrl.u32 %v4492_v42, 16  ;;  %v3439_v52 = vshrl.u32 %v4478_v43, 16  ;;  %v4479_v0 = vpack.c.bf16 %v3149_v45, %v3149_v45  ;;  %v3561_v58 = vshll.u32 %v4492_v42, 16  ;;  %v4415_v45 = vld [vmem:[%s5066_s21 + $0x5c] sm:$0x1] }
 0x2b8   : > { %v3577_v53 = vrot.slane %v3575_v44, 7  ;;  %v3422_v56 = vshrl.u32 %v4476_v48, 16  ;;  %v3583_v59 = vshrl.u32 %v4495_v50, 16  ;;  %v3442_v61 = vshll.u32 %v4478_v43, 16 }
 0x2b9   : > { %v6029_v57 = vrot.slane %v3558_v49, 7  ;;  %v3441_v60 = vrot.slane %v3439_v52, 7  ;;  %v3447_v1 = vshrl.u32 %v4479_v0, 16  ;;  %v3425_v3 = vshll.u32 %v4476_v48, 16 }
 0x2ba   : > { %v3580_v62 = vor.u32 %v3578_v54, %v3577_v53  ;;  %v3424_v46 = vrot.slane %v3422_v56, 7  ;;  %v3450_v11 = vshll.u32 %v4479_v0, 16  ;;  %v3585_v16 = vrot.slane %v3583_v59, 7 }
 0x2bb   : > { %v3563_v4 = vor.u32 %v3561_v58, %v6029_v57  ;;  %v3444_v7 = vor.u32 %v3442_v61, %v3441_v60  ;;  %v3449_v10 = vrot.slane %v3447_v1, 7  ;;  %v3445_v12 = vrot.slane %v3441_v60, 4 }
 0x2bc   : > { %v3751_v8 = vsel %vm5852_vm1, %v3580_v62, %v4457_v55  ;;  %v3427_v13 = vor.u32 %v3425_v3, %v3424_v46  ;;  %v3586_v21 = vshll.u32 %v4495_v50, 16  ;;  %v3590_v24 = vrot.slane %v3585_v16, 4 }
 0x2bd   : > { %4458 = vst [vmem:[%s5066_s21 + $0xc0] sm:$0xf] %v3751_v8  ;;  %v3744_v14 = vsel %vm5852_vm1, %v3563_v4, %v4452_v63  ;;  %v3695_v18 = vsel %vm5852_vm1, %v3444_v7, %v4417_v2  ;;  %v3452_v19 = vor.u32 %v3450_v11, %v3449_v10  ;;  %v3454_v20 = vrot.slane %v3449_v10, 4 }
 0x2be   : > { %4453 = vst [vmem:[%s5066_s21 + $0xb4] sm:$0xf] %v3744_v14  ;;  %4418 = vst [vmem:[%s5066_s21 + $0x60] sm:$0xf] %v3695_v18  ;;  %v3688_v17 = vsel %vm5852_vm1, %v3427_v13, %v4412_v9  ;;  %v3147_v25 = vmax.f32 %v3059_v51, 0.0  ;;  %v4493_v26 = vpack.c.bf16 %v3163_v6, %v3163_v6  ;;  %v3581_v27 = vrot.slane %v3577_v53, 4 }
 0x2bf   : > { %4413 = vst [vmem:[%s5066_s21 + $0x54] sm:$0xf] %v3688_v17  ;;  %v3453_v29 = vsel %vm5861_vm2, %v3445_v12, %v3452_v19  ;;  %v3699_v30 = vsel %vm5870_vm3, %v3454_v20, %v4420_v15  ;;  %v3588_v31 = vor.u32 %v3586_v21, %v3585_v16  ;;  %v3755_v22 = vsel %vm5870_vm3, %v3590_v24, %v4460_v23 }
 0x2c0   : > { %4419 = vst [vmem:[%s5066_s21 + $0x64] sm:$0xf] %v3453_v29  ;;  %4421 = vst [vmem:[%s5066_s21 + $0x68] sm:$0x1] %v3699_v30  ;;  %v4477_v32 = vpack.c.bf16 %v3147_v25, %v3147_v25  ;;  %v3566_v33 = vshrl.u32 %v4493_v26, 16  ;;  %v3569_v37 = vshll.u32 %v4493_v26, 16 }
 0x2c1   : > { %v3589_v28 = vsel %vm5861_vm2, %v3581_v27, %v3588_v31  ;;  %4461 = vst [vmem:[%s5066_s21 + $0xc8] sm:$0x1] %v3755_v22  ;;  %v3564_v5 = vrot.slane %v6029_v57, 4  ;;  %v3428_v44 = vrot.slane %v3424_v46, 4 }
 0x2c2   : > { %4459 = vst [vmem:[%s5066_s21 + $0xc4] sm:$0xf] %v3589_v28  ;;  %v3430_v34 = vshrl.u32 %v4477_v32, 16  ;;  %v3568_v36 = vrot.slane %v3566_v33, 7  ;;  %v3433_v41 = vshll.u32 %v4477_v32, 16 }
 0x2c4   : > { %v3432_v39 = vrot.slane %v3430_v34, 7  ;;  %v3571_v42 = vor.u32 %v3569_v37, %v3568_v36  ;;  %v3573_v43 = vrot.slane %v3568_v36, 4 }
 0x2c6   : > { %v3435_v47 = vor.u32 %v3433_v41, %v3432_v39  ;;  %v3437_v48 = vrot.slane %v3432_v39, 4  ;;  %v3572_v49 = vsel %vm5861_vm2, %v3564_v5, %v3571_v42  ;;  %v3748_v50 = vsel %vm5870_vm3, %v3573_v43, %v4455_v38 }
 0x2c7   : > { %4454 = vst [vmem:[%s5066_s21 + $0xb8] sm:$0xf] %v3572_v49  ;;  %4456 = vst [vmem:[%s5066_s21 + $0xbc] sm:$0x1] %v3748_v50 }
 0x2c8   : > { %v3436_v51 = vsel %vm5861_vm2, %v3428_v44, %v3435_v47  ;;  %v3692_v52 = vsel %vm5870_vm3, %v3437_v48, %v4415_v45 }
 0x2c9   : > { %4414 = vst [vmem:[%s5066_s21 + $0x58] sm:$0xf] %v3436_v51  ;;  %4416 = vst [vmem:[%s5066_s21 + $0x5c] sm:$0x1] %v3692_v52 }
 0x2ca PF: > { %s15_s12 = sadd.s32 1, %s4943_s12  }
 0x2cb   : > { %p12_p5 = scmp.ge.s32.totalorder %s15_s12, 4  }
 0x2cd   :  { %14 = sbr.rel (!%p12_p5) target bundleno = 2 (0x2), region = 74 }
 0x2d4   :  { %3778 = vsyncpa [#allocation4], 1 }
 0x2d5   :  { %3780 = vsyncpa [#allocation4 + $0x1], 1 }
 0x2d6   :  { %3781 = vsyncpa [#allocation6], 1 }

// kernel: faster_rcnn_trainer_forward.6
= control target key start
LH: loop header
LB: loop body
LE: loop exit
PB: predicated region body
PF: predicated region fallthrough
CT: control target
= control target key end

     0   :  { %10 = vsyncpa [#allocation4], 0  ;;  %s6172_s0 = inlined_call_operand.vmem [shape: bf16[2,18,18,128], index: 0, kind: input, shape index: {}]   ;;  %s6173_s1 = inlined_call_operand.hbm [shape: bf16[384,128], index: 1, kind: input, shape index: {}]   ;;  %s6174_s2 = inlined_call_operand.hbm [shape: f32[1,128], index: 2, kind: input, shape index: {}]   ;;  %s6175_s3 = inlined_call_operand.hbm [shape: bf16[128,128], index: 3, kind: input, shape index: {}]   ;;  %s6176_s4 = inlined_call_operand.hbm [shape: f32[1,128], index: 4, kind: input, shape index: {}]   ;;  %s6177_s5 = inlined_call_operand.vmem [shape: f32[2,256,128], index: 5, kind: output, shape index: {}]  }
   0x1   :  { %11 = vsyncpa [#allocation6], 0 }
   0x2   :  { %12 = vsyncpa [#allocation9], 0  ;;  %s5180_s18 = smov 0  }
   0x3 LB: > { %s5140_s19 = smov [#allocation5]   ;;  %s5186_s21 = sadd.s32 4294967295, %s5138_s18   ;;  %s5138_s18 = sphi %s5180_s18, %s18_s18  }
   0x4   : > { %s185_s20 = sshll.u32 %s5140_s19, 4  ;;  %p3877_p0 = scmp.ge.s32.totalorder %s5138_s18, 1  ;;  %s5191_s20 = int_to_ptr.vmem [resolvable:$true] %s185_s20 }
   0x5   : > { %p159_p1 = scmp.lt.s32.totalorder %s5138_s18, 3  ;;  %p6178_p2 = scmp.eq.s32.totalorder %s5186_s21, 0 }
   0x6   : > { %s5141_s23 = smov [#allocation3]   ;;  %s5142_s26 = smov [#allocation7]  }
   0x7   : > { %p5193_p3 = pnand %p3877_p0, %p159_p1  ;;  %s171_s24 = sshll.u32 %s5141_s23, 4  ;;  %s5199_s24 = int_to_ptr.vmem [resolvable:$true] %s171_s24 }
   0x8   : > { %s195_s27 = sshll.u32 %s5142_s26, 4  ;;  %s5143_s28 = smov [#allocation8]   ;;  %s5207_s27 = int_to_ptr.vmem [resolvable:$true] %s195_s27 }
   0x9   : > { %s6180_s22 = scalar_select %p5193_p3, 1, 0 }
   0xa   : > { %p4697_p4 = pneg %p5193_p3  ;;  %s5209_s29 = sshll.u32 %s5143_s28, 4  ;;  %s210_s29 = int_to_ptr.vmem [resolvable:$true] %s5209_s29 }
   0xb   : > { %s5008_s7 = scalar_lea.hbm %s6174_s2, 16 }
   0xc   : > { %p5203_p5 = pnand %p6178_p2, %p4697_p4  ;;  %p5009_p6 = scmp.ne.s32.totalorder %s6174_s2, %s5008_s7 }
   0xd   : > { %p5015_p10 = scmp.lt.u32.totalorder %s5008_s7, %s6174_s2 }
   0xe   : > { %p5219_p7 = pneg %p5203_p5 }
  0x10   : > { %p5011_p8 = pnand %p5219_p7, %p5009_p6 }
  0x12   : > { %p5012_p9 = pneg %p5011_p8 }
  0x14   : > { %p5017_p11 = pnand %p5015_p10, %p5012_p9 }
  0x16   : > { %5020 = shalt.err (!%p5017_p11)
}
  0x17   : > { %s5021_s13 = scalar_lea.vmem %s5191_s20, 16  ;;  %s5028_s14 = scalar_lea.vmem %s5191_s20, 32 }
  0x18   : > { %p5022_p12 = scmp.ne.s32.totalorder %s5191_s20, %s5021_s13  ;;  %p5029_p1 = scmp.lt.s32.totalorder %s5191_s20, %s5191_s20 }
  0x19   : > { %p5030_p4 = scmp.lt.s32.totalorder %s5028_s14, %s5021_s13 }
  0x1a   : > { %p5024_p13 = pnand %p5022_p12, %p5219_p7 }
  0x1b   : > { %p5031_p6 = por %p5030_p4, %p5029_p1 }
  0x1c   : > { %p5025_p0 = pneg %p5024_p13 }
  0x1e   : > { %p5032_p8 = pnand %p5031_p6, %p5025_p0 }
  0x20   : > { %5035 = shalt.err (!%p5032_p8)
}
  0x21   : > { %4703 = dma.hbm_to_vmem [thread:$0]  (!%p5203_p5), %s6174_s2, 16, %s5191_s20, [#allocation6]  }
  0x22   : > { %s5036_s23 = scalar_lea.hbm %s6173_s1, 3072 }
  0x23   : > { %p5037_p9 = scmp.ne.s32.totalorder %s6173_s1, %s5036_s23  ;;  %p5043_p12 = scmp.lt.u32.totalorder %s5036_s23, %s6173_s1 }
  0x25   : > { %p5039_p10 = pnand %p5037_p9, %p5219_p7 }
  0x27   : > { %p5040_p11 = pneg %p5039_p10 }
  0x29   : > { %p5045_p13 = pnand %p5043_p12, %p5040_p11 }
  0x2b   : > { %5048 = shalt.err (!%p5045_p13)
}
  0x2c   : > { %s5049_s20 = scalar_lea.vmem %s5199_s24, 3072  ;;  %p5057_p6 = scmp.lt.s32.totalorder %s5199_s24, %s5199_s24 }
  0x2d   : > { %p5050_p0 = scmp.ne.s32.totalorder %s5199_s24, %s5049_s20  ;;  %p5058_p8 = scmp.lt.s32.totalorder %s5049_s20, %s5049_s20 }
  0x2f   : > { %p5052_p1 = pnand %p5050_p0, %p5219_p7  ;;  %p5059_p9 = por %p5058_p8, %p5057_p6 }
  0x31   : > { %p5053_p4 = pneg %p5052_p1 }
  0x33   : > { %p5060_p10 = pnand %p5059_p9, %p5053_p4 }
  0x35   : > { %5063 = shalt.err (!%p5060_p10)
}
  0x36   : > { %s5144_s7 = smov 64   ;;  %s5145_s8 = smov 4  }
  0x37   : > { %4700 = dma.hbm_to_vmem [thread:$0]  (!%p5203_p5), %s6173_s1, 3072, %s5199_s24, [#allocation4], %s5144_s7, %s5144_s7, %s5145_s8  }
  0x38   : > { %s5064_s14 = scalar_lea.hbm %s6175_s3, 1024 }
  0x39   : > { %p5065_p11 = scmp.ne.s32.totalorder %s6175_s3, %s5064_s14  ;;  %p5071_p0 = scmp.lt.u32.totalorder %s5064_s14, %s6175_s3 }
  0x3b   : > { %p5067_p12 = pnand %p5065_p11, %p5219_p7 }
  0x3d   : > { %p5068_p13 = pneg %p5067_p12 }
  0x3f   : > { %p5073_p1 = pnand %p5071_p0, %p5068_p13 }
  0x41   : > { %5076 = shalt.err (!%p5073_p1)
}
  0x42   : > { %s5077_s24 = scalar_lea.vmem %s5207_s27, 1024  ;;  %p5085_p9 = scmp.lt.s32.totalorder %s5207_s27, %s5207_s27 }
  0x43   : > { %p5078_p4 = scmp.ne.s32.totalorder %s5207_s27, %s5077_s24  ;;  %p5086_p10 = scmp.lt.s32.totalorder %s5077_s24, %s5077_s24 }
  0x45   : > { %p5080_p6 = pnand %p5078_p4, %p5219_p7  ;;  %p5087_p11 = por %p5086_p10, %p5085_p9 }
  0x47   : > { %p5081_p8 = pneg %p5080_p6 }
  0x49   : > { %p5088_p12 = pnand %p5087_p11, %p5081_p8 }
  0x4b   : > { %5091 = shalt.err (!%p5088_p12)
}
  0x4c   : > { %4706 = dma.hbm_to_vmem [thread:$0]  (!%p5203_p5), %s6175_s3, 1024, %s5207_s27, [#allocation6], %s5144_s7, %s5144_s7, %s5145_s8  }
  0x4d   : > { %s5092_s6 = scalar_lea.hbm %s6176_s4, 16 }
  0x4e   : > { %p5093_p13 = scmp.ne.s32.totalorder %s6176_s4, %s5092_s6  ;;  %p5099_p4 = scmp.lt.u32.totalorder %s5092_s6, %s6176_s4 }
  0x50   : > { %p5095_p0 = pnand %p5093_p13, %p5219_p7 }
  0x52   : > { %p5096_p1 = pneg %p5095_p0 }
  0x54   : > { %p5101_p6 = pnand %p5099_p4, %p5096_p1 }
  0x56   : > { %5104 = shalt.err (!%p5101_p6)
}
  0x57   : > { %s5105_s13 = scalar_lea.vmem %s210_s29, 16  ;;  %s5112_s27 = scalar_lea.vmem %s210_s29, 32 }
  0x58   : > { %p5106_p8 = scmp.ne.s32.totalorder %s210_s29, %s5105_s13  ;;  %p5113_p11 = scmp.lt.s32.totalorder %s210_s29, %s210_s29 }
  0x59   : > { %p5114_p12 = scmp.lt.s32.totalorder %s5112_s27, %s5105_s13 }
  0x5a   : > { %p5108_p9 = pnand %p5106_p8, %p5219_p7 }
  0x5b   : > { %p5115_p2 = por %p5114_p12, %p5113_p11 }
  0x5c   : > { %p5109_p10 = pneg %p5108_p9 }
  0x5e   : > { %p5116_p3 = pnand %p5115_p2, %p5109_p10 }
  0x60   : > { %5119 = shalt.err (!%p5116_p3)
}
  0x61   : > { %4709 = dma.hbm_to_vmem [thread:$0]  (!%p5203_p5), %s6176_s4, 16, %s210_s29, [#allocation9]  }
  0x62   : > { %p6183_p13 = scmp.ne.s32.totalorder %s6180_s22, 0 }
  0x63   : > { %p6184_p0 = scmp.eq.s32.totalorder (!%p6183_p13), %s5186_s21, 0 }
  0x64   : > { %230 = sbr.rel (%p6183_p13) target bundleno = 886 (0x376), region = 40 }
  0x6b   : > { %5125 = dma.done.wait (%p6184_p0), [#allocation4], 3072   ;;  %p6185_p7 = pmov %p6184_p0 }
  0x6c   : > { %p6186_p1 = pmov %p6184_p0 }
  0x6d   : > { %5127 = vsyncadd (%p6185_p7), [#allocation4], 4294964224 }
  0x6e   : > { %5129 = dma.done.wait (%p6186_p1), [#allocation6], 1040   ;;  %p6187_p2 = pmov %p6184_p0 }
  0x6f   : > { %p6188_p3 = pmov %p6184_p0 }
  0x70   : > { %5131 = vsyncadd (%p6187_p2), [#allocation6], 4294966256 }
  0x71   : > { %5133 = dma.done.wait (%p6188_p3), [#allocation9], 16   ;;  %p6189_p5 = pmov %p6184_p0 }
  0x72   : > { %p270_p4 = scmp.lt.s32.totalorder %s5186_s21, 1  ;;  %vm1053_vm0 = vcmask 1046528   ;;  %s5146_s14 = smov 64   ;;  %vm619_vm1 = vsmask.f32 7424  ;;  %vm426_vm2 = vcmask 261120  }
  0x73   : > { %5135 = vsyncadd (%p6189_p5), [#allocation9], 4294967280  ;;  %s5147_s15 = smov 96   ;;  %s5148_s16 = smov 32   ;;  %vm860_vm3 = vcmask 523520   ;;  %vm1150_vm4 = vcmask 785920  }
  0x74   : > { %s6191_s21 = smov (!%p270_p4, %s5186_s21), 1  ;;  %vm1328_vm5 = vcmask 1048320   ;;  %vm281_vm6 = vcmask 1047808  }
  0x75   : > { %s4680_s22 = smul.u32 216, %s6191_s21  ;;  %s4423_s17 = sshll.u32 %s6191_s21, 8 }
  0x76   : > { %s6103_s23 = scalar_lea.vmem %s6177_s5, %s4423_s17 }
  0x77   : > { %s5328_s10 = scalar_lea.vmem %s6172_s0, %s4680_s22 }
  0x78   : > { %v4736_v0 = vld [vmem:[%s5328_s10 + $0x24] sm:$0xff]   ;;  %v4737_v1 = vld [vmem:[%s5328_s10 + $0x18] sm:$0xff]   ;;  %v4738_v2 = vld [vmem:[%s5328_s10 + $0xc] sm:$0xfe]  }
  0x79   : > { %2148 = vrot.lane.b32.xlu0 %v4736_v0, %s5146_s14  ;;  %2146 = vrot.lane.b32.xlu1 %v4737_v1, %s5146_s14  ;;  %v4739_v3 = vld [vmem:[%s5328_s10 + $0x14] ss:$0 sps:$4 sm:$0x11]   ;;  %v4740_v4 = vld [vmem:[%s5328_s10 + $0xc] sm:$0xff]   ;;  %v1921_v5 = vrot.slane %v4738_v2, 1 }
  0x7a   : > { %v1922_v6 = vrot.slane %v4739_v3, 1  ;;  %v4741_v7 = vld [vmem:[%s5328_s10 + $0x18] sm:$0xfe]   ;;  %v4742_v8 = vld [vmem:[%s5328_s10 + $0x20] ss:$0 sps:$4 sm:$0x11]  }
  0x7b   : > { %v4747_v9 = vld [vmem:[%s5328_s10] sm:$0xff]   ;;  %v1924_v11 = vrot.slane %v4741_v7, 1  ;;  %v1925_v12 = vrot.slane %v4742_v8, 1  ;;  %v4744_v14 = vld [vmem:[%s5328_s10 + $0x8] ss:$0 sps:$4 sm:$0x11]  }
  0x7c   : > { %v1923_v10 = vsel %vm1053_vm0, %v1921_v5, %v1922_v6  ;;  %v4743_v13 = vld [vmem:[%s5328_s10] sm:$0xfe]   ;;  %v621_v15 = vshrl.u32 %v4747_v9, 16  ;;  %v4745_v18 = vld [vmem:[%s5328_s10 + $0xc] sm:$0xfe]   ;;  %v623_v19 = vshll.u32 %v4747_v9, 16 }
  0x7d   : > { %1280 = vrot.lane.b32.xlu1 %v4740_v4, %s5147_s15  ;;  %1969 = vrot.lane.b32.xlu0 %v1923_v10, %s5148_s16  ;;  %v1926_v16 = vsel %vm1053_vm0, %v1924_v11, %v1925_v12  ;;  %v1054_v17 = vrot.slane %v4743_v13, 1  ;;  %v1055_v20 = vrot.slane %v4744_v14, 1  ;;  %v4746_v21 = vld [vmem:[%s5328_s10 + $0x14] ss:$0 sps:$4 sm:$0x11]   ;;  %v1057_v22 = vrot.slane %v4745_v18, 1 }
  0x7e   : > { %v625_v23 = vrot.slane %v623_v19, 1  ;;  %v1058_v25 = vrot.slane %v4746_v21, 1  ;;  %v4748_v26 = vld [vmem:[%s5328_s10 + $0x8] ss:$0 sps:$4 sm:$0x11]   ;;  %v4749_v27 = vld [vmem:[%s5328_s10 + $0xc] sm:$0xff]  }
  0x7f   : > { %v1056_v24 = vsel %vm1053_vm0, %v1054_v17, %v1055_v20  ;;  %v628_v30 = vshll.u32 %v4748_v26, 16  ;;  %v4750_v31 = vld [vmem:[%s5328_s10 + $0x14] ss:$0 sps:$4 sm:$0x11]   ;;  %v633_v32 = vshrl.u32 %v4749_v27, 16  ;;  %v635_v33 = vshll.u32 %v4749_v27, 16 }
  0x80   : > { %v1059_v28 = vsel %vm1053_vm0, %v1057_v22, %v1058_v25  ;;  %v626_v29 = vor.u32 %v625_v23, %v621_v15  ;;  %v640_v35 = vshll.u32 %v4750_v31, 16  ;;  %v4751_v36 = vld [vmem:[%s5328_s10 + $0x18] sm:$0xff]   ;;  %v4752_v37 = vld [vmem:[%s5328_s10 + $0x20] ss:$0 sps:$4 sm:$0x11]   ;;  %v4753_v39 = vld [vmem:[%s5328_s10 + $0x24] sm:$0xff]  }
  0x81   : > { %1971 = vrot.lane.b32.xlu0 %v1926_v16, %s5148_s16  ;;  %1102 = vrot.lane.b32.xlu1 %v1056_v24, %s5146_s14  ;;  %v630_v34 = vrot.slane %v628_v30, 1  ;;  %v637_v38 = vrot.slane %v635_v33, 1  ;;  %v2387_v42 = vshrl.u32 %v4751_v36, 16  ;;  %v2389_v43 = vshll.u32 %v4751_v36, 16  ;;  %v4755_v50 = vld [vmem:[%s5328_s10 + $0x18] sm:$0xff]   ;;  %v4763_v3 = vld [vmem:[%s5328_s10 + $0x30] sm:$0xff]  }
  0x82   : > { %v642_v41 = vrot.slane %v640_v35, 1  ;;  %v2394_v45 = vshll.u32 %v4752_v37, 16  ;;  %v4754_v46 = vld [vmem:[%s5328_s10 + $0x2c] ss:$0 sps:$4 sm:$0x11]   ;;  %v2399_v47 = vshrl.u32 %v4753_v39, 16 }
  0x83   : > { %v631_v40 = vsel %vm619_vm1, %v626_v29, %v630_v34  ;;  %v638_v44 = vor.u32 %v637_v38, %v633_v32  ;;  %v2401_v48 = vshll.u32 %v4753_v39, 16  ;;  %v2391_v49 = vrot.slane %v2389_v43, 1  ;;  %v4758_v55 = vld [vmem:[%s5328_s10 + $0x18] sm:$0xff]   ;;  %v4756_v57 = vld [vmem:[%s5328_s10 + $0x24] sm:$0xfe]   ;;  %v4760_v19 = vld [vmem:[%s5328_s10 + $0x30] sm:$0xff]  }
  0x84   : > { %v2396_v52 = vrot.slane %v2394_v45, 1  ;;  %v2406_v54 = vshll.u32 %v4754_v46, 16  ;;  %v4757_v60 = vld [vmem:[%s5328_s10 + $0x2c] ss:$0 sps:$4 sm:$0x11]   ;;  %v1927_v62 = vrot.slane %v4756_v57, 1 }
  0x85   : > { %1104 = vrot.lane.b32.xlu1 %v1059_v28, %s5146_s14  ;;  %812 = vrot.lane.b32.xlu0 %v631_v40, %s5148_s16  ;;  %v643_v51 = vsel %vm619_vm1, %v638_v44, %v642_v41  ;;  %v2403_v53 = vrot.slane %v2401_v48, 1  ;;  %v2392_v56 = vor.u32 %v2391_v49, %v2387_v42  ;;  %v645_v63 = vshrl.u32 %v4758_v55, 16  ;;  %v4759_v1 = vld [vmem:[%s5328_s10 + $0x20] ss:$0 sps:$4 sm:$0x11]   ;;  %v4768_v23 = vld [vmem:[%s5328_s10 + $0x24] sm:$0xff]  }
  0x86   : > { %v2408_v59 = vrot.slane %v2406_v54, 1  ;;  %v1928_v0 = vrot.slane %v4757_v60, 1  ;;  %v647_v2 = vshll.u32 %v4758_v55, 16  ;;  %v652_v6 = vshll.u32 %v4759_v1, 16  ;;  %v4761_v7 = vld [vmem:[%s5328_s10 + $0x18] sm:$0xfe]  }
  0x87   : > { %v2404_v58 = vor.u32 %v2403_v53, %v2399_v47  ;;  %v2397_v61 = vsel %vm619_vm1, %v2392_v56, %v2396_v52  ;;  %v4762_v8 = vld [vmem:[%s5328_s10 + $0x20] ss:$0 sps:$4 sm:$0x11]   ;;  %v2411_v9 = vshrl.u32 %v4763_v3, 16  ;;  %v2413_v12 = vshll.u32 %v4763_v3, 16  ;;  %v4765_v25 = vld [vmem:[%s5328_s10 + $0x24] sm:$0xff]  }
  0x88   : > { %v649_v5 = vrot.slane %v647_v2, 1  ;;  %v654_v11 = vrot.slane %v652_v6, 1  ;;  %v1929_v13 = vsel %vm1053_vm0, %v1927_v62, %v1928_v0  ;;  %v1060_v14 = vrot.slane %v4761_v7, 1  ;;  %v4764_v17 = vld [vmem:[%s5328_s10 + $0x38] ss:$0 sps:$4 sm:$0x11]  }
  0x89   : > { %814 = vrot.lane.b32.xlu1 %v643_v51, %s5148_s16  ;;  %2578 = vrot.lane.b32.xlu0 %v2397_v61, %s5147_s15  ;;  %v2409_v4 = vsel %vm619_vm1, %v2404_v58, %v2408_v59  ;;  %v1061_v15 = vrot.slane %v4762_v8, 1  ;;  %v2415_v18 = vrot.slane %v2413_v12, 1  ;;  %v2418_v21 = vshll.u32 %v4764_v17, 16  ;;  %v4766_v22 = vld [vmem:[%s5328_s10 + $0x30] sm:$0xfe]   ;;  %v4773_v38 = vld [vmem:[%s5328_s10 + $0x3c] sm:$0xff]  }
  0x8a   : > { %v650_v10 = vor.u32 %v649_v5, %v645_v63  ;;  %v4767_v26 = vld [vmem:[%s5328_s10 + $0x38] ss:$0 sps:$4 sm:$0x11]   ;;  %v1930_v28 = vrot.slane %v4766_v22, 1  ;;  %v657_v31 = vshrl.u32 %v4768_v23, 16  ;;  %v659_v32 = vshll.u32 %v4768_v23, 16 }
  0x8b   : > { %v1062_v20 = vsel %vm1053_vm0, %v1060_v14, %v1061_v15  ;;  %v2416_v24 = vor.u32 %v2415_v18, %v2411_v9  ;;  %v2420_v27 = vrot.slane %v2418_v21, 1  ;;  %v1931_v29 = vrot.slane %v4767_v26, 1  ;;  %v4769_v30 = vld [vmem:[%s5328_s10 + $0x2c] ss:$0 sps:$4 sm:$0x11]   ;;  %v4778_v48 = vld [vmem:[%s5328_s10 + $0x30] sm:$0xff]  }
  0x8c   : > { %v655_v16 = vsel %vm619_vm1, %v650_v10, %v654_v11  ;;  %v661_v34 = vrot.slane %v659_v32, 1  ;;  %v664_v35 = vshll.u32 %v4769_v30, 16  ;;  %v4771_v36 = vld [vmem:[%s5328_s10 + $0x24] sm:$0xfe]   ;;  %v2423_v43 = vshrl.u32 %v4773_v38, 16  ;;  %v4770_v49 = vld [vmem:[%s5328_s10 + $0x3c] sm:$0xff]  }
  0x8d   : > { %1282 = vrot.lane.b32.xlu1 %v4755_v50, %s5147_s15  ;;  %2580 = vrot.lane.b32.xlu0 %v2409_v4, %s5147_s15  ;;  %v2421_v33 = vsel %vm619_vm1, %v2416_v24, %v2420_v27  ;;  %v4772_v37 = vld [vmem:[%s5328_s10 + $0x2c] ss:$0 sps:$4 sm:$0x11]   ;;  %v1063_v41 = vrot.slane %v4771_v36, 1  ;;  %v2425_v44 = vshll.u32 %v4773_v38, 16  ;;  %v1932_v45 = vsel %vm1053_vm0, %v1930_v28, %v1931_v29  ;;  %v4775_v60 = vld [vmem:[%s5328_s10 + $0x30] sm:$0xff]  }
  0x8e   : > { %v662_v39 = vor.u32 %v661_v34, %v657_v31  ;;  %v666_v40 = vrot.slane %v664_v35, 1  ;;  %v1064_v42 = vrot.slane %v4772_v37, 1  ;;  %v4774_v47 = vld [vmem:[%s5328_s10 + $0x44] ss:$0 sps:$4 sm:$0x11]   ;;  %v669_v52 = vshrl.u32 %v4778_v48, 16 }
  0x8f   : > { %v2427_v50 = vrot.slane %v2425_v44, 1  ;;  %v2430_v51 = vshll.u32 %v4774_v47, 16  ;;  %v4776_v54 = vld [vmem:[%s5328_s10 + $0x3c] sm:$0xfe]   ;;  %v671_v56 = vshll.u32 %v4778_v48, 16  ;;  %v4783_v59 = vld [vmem:[%s5328_s10 + $0x48] sm:$0xff]  }
  0x90   : > { %v667_v46 = vsel %vm619_vm1, %v662_v39, %v666_v40  ;;  %v1065_v53 = vsel %vm1053_vm0, %v1063_v41, %v1064_v42  ;;  %v4777_v55 = vld [vmem:[%s5328_s10 + $0x44] ss:$0 sps:$4 sm:$0x11]   ;;  %v1933_v61 = vrot.slane %v4776_v54, 1  ;;  %v4781_v4 = vld [vmem:[%s5328_s10 + $0x30] sm:$0xfe]  }
  0x91   : > { %816 = vrot.lane.b32.xlu1 %v655_v16, %s5148_s16  ;;  %1973 = vrot.lane.b32.xlu0 %v1929_v13, %s5148_s16  ;;  %v2428_v57 = vor.u32 %v2427_v50, %v2423_v43  ;;  %v2432_v58 = vrot.slane %v2430_v51, 1  ;;  %v673_v62 = vrot.slane %v671_v56, 1  ;;  %v1934_v63 = vrot.slane %v4777_v55, 1  ;;  %v4779_v0 = vld [vmem:[%s5328_s10 + $0x38] ss:$0 sps:$4 sm:$0x11]  }
  0x92   : > { %v676_v3 = vshll.u32 %v4779_v0, 16  ;;  %v2437_v5 = vshll.u32 %v4783_v59, 16  ;;  %v4782_v6 = vld [vmem:[%s5328_s10 + $0x38] ss:$0 sps:$4 sm:$0x11]   ;;  %v4788_v7 = vld [vmem:[%s5328_s10 + $0x3c] sm:$0xff]  }
  0x93   : > { %v2433_v1 = vsel %vm619_vm1, %v2428_v57, %v2432_v58  ;;  %v674_v2 = vor.u32 %v673_v62, %v669_v52  ;;  %v2435_v9 = vshrl.u32 %v4783_v59, 16  ;;  %v1066_v10 = vrot.slane %v4781_v4, 1  ;;  %v4784_v12 = vld [vmem:[%s5328_s10 + $0x50] ss:$0 sps:$4 sm:$0x11]   ;;  %v4780_v16 = vld [vmem:[%s5328_s10 + $0x48] sm:$0xff]  }
  0x94   : > { %v678_v8 = vrot.slane %v676_v3, 1  ;;  %v1067_v11 = vrot.slane %v4782_v6, 1  ;;  %v2439_v13 = vrot.slane %v2437_v5, 1  ;;  %v1935_v14 = vsel %vm1053_vm0, %v1933_v61, %v1934_v63  ;;  %v4785_v26 = vld [vmem:[%s5328_s10 + $0x3c] sm:$0xff]   ;;  %v4793_v30 = vld [vmem:[%s5328_s10 + $0x54] sm:$0xff]   ;;  %v4795_v56 = vld [vmem:[%s5328_s10 + $0x48] sm:$0xff]  }
  0x95   : > { %1106 = vrot.lane.b32.xlu1 %v1062_v20, %s5146_s14  ;;  %2150 = vrot.lane.b32.xlu0 %v4760_v19, %s5146_s14  ;;  %v2442_v17 = vshll.u32 %v4784_v12, 16  ;;  %v683_v18 = vshll.u32 %v4788_v7, 16  ;;  %v4786_v19 = vld [vmem:[%s5328_s10 + $0x48] sm:$0xfe]   ;;  %v681_v21 = vshrl.u32 %v4788_v7, 16  ;;  %v2449_v39 = vshll.u32 %v4793_v30, 16 }
  0x96   : > { %v679_v15 = vsel %vm619_vm1, %v674_v2, %v678_v8  ;;  %v4787_v20 = vld [vmem:[%s5328_s10 + $0x50] ss:$0 sps:$4 sm:$0x11]   ;;  %v1068_v22 = vsel %vm1053_vm0, %v1066_v10, %v1067_v11  ;;  %v1936_v27 = vrot.slane %v4786_v19, 1  ;;  %v2447_v44 = vshrl.u32 %v4793_v30, 16  ;;  %v4790_v47 = vld [vmem:[%s5328_s10 + $0x54] sm:$0xff]  }
  0x97   : > { %v2444_v23 = vrot.slane %v2442_v17, 1  ;;  %v685_v24 = vrot.slane %v683_v18, 1  ;;  %v1937_v28 = vrot.slane %v4787_v20, 1  ;;  %v4789_v29 = vld [vmem:[%s5328_s10 + $0x44] ss:$0 sps:$4 sm:$0x11]  }
  0x98   : > { %v688_v32 = vshll.u32 %v4789_v29, 16  ;;  %v4792_v34 = vld [vmem:[%s5328_s10 + $0x44] ss:$0 sps:$4 sm:$0x11]   ;;  %v4796_v48 = vld [vmem:[%s5328_s10 + $0x54] sm:$0xfe]  }
  0x99   : > { %1284 = vrot.lane.b32.xlu1 %v4765_v25, %s5147_s15  ;;  %2582 = vrot.lane.b32.xlu0 %v2421_v33, %s5147_s15  ;;  %v2440_v25 = vor.u32 %v2439_v13, %v2435_v9  ;;  %v686_v31 = vor.u32 %v685_v24, %v681_v21  ;;  %v4791_v33 = vld [vmem:[%s5328_s10 + $0x3c] sm:$0xfe]   ;;  %v4794_v37 = vld [vmem:[%s5328_s10 + $0x5c] ss:$0 sps:$4 sm:$0x11]   ;;  %v1070_v41 = vrot.slane %v4792_v34, 1  ;;  %v1938_v43 = vsel %vm1053_vm0, %v1936_v27, %v1937_v28 }
  0x9a   : > { %v690_v36 = vrot.slane %v688_v32, 1  ;;  %v1069_v38 = vrot.slane %v4791_v33, 1  ;;  %v2454_v42 = vshll.u32 %v4794_v37, 16  ;;  %v4799_v52 = vld [vmem:[%s5328_s10 + $0x50] ss:$0 sps:$4 sm:$0x11]  }
  0x9b   : > { %v2445_v35 = vsel %vm619_vm1, %v2440_v25, %v2444_v23  ;;  %v700_v58 = vshll.u32 %v4799_v52, 16  ;;  %v4801_v59 = vld [vmem:[%s5328_s10 + $0x48] sm:$0xfe]   ;;  %v4803_v61 = vld [vmem:[%s5328_s10 + $0x60] sm:$0xff]   ;;  %v4808_v5 = vld [vmem:[%s5328_s10 + $0x54] sm:$0xff]  }
  0x9c   : > { %v691_v40 = vsel %vm619_vm1, %v686_v31, %v690_v36  ;;  %v1071_v50 = vsel %vm1053_vm0, %v1069_v38, %v1070_v41  ;;  %v2456_v51 = vrot.slane %v2454_v42, 1  ;;  %v2461_v3 = vshll.u32 %v4803_v61, 16  ;;  %v4804_v4 = vld [vmem:[%s5328_s10 + $0x68] ss:$0 sps:$4 sm:$0x11]   ;;  %v4813_v19 = vld [vmem:[%s5328_s10 + $0x6c] sm:$0xff]  }
  0x9d   : > { %818 = vrot.lane.b32.xlu1 %v667_v46, %s5148_s16  ;;  %1975 = vrot.lane.b32.xlu0 %v1932_v45, %s5148_s16  ;;  %v2451_v45 = vrot.slane %v2449_v39, 1  ;;  %v4798_v46 = vld [vmem:[%s5328_s10 + $0x48] sm:$0xff]   ;;  %v702_v63 = vrot.slane %v700_v58, 1  ;;  %v1072_v6 = vrot.slane %v4801_v59, 1  ;;  %v2466_v9 = vshll.u32 %v4804_v4, 16  ;;  %v4805_v24 = vld [vmem:[%s5328_s10 + $0x54] sm:$0xff]  }
  0x9e   : > { %v695_v54 = vshll.u32 %v4798_v46, 16  ;;  %v2459_v11 = vshrl.u32 %v4803_v61, 16  ;;  %v2463_v12 = vrot.slane %v2461_v3, 1  ;;  %v707_v13 = vshll.u32 %v4808_v5, 16  ;;  %v4811_v27 = vld [vmem:[%s5328_s10 + $0x54] sm:$0xfe]  }
  0x9f   : > { %v2452_v55 = vor.u32 %v2451_v45, %v2447_v44  ;;  %v4807_v17 = vld [vmem:[%s5328_s10 + $0x68] ss:$0 sps:$4 sm:$0x11]   ;;  %v705_v18 = vshrl.u32 %v4808_v5, 16  ;;  %v4818_v29 = vld [vmem:[%s5328_s10 + $0x60] sm:$0xff]   ;;  %v2473_v32 = vshll.u32 %v4813_v19, 16 }
  0xa0   : > { %v697_v57 = vrot.slane %v695_v54, 1  ;;  %v4809_v21 = vld [vmem:[%s5328_s10 + $0x5c] ss:$0 sps:$4 sm:$0x11]   ;;  %v2464_v23 = vor.u32 %v2463_v12, %v2459_v11  ;;  %v1943_v34 = vrot.slane %v4807_v17, 1  ;;  %v2471_v37 = vshrl.u32 %v4813_v19, 16 }
  0xa1   : > { %1108 = vrot.lane.b32.xlu1 %v1065_v53, %s5146_s14  ;;  %2152 = vrot.lane.b32.xlu0 %v4770_v49, %s5146_s14  ;;  %v4797_v49 = vld [vmem:[%s5328_s10 + $0x5c] ss:$0 sps:$4 sm:$0x11]   ;;  %v693_v53 = vshrl.u32 %v4798_v46, 16  ;;  %v2457_v0 = vsel %vm619_vm1, %v2452_v55, %v2456_v51  ;;  %v719_v39 = vshll.u32 %v4818_v29, 16  ;;  %v2475_v42 = vrot.slane %v2473_v32, 1 }
  0xa2   : > { %v1940_v2 = vrot.slane %v4797_v49, 1  ;;  %v4812_v28 = vld [vmem:[%s5328_s10 + $0x5c] ss:$0 sps:$4 sm:$0x11]   ;;  %v4816_v45 = vld [vmem:[%s5328_s10 + $0x6c] sm:$0xfe]  }
  0xa3   : > { %v698_v62 = vor.u32 %v697_v57, %v693_v53  ;;  %v4814_v36 = vld [vmem:[%s5328_s10 + $0x74] ss:$0 sps:$4 sm:$0x11]   ;;  %v1076_v41 = vrot.slane %v4812_v28, 1  ;;  %v721_v49 = vrot.slane %v719_v39, 1  ;;  %v4823_v51 = vld [vmem:[%s5328_s10 + $0x78] sm:$0xff]   ;;  %v2476_v53 = vor.u32 %v2475_v42, %v2471_v37 }
  0xa4   : > { %v2478_v38 = vshll.u32 %v4814_v36, 16  ;;  %v4817_v46 = vld [vmem:[%s5328_s10 + $0x74] ss:$0 sps:$4 sm:$0x11]   ;;  %v4815_v54 = vld [vmem:[%s5328_s10 + $0x60] sm:$0xff]   ;;  %v1945_v58 = vrot.slane %v4816_v45, 1 }
  0xa5   : > { %1286 = vrot.lane.b32.xlu1 %v4775_v60, %s5147_s15  ;;  %2584 = vrot.lane.b32.xlu0 %v2433_v1, %s5147_s15  ;;  %v4802_v60 = vld [vmem:[%s5328_s10 + $0x50] ss:$0 sps:$4 sm:$0x11]   ;;  %v1939_v1 = vrot.slane %v4796_v48, 1  ;;  %v703_v7 = vsel %vm619_vm1, %v698_v62, %v702_v63  ;;  %v1946_v59 = vrot.slane %v4817_v46, 1  ;;  %v2483_v4 = vshrl.u32 %v4823_v51, 16 }
  0xa6   : > { %v1073_v8 = vrot.slane %v4802_v60, 1  ;;  %v2480_v48 = vrot.slane %v2478_v38, 1  ;;  %v4822_v57 = vld [vmem:[%s5328_s10 + $0x68] ss:$0 sps:$4 sm:$0x11]   ;;  %v4826_v5 = vld [vmem:[#allocation3 + $0x40] sm:$0xff]  }
  0xa7   : > { %v1941_v10 = vsel %vm1053_vm0, %v1939_v1, %v1940_v2  ;;  %v4824_v61 = vld [vmem:[%s5328_s10 + $0x80] ss:$0 sps:$4 sm:$0x11]   ;;  %v1079_v2 = vrot.slane %v4822_v57, 1  ;;  %4424 = vmatprep.subr.bf16.mxu0 %v4826_v5  ;;  %v4830_v11 = vld [vmem:[%s5328_s10 + $0x6c] sm:$0xff]   ;;  %v1947_v12 = vsel %vm1053_vm0, %v1945_v58, %v1946_v59  ;;  %v4840_v37 = vld [vmem:[%s5328_s10 + $0x84] sm:$0xff]  }
  0xa8   : > { %v1074_v20 = vsel %vm1053_vm0, %v1072_v6, %v1073_v8  ;;  %v2481_v1 = vsel %vm619_vm1, %v2476_v53, %v2480_v48  ;;  %v2490_v3 = vshll.u32 %v4824_v61, 16  ;;  %v4829_v8 = vld [vmem:[#allocation3] sm:$0xff]   ;;  %v729_v17 = vshrl.u32 %v4830_v11, 16  ;;  %v4835_v28 = vld [vmem:[#allocation3 + $0x8] sm:$0xff]   ;;  %v4846_v58 = vld [vmem:[#allocation3 + $0x58] sm:$0xff]  }
  0xa9   : > { %820 = vrot.lane.b32.xlu1 %v679_v15, %s5148_s16  ;;  %1977 = vrot.lane.b32.xlu0 %v1935_v14, %s5148_s16  ;;  %v4806_v14 = vld [vmem:[%s5328_s10 + $0x60] sm:$0xfe]   ;;  %v731_v19 = vshll.u32 %v4830_v11, 16  ;;  %v4837_v32 = vld [vmem:[%s5328_s10 + $0x74] ss:$0 sps:$4 sm:$0x11]  }
  0xaa   : > { %v4800_v15 = vld [vmem:[%s5328_s10 + $0x60] sm:$0xff]   ;;  %v1942_v25 = vrot.slane %v4806_v14, 1  ;;  %4425 = vmatpush3.bf16.msra.mxu0 %v4829_v8  ;;  %v4832_v14 = vld [vmem:[#allocation3 + $0x48] sm:$0xff]   ;;  %v1082_v36 = vrot.slane %v4837_v32, 1  ;;  %v2495_v42 = vshrl.u32 %v4840_v37, 16  ;;  %v4851_v5 = vld [vmem:[%s5328_s10 + $0x78] sm:$0xff]  }
  0xab   : > { %4426 = vmatprep.subr.bf16.mxu0 %v4832_v14  ;;  %v4841_v39 = vld [vmem:[%s5328_s10 + $0x8c] ss:$0 sps:$4 sm:$0x11]   ;;  %v4852_v11 = vld [vmem:[%s5328_s10 + $0x80] ss:$0 sps:$4 sm:$0x11]  }
  0xac   : > { %v1944_v44 = vsel %vm1053_vm0, %v1942_v25, %v1943_v34  ;;  %v2502_v46 = vshll.u32 %v4841_v39, 16 }
  0xad   : > { %1110 = vrot.lane.b32.xlu1 %v1068_v22, %s5146_s14  ;;  %2154 = vrot.lane.b32.xlu0 %v4780_v16, %s5146_s14  ;;  %v2468_v16 = vrot.slane %v2466_v9, 1  ;;  %v709_v22 = vrot.slane %v707_v13, 1  ;;  %v2492_v13 = vrot.slane %v2490_v3, 1 }
  0xae   : > { %4427 = vmatpush3.bf16.msra.mxu0 %v4835_v28  ;;  %v4857_v28 = vld [vmem:[%s5328_s10 + $0x90] sm:$0xff]  }
  0xaf   : > { %v710_v30 = vor.u32 %v709_v22, %v705_v18  ;;  %v2469_v33 = vsel %vm619_vm1, %v2464_v23, %v2468_v16  ;;  %v4831_v18 = vld [vmem:[%s5328_s10 + $0x74] ss:$0 sps:$4 sm:$0x11]   ;;  %v4825_v22 = vld [vmem:[%s5328_s10 + $0x6c] sm:$0xff]  }
  0xb0   : > { %v736_v25 = vshll.u32 %v4831_v18, 16 }
  0xb1   : > { %1288 = vrot.lane.b32.xlu1 %v4785_v26, %s5147_s15  ;;  %2586 = vrot.lane.b32.xlu0 %v2445_v35, %s5147_s15  ;;  %v712_v26 = vshll.u32 %v4809_v21, 16  ;;  %v1075_v35 = vrot.slane %v4811_v27, 1 }
  0xb2   : > { %v738_v27 = vrot.slane %v736_v25, 1 }
  0xb3   : > { %v714_v31 = vrot.slane %v712_v26, 1  ;;  %v1077_v52 = vsel %vm1053_vm0, %v1075_v35, %v1076_v41  ;;  %v4833_v26 = vld [vmem:[#allocation3 + $0x80] sm:$0xff]   ;;  %v4839_v35 = vld [vmem:[#allocation3 + $0x88] sm:$0xff]  }
  0xb4   : > { %4584 = vmatprep.subr.bf16.mxu1 %v4833_v26 }
  0xb5   : > { %822 = vrot.lane.b32.xlu1 %v691_v40, %s5148_s16  ;;  %1979 = vrot.lane.b32.xlu0 %v1938_v43, %s5148_s16  ;;  %v715_v40 = vsel %vm619_vm1, %v710_v30, %v714_v31  ;;  %v717_v43 = vshrl.u32 %v4818_v29, 16  ;;  %v4836_v30 = vld [vmem:[%s5328_s10 + $0x6c] sm:$0xfe]  }
  0xb6   : > { %4585 = vmatpush3.bf16.msra.mxu1 %v4833_v26  ;;  %v1081_v34 = vrot.slane %v4836_v30, 1 }
  0xb7   : > { %v722_v62 = vor.u32 %v721_v49, %v717_v43  ;;  %4586 = vmatprep.subr.bf16.mxu1 %v4839_v35  ;;  %v2497_v43 = vshll.u32 %v4840_v37, 16  ;;  %v4844_v49 = vld [vmem:[%s5328_s10 + $0xc] sm:$0xff]   ;;  %v4861_v37 = vld [vmem:[%s5328_s10] sm:$0xff]  }
  0xb8   : > { %427 = vst.msk [vmem:[#allocation2] sm:$0xff] %vm426_vm2, %v4861_v37  ;;  %v4885_v37 = vld [vmem:[#allocation3 + $0xb8] sm:$0xff]  }
  0xb9   : > { %1112 = vrot.lane.b32.xlu1 %v1071_v50, %s5146_s14  ;;  %2156 = vrot.lane.b32.xlu0 %v4790_v47, %s5146_s14  ;;  %v4810_v47 = vld [vmem:[%s5328_s10 + $0x6c] sm:$0xff]   ;;  %v4819_v50 = vld [vmem:[%s5328_s10 + $0x68] ss:$0 sps:$4 sm:$0x11]   ;;  %v2499_v48 = vrot.slane %v2497_v43, 1 }
  0xba   : > { %v724_v55 = vshll.u32 %v4819_v50, 16  ;;  %4587 = vmatpush3.bf16.msra.mxu1 %v4839_v35  ;;  %v1083_v50 = vsel %vm1053_vm0, %v1081_v34, %v1082_v36  ;;  %v4859_v34 = vld [vmem:[%s5328_s10 + $0x78] sm:$0xfe]   ;;  %v4860_v35 = vld [vmem:[%s5328_s10 + $0x80] ss:$0 sps:$4 sm:$0x11]  }
  0xbb   : > { %v2500_v53 = vor.u32 %v2499_v48, %v2495_v42  ;;  %v1085_v39 = vrot.slane %v4860_v35, 1  ;;  %v5149_v48 = vmov 0  }
  0xbc   : > { %v726_v60 = vrot.slane %v724_v55, 1  ;;  %v1522_v55 = vshrl.u32 %v4844_v49, 16  ;;  %282 = vst.msk [vmem:[#allocation2 + $0x10] sm:$0xff] %vm281_vm6, %v5149_v48  ;;  %283 = vst.msk [vmem:[#allocation2 + $0x28] sm:$0xff] %vm281_vm6, %v5149_v48 }
  0xbd   : > { %1290 = vrot.lane.b32.xlu1 %v4795_v56, %s5147_s15  ;;  %2588 = vrot.lane.b32.xlu0 %v2457_v0, %s5147_s15  ;;  %v4821_v56 = vld [vmem:[%s5328_s10 + $0x60] sm:$0xfe]   ;;  %v2485_v0 = vshll.u32 %v4823_v51, 16  ;;  %v2504_v51 = vrot.slane %v2502_v46, 1  ;;  %284 = vst.msk [vmem:[#allocation2 + $0x40] sm:$0xff] %vm281_vm6, %v5149_v48  ;;  %285 = vst.msk [vmem:[#allocation2 + $0x58] sm:$0xff] %vm281_vm6, %v5149_v48 }
  0xbe   : > { %v1078_v63 = vrot.slane %v4821_v56, 1  ;;  %v727_v9 = vsel %vm619_vm1, %v722_v62, %v726_v60  ;;  %v1524_v56 = vshll.u32 %v4844_v49, 16  ;;  %v4847_v60 = vld [vmem:[#allocation3 + $0x90] sm:$0xff]   ;;  %v4865_v46 = vld [vmem:[%s5328_s10 + $0x98] ss:$0 sps:$4 sm:$0x11]  }
  0xbf   : > { %v2487_v6 = vrot.slane %v2485_v0, 1  ;;  %v4848_v0 = vld [vmem:[%s5328_s10 + $0x84] sm:$0xfe]   ;;  %4588 = vmatprep.subr.bf16.mxu1 %v4847_v60  ;;  %286 = vst.msk [vmem:[#allocation2 + $0x70] sm:$0xff] %vm281_vm6, %v5149_v48  ;;  %287 = vst.msk [vmem:[#allocation2 + $0x88] sm:$0xff] %vm281_vm6, %v5149_v48 }
  0xc0   : > { %v1526_v59 = vrot.slane %v1524_v56, 1  ;;  %4589 = vmatpush3.bf16.msra.mxu1 %v4847_v60  ;;  %288 = vst.msk [vmem:[#allocation2 + $0xa0] sm:$0xff] %vm281_vm6, %v5149_v48  ;;  %289 = vst.msk [vmem:[#allocation2 + $0xb8] sm:$0xff] %vm281_vm6, %v5149_v48 }
  0xc1   : > { %824 = vrot.lane.b32.xlu1 %v703_v7, %s5148_s16  ;;  %1981 = vrot.lane.b32.xlu0 %v1941_v10, %s5148_s16  ;;  %v4827_v7 = vld [vmem:[%s5328_s10 + $0x78] sm:$0xfe]   ;;  %v4828_v10 = vld [vmem:[%s5328_s10 + $0x80] ss:$0 sps:$4 sm:$0x11]   ;;  %v2488_v21 = vor.u32 %v2487_v6, %v2483_v4  ;;  %v1951_v6 = vrot.slane %v4848_v0, 1 }
  0xc2   : > { %v1948_v16 = vrot.slane %v4827_v7, 1  ;;  %v1949_v23 = vrot.slane %v4828_v10, 1  ;;  %v1527_v3 = vor.u32 %v1526_v59, %v1522_v55  ;;  %v4849_v4 = vld [vmem:[%s5328_s10 + $0x8c] ss:$0 sps:$4 sm:$0x11]   ;;  %v4853_v7 = vld [vmem:[%s5328_s10 + $0x18] sm:$0xff]  }
  0xc3   : > { %v2493_v31 = vsel %vm619_vm1, %v2488_v21, %v2492_v13  ;;  %v741_v10 = vshrl.u32 %v4851_v5, 16  ;;  %v1534_v14 = vshrl.u32 %v4853_v7, 16  ;;  %v4855_v21 = vld [vmem:[#allocation3 + $0x60] sm:$0xff]   ;;  %290 = vst.msk [vmem:[#allocation2 + $0xd0] sm:$0xff] %vm281_vm6, %v5149_v48  ;;  %291 = vst.msk [vmem:[#allocation2 + $0xe8] sm:$0xff] %vm281_vm6, %v5149_v48  ;;  %v4868_v55 = vld [vmem:[%s5328_s10 + $0xc] sm:$0xff]  }
  0xc4   : > { %v1950_v41 = vsel %vm1053_vm0, %v1948_v16, %v1949_v23  ;;  %v4856_v23 = vld [vmem:[#allocation3 + $0x98] sm:$0xff]   ;;  %292 = vst.msk [vmem:[#allocation2 + $0x100] sm:$0xff] %vm281_vm6, %v5149_v48  ;;  %293 = vst.msk [vmem:[#allocation2 + $0x118] sm:$0xff] %vm281_vm6, %v5149_v48  ;;  %v4870_v59 = vld [vmem:[#allocation3 + $0xa8] sm:$0xff]  }
  0xc5   : > { %1114 = vrot.lane.b32.xlu1 %v1074_v20, %s5146_s14  ;;  %2158 = vrot.lane.b32.xlu0 %v4800_v15, %s5146_s14  ;;  %v4820_v15 = vld [vmem:[%s5328_s10 + $0x78] sm:$0xff]   ;;  %v1080_v20 = vsel %vm1053_vm0, %v1078_v63, %v1079_v2  ;;  %v2505_v2 = vsel %vm619_vm1, %v2500_v53, %v2504_v51  ;;  %294 = vst.msk [vmem:[#allocation2 + $0x130] sm:$0xff] %vm281_vm6, %v5149_v48  ;;  %295 = vst.msk [vmem:[#allocation2 + $0x148] sm:$0xff] %vm281_vm6, %v5149_v48  ;;  %v2514_v51 = vshll.u32 %v4865_v46, 16  ;;  %v4873_v0 = vld [vmem:[#allocation3 + $0x30] sm:$0xff]  }
  0xc6   : > { %4590 = vmatprep.subr.bf16.mxu1 %v4856_v23  ;;  %296 = vst.msk [vmem:[#allocation2 + $0x160] sm:$0xff] %vm281_vm6, %v5149_v48  ;;  %297 = vst.msk [vmem:[#allocation2 + $0x178] sm:$0xff] %vm281_vm6, %v5149_v48 }
  0xc7   : > { %4591 = vmatpush3.bf16.msra.mxu1 %v4856_v23  ;;  %v2516_v56 = vrot.slane %v2514_v51, 1  ;;  %428 = vst.msk [vmem:[#allocation2 + $0x18] sm:$0xff] %vm426_vm2, %v4868_v55  ;;  %v4882_v23 = vld [vmem:[%s5328_s10 + $0x24] sm:$0xff]  }
  0xc9   : > { %1292 = vrot.lane.b32.xlu1 %v4805_v24, %s5147_s15  ;;  %2590 = vrot.lane.b32.xlu0 %v2469_v33, %s5147_s15  ;;  %v733_v24 = vrot.slane %v731_v19, 1  ;;  %v4838_v33 = vld [vmem:[#allocation3 + $0x50] sm:$0xff]   ;;  %v4854_v19 = vld [vmem:[%s5328_s10 + $0x20] ss:$0 sps:$4 sm:$0x11]  }
  0xca   : > { %4428 = vmatprep.subr.bf16.mxu0 %v4838_v33  ;;  %v1541_v26 = vshll.u32 %v4854_v19, 16  ;;  %v4879_v19 = vld [vmem:[#allocation3 + $0x38] sm:$0xff]  }
  0xcb   : > { %v734_v29 = vor.u32 %v733_v24, %v729_v17  ;;  %v748_v17 = vshll.u32 %v4852_v11, 16 }
  0xcc   : > { %v1543_v30 = vrot.slane %v1541_v26, 1  ;;  %v4884_v26 = vld [vmem:[%s5328_s10 + $0x18] sm:$0xff]  }
  0xcd   : > { %826 = vrot.lane.b32.xlu1 %v715_v40, %s5148_s16  ;;  %1983 = vrot.lane.b32.xlu0 %v1944_v44, %s5148_s16  ;;  %v739_v38 = vsel %vm619_vm1, %v734_v29, %v738_v27  ;;  %v4842_v40 = vld [vmem:[#allocation3 + $0x10] sm:$0xff]   ;;  %v4834_v44 = vld [vmem:[%s5328_s10 + $0x84] sm:$0xff]   ;;  %v750_v25 = vrot.slane %v748_v17, 1  ;;  %429 = vst.msk [vmem:[#allocation2 + $0x30] sm:$0xff] %vm426_vm2, %v4884_v26 }
  0xce   : > { %4429 = vmatpush3.bf16.msra.mxu0 %v4842_v40  ;;  %v4862_v40 = vld [vmem:[#allocation3 + $0x68] sm:$0xff]  }
  0xcf   : > { %4430 = vmatprep.subr.bf16.mxu0 %v4846_v58 }
  0xd1   : > { %1116 = vrot.lane.b32.xlu1 %v1077_v52, %s5146_s14  ;;  %2160 = vrot.lane.b32.xlu0 %v4810_v47, %s5146_s14  ;;  %v4845_v52 = vld [vmem:[%s5328_s10 + $0x14] ss:$0 sps:$4 sm:$0x11]  }
  0xd2   : > { %v1529_v57 = vshll.u32 %v4845_v52, 16  ;;  %v4867_v52 = vld [vmem:[%s5328_s10 + $0x84] sm:$0xff]  }
  0xd4   : > { %v1531_v62 = vrot.slane %v1529_v57, 1  ;;  %v4869_v57 = vld [vmem:[#allocation3 + $0x70] sm:$0xff]  }
  0xd5   : > { %1294 = vrot.lane.b32.xlu1 %v4815_v54, %s5147_s15  ;;  %2592 = vrot.lane.b32.xlu0 %v2481_v1, %s5147_s15  ;;  %v4843_v54 = vld [vmem:[%s5328_s10 + $0x78] sm:$0xff]  }
  0xd6   : > { %v4850_v1 = vld [vmem:[#allocation3 + $0x18] sm:$0xff]   ;;  %v1532_v8 = vsel %vm619_vm1, %v1527_v3, %v1531_v62 }
  0xd7   : > { %4431 = vmatpush3.bf16.msra.mxu0 %v4850_v1  ;;  %1729 = vst.msk [vmem:[#allocation2 + $0x8] sm:$0xff] %vm426_vm2, %v1532_v8 }
  0xd8   : > { %4432 = vmatprep.subr.bf16.mxu0 %v4855_v21 }
  0xd9   : > { %828 = vrot.lane.b32.xlu1 %v727_v9, %s5148_s16  ;;  %1985 = vrot.lane.b32.xlu0 %v1947_v12, %s5148_s16  ;;  %v1952_v9 = vrot.slane %v4849_v4, 1  ;;  %v743_v12 = vshll.u32 %v4851_v5, 16  ;;  %v4876_v5 = vld [vmem:[#allocation3 + $0x78] sm:$0xff]  }
  0xdb   : > { %v1953_v13 = vsel %vm1053_vm0, %v1951_v6, %v1952_v9  ;;  %v745_v16 = vrot.slane %v743_v12, 1 }
  0xdd   : > { %1118 = vrot.lane.b32.xlu1 %v1080_v20, %s5146_s14  ;;  %2162 = vrot.lane.b32.xlu0 %v4820_v15, %s5146_s14  ;;  %v1536_v15 = vshll.u32 %v4853_v7, 16  ;;  %v746_v24 = vor.u32 %v745_v16, %v741_v10  ;;  %v4875_v7 = vld [vmem:[%s5328_s10 + $0x8c] ss:$0 sps:$4 sm:$0x11]   ;;  %v4877_v10 = vld [vmem:[#allocation3 + $0xb0] sm:$0xff]  }
  0xdf   : > { %v751_v29 = vsel %vm619_vm1, %v746_v24, %v750_v25 }
  0xe1   : > { %1296 = vrot.lane.b32.xlu1 %v4825_v22, %s5147_s15  ;;  %2594 = vrot.lane.b32.xlu0 %v2493_v31, %s5147_s15  ;;  %v1538_v22 = vrot.slane %v1536_v15, 1  ;;  %v4858_v31 = vld [vmem:[#allocation3 + $0x20] sm:$0xff]  }
  0xe2   : > { %4433 = vmatpush3.bf16.msra.mxu0 %v4858_v31  ;;  %v4878_v15 = vld [vmem:[%s5328_s10 + $0x9c] sm:$0xff]   ;;  %v1548_v31 = vshll.u32 %v4882_v23, 16 }
  0xe3   : > { %v1539_v27 = vor.u32 %v1538_v22, %v1534_v14  ;;  %4434 = vmatprep.subr.bf16.mxu0 %v4862_v40  ;;  %v4881_v22 = vld [vmem:[%s5328_s10 + $0x8c] ss:$0 sps:$4 sm:$0x11]  }
  0xe5   : > { %830 = vrot.lane.b32.xlu1 %v739_v38, %s5148_s16  ;;  %1987 = vrot.lane.b32.xlu0 %v1950_v41, %s5148_s16  ;;  %v1544_v33 = vsel %vm619_vm1, %v1539_v27, %v1543_v30  ;;  %v1084_v38 = vrot.slane %v4859_v34, 1  ;;  %v4863_v41 = vld [vmem:[#allocation3 + $0xa0] sm:$0xff]   ;;  %v1546_v30 = vshrl.u32 %v4882_v23, 16  ;;  %v1550_v34 = vrot.slane %v1548_v31, 1 }
  0xe6   : > { %1730 = vst.msk [vmem:[#allocation2 + $0x20] sm:$0xff] %vm426_vm2, %v1544_v33  ;;  %4592 = vmatprep.subr.bf16.mxu1 %v4863_v41 }
  0xe7   : > { %v1086_v43 = vsel %vm1053_vm0, %v1084_v38, %v1085_v39  ;;  %4593 = vmatpush3.bf16.msra.mxu1 %v4863_v41  ;;  %v1551_v39 = vor.u32 %v1550_v34, %v1546_v30  ;;  %v4886_v41 = vld [vmem:[%s5328_s10 + $0x9c] sm:$0xff]   ;;  %v4902_v34 = vld [vmem:[%s5328_s10 + $0x24] sm:$0xff]  }
  0xe8   : > { %4594 = vmatprep.subr.bf16.mxu1 %v4870_v59  ;;  %v2521_v48 = vshll.u32 %v4886_v41, 16  ;;  %430 = vst.msk [vmem:[#allocation2 + $0x48] sm:$0xff] %vm426_vm2, %v4902_v34 }
  0xe9   : > { %1120 = vrot.lane.b32.xlu1 %v1083_v50, %s5146_s14  ;;  %2164 = vrot.lane.b32.xlu0 %v4834_v44, %s5146_s14  ;;  %v4864_v44 = vld [vmem:[%s5328_s10 + $0x90] sm:$0xff]  }
  0xea   : > { %v2509_v49 = vshll.u32 %v4864_v44, 16 }
  0xeb   : > { %v5521_v45 = vpop.permute.xlu0 %2148  ;;  %v2147_v47 = vpop.permute.xlu1 %2146  ;;  %4595 = vmatpush3.bf16.msra.mxu1 %v4870_v59 }
  0xec   : > { %4596 = vmatprep.subr.bf16.mxu1 %v4877_v10 }
  0xed   : > { %1298 = vrot.lane.b32.xlu1 %v4843_v54, %s5147_s15  ;;  %2596 = vrot.lane.b32.xlu0 %v2505_v2, %s5147_s15  ;;  %v2511_v54 = vrot.slane %v2509_v49, 1  ;;  %v4874_v2 = vld [vmem:[%s5328_s10 + $0x84] sm:$0xff]   ;;  %v4895_v49 = vld [vmem:[%s5328_s10 + $0x90] sm:$0xff]  }
  0xee   : > { %v753_v8 = vshrl.u32 %v4874_v2, 16  ;;  %v755_v9 = vshll.u32 %v4874_v2, 16  ;;  %v765_v55 = vshrl.u32 %v4895_v49, 16 }
  0xef   : > { %v1970_v61 = vpop.permute.xlu0 %1969  ;;  %v5531_v63 = vpop.permute.xlu1 %1280  ;;  %4597 = vmatpush3.bf16.msra.mxu1 %v4877_v10 }
  0xf0   : > { %2017 = vst.msk [vmem:[#allocation2 + $0x8] sm:$0xff] %vm860_vm3, %v1970_v61  ;;  %v4871_v61 = vld [vmem:[%s5328_s10 + $0x90] sm:$0xfe]   ;;  %v757_v12 = vrot.slane %v755_v9, 1  ;;  %4598 = vmatprep.subr.bf16.mxu1 %v4885_v37 }
  0xf1   : > { %2194 = vst.msk [vmem:[#allocation2 + $0x8] sm:$0xff] %vm1150_vm4, %v2147_v47  ;;  %1989 = vrot.lane.b32.xlu0 %v1953_v13, %s5148_s16  ;;  %832 = vrot.lane.b32.xlu1 %v751_v29, %s5148_s16  ;;  %v4866_v47 = vld [vmem:[#allocation3 + $0x28] sm:$0xff]   ;;  %v1954_v1 = vrot.slane %v4871_v61, 1  ;;  %v760_v13 = vshll.u32 %v4875_v7, 16 }
  0xf2   : > { %4435 = vmatpush3.bf16.msra.mxu0 %v4866_v47  ;;  %v758_v17 = vor.u32 %v757_v12, %v753_v8  ;;  %v4883_v29 = vld [vmem:[%s5328_s10 + $0x2c] ss:$0 sps:$4 sm:$0x11]   ;;  %v2519_v47 = vshrl.u32 %v4886_v41, 16 }
  0xf3   : > { %v1972_v18 = vpop.permute.xlu0 %1971  ;;  %v1103_v20 = vpop.permute.xlu1 %1102  ;;  %4436 = vmatprep.subr.bf16.mxu0 %v4869_v57  ;;  %v1553_v35 = vshll.u32 %v4883_v29, 16  ;;  %4599 = vmatpush3.bf16.msra.mxu1 %v4885_v37  ;;  %v4890_v57 = vld [vmem:[%s5328_s10 + $0x20] ss:$0 sps:$4 sm:$0x11]  }
  0xf4   : > { %2018 = vst.msk [vmem:[#allocation2 + $0x20] sm:$0xff] %vm860_vm3, %v1972_v18  ;;  %v762_v18 = vrot.slane %v760_v13, 1  ;;  %v4894_v7 = vld [vmem:[%s5328_s10 + $0x2c] ss:$0 sps:$4 sm:$0x11]  }
  0xf5   : > { %2166 = vrot.lane.b32.xlu0 %v4857_v28, %s5146_s14  ;;  %2195 = vst.msk [vmem:[#allocation2 + $0x20] sm:$0xff] %vm1150_vm4, %v5521_v45  ;;  %1122 = vrot.lane.b32.xlu1 %v1086_v43, %s5146_s14  ;;  %v2507_v45 = vshrl.u32 %v4864_v44, 16  ;;  %v1088_v28 = vrot.slane %v4881_v22, 1  ;;  %v1555_v40 = vrot.slane %v1553_v35, 1  ;;  %v4888_v44 = vld [vmem:[%s5328_s10 + $0x90] sm:$0xff]   ;;  %v4897_v13 = vld [vmem:[%s5328_s10 + $0xa8] sm:$0xff]  }
  0xf6   : > { %4437 = vmatpush3.bf16.msra.mxu0 %v4873_v0  ;;  %v763_v21 = vsel %vm619_vm1, %v758_v17, %v762_v18  ;;  %v4887_v43 = vld [vmem:[%s5328_s10 + $0xa4] ss:$0 sps:$4 sm:$0x11]   ;;  %v4896_v12 = vld [vmem:[%s5328_s10 + $0x98] ss:$0 sps:$4 sm:$0x11]  }
  0xf7   : > { %v5550_v32 = vpop.permute.xlu1 %1104  ;;  %v813_v36 = vpop.permute.xlu0 %812  ;;  %v2512_v58 = vor.u32 %v2511_v54, %v2507_v45  ;;  %4438 = vmatprep.subr.bf16.mxu0 %v4876_v5  ;;  %v1556_v46 = vsel %vm619_vm1, %v1551_v39, %v1555_v40  ;;  %v2526_v51 = vshll.u32 %v4887_v43, 16  ;;  %v4889_v54 = vld [vmem:[%s5328_s10 + $0x18] sm:$0xfe]   ;;  %v4892_v0 = vld [vmem:[%s5328_s10 + $0xa4] ss:$0 sps:$4 sm:$0x11]  }
  0xf8   : > { %861 = vst.msk [vmem:[#allocation2] sm:$0xff] %vm860_vm3, %v813_v36  ;;  %v2818_v59 = vrot.slane %v4889_v54, 1  ;;  %v1958_v5 = vrot.slane %v4892_v0, 1  ;;  %v772_v18 = vshll.u32 %v4896_v12, 16  ;;  %v4903_v40 = vld [vmem:[%s5328_s10 + $0xa8] sm:$0xff]  }
  0xf9   : > { %1151 = vst.msk [vmem:[#allocation2] sm:$0xff] %vm1150_vm4, %v1103_v20  ;;  %1300 = vrot.lane.b32.xlu1 %v4867_v52, %s5147_s15  ;;  %v2517_v62 = vsel %vm619_vm1, %v2512_v58, %v2516_v56  ;;  %v4880_v20 = vld [vmem:[%s5328_s10 + $0x84] sm:$0xfe]   ;;  %v2528_v56 = vrot.slane %v2526_v51, 1 }
  0xfa   : > { %1329 = vst.msk [vmem:[#allocation2] sm:$0xff] %vm1328_vm5, %v5531_v63  ;;  %v4872_v63 = vld [vmem:[%s5328_s10 + $0x98] ss:$0 sps:$4 sm:$0x11]   ;;  %2598 = vrot.lane.b32.xlu0 %v2517_v62, %s5147_s15  ;;  %4439 = vmatpush3.bf16.msra.mxu0 %v4879_v19  ;;  %v1087_v25 = vrot.slane %v4880_v20, 1  ;;  %v2819_v62 = vrot.slane %v4890_v57, 1 }
  0xfb   : > { %v815_v42 = vpop.permute.xlu1 %814  ;;  %v2579_v50 = vpop.permute.xlu0 %2578  ;;  %v1955_v4 = vrot.slane %v4872_v63, 1  ;;  %1731 = vst.msk [vmem:[#allocation2 + $0x38] sm:$0xff] %vm426_vm2, %v1556_v46  ;;  %v4891_v63 = vld [vmem:[%s5328_s10 + $0x9c] sm:$0xfe]   ;;  %v4900_v19 = vld [vmem:[%s5328_s10 + $0x30] sm:$0xff]   ;;  %v774_v23 = vrot.slane %v772_v18, 1 }
  0xfc   : > { %2626 = vst.msk [vmem:[#allocation2 + $0x8] sm:$0xff] %vm1328_vm5, %v2579_v50  ;;  %v1089_v33 = vsel %vm1053_vm0, %v1087_v25, %v1088_v28  ;;  %v1558_v31 = vshrl.u32 %v4900_v19, 16  ;;  %v4904_v43 = vld [vmem:[%s5328_s10 + $0xb0] ss:$0 sps:$4 sm:$0x11]   ;;  %v2531_v46 = vshrl.u32 %v4903_v40, 16 }
  0xfd   : > { %862 = vst.msk [vmem:[#allocation2 + $0x18] sm:$0xff] %vm860_vm3, %v815_v42  ;;  %v1956_v11 = vsel %vm1053_vm0, %v1954_v1, %v1955_v4  ;;  %834 = vrot.lane.b32.xlu1 %v763_v21, %s5148_s16  ;;  %v1957_v4 = vrot.slane %v4891_v63, 1  ;;  %v4898_v21 = vld [vmem:[%s5328_s10 + $0x90] sm:$0xfe]   ;;  %v2538_v51 = vshll.u32 %v4904_v43, 16 }
  0xfe   : > { %1152 = vst.msk [vmem:[#allocation2 + $0x18] sm:$0xff] %vm1150_vm4, %v5550_v32  ;;  %1991 = vrot.lane.b32.xlu0 %v1956_v11, %s5148_s16  ;;  %v1090_v26 = vrot.slane %v4898_v21, 1  ;;  %v4909_v63 = vld [vmem:[%s5328_s10 + $0xa4] ss:$0 sps:$4 sm:$0x11]  }
  0xff   : > { %v1283_v53 = vpop.permute.xlu1 %1282  ;;  %v2581_v60 = vpop.permute.xlu0 %2580  ;;  %v1959_v10 = vsel %vm1053_vm0, %v1957_v4, %v1958_v5  ;;  %v784_v5 = vshll.u32 %v4909_v63, 16 }
 0x100   : > { %2627 = vst.msk [vmem:[#allocation2 + $0x20] sm:$0xff] %vm1328_vm5, %v2581_v60  ;;  %1330 = vst.msk [vmem:[#allocation2 + $0x18] sm:$0xff] %vm1328_vm5, %v1283_v53  ;;  %v2523_v53 = vrot.slane %v2521_v48, 1  ;;  %v767_v60 = vshll.u32 %v4895_v49, 16  ;;  %v4905_v48 = vld [vmem:[%s5328_s10 + $0x9c] sm:$0xff]  }
 0x101   : > { %1124 = vrot.lane.b32.xlu1 %v1089_v33, %s5146_s14  ;;  %v2898_v42 = vld [vmem:[#allocation2] sm:$0xff] }
 0x102   : > { %2168 = vrot.lane.b32.xlu0 %v4878_v15, %s5146_s14  ;;  %v2524_v58 = vor.u32 %v2523_v53, %v2519_v47  ;;  %v769_v8 = vrot.slane %v767_v60, 1  ;;  %v2822_v15 = vrot.slane %v4894_v7, 1  ;;  %v2533_v47 = vshll.u32 %v4903_v40, 16  ;;  %v4919_v40 = vld [vmem:[%s5328_s10 + $0x30] sm:$0xff]  }
 0x103   : > { %v817_v3 = vpop.permute.xlu1 %816  ;;  %v5602_v6 = vpop.permute.xlu0 %1973  ;;  %v2899_v32 = vld [vmem:[#allocation2 + $0x8] sm:$0xff]  ;;  %431 = vst.msk [vmem:[#allocation2 + $0x60] sm:$0xff] %vm426_vm2, %v4919_v40 }
 0x104   : > { %863 = vst.msk [vmem:[#allocation2 + $0x30] sm:$0xff] %vm860_vm3, %v817_v3  ;;  %3177 = vmatprep.mubr.bf16.mxu0 %v2899_v32  ;;  %2019 = vst.msk [vmem:[#allocation2 + $0x38] sm:$0xff] %vm860_vm3, %v5602_v6  ;;  %v2529_v2 = vsel %vm619_vm1, %v2524_v58, %v2528_v56  ;;  %v2820_v3 = vsel %vm1053_vm0, %v2818_v59, %v2819_v62  ;;  %v4893_v6 = vld [vmem:[%s5328_s10 + $0x24] sm:$0xfe]   ;;  %v770_v17 = vor.u32 %v769_v8, %v765_v55  ;;  %v4908_v62 = vld [vmem:[%s5328_s10 + $0x9c] sm:$0xff]  }
 0x105   : > { %3178 = vmatmul.mubr.bf16.vlgmr.msra.gmra.mrb[0].mxu0 %v2898_v42  ;;  %1302 = vrot.lane.b32.xlu1 %v4888_v44, %s5147_s15  ;;  %2882 = vst.msk [vmem:[#allocation2 + $0x10] sm:$0xff] %vm426_vm2, %v2820_v3  ;;  %v2821_v11 = vrot.slane %v4893_v6, 1  ;;  %v1560_v32 = vshll.u32 %v4900_v19, 16  ;;  %v4906_v55 = vld [vmem:[%s5328_s10 + $0xa8] sm:$0xfe]   ;;  %v2540_v58 = vrot.slane %v2538_v51, 1 }
 0x106   : > { %2600 = vrot.lane.b32.xlu0 %v2529_v2, %s5147_s15  ;;  %v775_v29 = vsel %vm619_vm1, %v770_v17, %v774_v23  ;;  %v1960_v60 = vrot.slane %v4906_v55, 1  ;;  %v777_v3 = vshrl.u32 %v4908_v62, 16  ;;  %v4911_v6 = vld [vmem:[%s5328_s10 + $0x38] ss:$0 sps:$4 sm:$0x11]  }
 0x107   : > { %v1107_v14 = vpop.permute.xlu1 %1106  ;;  %v2151_v16 = vpop.permute.xlu0 %2150  ;;  %v2902_v45 = vld [vmem:[#allocation2 + $0x20] sm:$0xff]  ;;  %v2823_v20 = vsel %vm1053_vm0, %v2821_v11, %v2822_v15  ;;  %v1562_v39 = vrot.slane %v1560_v32, 1  ;;  %v2825_v12 = vrot.slane %v4911_v6, 1  ;;  %v4926_v6 = vld [vmem:[%s5328_s10 + $0xb0] ss:$0 sps:$4 sm:$0x11]  }
 0x108   : > { %1153 = vst.msk [vmem:[#allocation2 + $0x30] sm:$0xff] %vm1150_vm4, %v1107_v14  ;;  %3185 = vmatprep.mubr.bf16.mxu0 %v2902_v45  ;;  %2196 = vst.msk [vmem:[#allocation2 + $0x38] sm:$0xff] %vm1150_vm4, %v2151_v16  ;;  %v2901_v16 = vld [vmem:[#allocation2 + $0x18] sm:$0xff] }
 0x109   : > { %2883 = vst.msk [vmem:[#allocation2 + $0x28] sm:$0xff] %vm426_vm2, %v2823_v20  ;;  %836 = vrot.lane.b32.xlu1 %v775_v29, %s5148_s16  ;;  %v1563_v44 = vor.u32 %v1562_v39, %v1558_v31  ;;  %v4917_v15 = vld [vmem:[%s5328_s10 + $0x3c] sm:$0xff]   ;;  %v4914_v20 = vld [vmem:[%s5328_s10 + $0x44] ss:$0 sps:$4 sm:$0x11]  }
 0x10a   : > { %1993 = vrot.lane.b32.xlu0 %v1959_v10, %s5148_s16  ;;  %v786_v10 = vrot.slane %v784_v5, 1  ;;  %v4913_v17 = vld [vmem:[%s5328_s10 + $0x3c] sm:$0xfe]   ;;  %v1570_v21 = vshrl.u32 %v4917_v15, 16  ;;  %v4925_v5 = vld [vmem:[%s5328_s10 + $0xa8] sm:$0xff]  }
 0x10b   : > { %v1285_v24 = vpop.permute.xlu1 %1284  ;;  %v2583_v27 = vpop.permute.xlu0 %2582  ;;  %v4916_v29 = vld [vmem:[%s5328_s10 + $0xa4] ss:$0 sps:$4 sm:$0x11]  }
 0x10c   : > { %1331 = vst.msk [vmem:[#allocation2 + $0x30] sm:$0xff] %vm1328_vm5, %v1285_v24  ;;  %2628 = vst.msk [vmem:[#allocation2 + $0x38] sm:$0xff] %vm1328_vm5, %v2583_v27  ;;  %v4899_v24 = vld [vmem:[%s5328_s10 + $0x98] ss:$0 sps:$4 sm:$0x11]   ;;  %v2900_v28 = vld [vmem:[#allocation2 + $0x10] sm:$0xff] }
 0x10d   : > { %3186 = vmatmul.mubr.bf16.gmra.mrb[4].mxu0 %v2901_v16  ;;  %v4901_v27 = vld [vmem:[%s5328_s10 + $0x38] ss:$0 sps:$4 sm:$0x11]   ;;  %v1091_v30 = vrot.slane %v4899_v24, 1  ;;  %4600 = vmatprep.mubr.bf16.mxu1 %v2900_v28  ;;  %v2827_v24 = vrot.slane %v4913_v17, 1  ;;  %v1094_v34 = vrot.slane %v4916_v29, 1 }
 0x10e   : > { %2170 = vrot.lane.b32.xlu0 %v4897_v13, %s5146_s14  ;;  %v1565_v33 = vshll.u32 %v4901_v27, 16  ;;  %v4912_v13 = vld [vmem:[%s5328_s10 + $0xb4] sm:$0xff]   ;;  %v2828_v27 = vrot.slane %v4914_v20, 1  ;;  %v4915_v28 = vld [vmem:[%s5328_s10 + $0x9c] sm:$0xfe]  }
 0x10f   : > { %v5619_v36 = vpop.permute.xlu1 %818  ;;  %v5623_v38 = vpop.permute.xlu0 %1975  ;;  %v1092_v37 = vsel %vm1053_vm0, %v1090_v26, %v1091_v30  ;;  %v1572_v26 = vshll.u32 %v4917_v15, 16  ;;  %v4928_v17 = vld [vmem:[%s5328_s10 + $0xa8] sm:$0xfe]  }
 0x110   : > { %v1567_v42 = vrot.slane %v1565_v33, 1  ;;  %864 = vst.msk [vmem:[#allocation2 + $0x48] sm:$0xff] %vm860_vm3, %v5619_v36  ;;  %v2903_v49 = vld [vmem:[#allocation2 + $0x28] sm:$0xff]  ;;  %1126 = vrot.lane.b32.xlu1 %v1092_v37, %s5146_s14  ;;  %v2535_v36 = vrot.slane %v2533_v47, 1  ;;  %v2829_v32 = vsel %vm1053_vm0, %v2827_v24, %v2828_v27  ;;  %v1093_v33 = vrot.slane %v4915_v28, 1 }
 0x111   : > { %4601 = vmatmul.mubr.bf16.vlgmr.msra.gmra.mrb[0].mxu1 %v2903_v49  ;;  %v4918_v37 = vld [vmem:[%s5328_s10 + $0x44] ss:$0 sps:$4 sm:$0x11]   ;;  %v1574_v39 = vrot.slane %v1572_v26, 1  ;;  %2885 = vst.msk [vmem:[#allocation2 + $0x58] sm:$0xff] %vm426_vm2, %v2829_v32  ;;  %v1096_v24 = vrot.slane %v4928_v17, 1 }
 0x112   : > { %v1568_v54 = vsel %vm619_vm1, %v1563_v44, %v1567_v42  ;;  %v2536_v59 = vor.u32 %v2535_v36, %v2531_v46  ;;  %v1095_v42 = vsel %vm1053_vm0, %v1093_v33, %v1094_v34  ;;  %v1577_v44 = vshll.u32 %v4918_v37, 16  ;;  %v4920_v46 = vld [vmem:[%s5328_s10 + $0xb4] sm:$0xff]   ;;  %v4931_v28 = vld [vmem:[%s5328_s10 + $0x50] ss:$0 sps:$4 sm:$0x11]   ;;  %v4932_v33 = vld [vmem:[%s5328_s10 + $0x3c] sm:$0xff]  }
 0x113   : > { %v5631_v50 = vpop.permute.xlu1 %1108  ;;  %v5635_v52 = vpop.permute.xlu0 %2152  ;;  %v2905_v45 = vld [vmem:[#allocation2 + $0x38] sm:$0xff]  ;;  %v2904_v56 = vld [vmem:[#allocation2 + $0x30] sm:$0xff]  ;;  %1732 = vst.msk [vmem:[#allocation2 + $0x50] sm:$0xff] %vm426_vm2, %v1568_v54  ;;  %v1575_v43 = vor.u32 %v1574_v39, %v1570_v21  ;;  %v2543_v36 = vshrl.u32 %v4920_v46, 16  ;;  %v2545_v55 = vshll.u32 %v4920_v46, 16  ;;  %v1589_v37 = vshll.u32 %v4931_v28, 16 }
 0x114   : > { %1154 = vst.msk [vmem:[#allocation2 + $0x48] sm:$0xff] %vm1150_vm4, %v5631_v50  ;;  %3193 = vmatprep.mubr.bf16.mxu0 %v2905_v45  ;;  %v4907_v50 = vld [vmem:[%s5328_s10 + $0xb0] ss:$0 sps:$4 sm:$0x11]   ;;  %1304 = vrot.lane.b32.xlu1 %v4905_v48, %s5147_s15  ;;  %v2541_v2 = vsel %vm619_vm1, %v2536_v59, %v2540_v58  ;;  %v4922_v45 = vld [vmem:[%s5328_s10 + $0xa8] sm:$0xff]   ;;  %v1579_v54 = vrot.slane %v1577_v44, 1 }
 0x115   : > { %3194 = vmatmul.mubr.bf16.gmra.mrb[8].mxu0 %v2904_v56  ;;  %2020 = vst.msk [vmem:[#allocation2 + $0x50] sm:$0xff] %vm860_vm3, %v5623_v38  ;;  %v779_v38 = vshll.u32 %v4908_v62, 16  ;;  %2602 = vrot.lane.b32.xlu0 %v2541_v2, %s5147_s15  ;;  %v4921_v48 = vld [vmem:[%s5328_s10 + $0xbc] ss:$0 sps:$4 sm:$0x11]   ;;  %v2547_v59 = vrot.slane %v2545_v55, 1 }
 0x116   : > { %2197 = vst.msk [vmem:[#allocation2 + $0x50] sm:$0xff] %vm1150_vm4, %v5635_v52  ;;  %v4910_v52 = vld [vmem:[%s5328_s10 + $0x30] sm:$0xfe]   ;;  %v2550_v56 = vshll.u32 %v4921_v48, 16  ;;  %v4933_v39 = vld [vmem:[%s5328_s10 + $0xc0] sm:$0xff]   ;;  %v1591_v46 = vrot.slane %v1589_v37, 1 }
 0x117   : > { %v5643_v61 = vpop.permute.xlu1 %1286  ;;  %v5647_v1 = vpop.permute.xlu0 %2584  ;;  %v781_v8 = vrot.slane %v779_v38, 1  ;;  %v2824_v11 = vrot.slane %v4910_v52, 1  ;;  %432 = vst.msk [vmem:[#allocation2 + $0x78] sm:$0xff] %vm426_vm2, %v4932_v33  ;;  %v2555_v48 = vshrl.u32 %v4933_v39, 16  ;;  %v4943_v17 = vld [vmem:[%s5328_s10 + $0x54] sm:$0xfe]  }
 0x118   : > { %1332 = vst.msk [vmem:[#allocation2 + $0x48] sm:$0xff] %vm1328_vm5, %v5643_v61  ;;  %v1961_v61 = vrot.slane %v4907_v50, 1  ;;  %2629 = vst.msk [vmem:[#allocation2 + $0x50] sm:$0xff] %vm1328_vm5, %v5647_v1  ;;  %v1580_v50 = vsel %vm619_vm1, %v1575_v43, %v1579_v54  ;;  %v2552_v62 = vrot.slane %v2550_v56, 1  ;;  %v2909_v2 = vld [vmem:[#allocation2 + $0x58] sm:$0xff]  ;;  %v2833_v28 = vrot.slane %v4943_v17, 1 }
 0x119   : > { %v782_v1 = vor.u32 %v781_v8, %v777_v3  ;;  %v2826_v19 = vsel %vm1053_vm0, %v2824_v11, %v2825_v12  ;;  %1733 = vst.msk [vmem:[#allocation2 + $0x68] sm:$0xff] %vm426_vm2, %v1580_v50  ;;  %v796_v12 = vshll.u32 %v4926_v6, 16  ;;  %v4934_v43 = vld [vmem:[%s5328_s10 + $0xc8] ss:$0 sps:$4 sm:$0x11]  }
 0x11a   : > { %v1962_v7 = vsel %vm1053_vm0, %v1960_v60, %v1961_v61  ;;  %2884 = vst.msk [vmem:[#allocation2 + $0x40] sm:$0xff] %vm426_vm2, %v2826_v19  ;;  %v4924_v61 = vld [vmem:[%s5328_s10 + $0xbc] ss:$0 sps:$4 sm:$0x11]   ;;  %v4936_v50 = vld [vmem:[%s5328_s10 + $0xc0] sm:$0xfe]  }
 0x11b   : > { %v5655_v9 = vpop.permute.xlu1 %820  ;;  %v5660_v14 = vpop.permute.xlu0 %1977  ;;  %1995 = vrot.lane.b32.xlu0 %v1962_v7, %s5148_s16  ;;  %v787_v23 = vsel %vm619_vm1, %v782_v1, %v786_v10  ;;  %v1964_v38 = vrot.slane %v4924_v61, 1  ;;  %v4930_v7 = vld [vmem:[%s5328_s10 + $0x48] sm:$0xff]   ;;  %v791_v10 = vshll.u32 %v4925_v5, 16  ;;  %v4927_v1 = vld [vmem:[%s5328_s10 + $0xc0] sm:$0xff]   ;;  %v1966_v61 = vrot.slane %v4936_v50, 1 }
 0x11c   : > { %838 = vrot.lane.b32.xlu1 %v787_v23, %s5148_s16  ;;  %865 = vst.msk [vmem:[#allocation2 + $0x60] sm:$0xff] %vm860_vm3, %v5655_v9  ;;  %2021 = vst.msk [vmem:[#allocation2 + $0x68] sm:$0xff] %vm860_vm3, %v5660_v14  ;;  %v789_v14 = vshrl.u32 %v4925_v5, 16  ;;  %v4929_v19 = vld [vmem:[%s5328_s10 + $0xb0] ss:$0 sps:$4 sm:$0x11]  }
 0x11d   : > { %v793_v15 = vrot.slane %v791_v10, 1  ;;  %v1584_v20 = vshll.u32 %v4930_v7, 16  ;;  %v1097_v26 = vrot.slane %v4929_v19, 1  ;;  %v4941_v6 = vld [vmem:[%s5328_s10 + $0x50] ss:$0 sps:$4 sm:$0x11]  }
 0x11f   : > { %v5666_v22 = vpop.permute.xlu1 %1110  ;;  %v5670_v25 = vpop.permute.xlu0 %2154  ;;  %2172 = vrot.lane.b32.xlu0 %v4912_v13, %s5146_s14  ;;  %v2908_v58 = vld [vmem:[#allocation2 + $0x50] sm:$0xff]  ;;  %v2907_v60 = vld [vmem:[#allocation2 + $0x48] sm:$0xff]  ;;  %v1582_v13 = vshrl.u32 %v4930_v7, 16  ;;  %v794_v23 = vor.u32 %v793_v15, %v789_v14  ;;  %v1586_v29 = vrot.slane %v1584_v20, 1 }
 0x120   : > { %1128 = vrot.lane.b32.xlu1 %v1095_v42, %s5146_s14  ;;  %1155 = vst.msk [vmem:[#allocation2 + $0x60] sm:$0xff] %vm1150_vm4, %v5666_v22  ;;  %3201 = vmatprep.mubr.bf16.mxu0 %v2908_v58  ;;  %v4923_v22 = vld [vmem:[%s5328_s10 + $0xb4] sm:$0xfe]   ;;  %2198 = vst.msk [vmem:[#allocation2 + $0x68] sm:$0xff] %vm1150_vm4, %v5670_v25  ;;  %v1098_v42 = vsel %vm1053_vm0, %v1096_v24, %v1097_v26 }
 0x121   : > { %v2906_v51 = vld [vmem:[#allocation2 + $0x40] sm:$0xff]  ;;  %3202 = vmatmul.mubr.bf16.gmra.mrb[12].mxu0 %v2907_v60  ;;  %v1963_v3 = vrot.slane %v4923_v22, 1  ;;  %v1587_v34 = vor.u32 %v1586_v29, %v1582_v13  ;;  %v4938_v60 = vld [vmem:[%s5328_s10 + $0xb4] sm:$0xff]  }
 0x122   : > { %4604 = vmatprep.mubr.bf16.mxu1 %v2906_v51  ;;  %v4935_v51 = vld [vmem:[%s5328_s10 + $0xb4] sm:$0xff]  }
 0x123   : > { %v5677_v35 = vpop.permute.xlu1 %1288  ;;  %v5681_v41 = vpop.permute.xlu0 %2586  ;;  %4605 = vmatmul.mubr.bf16.gmra.mrb[4].mxu1 %v2909_v2  ;;  %v1965_v11 = vsel %vm1053_vm0, %v1963_v3, %v1964_v38  ;;  %v1592_v56 = vsel %vm619_vm1, %v1587_v34, %v1591_v46  ;;  %v803_v3 = vshll.u32 %v4938_v60, 16  ;;  %v4947_v7 = vld [vmem:[%s5328_s10 + $0x54] sm:$0xff]   ;;  %v4946_v34 = vld [vmem:[%s5328_s10 + $0xbc] ss:$0 sps:$4 sm:$0x11]  }
 0x124   : > { %1333 = vst.msk [vmem:[#allocation2 + $0x60] sm:$0xff] %vm1328_vm5, %v5677_v35  ;;  %1306 = vrot.lane.b32.xlu1 %v4922_v45, %s5147_s15  ;;  %v2548_v35 = vor.u32 %v2547_v59, %v2543_v36  ;;  %2630 = vst.msk [vmem:[#allocation2 + $0x68] sm:$0xff] %vm1328_vm5, %v5681_v41  ;;  %v798_v41 = vrot.slane %v796_v12, 1  ;;  %v2557_v45 = vshll.u32 %v4933_v39, 16  ;;  %v2562_v36 = vshll.u32 %v4934_v43, 16  ;;  %v4949_v12 = vld [vmem:[%s5328_s10 + $0x48] sm:$0xff]  }
 0x125   : > { %v4937_v59 = vld [vmem:[%s5328_s10 + $0xc8] ss:$0 sps:$4 sm:$0x11]   ;;  %1734 = vst.msk [vmem:[#allocation2 + $0x80] sm:$0xff] %vm426_vm2, %v1592_v56  ;;  %433 = vst.msk [vmem:[#allocation2 + $0x90] sm:$0xff] %vm426_vm2, %v4949_v12  ;;  %v1594_v24 = vshrl.u32 %v4947_v7, 16 }
 0x126   : > { %v2553_v52 = vsel %vm619_vm1, %v2548_v35, %v2552_v62  ;;  %v799_v32 = vsel %vm619_vm1, %v794_v23, %v798_v41  ;;  %v2559_v58 = vrot.slane %v2557_v45, 1  ;;  %v1967_v2 = vrot.slane %v4937_v59, 1  ;;  %v4944_v23 = vld [vmem:[%s5328_s10 + $0x5c] ss:$0 sps:$4 sm:$0x11]   ;;  %v4960_v12 = vld [vmem:[%s5328_s10 + $0x6c] sm:$0xff]  }
 0x127   : > { %v5691_v53 = vpop.permute.xlu1 %822  ;;  %v5697_v57 = vpop.permute.xlu0 %1979  ;;  %2604 = vrot.lane.b32.xlu0 %v2553_v52, %s5147_s15  ;;  %v801_v35 = vshrl.u32 %v4938_v60, 16  ;;  %v805_v52 = vrot.slane %v803_v3, 1  ;;  %v4945_v29 = vld [vmem:[%s5328_s10 + $0xb4] sm:$0xfe]   ;;  %v2834_v33 = vrot.slane %v4944_v23, 1  ;;  %v1100_v43 = vrot.slane %v4946_v34, 1 }
 0x128   : > { %840 = vrot.lane.b32.xlu1 %v799_v32, %s5148_s16  ;;  %866 = vst.msk [vmem:[#allocation2 + $0x78] sm:$0xff] %vm860_vm3, %v5691_v53  ;;  %2022 = vst.msk [vmem:[#allocation2 + $0x80] sm:$0xff] %vm860_vm3, %v5697_v57  ;;  %v2560_v22 = vor.u32 %v2559_v58, %v2555_v48  ;;  %v4940_v57 = vld [vmem:[%s5328_s10 + $0x48] sm:$0xfe]   ;;  %v1968_v10 = vsel %vm1053_vm0, %v1966_v61, %v1967_v2  ;;  %v1596_v32 = vshll.u32 %v4947_v7, 16  ;;  %v1618_v17 = vshrl.u32 %v4960_v12, 16 }
 0x129   : > { %v806_v13 = vor.u32 %v805_v52, %v801_v35  ;;  %v4948_v46 = vld [vmem:[%s5328_s10 + $0x5c] ss:$0 sps:$4 sm:$0x11]   ;;  %v4954_v3 = vld [vmem:[%s5328_s10 + $0x68] ss:$0 sps:$4 sm:$0x11]  }
 0x12a   : > { %v1598_v37 = vrot.slane %v1596_v32, 1  ;;  %v4961_v34 = vld [vmem:[%s5328_s10 + $0x74] ss:$0 sps:$4 sm:$0x11]  }
 0x12b   : > { %v5708_v0 = vpop.permute.xlu1 %1112  ;;  %v5713_v4 = vpop.permute.xlu0 %2156  ;;  %1997 = vrot.lane.b32.xlu0 %v1965_v11, %s5148_s16  ;;  %v2911_v54 = vld [vmem:[#allocation2 + $0x68] sm:$0xff]  ;;  %v2910_v55 = vld [vmem:[#allocation2 + $0x60] sm:$0xff]  ;;  %v2830_v11 = vrot.slane %v4940_v57, 1 }
 0x12c   : > { %1156 = vst.msk [vmem:[#allocation2 + $0x78] sm:$0xff] %vm1150_vm4, %v5708_v0  ;;  %3209 = vmatprep.mubr.bf16.mxu0 %v2911_v54  ;;  %1130 = vrot.lane.b32.xlu1 %v1098_v42, %s5146_s14  ;;  %v2564_v0 = vrot.slane %v2562_v36, 1  ;;  %2199 = vst.msk [vmem:[#allocation2 + $0x80] sm:$0xff] %vm1150_vm4, %v5713_v4  ;;  %v2835_v42 = vsel %vm1053_vm0, %v2833_v28, %v2834_v33  ;;  %v1599_v45 = vor.u32 %v1598_v37, %v1594_v24  ;;  %v4951_v54 = vld [vmem:[%s5328_s10 + $0xd4] ss:$0 sps:$4 sm:$0x11]  }
 0x12d   : > { %3210 = vmatmul.mubr.bf16.gmra.mrb[16].mxu0 %v2910_v55  ;;  %2887 = vst.msk [vmem:[#allocation2 + $0x88] sm:$0xff] %vm426_vm2, %v2835_v42  ;;  %v4952_v36 = vld [vmem:[%s5328_s10 + $0xc0] sm:$0xff]   ;;  %v2574_v60 = vshll.u32 %v4951_v54, 16  ;;  %v4958_v28 = vld [vmem:[%s5328_s10 + $0x6c] sm:$0xfe]   ;;  %v1625_v37 = vshll.u32 %v4961_v34, 16 }
 0x12e   : > { %v2565_v38 = vsel %vm619_vm1, %v2560_v22, %v2564_v0  ;;  %v4953_v22 = vld [vmem:[%s5328_s10 + $0x60] sm:$0xff]   ;;  %v2839_v32 = vrot.slane %v4958_v28, 1  ;;  %v4966_v54 = vld [vmem:[%s5328_s10 + $0x78] sm:$0xfe]  }
 0x12f   : > { %v5721_v16 = vpop.permute.xlu1 %1290  ;;  %v5724_v18 = vpop.permute.xlu0 %2588  ;;  %2174 = vrot.lane.b32.xlu0 %v4927_v1, %s5146_s14  ;;  %v4942_v1 = vld [vmem:[%s5328_s10 + $0xcc] sm:$0xff]   ;;  %v1606_v57 = vshrl.u32 %v4953_v22, 16  ;;  %v1608_v52 = vshll.u32 %v4953_v22, 16 }
 0x130   : > { %1334 = vst.msk [vmem:[#allocation2 + $0x78] sm:$0xff] %vm1328_vm5, %v5721_v16  ;;  %v4939_v16 = vld [vmem:[%s5328_s10 + $0xbc] ss:$0 sps:$4 sm:$0x11]   ;;  %1308 = vrot.lane.b32.xlu1 %v4935_v51, %s5147_s15  ;;  %2631 = vst.msk [vmem:[#allocation2 + $0x80] sm:$0xff] %vm1328_vm5, %v5724_v18  ;;  %v2831_v18 = vrot.slane %v4941_v6, 1 }
 0x131   : > { %v808_v4 = vshll.u32 %v4939_v16, 16  ;;  %v4950_v51 = vld [vmem:[%s5328_s10 + $0xcc] sm:$0xff]  }
 0x132   : > { %v2832_v20 = vsel %vm1053_vm0, %v2830_v11, %v2831_v18  ;;  %v2567_v58 = vshrl.u32 %v4950_v51, 16  ;;  %v2569_v50 = vshll.u32 %v4950_v51, 16  ;;  %v1610_v11 = vrot.slane %v1608_v52, 1  ;;  %v4962_v18 = vld [vmem:[%s5328_s10 + $0x60] sm:$0xff]  }
 0x133   : > { %v5734_v30 = vpop.permute.xlu1 %824  ;;  %v5736_v31 = vpop.permute.xlu0 %1981  ;;  %2606 = vrot.lane.b32.xlu0 %v2565_v38, %s5147_s15  ;;  %v810_v15 = vrot.slane %v808_v4, 1  ;;  %2886 = vst.msk [vmem:[#allocation2 + $0x70] sm:$0xff] %vm426_vm2, %v2832_v20  ;;  %v2576_v38 = vrot.slane %v2574_v60, 1  ;;  %v4955_v4 = vld [vmem:[%s5328_s10 + $0x54] sm:$0xff]   ;;  %435 = vst.msk [vmem:[#allocation2 + $0xc0] sm:$0xff] %vm426_vm2, %v4962_v18 }
 0x134   : > { %867 = vst.msk [vmem:[#allocation2 + $0x90] sm:$0xff] %vm860_vm3, %v5734_v30  ;;  %v1099_v30 = vrot.slane %v4945_v29, 1  ;;  %v2571_v35 = vrot.slane %v2569_v50, 1  ;;  %v2915_v6 = vld [vmem:[#allocation2 + $0x88] sm:$0xff] }
 0x135   : > { %v811_v41 = vsel %vm619_vm1, %v806_v13, %v810_v15  ;;  %434 = vst.msk [vmem:[#allocation2 + $0xa8] sm:$0xff] %vm426_vm2, %v4955_v4  ;;  %v4959_v29 = vld [vmem:[%s5328_s10 + $0x74] ss:$0 sps:$4 sm:$0x11]   ;;  %v4970_v50 = vld [vmem:[%s5328_s10 + $0x84] sm:$0xff]  }
 0x136   : > { %842 = vrot.lane.b32.xlu1 %v811_v41, %s5148_s16  ;;  %v2572_v7 = vor.u32 %v2571_v35, %v2567_v58  ;;  %v2840_v33 = vrot.slane %v4959_v29, 1  ;;  %v4967_v58 = vld [vmem:[%s5328_s10 + $0x80] ss:$0 sps:$4 sm:$0x11]   ;;  %v1642_v52 = vshrl.u32 %v4970_v50, 16 }
 0x137   : > { %v5745_v47 = vpop.permute.xlu1 %1114  ;;  %v5751_v49 = vpop.permute.xlu0 %2158  ;;  %1999 = vrot.lane.b32.xlu0 %v1968_v10, %s5148_s16  ;;  %v2914_v59 = vld [vmem:[#allocation2 + $0x80] sm:$0xff]  ;;  %v2913_v0 = vld [vmem:[#allocation2 + $0x78] sm:$0xff]  ;;  %v1613_v10 = vshll.u32 %v4954_v3, 16  ;;  %v2843_v35 = vrot.slane %v4967_v58, 1 }
 0x138   : > { %1157 = vst.msk [vmem:[#allocation2 + $0x90] sm:$0xff] %vm1150_vm4, %v5745_v47  ;;  %v1101_v47 = vsel %vm1053_vm0, %v1099_v30, %v1100_v43  ;;  %3217 = vmatprep.mubr.bf16.mxu0 %v2914_v59  ;;  %v2577_v13 = vsel %vm619_vm1, %v2572_v7, %v2576_v38  ;;  %v4968_v3 = vld [vmem:[%s5328_s10 + $0x84] sm:$0xfe]   ;;  %v1644_v7 = vshll.u32 %v4970_v50, 16 }
 0x139   : > { %3218 = vmatmul.mubr.bf16.gmra.mrb[20].mxu0 %v2913_v0  ;;  %v1615_v15 = vrot.slane %v1613_v10, 1  ;;  %v2842_v0 = vrot.slane %v4966_v54, 1  ;;  %v4972_v10 = vld [vmem:[%s5328_s10 + $0x78] sm:$0xff]   ;;  %v4981_v54 = vld [vmem:[%s5328_s10 + $0xa4] ss:$0 sps:$4 sm:$0x11]  }
 0x13a   : > { %1132 = vrot.lane.b32.xlu1 %v1101_v47, %s5146_s14  ;;  %v2912_v55 = vld [vmem:[#allocation2 + $0x70] sm:$0xff]  ;;  %437 = vst.msk [vmem:[#allocation2 + $0xf0] sm:$0xff] %vm426_vm2, %v4972_v10  ;;  %v1673_v50 = vshll.u32 %v4981_v54, 16 }
 0x13b   : > { %v5760_v9 = vpop.permute.xlu1 %1292  ;;  %v5766_v63 = vpop.permute.xlu0 %2590  ;;  %2176 = vrot.lane.b32.xlu0 %v4942_v1, %s5146_s14  ;;  %4608 = vmatprep.mubr.bf16.mxu1 %v2912_v55  ;;  %v4957_v1 = vld [vmem:[%s5328_s10 + $0x68] ss:$0 sps:$4 sm:$0x11]   ;;  %v4965_v47 = vld [vmem:[%s5328_s10 + $0x6c] sm:$0xff]  }
 0x13c   : > { %1335 = vst.msk [vmem:[#allocation2 + $0x90] sm:$0xff] %vm1328_vm5, %v5760_v9  ;;  %v1601_v9 = vshll.u32 %v4948_v46, 16  ;;  %4609 = vmatmul.mubr.bf16.gmra.mrb[8].mxu1 %v2915_v6  ;;  %v2837_v24 = vrot.slane %v4957_v1, 1  ;;  %v1627_v46 = vrot.slane %v1625_v37, 1  ;;  %v4975_v1 = vld [vmem:[%s5328_s10 + $0x84] sm:$0xff]  }
 0x13d   : > { %436 = vst.msk [vmem:[#allocation2 + $0xd8] sm:$0xff] %vm426_vm2, %v4965_v47  ;;  %v4971_v6 = vld [vmem:[%s5328_s10 + $0x8c] ss:$0 sps:$4 sm:$0x11]   ;;  %438 = vst.msk [vmem:[#allocation2 + $0x108] sm:$0xff] %vm426_vm2, %v4975_v1 }
 0x13e   : > { %v1603_v56 = vrot.slane %v1601_v9, 1  ;;  %1310 = vrot.lane.b32.xlu1 %v4952_v36, %s5147_s15 }
 0x13f   : > { %v5778_v8 = vpop.permute.xlu1 %826  ;;  %v5781_v25 = vpop.permute.xlu0 %1983  ;;  %2608 = vrot.lane.b32.xlu0 %v2577_v13, %s5147_s15 }
 0x140   : > { %v1604_v16 = vsel %vm619_vm1, %v1599_v45, %v1603_v56  ;;  %868 = vst.msk [vmem:[#allocation2 + $0xa8] sm:$0xff] %vm860_vm3, %v5778_v8  ;;  %v1620_v8 = vshll.u32 %v4960_v12, 16  ;;  %v1649_v12 = vshll.u32 %v4971_v6, 16 }
 0x141   : > { %1735 = vst.msk [vmem:[#allocation2 + $0x98] sm:$0xff] %vm426_vm2, %v1604_v16 }
 0x142   : > { %2023 = vst.msk [vmem:[#allocation2 + $0x98] sm:$0xff] %vm860_vm3, %v5736_v31  ;;  %v4956_v31 = vld [vmem:[%s5328_s10 + $0x60] sm:$0xfe]   ;;  %v1622_v30 = vrot.slane %v1620_v8, 1 }
 0x143   : > { %v5787_v21 = vpop.permute.xlu1 %1116  ;;  %v5790_v27 = vpop.permute.xlu0 %2160  ;;  %2200 = vst.msk [vmem:[#allocation2 + $0x98] sm:$0xff] %vm1150_vm4, %v5751_v49  ;;  %v1611_v49 = vor.u32 %v1610_v11, %v1606_v57  ;;  %v2844_v57 = vsel %vm1053_vm0, %v2842_v0, %v2843_v35  ;;  %v1646_v11 = vrot.slane %v1644_v7, 1  ;;  %v4984_v0 = vld [vmem:[%s5328_s10 + $0xb0] ss:$0 sps:$4 sm:$0x11]  }
 0x144   : > { %2632 = vst.msk [vmem:[#allocation2 + $0x98] sm:$0xff] %vm1328_vm5, %v5766_v63  ;;  %v2836_v63 = vrot.slane %v4956_v31, 1  ;;  %v4974_v31 = vld [vmem:[%s5328_s10 + $0x98] ss:$0 sps:$4 sm:$0x11]  }
 0x145   : > { %1158 = vst.msk [vmem:[#allocation2 + $0xa8] sm:$0xff] %vm1150_vm4, %v5787_v21  ;;  %v1616_v23 = vsel %vm619_vm1, %v1611_v49, %v1615_v15  ;;  %v2916_v21 = vld [vmem:[#allocation2 + $0x90] sm:$0xff]  ;;  %v1647_v18 = vor.u32 %v1646_v11, %v1642_v52  ;;  %v1651_v49 = vrot.slane %v1649_v12, 1 }
 0x146   : > { %1736 = vst.msk [vmem:[#allocation2 + $0xb0] sm:$0xff] %vm426_vm2, %v1616_v23  ;;  %2890 = vst.msk [vmem:[#allocation2 + $0xd0] sm:$0xff] %vm426_vm2, %v2844_v57  ;;  %v4987_v7 = vld [vmem:[%s5328_s10 + $0xb0] ss:$0 sps:$4 sm:$0x11]  }
 0x147   : > { %v5797_v40 = vpop.permute.xlu1 %1294  ;;  %v5803_v44 = vpop.permute.xlu0 %2592  ;;  %2024 = vst.msk [vmem:[#allocation2 + $0xb0] sm:$0xff] %vm860_vm3, %v5781_v25  ;;  %v2841_v25 = vsel %vm1053_vm0, %v2839_v32, %v2840_v33  ;;  %v1652_v8 = vsel %vm619_vm1, %v1647_v18, %v1651_v49  ;;  %v4980_v33 = vld [vmem:[%s5328_s10 + $0x9c] sm:$0xff]   ;;  %v2855_v12 = vrot.slane %v4987_v7, 1 }
 0x148   : > { %1336 = vst.msk [vmem:[#allocation2 + $0xa8] sm:$0xff] %vm1328_vm5, %v5797_v40  ;;  %v2838_v40 = vsel %vm1053_vm0, %v2836_v63, %v2837_v24  ;;  %v4976_v24 = vld [vmem:[%s5328_s10 + $0x90] sm:$0xfe]  }
 0x149   : > { %2201 = vst.msk [vmem:[#allocation2 + $0xb0] sm:$0xff] %vm1150_vm4, %v5790_v27  ;;  %v4964_v27 = vld [vmem:[%s5328_s10 + $0x80] ss:$0 sps:$4 sm:$0x11]   ;;  %v2848_v32 = vrot.slane %v4976_v24, 1 }
 0x14a   : > { %2888 = vst.msk [vmem:[#allocation2 + $0xa0] sm:$0xff] %vm426_vm2, %v2838_v40  ;;  %2889 = vst.msk [vmem:[#allocation2 + $0xb8] sm:$0xff] %vm426_vm2, %v2841_v25  ;;  %v1637_v9 = vshll.u32 %v4964_v27, 16  ;;  %v4977_v40 = vld [vmem:[%s5328_s10 + $0x98] ss:$0 sps:$4 sm:$0x11]  }
 0x14b   : > { %v5816_v53 = vpop.permute.xlu1 %828  ;;  %v5820_v62 = vpop.permute.xlu0 %1985  ;;  %2633 = vst.msk [vmem:[#allocation2 + $0xb0] sm:$0xff] %vm1328_vm5, %v5803_v44  ;;  %v4982_v25 = vld [vmem:[%s5328_s10 + $0x90] sm:$0xff]  }
 0x14c   : > { %869 = vst.msk [vmem:[#allocation2 + $0xc0] sm:$0xff] %vm860_vm3, %v5816_v53  ;;  %v2917_v53 = vld [vmem:[#allocation2 + $0x98] sm:$0xff]  ;;  %v1639_v56 = vrot.slane %v1637_v9, 1 }
 0x14d   : > { %3225 = vmatprep.mubr.bf16.mxu0 %v2917_v53  ;;  %v2924_v28 = vld [vmem:[#allocation2 + $0xd0] sm:$0xff]  ;;  %1739 = vst.msk [vmem:[#allocation2 + $0xf8] sm:$0xff] %vm426_vm2, %v1652_v8  ;;  %v4978_v53 = vld [vmem:[%s5328_s10 + $0x9c] sm:$0xfe]   ;;  %439 = vst.msk [vmem:[#allocation2 + $0x120] sm:$0xff] %vm426_vm2, %v4982_v25 }
 0x14e   : > { %3226 = vmatmul.mubr.bf16.gmra.mrb[24].mxu0 %v2916_v21 }
 0x14f   : > { %v5832_v5 = vpop.permute.xlu1 %1118  ;;  %v5837_v14 = vpop.permute.xlu0 %2162  ;;  %v2919_v36 = vld [vmem:[#allocation2 + $0xa8] sm:$0xff] }
 0x150   : > { %1159 = vst.msk [vmem:[#allocation2 + $0xc0] sm:$0xff] %vm1150_vm4, %v5832_v5  ;;  %v1623_v5 = vor.u32 %v1622_v30, %v1618_v17  ;;  %v2849_v30 = vrot.slane %v4977_v40, 1 }
 0x151   : > { %v2918_v59 = vld [vmem:[#allocation2 + $0xa0] sm:$0xff] }
 0x152   : > { %v1628_v51 = vsel %vm619_vm1, %v1623_v5, %v1627_v46  ;;  %4612 = vmatprep.mubr.bf16.mxu1 %v2918_v59  ;;  %v2920_v16 = vld [vmem:[#allocation2 + $0xb0] sm:$0xff]  ;;  %v2850_v47 = vsel %vm1053_vm0, %v2848_v32, %v2849_v30  ;;  %v4983_v59 = vld [vmem:[%s5328_s10 + $0xa8] sm:$0xff]  }
 0x153   : > { %v5844_v19 = vpop.permute.xlu1 %1296  ;;  %v5852_v26 = vpop.permute.xlu0 %2594  ;;  %1737 = vst.msk [vmem:[#allocation2 + $0xc8] sm:$0xff] %vm426_vm2, %v1628_v51  ;;  %3233 = vmatprep.mubr.bf16.mxu0 %v2920_v16  ;;  %2892 = vst.msk [vmem:[#allocation2 + $0x100] sm:$0xff] %vm426_vm2, %v2850_v47  ;;  %v1675_v16 = vrot.slane %v1673_v50, 1  ;;  %v1680_v35 = vshll.u32 %v4983_v59, 16 }
 0x154   : > { %1337 = vst.msk [vmem:[#allocation2 + $0xc0] sm:$0xff] %vm1328_vm5, %v5844_v19  ;;  %v4963_v19 = vld [vmem:[%s5328_s10 + $0x78] sm:$0xff]   ;;  %v4999_v50 = vld [vmem:[%s5328_s10 + $0xd4] ss:$0 sps:$4 sm:$0x11]  }
 0x155   : > { %v1630_v45 = vshrl.u32 %v4963_v19, 16  ;;  %v1632_v44 = vshll.u32 %v4963_v19, 16  ;;  %2025 = vst.msk [vmem:[#allocation2 + $0xc8] sm:$0xff] %vm860_vm3, %v5820_v62  ;;  %v2921_v62 = vld [vmem:[#allocation2 + $0xb8] sm:$0xff]  ;;  %v1666_v19 = vshrl.u32 %v4980_v33, 16 }
 0x156   : > { %2202 = vst.msk [vmem:[#allocation2 + $0xc8] sm:$0xff] %vm1150_vm4, %v5837_v14  ;;  %4613 = vmatmul.mubr.bf16.gmra.mrb[12].mxu1 %v2921_v62  ;;  %v2845_v14 = vrot.slane %v4968_v3, 1  ;;  %3234 = vmatmul.mubr.bf16.gmra.mrb[28].mxu0 %v2919_v36  ;;  %v1685_v3 = vshll.u32 %v4984_v0, 16  ;;  %v4990_v62 = vld [vmem:[%s5328_s10 + $0xb4] sm:$0xff]  }
 0x157   : > { %v5862_v39 = vpop.permute.xlu1 %830  ;;  %v5867_v48 = vpop.permute.xlu0 %1987  ;;  %v1634_v55 = vrot.slane %v1632_v44, 1  ;;  %2634 = vst.msk [vmem:[#allocation2 + $0xc8] sm:$0xff] %vm1328_vm5, %v5852_v26  ;;  %4616 = vmatprep.mubr.bf16.mxu1 %v2924_v28  ;;  %v1668_v44 = vshll.u32 %v4980_v33, 16  ;;  %v4993_v28 = vld [vmem:[%s5328_s10 + $0xc0] sm:$0xff]   ;;  %v4995_v33 = vld [vmem:[%s5328_s10 + $0xb4] sm:$0xff]  }
 0x158   : > { %870 = vst.msk [vmem:[#allocation2 + $0xd8] sm:$0xff] %vm860_vm3, %v5862_v39  ;;  %v1687_v6 = vrot.slane %v1685_v3, 1  ;;  %v1702_v40 = vshrl.u32 %v4993_v28, 16  ;;  %v1704_v32 = vshll.u32 %v4993_v28, 16 }
 0x159   : > { %v1635_v39 = vor.u32 %v1634_v55, %v1630_v45  ;;  %v2851_v45 = vrot.slane %v4978_v53, 1  ;;  %v1670_v36 = vrot.slane %v1668_v44, 1  ;;  %v5000_v53 = vld [vmem:[#allocation7] sm:$0xff]   ;;  %442 = vst.msk [vmem:[#allocation2 + $0x168] sm:$0xff] %vm426_vm2, %v4995_v33  ;;  %v5002_v44 = vld [vmem:[#allocation7 + $0x10] sm:$0xff]  }
 0x15a   : > { %4632 = vmatprep.subr.bf16.mxu1 %v5000_v53 }
 0x15b   : > { %v5876_v61 = vpop.permute.xlu0 %2164  ;;  %v5878_v2 = vpop.permute.xlu1 %1120  ;;  %v1640_v38 = vsel %vm619_vm1, %v1635_v39, %v1639_v56  ;;  %v1671_v58 = vor.u32 %v1670_v36, %v1666_v19  ;;  %v1678_v39 = vshrl.u32 %v4983_v59, 16  ;;  %4633 = vmatpush3.bf16.msra.mxu1 %v5000_v53  ;;  %v4998_v36 = vld [vmem:[%s5328_s10 + $0xcc] sm:$0xfe]  }
 0x15c   : > { %1160 = vst.msk [vmem:[#allocation2 + $0xd8] sm:$0xff] %vm1150_vm4, %v5878_v2  ;;  %v4969_v2 = vld [vmem:[%s5328_s10 + $0x8c] ss:$0 sps:$4 sm:$0x11]   ;;  %v2863_v0 = vrot.slane %v4998_v36, 1 }
 0x15d   : > { %1738 = vst.msk [vmem:[#allocation2 + $0xe0] sm:$0xff] %vm426_vm2, %v1640_v38  ;;  %v2846_v4 = vrot.slane %v4969_v2, 1  ;;  %v4986_v2 = vld [vmem:[%s5328_s10 + $0xa8] sm:$0xfe]   ;;  %v1676_v52 = vsel %vm619_vm1, %v1671_v58, %v1675_v16 }
 0x15e   : > { %2026 = vst.msk [vmem:[#allocation2 + $0xe0] sm:$0xff] %vm860_vm3, %v5867_v48  ;;  %v4973_v48 = vld [vmem:[%s5328_s10 + $0x90] sm:$0xff]   ;;  %v2923_v17 = vld [vmem:[#allocation2 + $0xc8] sm:$0xff]  ;;  %v2854_v10 = vrot.slane %v4986_v2, 1 }
 0x15f   : > { %v5902_v41 = vpop.permute.xlu0 %2596  ;;  %v1299_v20 = vpop.permute.xlu1 %1298  ;;  %2203 = vst.msk [vmem:[#allocation2 + $0xe0] sm:$0xff] %vm1150_vm4, %v5876_v61  ;;  %v2847_v26 = vsel %vm1053_vm0, %v2845_v14, %v2846_v4  ;;  %v2922_v61 = vld [vmem:[#allocation2 + $0xc0] sm:$0xff]  ;;  %v1656_v63 = vshll.u32 %v4973_v48, 16  ;;  %3241 = vmatprep.mubr.bf16.mxu0 %v2923_v17  ;;  %v1682_v4 = vrot.slane %v1680_v35, 1 }
 0x160   : > { %1338 = vst.msk [vmem:[#allocation2 + $0xd8] sm:$0xff] %vm1328_vm5, %v1299_v20  ;;  %2635 = vst.msk [vmem:[#allocation2 + $0xe0] sm:$0xff] %vm1328_vm5, %v5902_v41  ;;  %v1654_v20 = vshrl.u32 %v4973_v48, 16  ;;  %v1661_v41 = vshll.u32 %v4974_v31, 16  ;;  %3242 = vmatmul.mubr.bf16.gmra.mrb[32].mxu0 %v2922_v61  ;;  %v2930_v14 = vld [vmem:[#allocation2 + $0x100] sm:$0xff]  ;;  %v2856_v18 = vsel %vm1053_vm0, %v2854_v10, %v2855_v12 }
 0x161   : > { %2891 = vst.msk [vmem:[#allocation2 + $0xe8] sm:$0xff] %vm426_vm2, %v2847_v26  ;;  %v1658_v29 = vrot.slane %v1656_v63, 1  ;;  %1741 = vst.msk [vmem:[#allocation2 + $0x128] sm:$0xff] %vm426_vm2, %v1676_v52  ;;  %v1690_v26 = vshrl.u32 %v4990_v62, 16  ;;  %v1683_v11 = vor.u32 %v1682_v4, %v1678_v39  ;;  %v5004_v35 = vld [vmem:[#allocation7 + $0x20] sm:$0xff]   ;;  %v5006_v52 = vld [vmem:[#allocation7 + $0x30] sm:$0xff]  }
 0x162   : > { %v1663_v21 = vrot.slane %v1661_v41, 1  ;;  %v4989_v31 = vld [vmem:[%s5328_s10 + $0xbc] ss:$0 sps:$4 sm:$0x11]   ;;  %2894 = vst.msk [vmem:[#allocation2 + $0x130] sm:$0xff] %vm426_vm2, %v2856_v18  ;;  %v4992_v41 = vld [vmem:[%s5328_s10 + $0xa8] sm:$0xff]  }
 0x163   : > { %v5927_v42 = vpop.permute.xlu0 %1989  ;;  %v833_v43 = vpop.permute.xlu1 %832  ;;  %v1659_v34 = vor.u32 %v1658_v29, %v1654_v20  ;;  %v1688_v61 = vsel %vm619_vm1, %v1683_v11, %v1687_v6  ;;  %v2858_v17 = vrot.slane %v4989_v31, 1  ;;  %v4991_v20 = vld [vmem:[%s5328_s10 + $0xbc] ss:$0 sps:$4 sm:$0x11]   ;;  %441 = vst.msk [vmem:[#allocation2 + $0x150] sm:$0xff] %vm426_vm2, %v4992_v41 }
 0x164   : > { %871 = vst.msk [vmem:[#allocation2 + $0xf0] sm:$0xff] %vm860_vm3, %v833_v43  ;;  %2027 = vst.msk [vmem:[#allocation2 + $0xf8] sm:$0xff] %vm860_vm3, %v5927_v42  ;;  %v4979_v43 = vld [vmem:[%s5328_s10 + $0xa4] ss:$0 sps:$4 sm:$0x11]   ;;  %v1697_v24 = vshll.u32 %v4991_v20, 16 }
 0x165   : > { %v1664_v42 = vsel %vm619_vm1, %v1659_v34, %v1663_v21  ;;  %v2852_v51 = vrot.slane %v4979_v43, 1  ;;  %1742 = vst.msk [vmem:[#allocation2 + $0x140] sm:$0xff] %vm426_vm2, %v1688_v61  ;;  %v4994_v29 = vld [vmem:[%s5328_s10 + $0xc8] ss:$0 sps:$4 sm:$0x11]   ;;  %v5001_v43 = vld [vmem:[#allocation7 + $0x8] sm:$0xff]  }
 0x166   : > { %1740 = vst.msk [vmem:[#allocation2 + $0x110] sm:$0xff] %vm426_vm2, %v1664_v42  ;;  %v1699_v21 = vrot.slane %v1697_v24, 1  ;;  %v1709_v30 = vshll.u32 %v4994_v29, 16  ;;  %4634 = vmatprep.subr.bf16.mxu1 %v5001_v43 }
 0x167   : > { %v5945_v60 = vpop.permute.xlu0 %2166  ;;  %v1123_v22 = vpop.permute.xlu1 %1122  ;;  %v2926_v37 = vld [vmem:[#allocation2 + $0xe0] sm:$0xff]  ;;  %v2925_v9 = vld [vmem:[#allocation2 + $0xd8] sm:$0xff]  ;;  %v2853_v55 = vsel %vm1053_vm0, %v2851_v45, %v2852_v51  ;;  %4635 = vmatpush3.bf16.msra.mxu1 %v5001_v43 }
 0x168   : > { %1161 = vst.msk [vmem:[#allocation2 + $0xf0] sm:$0xff] %vm1150_vm4, %v1123_v22  ;;  %2204 = vst.msk [vmem:[#allocation2 + $0xf8] sm:$0xff] %vm1150_vm4, %v5945_v60  ;;  %v2927_v5 = vld [vmem:[#allocation2 + $0xe8] sm:$0xff]  ;;  %3249 = vmatprep.mubr.bf16.mxu0 %v2926_v37  ;;  %v4985_v60 = vld [vmem:[%s5328_s10 + $0x9c] sm:$0xff]   ;;  %4636 = vmatprep.subr.bf16.mxu1 %v5002_v44 }
 0x169   : > { %4617 = vmatmul.mubr.bf16.gmra.mrb[16].mxu1 %v2927_v5  ;;  %2893 = vst.msk [vmem:[#allocation2 + $0x118] sm:$0xff] %vm426_vm2, %v2853_v55  ;;  %3250 = vmatmul.mubr.bf16.gmra.mrb[36].mxu0 %v2925_v9  ;;  %440 = vst.msk [vmem:[#allocation2 + $0x138] sm:$0xff] %vm426_vm2, %v4985_v60  ;;  %v1706_v5 = vrot.slane %v1704_v32, 1  ;;  %v4996_v37 = vld [vmem:[%s5328_s10 + $0xc0] sm:$0xfe]   ;;  %v2936_v42 = vld [vmem:[#allocation2 + $0x130] sm:$0xff] }
 0x16a   : > { %4620 = vmatprep.mubr.bf16.mxu1 %v2930_v14  ;;  %v2860_v45 = vrot.slane %v4996_v37, 1  ;;  %v2864_v60 = vrot.slane %v4999_v50, 1 }
 0x16b   : > { %v1301_v15 = vpop.permute.xlu1 %1300  ;;  %v1707_v47 = vor.u32 %v1706_v5, %v1702_v40  ;;  %4637 = vmatpush3.bf16.msra.mxu1 %v5002_v44 }
 0x16c   : > { %v2599_v13 = vpop.permute.xlu0 %2598  ;;  %1339 = vst.msk [vmem:[#allocation2 + $0xf0] sm:$0xff] %vm1328_vm5, %v1301_v15  ;;  %v1692_v15 = vshll.u32 %v4990_v62, 16  ;;  %v2865_v39 = vsel %vm1053_vm0, %v2863_v0, %v2864_v60 }
 0x16d   : > { %2636 = vst.msk [vmem:[#allocation2 + $0xf8] sm:$0xff] %vm1328_vm5, %v2599_v13  ;;  %v4988_v13 = vld [vmem:[%s5328_s10 + $0xb4] sm:$0xfe]  }
 0x16e   : > { %v2857_v49 = vrot.slane %v4988_v13, 1  ;;  %v1694_v1 = vrot.slane %v1692_v15, 1  ;;  %2897 = vst.msk [vmem:[#allocation2 + $0x178] sm:$0xff] %vm426_vm2, %v2865_v39 }
 0x16f   : > { %v835_v27 = vpop.permute.xlu1 %834 }
 0x170   : > { %v1992_v23 = vpop.permute.xlu0 %1991  ;;  %872 = vst.msk [vmem:[#allocation2 + $0x108] sm:$0xff] %vm860_vm3, %v835_v27  ;;  %v2933_v48 = vld [vmem:[#allocation2 + $0x118] sm:$0xff]  ;;  %v2859_v8 = vsel %vm1053_vm0, %v2857_v49, %v2858_v17  ;;  %v1711_v27 = vrot.slane %v1709_v30, 1 }
 0x171   : > { %2028 = vst.msk [vmem:[#allocation2 + $0x110] sm:$0xff] %vm860_vm3, %v1992_v23  ;;  %4621 = vmatmul.mubr.bf16.gmra.mrb[20].mxu1 %v2933_v48  ;;  %v1695_v23 = vor.u32 %v1694_v1, %v1690_v26  ;;  %v5007_v26 = vld [vmem:[#allocation7 + $0x38] sm:$0xff]  }
 0x172   : > { %2895 = vst.msk [vmem:[#allocation2 + $0x148] sm:$0xff] %vm426_vm2, %v2859_v8  ;;  %4624 = vmatprep.mubr.bf16.mxu1 %v2936_v42  ;;  %v1712_v58 = vsel %vm619_vm1, %v1707_v47, %v1711_v27 }
 0x173   : > { %v1125_v56 = vpop.permute.xlu1 %1124  ;;  %v2928_v38 = vld [vmem:[#allocation2 + $0xf0] sm:$0xff]  ;;  %v1700_v25 = vsel %vm619_vm1, %v1695_v23, %v1699_v21  ;;  %1744 = vst.msk [vmem:[#allocation2 + $0x170] sm:$0xff] %vm426_vm2, %v1712_v58 }
 0x174   : > { %v2169_v46 = vpop.permute.xlu0 %2168  ;;  %1162 = vst.msk [vmem:[#allocation2 + $0x108] sm:$0xff] %vm1150_vm4, %v1125_v56  ;;  %v2929_v22 = vld [vmem:[#allocation2 + $0xf8] sm:$0xff] }
 0x175   : > { %2205 = vst.msk [vmem:[#allocation2 + $0x110] sm:$0xff] %vm1150_vm4, %v2169_v46  ;;  %3257 = vmatprep.mubr.bf16.mxu0 %v2929_v22  ;;  %v4997_v46 = vld [vmem:[%s5328_s10 + $0xc8] ss:$0 sps:$4 sm:$0x11]   ;;  %v5003_v22 = vld [vmem:[#allocation7 + $0x18] sm:$0xff]  }
 0x176   : > { %3258 = vmatmul.mubr.bf16.gmra.mrb[40].mxu0 %v2928_v38  ;;  %1743 = vst.msk [vmem:[#allocation2 + $0x158] sm:$0xff] %vm426_vm2, %v1700_v25  ;;  %v2861_v54 = vrot.slane %v4997_v46, 1  ;;  %4638 = vmatprep.subr.bf16.mxu1 %v5003_v22  ;;  %v5005_v38 = vld [vmem:[#allocation7 + $0x28] sm:$0xff]   ;;  %v6063_v46 = vld [vmem:[#allocation5] ss:$0 sm:$0xff] }
 0x177   : > { %v1303_v57 = vpop.permute.xlu1 %1302  ;;  %4639 = vmatpush3.bf16.msra.mxu1 %v5003_v22 }
 0x178   : > { %1340 = vst.msk [vmem:[#allocation2 + $0x108] sm:$0xff] %vm1328_vm5, %v1303_v57  ;;  %v2601_v63 = vpop.permute.xlu0 %2600  ;;  %v2862_v59 = vsel %vm1053_vm0, %v2860_v45, %v2861_v54  ;;  %4640 = vmatprep.subr.bf16.mxu1 %v5004_v35  ;;  %v2945_v57 = vld [vmem:[#allocation2 + $0x178] sm:$0xff] }
 0x179   : > { %2637 = vst.msk [vmem:[#allocation2 + $0x110] sm:$0xff] %vm1328_vm5, %v2601_v63  ;;  %v2939_v56 = vld [vmem:[#allocation2 + $0x148] sm:$0xff] }
 0x17a   : > { %4625 = vmatmul.mubr.bf16.gmra.mrb[24].mxu1 %v2939_v56  ;;  %2896 = vst.msk [vmem:[#allocation2 + $0x160] sm:$0xff] %vm426_vm2, %v2862_v59 }
 0x17b   : > { %v837_v55 = vpop.permute.xlu1 %836  ;;  %4641 = vmatpush3.bf16.msra.mxu1 %v5004_v35 }
 0x17c   : > { %v1994_v34 = vpop.permute.xlu0 %1993  ;;  %873 = vst.msk [vmem:[#allocation2 + $0x120] sm:$0xff] %vm860_vm3, %v837_v55  ;;  %4642 = vmatprep.subr.bf16.mxu1 %v5005_v38 }
 0x17d   : > { %2029 = vst.msk [vmem:[#allocation2 + $0x128] sm:$0xff] %vm860_vm3, %v1994_v34 }
 0x17f   : > { %v2931_v19 = vld [vmem:[#allocation2 + $0x108] sm:$0xff]  ;;  %4643 = vmatpush3.bf16.msra.mxu1 %v5005_v38 }
 0x180   : > { %v2171_v9 = vpop.permute.xlu0 %2170  ;;  %v2932_v51 = vld [vmem:[#allocation2 + $0x110] sm:$0xff]  ;;  %4644 = vmatprep.subr.bf16.mxu1 %v5006_v52 }
 0x181   : > { %2206 = vst.msk [vmem:[#allocation2 + $0x128] sm:$0xff] %vm1150_vm4, %v2171_v9  ;;  %3265 = vmatprep.mubr.bf16.mxu0 %v2932_v51  ;;  %v2942_v62 = vld [vmem:[#allocation2 + $0x160] sm:$0xff] }
 0x182   : > { %3266 = vmatmul.mubr.bf16.gmra.mrb[44].mxu0 %v2931_v19  ;;  %v1127_v16 = vpop.permute.xlu1 %1126  ;;  %4628 = vmatprep.mubr.bf16.mxu1 %v2942_v62 }
 0x183   : > { %1163 = vst.msk [vmem:[#allocation2 + $0x120] sm:$0xff] %vm1150_vm4, %v1127_v16  ;;  %4629 = vmatmul.mubr.bf16.gmra.mrb[28].mxu1 %v2945_v57 }
 0x184   : > { %4645 = vmatpush3.bf16.msra.mxu1 %v5006_v52 }
 0x185   : > { %4646 = vmatprep.subr.bf16.mxu1 %v5007_v26 }
 0x186   : > { %v1305_v3 = vpop.permute.xlu1 %1304 }
 0x187   : > { %1341 = vst.msk [vmem:[#allocation2 + $0x120] sm:$0xff] %vm1328_vm5, %v1305_v3  ;;  %v2603_v2 = vpop.permute.xlu0 %2602 }
 0x188   : > { %2638 = vst.msk [vmem:[#allocation2 + $0x128] sm:$0xff] %vm1328_vm5, %v2603_v2  ;;  %4647 = vmatpush3.bf16.msra.mxu1 %v5007_v26 }
 0x18d   : > { %v1996_v14 = vpop.permute.xlu0 %1995 }
 0x18e   : > { %2030 = vst.msk [vmem:[#allocation2 + $0x140] sm:$0xff] %vm860_vm3, %v1996_v14  ;;  %v839_v4 = vpop.permute.xlu1 %838  ;;  %v2934_v6 = vld [vmem:[#allocation2 + $0x120] sm:$0xff] }
 0x18f   : > { %874 = vst.msk [vmem:[#allocation2 + $0x138] sm:$0xff] %vm860_vm3, %v839_v4  ;;  %v2935_v10 = vld [vmem:[#allocation2 + $0x128] sm:$0xff] }
 0x190   : > { %3273 = vmatprep.mubr.bf16.mxu0 %v2935_v10 }
 0x191   : > { %v2173_v7 = vpop.permute.xlu0 %2172  ;;  %3274 = vmatmul.mubr.bf16.gmra.mrb[48].mxu0 %v2934_v6 }
 0x192   : > { %2207 = vst.msk [vmem:[#allocation2 + $0x140] sm:$0xff] %vm1150_vm4, %v2173_v7  ;;  %v1129_v11 = vpop.permute.xlu1 %1128 }
 0x193   : > { %1164 = vst.msk [vmem:[#allocation2 + $0x138] sm:$0xff] %vm1150_vm4, %v1129_v11 }
 0x196   : > { %v1307_v12 = vpop.permute.xlu1 %1306 }
 0x197   : > { %1342 = vst.msk [vmem:[#allocation2 + $0x138] sm:$0xff] %vm1328_vm5, %v1307_v12 }
 0x199   : > { %v2605_v13 = vpop.permute.xlu0 %2604 }
 0x19a   : > { %2639 = vst.msk [vmem:[#allocation2 + $0x140] sm:$0xff] %vm1328_vm5, %v2605_v13  ;;  %v841_v48 = vpop.permute.xlu1 %840 }
 0x19b   : > { %875 = vst.msk [vmem:[#allocation2 + $0x150] sm:$0xff] %vm860_vm3, %v841_v48 }
 0x19d   : > { %v1998_v15 = vpop.permute.xlu0 %1997 }
 0x19e   : > { %2031 = vst.msk [vmem:[#allocation2 + $0x158] sm:$0xff] %vm860_vm3, %v1998_v15  ;;  %v2937_v31 = vld [vmem:[#allocation2 + $0x138] sm:$0xff]  ;;  %v1131_v49 = vpop.permute.xlu1 %1130 }
 0x19f   : > { %1165 = vst.msk [vmem:[#allocation2 + $0x150] sm:$0xff] %vm1150_vm4, %v1131_v49 }
 0x1a1   : > { %v2175_v61 = vpop.permute.xlu0 %2174  ;;  %v2938_v18 = vld [vmem:[#allocation2 + $0x140] sm:$0xff] }
 0x1a2   : > { %2208 = vst.msk [vmem:[#allocation2 + $0x158] sm:$0xff] %vm1150_vm4, %v2175_v61  ;;  %3281 = vmatprep.mubr.bf16.mxu0 %v2938_v18  ;;  %v1309_v1 = vpop.permute.xlu1 %1308 }
 0x1a3   : > { %3282 = vmatmul.mubr.bf16.gmra.mrb[52].mxu0 %v2937_v31  ;;  %1343 = vst.msk [vmem:[#allocation2 + $0x150] sm:$0xff] %vm1328_vm5, %v1309_v1 }
 0x1a5   : > { %v2607_v17 = vpop.permute.xlu0 %2606 }
 0x1a6   : > { %2640 = vst.msk [vmem:[#allocation2 + $0x158] sm:$0xff] %vm1328_vm5, %v2607_v17 }
 0x1a8   : > { %v843_v63 = vpop.permute.xlu1 %842 }
 0x1a9   : > { %v2000_v20 = vpop.permute.xlu0 %1999  ;;  %876 = vst.msk [vmem:[#allocation2 + $0x168] sm:$0xff] %vm860_vm3, %v843_v63 }
 0x1aa   : > { %2032 = vst.msk [vmem:[#allocation2 + $0x170] sm:$0xff] %vm860_vm3, %v2000_v20  ;;  %v2940_v41 = vld [vmem:[#allocation2 + $0x150] sm:$0xff] }
 0x1ac   : > { %v1133_v24 = vpop.permute.xlu1 %1132 }
 0x1ad   : > { %v2177_v8 = vpop.permute.xlu0 %2176  ;;  %v2941_v23 = vld [vmem:[#allocation2 + $0x158] sm:$0xff]  ;;  %1166 = vst.msk [vmem:[#allocation2 + $0x168] sm:$0xff] %vm1150_vm4, %v1133_v24 }
 0x1ae   : > { %2209 = vst.msk [vmem:[#allocation2 + $0x170] sm:$0xff] %vm1150_vm4, %v2177_v8  ;;  %3289 = vmatprep.mubr.bf16.mxu0 %v2941_v23 }
 0x1af   : > { %3290 = vmatmul.mubr.bf16.gmra.mrb[56].mxu0 %v2940_v41 }
 0x1b0   : > { %v1311_v28 = vpop.permute.xlu1 %1310 }
 0x1b1   : > { %1344 = vst.msk [vmem:[#allocation2 + $0x168] sm:$0xff] %vm1328_vm5, %v1311_v28  ;;  %v2609_v29 = vpop.permute.xlu0 %2608 }
 0x1b2   : > { %2641 = vst.msk [vmem:[#allocation2 + $0x170] sm:$0xff] %vm1328_vm5, %v2609_v29 }
 0x1b8   : > { %v2943_v21 = vld [vmem:[#allocation2 + $0x168] sm:$0xff] }
 0x1b9   : > { %v2944_v40 = vld [vmem:[#allocation2 + $0x170] sm:$0xff] }
 0x1ba   : > { %3297 = vmatprep.mubr.bf16.mxu0 %v2944_v40 }
 0x1bb   : > { %3298 = vmatmul.mubr.bf16.gmra.mrb[60].mxu0 %v2943_v21 }
 0x1d8   : > { %v4440_v32 = vpop.f32.mrb[0].mxu0 }
 0x1d9   : > { %v4441_v33 = vpop.f32.mrb[1].mxu0 }
 0x1da   : > { %v4442_v34 = vadd.f32 %v4441_v33, %v4440_v32  ;;  %v4443_v30 = vpop.f32.mrb[2].mxu0 }
 0x1db   : > { %v4444_v53 = vpop.f32.mrb[3].mxu0 }
 0x1dc   : > { %v4445_v25 = vadd.f32 %v4444_v53, %v4443_v30  ;;  %v3180_v45 = vadd.f32 %v4442_v34, %v6063_v46 }
 0x1de   : > { %v3183_v51 = vadd.f32 %v4445_v25, %v6063_v46 }
 0x1e0   : > { %v4446_v5 = vpop.f32.mrb[4].mxu0 }
 0x1e1   : > { %v4447_v37 = vpop.f32.mrb[5].mxu0 }
 0x1e2   : > { %v4448_v43 = vadd.f32 %v4447_v37, %v4446_v5  ;;  %v4449_v19 = vpop.f32.mrb[6].mxu0 }
 0x1e3   : > { %v4450_v42 = vpop.f32.mrb[7].mxu0 }
 0x1e4   : > { %v4451_v27 = vadd.f32 %v4450_v42, %v4449_v19  ;;  %v3188_v47 = vadd.f32 %v4448_v43, %v6063_v46  ;;  %v4602_v9 = vpop.f32.mrb[0].mxu1 }
 0x1e5   : > { %v3340_v54 = vpop.f32.mrb[1].mxu1 }
 0x1e6   : > { %v3191_v44 = vadd.f32 %v4451_v27, %v6063_v46  ;;  %v3349_v36 = vadd.f32 %v4602_v9, %v3188_v47  ;;  %v3341_v56 = vadd.f32 %v3340_v54, %v3180_v45  ;;  %v4603_v58 = vpop.f32.mrb[2].mxu1 }
 0x1e7   : > { %v3343_v59 = vpop.f32.mrb[3].mxu1 }
 0x1e8   : > { %v4452_v55 = vpop.f32.mrb[8].mxu0  ;;  %v3352_v0 = vadd.f32 %v4603_v58, %v3191_v44  ;;  %v3344_v16 = vadd.f32 %v3343_v59, %v3183_v51  ;;  %v3469_v35 = vmax.f32 %v3349_v36, 0.0  ;;  %v3467_v2 = vmax.f32 %v3341_v56, 0.0 }
 0x1e9   : > { %v4453_v50 = vpop.f32.mrb[9].mxu0 }
 0x1ea   : > { %v4454_v60 = vadd.f32 %v4453_v50, %v4452_v55  ;;  %v4455_v22 = vpop.f32.mrb[10].mxu0  ;;  %v3470_v3 = vmax.f32 %v3352_v0, 0.0  ;;  %v3468_v38 = vmax.f32 %v3344_v16, 0.0 }
 0x1eb   : > { %v4456_v39 = vpop.f32.mrb[11].mxu0 }
 0x1ec   : > { %v4457_v62 = vadd.f32 %v4456_v39, %v4455_v22  ;;  %v3500_v57 = vpack.c.bf16 %v3470_v3, %v3469_v35  ;;  %v3499_v14 = vpack.c.bf16 %v3468_v38, %v3467_v2  ;;  %v3196_v52 = vadd.f32 %v4454_v60, %v6063_v46 }
 0x1ee   : > { %4648 = vmatprep.mubr.bf16.mxu1 %v3499_v14  ;;  %v3199_v10 = vadd.f32 %v4457_v62, %v6063_v46 }
 0x1ef   : > { %4649 = vmatmul.mubr.bf16.vlgmr.msra.gmra.mrb[32].mxu1 %v3500_v57 }
 0x1f4   : > { %v4458_v4 = vpop.f32.mrb[12].mxu0 }
 0x1f5   : > { %v4459_v6 = vpop.f32.mrb[13].mxu0 }
 0x1f6   : > { %v4606_v7 = vpop.f32.mrb[4].mxu1  ;;  %v4460_v26 = vadd.f32 %v4459_v6, %v4458_v4  ;;  %v4461_v11 = vpop.f32.mrb[14].mxu0 }
 0x1f7   : > { %v3356_v12 = vpop.f32.mrb[5].mxu1  ;;  %v4462_v13 = vpop.f32.mrb[15].mxu0 }
 0x1f8   : > { %v3357_v15 = vadd.f32 %v3356_v12, %v3196_v52  ;;  %v4607_v48 = vpop.f32.mrb[6].mxu1  ;;  %v3204_v31 = vadd.f32 %v4460_v26, %v6063_v46  ;;  %v4463_v61 = vadd.f32 %v4462_v13, %v4461_v11 }
 0x1f9   : > { %v3359_v18 = vpop.f32.mrb[7].mxu1 }
 0x1fa   : > { %v3360_v49 = vadd.f32 %v3359_v18, %v3199_v10  ;;  %v3365_v1 = vadd.f32 %v4606_v7, %v3204_v31  ;;  %v3207_v17 = vadd.f32 %v4463_v61, %v6063_v46  ;;  %v3471_v20 = vmax.f32 %v3357_v15, 0.0 }
 0x1fc   : > { %v3472_v63 = vmax.f32 %v3360_v49, 0.0  ;;  %v3368_v41 = vadd.f32 %v4607_v48, %v3207_v17  ;;  %v3473_v23 = vmax.f32 %v3365_v1, 0.0 }
 0x1fe   : > { %v3501_v8 = vpack.c.bf16 %v3472_v63, %v3471_v20  ;;  %v3474_v24 = vmax.f32 %v3368_v41, 0.0 }
 0x200   : > { %4652 = vmatprep.mubr.bf16.mxu1 %v3501_v8  ;;  %v3502_v28 = vpack.c.bf16 %v3474_v24, %v3473_v23  ;;  %v4464_v29 = vpop.f32.mrb[16].mxu0 }
 0x201   : > { %v4465_v21 = vpop.f32.mrb[17].mxu0 }
 0x202   : > { %4653 = vmatmul.mubr.bf16.gmra.mrb[36].mxu1 %v3502_v28  ;;  %v4466_v40 = vadd.f32 %v4465_v21, %v4464_v29  ;;  %v4467_v32 = vpop.f32.mrb[18].mxu0 }
 0x203   : > { %v4468_v33 = vpop.f32.mrb[19].mxu0 }
 0x204   : > { %v4469_v34 = vadd.f32 %v4468_v33, %v4467_v32  ;;  %v3212_v53 = vadd.f32 %v4466_v40, %v6063_v46 }
 0x206   : > { %v3215_v19 = vadd.f32 %v4469_v34, %v6063_v46 }
 0x20c   : > { %v4470_v30 = vpop.f32.mrb[20].mxu0 }
 0x20d   : > { %v4471_v25 = vpop.f32.mrb[21].mxu0 }
 0x20e   : > { %v4472_v5 = vadd.f32 %v4471_v25, %v4470_v30  ;;  %v4473_v37 = vpop.f32.mrb[22].mxu0 }
 0x20f   : > { %v4610_v43 = vpop.f32.mrb[8].mxu1  ;;  %v4474_v42 = vpop.f32.mrb[23].mxu0 }
 0x210   : > { %v3372_v27 = vpop.f32.mrb[9].mxu1  ;;  %v3220_v47 = vadd.f32 %v4472_v5, %v6063_v46  ;;  %v4475_v45 = vadd.f32 %v4474_v42, %v4473_v37 }
 0x211   : > { %v3373_v44 = vadd.f32 %v3372_v27, %v3212_v53  ;;  %v4611_v9 = vpop.f32.mrb[10].mxu1 }
 0x212   : > { %v3375_v51 = vpop.f32.mrb[11].mxu1  ;;  %v3381_v54 = vadd.f32 %v4610_v43, %v3220_v47  ;;  %v3223_v36 = vadd.f32 %v4475_v45, %v6063_v46 }
 0x213   : > { %v3376_v55 = vadd.f32 %v3375_v51, %v3215_v19  ;;  %v3475_v58 = vmax.f32 %v3373_v44, 0.0 }
 0x214   : > { %v3384_v56 = vadd.f32 %v4611_v9, %v3223_v36  ;;  %v3477_v59 = vmax.f32 %v3381_v54, 0.0 }
 0x215   : > { %v3476_v50 = vmax.f32 %v3376_v55, 0.0 }
 0x216   : > { %v3478_v0 = vmax.f32 %v3384_v56, 0.0 }
 0x217   : > { %v3503_v60 = vpack.c.bf16 %v3476_v50, %v3475_v58 }
 0x218   : > { %v3504_v22 = vpack.c.bf16 %v3478_v0, %v3477_v59 }
 0x219   : > { %4656 = vmatprep.mubr.bf16.mxu1 %v3503_v60 }
 0x21a   : > { %4657 = vmatmul.mubr.bf16.gmra.mrb[40].mxu1 %v3504_v22 }
 0x221   : > { %v4476_v16 = vpop.f32.mrb[24].mxu0 }
 0x222   : > { %v4477_v39 = vpop.f32.mrb[25].mxu0 }
 0x223   : > { %v4478_v35 = vadd.f32 %v4477_v39, %v4476_v16  ;;  %v4479_v3 = vpop.f32.mrb[26].mxu0 }
 0x224   : > { %v4480_v62 = vpop.f32.mrb[27].mxu0 }
 0x225   : > { %v4481_v2 = vadd.f32 %v4480_v62, %v4479_v3  ;;  %v3228_v38 = vadd.f32 %v4478_v35, %v6063_v46 }
 0x227   : > { %v3231_v14 = vadd.f32 %v4481_v2, %v6063_v46 }
 0x229   : > { %v4614_v57 = vpop.f32.mrb[12].mxu1  ;;  %v4482_v4 = vpop.f32.mrb[28].mxu0 }
 0x22a   : > { %v3388_v52 = vpop.f32.mrb[13].mxu1  ;;  %v4483_v10 = vpop.f32.mrb[29].mxu0 }
 0x22b   : > { %v3389_v6 = vadd.f32 %v3388_v52, %v3228_v38  ;;  %v4615_v7 = vpop.f32.mrb[14].mxu1  ;;  %v4484_v11 = vadd.f32 %v4483_v10, %v4482_v4  ;;  %v4485_v12 = vpop.f32.mrb[30].mxu0 }
 0x22c   : > { %v3391_v26 = vpop.f32.mrb[15].mxu1  ;;  %v4486_v15 = vpop.f32.mrb[31].mxu0 }
 0x22d   : > { %v3392_v13 = vadd.f32 %v3391_v26, %v3231_v14  ;;  %v3236_v48 = vadd.f32 %v4484_v11, %v6063_v46  ;;  %v4487_v31 = vadd.f32 %v4486_v15, %v4485_v12  ;;  %v3479_v61 = vmax.f32 %v3389_v6, 0.0 }
 0x22f   : > { %v3480_v18 = vmax.f32 %v3392_v13, 0.0  ;;  %v3397_v49 = vadd.f32 %v4614_v57, %v3236_v48  ;;  %v3239_v1 = vadd.f32 %v4487_v31, %v6063_v46 }
 0x231   : > { %v3505_v17 = vpack.c.bf16 %v3480_v18, %v3479_v61  ;;  %v3400_v20 = vadd.f32 %v4615_v7, %v3239_v1  ;;  %v3481_v8 = vmax.f32 %v3397_v49, 0.0 }
 0x233   : > { %v4488_v63 = vpop.f32.mrb[32].mxu0  ;;  %4660 = vmatprep.mubr.bf16.mxu1 %v3505_v17  ;;  %v3482_v23 = vmax.f32 %v3400_v20, 0.0 }
 0x234   : > { %v4489_v41 = vpop.f32.mrb[33].mxu0 }
 0x235   : > { %v4490_v24 = vadd.f32 %v4489_v41, %v4488_v63  ;;  %v4491_v28 = vpop.f32.mrb[34].mxu0  ;;  %v3506_v40 = vpack.c.bf16 %v3482_v23, %v3481_v8 }
 0x236   : > { %v4492_v29 = vpop.f32.mrb[35].mxu0 }
 0x237   : > { %v4493_v32 = vadd.f32 %v4492_v29, %v4491_v28  ;;  %v3244_v33 = vadd.f32 %v4490_v24, %v6063_v46  ;;  %4661 = vmatmul.mubr.bf16.gmra.mrb[44].mxu1 %v3506_v40 }
 0x239   : > { %v3247_v25 = vadd.f32 %v4493_v32, %v6063_v46 }
 0x23c   : > { %v4618_v21 = vpop.f32.mrb[16].mxu1  ;;  %v4494_v43 = vpop.f32.mrb[36].mxu0 }
 0x23d   : > { %v3404_v34 = vpop.f32.mrb[17].mxu1  ;;  %v4495_v19 = vpop.f32.mrb[37].mxu0 }
 0x23e   : > { %v4619_v30 = vpop.f32.mrb[18].mxu1  ;;  %v3405_v53 = vadd.f32 %v3404_v34, %v3244_v33  ;;  %v4496_v47 = vadd.f32 %v4495_v19, %v4494_v43  ;;  %v4497_v45 = vpop.f32.mrb[38].mxu0 }
 0x23f   : > { %v3407_v5 = vpop.f32.mrb[19].mxu1  ;;  %v4498_v44 = vpop.f32.mrb[39].mxu0 }
 0x240   : > { %v3408_v37 = vadd.f32 %v3407_v5, %v3247_v25  ;;  %v3483_v42 = vmax.f32 %v3405_v53, 0.0  ;;  %v3252_v51 = vadd.f32 %v4496_v47, %v6063_v46  ;;  %v4499_v54 = vadd.f32 %v4498_v44, %v4497_v45 }
 0x242   : > { %v3484_v27 = vmax.f32 %v3408_v37, 0.0  ;;  %v3413_v36 = vadd.f32 %v4618_v21, %v3252_v51  ;;  %v3255_v55 = vadd.f32 %v4499_v54, %v6063_v46 }
 0x244   : > { %v3507_v9 = vpack.c.bf16 %v3484_v27, %v3483_v42  ;;  %v4622_v56 = vpop.f32.mrb[20].mxu1  ;;  %v3416_v58 = vadd.f32 %v4619_v30, %v3255_v55  ;;  %v3485_v22 = vmax.f32 %v3413_v36, 0.0 }
 0x245   : > { %v3420_v59 = vpop.f32.mrb[21].mxu1 }
 0x246   : > { %4664 = vmatprep.mubr.bf16.mxu1 %v3507_v9  ;;  %v4623_v60 = vpop.f32.mrb[22].mxu1  ;;  %v3486_v16 = vmax.f32 %v3416_v58, 0.0 }
 0x247   : > { %v3423_v3 = vpop.f32.mrb[23].mxu1 }
 0x248   : > { %v3508_v2 = vpack.c.bf16 %v3486_v16, %v3485_v22 }
 0x249   : > { %v4500_v50 = vpop.f32.mrb[40].mxu0 }
 0x24a   : > { %v4501_v0 = vpop.f32.mrb[41].mxu0  ;;  %4665 = vmatmul.mubr.bf16.gmra.mrb[48].mxu1 %v3508_v2 }
 0x24b   : > { %v4502_v39 = vadd.f32 %v4501_v0, %v4500_v50  ;;  %v4503_v35 = vpop.f32.mrb[42].mxu0 }
 0x24c   : > { %v4504_v62 = vpop.f32.mrb[43].mxu0 }
 0x24d   : > { %v4505_v38 = vadd.f32 %v4504_v62, %v4503_v35  ;;  %v3260_v57 = vadd.f32 %v4502_v39, %v6063_v46  ;;  %v4626_v26 = vpop.f32.mrb[24].mxu1 }
 0x24e   : > { %v3436_v13 = vpop.f32.mrb[25].mxu1 }
 0x24f   : > { %v3421_v14 = vadd.f32 %v3420_v59, %v3260_v57  ;;  %v3263_v52 = vadd.f32 %v4505_v38, %v6063_v46  ;;  %v4627_v31 = vpop.f32.mrb[26].mxu1 }
 0x250   : > { %v3439_v18 = vpop.f32.mrb[27].mxu1 }
 0x251   : > { %v3424_v4 = vadd.f32 %v3423_v3, %v3263_v52  ;;  %v3487_v6 = vmax.f32 %v3421_v14, 0.0 }
 0x253   : > { %v3488_v7 = vmax.f32 %v3424_v4, 0.0 }
 0x255   : > { %v4506_v10 = vpop.f32.mrb[44].mxu0  ;;  %v3509_v11 = vpack.c.bf16 %v3488_v7, %v3487_v6 }
 0x256   : > { %v4507_v12 = vpop.f32.mrb[45].mxu0  ;;  %v4630_v24 = vpop.f32.mrb[28].mxu1 }
 0x257   : > { %v4508_v15 = vadd.f32 %v4507_v12, %v4506_v10  ;;  %v4509_v48 = vpop.f32.mrb[46].mxu0  ;;  %4668 = vmatprep.mubr.bf16.mxu1 %v3509_v11  ;;  %v3452_v28 = vpop.f32.mrb[29].mxu1 }
 0x258   : > { %v4510_v61 = vpop.f32.mrb[47].mxu0  ;;  %v4631_v29 = vpop.f32.mrb[30].mxu1 }
 0x259   : > { %v3268_v49 = vadd.f32 %v4508_v15, %v6063_v46  ;;  %v4511_v1 = vadd.f32 %v4510_v61, %v4509_v48  ;;  %v3455_v21 = vpop.f32.mrb[31].mxu1 }
 0x25b   : > { %v3429_v17 = vadd.f32 %v4622_v56, %v3268_v49  ;;  %v3271_v20 = vadd.f32 %v4511_v1, %v6063_v46  ;;  %v6098_v1 = vld [vmem:[#allocation8] ss:$0 sm:$0xff] }
 0x25d   : > { %v3432_v63 = vadd.f32 %v4623_v60, %v3271_v20  ;;  %v3489_v41 = vmax.f32 %v3429_v17, 0.0 }
 0x25f   : > { %v3490_v8 = vmax.f32 %v3432_v63, 0.0 }
 0x261   : > { %v3510_v23 = vpack.c.bf16 %v3490_v8, %v3489_v41 }
 0x263   : > { %4669 = vmatmul.mubr.bf16.gmra.mrb[52].mxu1 %v3510_v23 }
 0x264   : > { %v4512_v40 = vpop.f32.mrb[48].mxu0 }
 0x265   : > { %v4513_v32 = vpop.f32.mrb[49].mxu0 }
 0x266   : > { %v4514_v33 = vadd.f32 %v4513_v32, %v4512_v40  ;;  %v4515_v34 = vpop.f32.mrb[50].mxu0 }
 0x267   : > { %v4516_v30 = vpop.f32.mrb[51].mxu0 }
 0x268   : > { %v4517_v53 = vadd.f32 %v4516_v30, %v4515_v34  ;;  %v3276_v25 = vadd.f32 %v4514_v33, %v6063_v46 }
 0x26a   : > { %v3437_v5 = vadd.f32 %v3436_v13, %v3276_v25  ;;  %v3279_v37 = vadd.f32 %v4517_v53, %v6063_v46 }
 0x26c   : > { %v3440_v43 = vadd.f32 %v3439_v18, %v3279_v37  ;;  %v3491_v19 = vmax.f32 %v3437_v5, 0.0 }
 0x26e   : > { %v3492_v42 = vmax.f32 %v3440_v43, 0.0 }
 0x270   : > { %v3511_v27 = vpack.c.bf16 %v3492_v42, %v3491_v19 }
 0x272   : > { %4672 = vmatprep.mubr.bf16.mxu1 %v3511_v27 }
 0x276   : > { %v4518_v47 = vpop.f32.mrb[52].mxu0 }
 0x277   : > { %v4519_v45 = vpop.f32.mrb[53].mxu0 }
 0x278   : > { %v4520_v44 = vadd.f32 %v4519_v45, %v4518_v47  ;;  %v4521_v9 = vpop.f32.mrb[54].mxu0 }
 0x279   : > { %v4522_v51 = vpop.f32.mrb[55].mxu0 }
 0x27a   : > { %v3284_v54 = vadd.f32 %v4520_v44, %v6063_v46  ;;  %v4523_v36 = vadd.f32 %v4522_v51, %v4521_v9 }
 0x27c   : > { %v3445_v55 = vadd.f32 %v4626_v26, %v3284_v54  ;;  %v3287_v56 = vadd.f32 %v4523_v36, %v6063_v46 }
 0x27e   : > { %v3448_v58 = vadd.f32 %v4627_v31, %v3287_v56  ;;  %v3493_v50 = vmax.f32 %v3445_v55, 0.0 }
 0x280   : > { %v3494_v59 = vmax.f32 %v3448_v58, 0.0 }
 0x282   : > { %v3512_v0 = vpack.c.bf16 %v3494_v59, %v3493_v50  ;;  %v4524_v60 = vpop.f32.mrb[56].mxu0 }
 0x283   : > { %v4525_v22 = vpop.f32.mrb[57].mxu0 }
 0x284   : > { %4673 = vmatmul.mubr.bf16.gmra.mrb[56].mxu1 %v3512_v0  ;;  %v4526_v16 = vadd.f32 %v4525_v22, %v4524_v60  ;;  %v4527_v39 = vpop.f32.mrb[58].mxu0 }
 0x285   : > { %v4528_v35 = vpop.f32.mrb[59].mxu0 }
 0x286   : > { %v4529_v3 = vadd.f32 %v4528_v35, %v4527_v39  ;;  %v3292_v62 = vadd.f32 %v4526_v16, %v6063_v46 }
 0x288   : > { %v3453_v2 = vadd.f32 %v3452_v28, %v3292_v62  ;;  %v3295_v38 = vadd.f32 %v4529_v3, %v6063_v46 }
 0x28a   : > { %v3456_v57 = vadd.f32 %v3455_v21, %v3295_v38  ;;  %v3495_v14 = vmax.f32 %v3453_v2, 0.0 }
 0x28c   : > { %v3496_v52 = vmax.f32 %v3456_v57, 0.0 }
 0x28e   : > { %v3513_v4 = vpack.c.bf16 %v3496_v52, %v3495_v14  ;;  %v4530_v6 = vpop.f32.mrb[60].mxu0 }
 0x28f   : > { %v4531_v7 = vpop.f32.mrb[61].mxu0 }
 0x290   : > { %4676 = vmatprep.mubr.bf16.mxu1 %v3513_v4  ;;  %v4532_v10 = vadd.f32 %v4531_v7, %v4530_v6  ;;  %v4533_v26 = vpop.f32.mrb[62].mxu0 }
 0x291   : > { %v4534_v11 = vpop.f32.mrb[63].mxu0 }
 0x292   : > { %v3300_v12 = vadd.f32 %v4532_v10, %v6063_v46  ;;  %v4535_v13 = vadd.f32 %v4534_v11, %v4533_v26 }
 0x294   : > { %v3461_v15 = vadd.f32 %v4630_v24, %v3300_v12  ;;  %v3303_v48 = vadd.f32 %v4535_v13, %v6063_v46 }
 0x296   : > { %v3464_v31 = vadd.f32 %v4631_v29, %v3303_v48  ;;  %v3497_v61 = vmax.f32 %v3461_v15, 0.0 }
 0x298   : > { %v3498_v18 = vmax.f32 %v3464_v31, 0.0 }
 0x29a   : > { %v3514_v49 = vpack.c.bf16 %v3498_v18, %v3497_v61 }
 0x29c   : > { %4677 = vmatmul.mubr.bf16.gmra.mrb[60].mxu1 %v3514_v49 }
 0x2c2   : > { %v4650_v17 = vpop.f32.mrb[32].mxu1 }
 0x2c3   : > { %v3629_v46 = vadd.f32 %v4650_v17, %v6098_v1  ;;  %v3620_v20 = vpop.f32.mrb[33].mxu1 }
 0x2c4   : > { %v3621_v63 = vadd.f32 %v6098_v1, %v3620_v20  ;;  %v4651_v41 = vpop.f32.mrb[34].mxu1 }
 0x2c5   : > { %3749 = vst [vmem:[%s6103_s23 + $0x10] sm:$0xff] %v3629_v46  ;;  %v3632_v8 = vadd.f32 %v4651_v41, %v6098_v1  ;;  %v3623_v23 = vpop.f32.mrb[35].mxu1 }
 0x2c6   : > { %3747 = vst [vmem:[%s6103_s23] sm:$0xff] %v3621_v63  ;;  %v3624_v24 = vadd.f32 %v6098_v1, %v3623_v23 }
 0x2c7   : > { %3750 = vst [vmem:[%s6103_s23 + $0x18] sm:$0xff] %v3632_v8 }
 0x2c8   : > { %3748 = vst [vmem:[%s6103_s23 + $0x8] sm:$0xff] %v3624_v24 }
 0x2d5   : > { %v4654_v28 = vpop.f32.mrb[36].mxu1 }
 0x2d6   : > { %v3645_v29 = vadd.f32 %v4654_v28, %v6098_v1  ;;  %v3636_v21 = vpop.f32.mrb[37].mxu1 }
 0x2d7   : > { %v3637_v40 = vadd.f32 %v6098_v1, %v3636_v21  ;;  %v4655_v32 = vpop.f32.mrb[38].mxu1 }
 0x2d8   : > { %3753 = vst [vmem:[%s6103_s23 + $0x30] sm:$0xff] %v3645_v29  ;;  %v3648_v33 = vadd.f32 %v4655_v32, %v6098_v1  ;;  %v3639_v34 = vpop.f32.mrb[39].mxu1 }
 0x2d9   : > { %3751 = vst [vmem:[%s6103_s23 + $0x20] sm:$0xff] %v3637_v40  ;;  %v3640_v30 = vadd.f32 %v6098_v1, %v3639_v34 }
 0x2da   : > { %3754 = vst [vmem:[%s6103_s23 + $0x38] sm:$0xff] %v3648_v33 }
 0x2db   : > { %3752 = vst [vmem:[%s6103_s23 + $0x28] sm:$0xff] %v3640_v30 }
 0x2ed   : > { %v4658_v53 = vpop.f32.mrb[40].mxu1 }
 0x2ee   : > { %v3661_v25 = vadd.f32 %v4658_v53, %v6098_v1  ;;  %v3652_v5 = vpop.f32.mrb[41].mxu1 }
 0x2ef   : > { %v3653_v37 = vadd.f32 %v6098_v1, %v3652_v5  ;;  %v4659_v43 = vpop.f32.mrb[42].mxu1 }
 0x2f0   : > { %3757 = vst [vmem:[%s6103_s23 + $0x50] sm:$0xff] %v3661_v25  ;;  %v3664_v19 = vadd.f32 %v4659_v43, %v6098_v1  ;;  %v3655_v42 = vpop.f32.mrb[43].mxu1 }
 0x2f1   : > { %3755 = vst [vmem:[%s6103_s23 + $0x40] sm:$0xff] %v3653_v37  ;;  %v3656_v27 = vadd.f32 %v6098_v1, %v3655_v42 }
 0x2f2   : > { %3758 = vst [vmem:[%s6103_s23 + $0x58] sm:$0xff] %v3664_v19 }
 0x2f3   : > { %3756 = vst [vmem:[%s6103_s23 + $0x48] sm:$0xff] %v3656_v27 }
 0x30a   : > { %v4662_v47 = vpop.f32.mrb[44].mxu1 }
 0x30b   : > { %v3677_v45 = vadd.f32 %v4662_v47, %v6098_v1  ;;  %v3668_v44 = vpop.f32.mrb[45].mxu1 }
 0x30c   : > { %v3669_v9 = vadd.f32 %v6098_v1, %v3668_v44  ;;  %v4663_v51 = vpop.f32.mrb[46].mxu1 }
 0x30d   : > { %3761 = vst [vmem:[%s6103_s23 + $0x70] sm:$0xff] %v3677_v45  ;;  %v3680_v54 = vadd.f32 %v4663_v51, %v6098_v1  ;;  %v3671_v36 = vpop.f32.mrb[47].mxu1 }
 0x30e   : > { %3759 = vst [vmem:[%s6103_s23 + $0x60] sm:$0xff] %v3669_v9  ;;  %v3672_v55 = vadd.f32 %v6098_v1, %v3671_v36 }
 0x30f   : > { %3762 = vst [vmem:[%s6103_s23 + $0x78] sm:$0xff] %v3680_v54 }
 0x310   : > { %3760 = vst [vmem:[%s6103_s23 + $0x68] sm:$0xff] %v3672_v55 }
 0x31d   : > { %v4666_v56 = vpop.f32.mrb[48].mxu1 }
 0x31e   : > { %v3693_v58 = vadd.f32 %v4666_v56, %v6098_v1  ;;  %v3684_v50 = vpop.f32.mrb[49].mxu1 }
 0x31f   : > { %v3685_v59 = vadd.f32 %v6098_v1, %v3684_v50  ;;  %v4667_v0 = vpop.f32.mrb[50].mxu1 }
 0x320   : > { %3765 = vst [vmem:[%s6103_s23 + $0x90] sm:$0xff] %v3693_v58  ;;  %v3696_v60 = vadd.f32 %v4667_v0, %v6098_v1  ;;  %v3687_v22 = vpop.f32.mrb[51].mxu1 }
 0x321   : > { %3763 = vst [vmem:[%s6103_s23 + $0x80] sm:$0xff] %v3685_v59  ;;  %v3688_v16 = vadd.f32 %v6098_v1, %v3687_v22 }
 0x322   : > { %3766 = vst [vmem:[%s6103_s23 + $0x98] sm:$0xff] %v3696_v60 }
 0x323   : > { %3764 = vst [vmem:[%s6103_s23 + $0x88] sm:$0xff] %v3688_v16 }
 0x336   : > { %v4670_v39 = vpop.f32.mrb[52].mxu1 }
 0x337   : > { %v3709_v35 = vadd.f32 %v4670_v39, %v6098_v1  ;;  %v3700_v3 = vpop.f32.mrb[53].mxu1 }
 0x338   : > { %v3701_v62 = vadd.f32 %v6098_v1, %v3700_v3  ;;  %v4671_v2 = vpop.f32.mrb[54].mxu1 }
 0x339   : > { %3769 = vst [vmem:[%s6103_s23 + $0xb0] sm:$0xff] %v3709_v35  ;;  %v3712_v38 = vadd.f32 %v4671_v2, %v6098_v1  ;;  %v3703_v57 = vpop.f32.mrb[55].mxu1 }
 0x33a   : > { %3767 = vst [vmem:[%s6103_s23 + $0xa0] sm:$0xff] %v3701_v62  ;;  %v3704_v14 = vadd.f32 %v6098_v1, %v3703_v57 }
 0x33b   : > { %3770 = vst [vmem:[%s6103_s23 + $0xb8] sm:$0xff] %v3712_v38 }
 0x33c   : > { %3768 = vst [vmem:[%s6103_s23 + $0xa8] sm:$0xff] %v3704_v14 }
 0x357   : > { %v4674_v52 = vpop.f32.mrb[56].mxu1 }
 0x358   : > { %v3725_v4 = vadd.f32 %v4674_v52, %v6098_v1  ;;  %v3716_v6 = vpop.f32.mrb[57].mxu1 }
 0x359   : > { %v3717_v7 = vadd.f32 %v6098_v1, %v3716_v6  ;;  %v4675_v10 = vpop.f32.mrb[58].mxu1 }
 0x35a   : > { %3773 = vst [vmem:[%s6103_s23 + $0xd0] sm:$0xff] %v3725_v4  ;;  %v3728_v26 = vadd.f32 %v4675_v10, %v6098_v1  ;;  %v3719_v11 = vpop.f32.mrb[59].mxu1 }
 0x35b   : > { %3771 = vst [vmem:[%s6103_s23 + $0xc0] sm:$0xff] %v3717_v7  ;;  %v3720_v12 = vadd.f32 %v6098_v1, %v3719_v11 }
 0x35c   : > { %3774 = vst [vmem:[%s6103_s23 + $0xd8] sm:$0xff] %v3728_v26 }
 0x35d   : > { %3772 = vst [vmem:[%s6103_s23 + $0xc8] sm:$0xff] %v3720_v12 }
 0x36f   : > { %v4678_v13 = vpop.f32.mrb[60].mxu1 }
 0x370   : > { %v3741_v15 = vadd.f32 %v4678_v13, %v6098_v1  ;;  %v3732_v48 = vpop.f32.mrb[61].mxu1 }
 0x371   : > { %v3733_v31 = vadd.f32 %v6098_v1, %v3732_v48  ;;  %v4679_v61 = vpop.f32.mrb[62].mxu1 }
 0x372   : > { %3777 = vst [vmem:[%s6103_s23 + $0xf0] sm:$0xff] %v3741_v15  ;;  %v3744_v18 = vadd.f32 %v4679_v61, %v6098_v1  ;;  %v3735_v49 = vpop.f32.mrb[63].mxu1 }
 0x373   : > { %3775 = vst [vmem:[%s6103_s23 + $0xe0] sm:$0xff] %v3733_v31  ;;  %v3736_v17 = vadd.f32 %v6098_v1, %v3735_v49 }
 0x374   : > { %3778 = vst [vmem:[%s6103_s23 + $0xf8] sm:$0xff] %v3744_v18 }
 0x375   : > { %3776 = vst [vmem:[%s6103_s23 + $0xe8] sm:$0xff] %v3736_v17 }
 0x376 PF: > { %s18_s18 = sadd.s32 1, %s5138_s18  }
 0x377   : > { %p15_p6 = scmp.ge.s32.totalorder %s18_s18, 4  }
 0x379   :  { %17 = sbr.rel (!%p15_p6) target bundleno = 3 (0x3), region = 89 }
 0x380   :  { %3800 = vsyncpa [#allocation4], 1 }
 0x381   :  { %3802 = vsyncpa [#allocation4 + $0x1], 1 }
 0x382   :  { %3803 = vsyncpa [#allocation6], 1 }
 0x383   :  { %3804 = vsyncpa [#allocation9], 1 }

// kernel: squeeze.68
= control target key start
LH: loop header
LB: loop body
LE: loop exit
PB: predicated region body
PF: predicated region fallthrough
CT: control target
= control target key end

     0   :  { %s328_s0 = inlined_call_operand.vmem [shape: f32[2,2304], index: 0, kind: input, shape index: {}]   ;;  %s329_s1 = inlined_call_operand.vmem [shape: f32[2,18,128], index: 1, kind: output, shape index: {}]  }
   0x1   :  { %v176_v0 = vld [vmem:[%s328_s0 + $0x22] sm:$0x3]  ;;  %v177_v1 = vld [vmem:[%s328_s0 + $0x20] sm:$0x3]  ;;  %v178_v2 = vld [vmem:[%s328_s0 + $0x1e] sm:$0x3] }
   0x2   :  { %8 = vst [vmem:[#allocation0 + $0x88] sm:$0x3] %v176_v0  ;;  %13 = vst [vmem:[#allocation0 + $0x80] sm:$0x3] %v177_v1  ;;  %v179_v3 = vld [vmem:[%s328_s0 + $0x1c] sm:$0x3] }
   0x3   :  { %18 = vst [vmem:[#allocation0 + $0x78] sm:$0x3] %v178_v2  ;;  %v180_v4 = vld [vmem:[%s328_s0 + $0x1a] sm:$0x3]  ;;  %v181_v5 = vld [vmem:[%s328_s0 + $0x18] sm:$0x3] }
   0x4   :  { %23 = vst [vmem:[#allocation0 + $0x70] sm:$0x3] %v179_v3  ;;  %28 = vst [vmem:[#allocation0 + $0x68] sm:$0x3] %v180_v4  ;;  %v182_v6 = vld [vmem:[%s328_s0 + $0x16] sm:$0x3] }
   0x5   :  { %33 = vst [vmem:[#allocation0 + $0x60] sm:$0x3] %v181_v5  ;;  %v183_v7 = vld [vmem:[%s328_s0 + $0x14] sm:$0x3]  ;;  %v184_v8 = vld [vmem:[%s328_s0 + $0x12] sm:$0x3] }
   0x6   :  { %38 = vst [vmem:[#allocation0 + $0x58] sm:$0x3] %v182_v6  ;;  %43 = vst [vmem:[#allocation0 + $0x50] sm:$0x3] %v183_v7  ;;  %v185_v9 = vld [vmem:[%s328_s0 + $0x10] sm:$0x3] }
   0x7   :  { %48 = vst [vmem:[#allocation0 + $0x48] sm:$0x3] %v184_v8  ;;  %v186_v10 = vld [vmem:[%s328_s0 + $0xe] sm:$0x3]  ;;  %v187_v11 = vld [vmem:[%s328_s0 + $0xc] sm:$0x3] }
   0x8   :  { %53 = vst [vmem:[#allocation0 + $0x40] sm:$0x3] %v185_v9  ;;  %58 = vst [vmem:[#allocation0 + $0x38] sm:$0x3] %v186_v10  ;;  %v188_v12 = vld [vmem:[%s328_s0 + $0xa] sm:$0x3] }
   0x9   :  { %63 = vst [vmem:[#allocation0 + $0x30] sm:$0x3] %v187_v11  ;;  %v189_v13 = vld [vmem:[%s328_s0 + $0x8] sm:$0x3]  ;;  %v190_v14 = vld [vmem:[%s328_s0 + $0x6] sm:$0x3] }
   0xa   :  { %68 = vst [vmem:[#allocation0 + $0x28] sm:$0x3] %v188_v12  ;;  %73 = vst [vmem:[#allocation0 + $0x20] sm:$0x3] %v189_v13  ;;  %v191_v15 = vld [vmem:[%s328_s0 + $0x4] sm:$0x3] }
   0xb   :  { %78 = vst [vmem:[#allocation0 + $0x18] sm:$0x3] %v190_v14  ;;  %v192_v16 = vld [vmem:[%s328_s0 + $0x2] sm:$0x3]  ;;  %v88_v17 = vld [vmem:[%s328_s0] sm:$0x3] }
   0xc   :  { %83 = vst [vmem:[#allocation0 + $0x10] sm:$0x3] %v191_v15  ;;  %87 = vst [vmem:[#allocation0 + $0x8] sm:$0x3] %v192_v16  ;;  %v149_v18 = vld [vmem:[#allocation0 + $0x78] sm:$0x3]  }
   0xd   :  { %89 = vst [vmem:[#allocation0] sm:$0x3] %v88_v17  ;;  %v153_v19 = vld [vmem:[#allocation0 + $0x80] sm:$0x3]   ;;  %v157_v20 = vld [vmem:[#allocation0 + $0x88] sm:$0x3]  }
   0xe   :  { %v137_v21 = vld [vmem:[#allocation0 + $0x60] sm:$0x3]   ;;  %v141_v22 = vld [vmem:[#allocation0 + $0x68] sm:$0x3]   ;;  %v145_v23 = vld [vmem:[#allocation0 + $0x70] sm:$0x3]  }
   0xf   :  { %207 = vst [vmem:[%s329_s1 + $0xf] ss:$24 sm:$0x3] %v149_v18   ;;  %208 = vst [vmem:[%s329_s1 + $0x10] ss:$24 sm:$0x3] %v153_v19  }
  0x10   :  { %209 = vst [vmem:[%s329_s1 + $0x11] ss:$24 sm:$0x3] %v157_v20   ;;  %v125_v24 = vld [vmem:[#allocation0 + $0x48] sm:$0x3]  }
  0x11   :  { %v129_v25 = vld [vmem:[#allocation0 + $0x50] sm:$0x3]   ;;  %v133_v26 = vld [vmem:[#allocation0 + $0x58] sm:$0x3]   ;;  %v121_v29 = vld [vmem:[#allocation0 + $0x40] sm:$0x3]  }
  0x12   :  { %204 = vst [vmem:[%s329_s1 + $0xc] ss:$24 sm:$0x3] %v137_v21   ;;  %205 = vst [vmem:[%s329_s1 + $0xd] ss:$24 sm:$0x3] %v141_v22  }
  0x13   :  { %206 = vst [vmem:[%s329_s1 + $0xe] ss:$24 sm:$0x3] %v145_v23   ;;  %v113_v27 = vld [vmem:[#allocation0 + $0x30] sm:$0x3]  }
  0x14   :  { %v117_v28 = vld [vmem:[#allocation0 + $0x38] sm:$0x3]   ;;  %201 = vst [vmem:[%s329_s1 + $0x9] ss:$24 sm:$0x3] %v125_v24  }
  0x15   :  { %202 = vst [vmem:[%s329_s1 + $0xa] ss:$24 sm:$0x3] %v129_v25   ;;  %203 = vst [vmem:[%s329_s1 + $0xb] ss:$24 sm:$0x3] %v133_v26  }
  0x16   :  { %v101_v30 = vld [vmem:[#allocation0 + $0x18] sm:$0x3]   ;;  %v105_v31 = vld [vmem:[#allocation0 + $0x20] sm:$0x3]   ;;  %v109_v32 = vld [vmem:[#allocation0 + $0x28] sm:$0x3]  }
  0x17   :  { %198 = vst [vmem:[%s329_s1 + $0x6] ss:$24 sm:$0x3] %v113_v27   ;;  %199 = vst [vmem:[%s329_s1 + $0x7] ss:$24 sm:$0x3] %v117_v28  }
  0x18   :  { %200 = vst [vmem:[%s329_s1 + $0x8] ss:$24 sm:$0x3] %v121_v29   ;;  %v90_v33 = vld [vmem:[#allocation0] sm:$0x3]  }
  0x19   :  { %v93_v34 = vld [vmem:[#allocation0 + $0x8] sm:$0x3]   ;;  %v97_v35 = vld [vmem:[#allocation0 + $0x10] sm:$0x3]   ;;  %91 = vst [vmem:[%s329_s1] ss:$24 sm:$0x3] %v90_v33  }
  0x1a   :  { %195 = vst [vmem:[%s329_s1 + $0x3] ss:$24 sm:$0x3] %v101_v30   ;;  %196 = vst [vmem:[%s329_s1 + $0x4] ss:$24 sm:$0x3] %v105_v31  }
  0x1b   :  { %197 = vst [vmem:[%s329_s1 + $0x5] ss:$24 sm:$0x3] %v109_v32   ;;  %193 = vst [vmem:[%s329_s1 + $0x1] ss:$24 sm:$0x3] %v93_v34  }
  0x1c   :  { %194 = vst [vmem:[%s329_s1 + $0x2] ss:$24 sm:$0x3] %v97_v35  }

// kernel: faster_rcnn_trainer_forward.8
= control target key start
LH: loop header
LB: loop body
LE: loop exit
PB: predicated region body
PF: predicated region fallthrough
CT: control target
= control target key end

     0   :  { %s928_s18 = smov 0   ;;  %s1031_s0 = inlined_call_operand.vmem [shape: bf16[256,128], index: 0, kind: input, shape index: {}]   ;;  %s1032_s1 = inlined_call_operand.vmem [shape: bf16[128,128], index: 1, kind: input, shape index: {}]   ;;  %s1033_s2 = inlined_call_operand.vmem [shape: f32[1,128], index: 2, kind: input, shape index: {}]   ;;  %s1034_s3 = inlined_call_operand.vmem [shape: bf16[128,128], index: 3, kind: input, shape index: {}]   ;;  %s1035_s4 = inlined_call_operand.vmem [shape: f32[1,128], index: 4, kind: input, shape index: {}]   ;;  %s1036_s5 = inlined_call_operand.vmem [shape: f32[256,128], index: 5, kind: output, shape index: {}]  }
   0x1 LB: > { %s725_s19 = sadd.s32 4294967295, %s896_s18   ;;  %p729_p0 = scmp.ge.s32.totalorder %s896_s18, 1  ;;  %s896_s18 = sphi %s928_s18, %s15_s18  }
   0x2   : > { %p188_p1 = scmp.lt.s32.totalorder %s896_s18, 3 }
   0x4   : > { %p189_p2 = pnand %p729_p0, %p188_p1 }
   0x5   : > { %v866_v0 = vld [vmem:[%s1032_s1] sm:$0xff] (!%p189_p2)   ;;  %s730_s22 = sshll.u32 (!%p189_p2), %s725_s19, 4  ;;  %v867_v1 = vld [vmem:[%s1032_s1 + $0x8] sm:$0xff] (!%p189_p2)   ;;  %v868_v2 = vld [vmem:[%s1032_s1 + $0x10] sm:$0xff] (!%p189_p2)  }
   0x6   : > { %192 = sbr.rel (%p189_p2) target bundleno = 502 (0x1f6), region = 40  ;;  %p217_p3 = scmp.lt.s32.totalorder (!%p189_p2), %s730_s22, 31  ;;  %794 = vmatprep.subr.bf16.mxu0 (!%p189_p2), %v866_v0  ;;  %v869_v3 = vld [vmem:[%s1032_s1 + $0x18] sm:$0xff] (!%p189_p2)   ;;  %v870_v5 = vld [vmem:[%s1032_s1 + $0x20] sm:$0xff] (!%p189_p2)   ;;  %v871_v6 = vld [vmem:[%s1032_s1 + $0x28] sm:$0xff] (!%p189_p2)  }
   0x7   : > { %795 = vmatpush3.bf16.msra.mxu0 (!%p189_p2), %v866_v0  ;;  %v882_v7 = vld [vmem:[%s1034_s3] sm:$0xff] (!%p189_p2)   ;;  %v883_v8 = vld [vmem:[%s1034_s3 + $0x8] sm:$0xff] (!%p189_p2)   ;;  %v872_v9 = vld [vmem:[%s1032_s1 + $0x30] sm:$0xff] (!%p189_p2)  }
   0x8   : > { %796 = vmatprep.subr.bf16.mxu0 (!%p189_p2), %v867_v1  ;;  %826 = vmatprep.subr.bf16.mxu1 (!%p189_p2), %v882_v7  ;;  %v884_v10 = vld [vmem:[%s1034_s3 + $0x10] sm:$0xff] (!%p189_p2)   ;;  %v873_v11 = vld [vmem:[%s1032_s1 + $0x38] sm:$0xff] (!%p189_p2)   ;;  %v886_v13 = vld [vmem:[%s1034_s3 + $0x20] sm:$0xff] (!%p189_p2)  }
   0x9   : > { %827 = vmatpush3.bf16.msra.mxu1 (!%p189_p2), %v882_v7  ;;  %v885_v12 = vld [vmem:[%s1034_s3 + $0x18] sm:$0xff] (!%p189_p2)   ;;  %v887_v16 = vld [vmem:[%s1034_s3 + $0x28] sm:$0xff] (!%p189_p2)   ;;  %v888_v22 = vld [vmem:[%s1034_s3 + $0x30] sm:$0xff] (!%p189_p2)  }
   0xa   : > { %828 = vmatprep.subr.bf16.mxu1 (!%p189_p2), %v883_v8  ;;  %v889_v23 = vld [vmem:[%s1034_s3 + $0x38] sm:$0xff] (!%p189_p2)   ;;  %v734_v24 = vld [vmem:[%s1033_s2] ss:$0 sm:$0xff] (!%p189_p2) }
   0xb   : > { %797 = vmatpush3.bf16.msra.mxu0 (!%p189_p2), %v867_v1 }
   0xc   : > { %798 = vmatprep.subr.bf16.mxu0 (!%p189_p2), %v868_v2 }
   0xd   : > { %s1038_s22 = smov (!%p217_p3, %s730_s22), 31  ;;  %829 = vmatpush3.bf16.msra.mxu1 %v883_v8 }
   0xe   : > { %s731_s27 = sshll.u32 %s1038_s22, 2  ;;  %830 = vmatprep.subr.bf16.mxu1 %v884_v10 }
   0xf   : > { %s951_s30 = scalar_lea.vmem %s1031_s0, %s731_s27  ;;  %799 = vmatpush3.bf16.msra.mxu0 %v868_v2 }
  0x10   : > { %v874_v4 = vld [vmem:[%s951_s30] sm:$0xff]   ;;  %800 = vmatprep.subr.bf16.mxu0 %v869_v3  ;;  %v875_v14 = vld [vmem:[%s951_s30 + $0x8] sm:$0xff]   ;;  %v876_v15 = vld [vmem:[%s951_s30 + $0x10] sm:$0xff]  }
  0x11   : > { %810 = vmatprep.mubr.bf16.mxu0 %v874_v4  ;;  %831 = vmatpush3.bf16.msra.mxu1 %v884_v10  ;;  %v877_v17 = vld [vmem:[%s951_s30 + $0x18] sm:$0xff]   ;;  %v878_v18 = vld [vmem:[%s951_s30 + $0x20] sm:$0xff]   ;;  %v879_v19 = vld [vmem:[%s951_s30 + $0x28] sm:$0xff]  }
  0x12   : > { %832 = vmatprep.subr.bf16.mxu1 %v885_v12  ;;  %v880_v20 = vld [vmem:[%s951_s30 + $0x30] sm:$0xff]   ;;  %v881_v21 = vld [vmem:[%s951_s30 + $0x38] sm:$0xff]   ;;  %s733_s30 = sshll.u32 %s1038_s22, 3 }
  0x13   : > { %801 = vmatpush3.bf16.msra.mxu0 %v869_v3  ;;  %s1010_s16 = scalar_lea.vmem %s1036_s5, %s733_s30 }
  0x14   : > { %802 = vmatprep.subr.bf16.mxu0 %v870_v5 }
  0x15   : > { %833 = vmatpush3.bf16.msra.mxu1 %v885_v12 }
  0x16   : > { %834 = vmatprep.subr.bf16.mxu1 %v886_v13 }
  0x17   : > { %803 = vmatpush3.bf16.msra.mxu0 %v870_v5 }
  0x18   : > { %804 = vmatprep.subr.bf16.mxu0 %v871_v6 }
  0x19   : > { %835 = vmatpush3.bf16.msra.mxu1 %v886_v13 }
  0x1a   : > { %836 = vmatprep.subr.bf16.mxu1 %v887_v16 }
  0x1b   : > { %805 = vmatpush3.bf16.msra.mxu0 %v871_v6 }
  0x1c   : > { %806 = vmatprep.subr.bf16.mxu0 %v872_v9 }
  0x1d   : > { %837 = vmatpush3.bf16.msra.mxu1 %v887_v16 }
  0x1e   : > { %838 = vmatprep.subr.bf16.mxu1 %v888_v22 }
  0x1f   : > { %807 = vmatpush3.bf16.msra.mxu0 %v872_v9 }
  0x20   : > { %808 = vmatprep.subr.bf16.mxu0 %v873_v11 }
  0x21   : > { %839 = vmatpush3.bf16.msra.mxu1 %v888_v22 }
  0x22   : > { %840 = vmatprep.subr.bf16.mxu1 %v889_v23 }
  0x23   : > { %809 = vmatpush3.bf16.msra.mxu0 %v873_v11 }
  0x25   : > { %841 = vmatpush3.bf16.msra.mxu1 %v889_v23 }
  0x26   : > { %811 = vmatmul.mubr.bf16.vlgmr.msra.gmra.mrb[0].mxu0 %v875_v14 }
  0x27   : > { %814 = vmatprep.mubr.bf16.mxu0 %v876_v15 }
  0x2e   : > { %815 = vmatmul.mubr.bf16.gmra.mrb[4].mxu0 %v877_v17  ;;  %v751_v17 = vld [vmem:[%s1035_s4] ss:$0 sm:$0xff] }
  0x2f   : > { %818 = vmatprep.mubr.bf16.mxu0 %v878_v18 }
  0x36   : > { %819 = vmatmul.mubr.bf16.gmra.mrb[8].mxu0 %v879_v19 }
  0x37   : > { %822 = vmatprep.mubr.bf16.mxu0 %v880_v20 }
  0x3e   : > { %823 = vmatmul.mubr.bf16.gmra.mrb[12].mxu0 %v881_v21 }
  0xf9   : > { %v812_v25 = vpop.f32.mrb[0].mxu0 }
  0xfa   : > { %v407_v26 = vadd.f32 %v812_v25, %v734_v24  ;;  %v398_v27 = vpop.f32.mrb[1].mxu0 }
  0xfb   : > { %v399_v28 = vadd.f32 %v734_v24, %v398_v27  ;;  %v813_v29 = vpop.f32.mrb[2].mxu0 }
  0xfc   : > { %v410_v30 = vadd.f32 %v813_v29, %v734_v24  ;;  %v401_v31 = vpop.f32.mrb[3].mxu0  ;;  %v463_v33 = vmax.f32 %v407_v26, 0.0 }
  0xfd   : > { %v402_v32 = vadd.f32 %v734_v24, %v401_v31  ;;  %v461_v35 = vmax.f32 %v399_v28, 0.0 }
  0xfe   : > { %v464_v34 = vmax.f32 %v410_v30, 0.0 }
  0xff   : > { %v462_v36 = vmax.f32 %v402_v32, 0.0 }
 0x100   : > { %v478_v37 = vpack.c.bf16 %v464_v34, %v463_v33 }
 0x101   : > { %v816_v38 = vpop.f32.mrb[4].mxu0  ;;  %v477_v39 = vpack.c.bf16 %v462_v36, %v461_v35 }
 0x102   : > { %v423_v40 = vadd.f32 %v816_v38, %v734_v24  ;;  %v414_v41 = vpop.f32.mrb[5].mxu0 }
 0x103   : > { %v415_v42 = vadd.f32 %v734_v24, %v414_v41  ;;  %v817_v43 = vpop.f32.mrb[6].mxu0  ;;  %842 = vmatprep.mubr.bf16.mxu1 %v477_v39 }
 0x104   : > { %v426_v44 = vadd.f32 %v817_v43, %v734_v24  ;;  %v417_v45 = vpop.f32.mrb[7].mxu0  ;;  %843 = vmatmul.mubr.bf16.vlgmr.msra.gmra.mrb[0].mxu1 %v478_v37  ;;  %v467_v47 = vmax.f32 %v423_v40, 0.0 }
 0x105   : > { %v418_v46 = vadd.f32 %v734_v24, %v417_v45  ;;  %v465_v49 = vmax.f32 %v415_v42, 0.0 }
 0x106   : > { %v468_v48 = vmax.f32 %v426_v44, 0.0 }
 0x107   : > { %v466_v50 = vmax.f32 %v418_v46, 0.0 }
 0x108   : > { %v480_v51 = vpack.c.bf16 %v468_v48, %v467_v47 }
 0x109   : > { %v479_v52 = vpack.c.bf16 %v466_v50, %v465_v49  ;;  %v820_v53 = vpop.f32.mrb[8].mxu0 }
 0x10a   : > { %v439_v54 = vadd.f32 %v820_v53, %v734_v24  ;;  %v430_v55 = vpop.f32.mrb[9].mxu0 }
 0x10b   : > { %v431_v56 = vadd.f32 %v734_v24, %v430_v55  ;;  %v821_v57 = vpop.f32.mrb[10].mxu0  ;;  %846 = vmatprep.mubr.bf16.mxu1 %v479_v52 }
 0x10c   : > { %v442_v58 = vadd.f32 %v821_v57, %v734_v24  ;;  %v433_v59 = vpop.f32.mrb[11].mxu0  ;;  %847 = vmatmul.mubr.bf16.gmra.mrb[4].mxu1 %v480_v51  ;;  %v471_v61 = vmax.f32 %v439_v54, 0.0 }
 0x10d   : > { %v434_v60 = vadd.f32 %v734_v24, %v433_v59  ;;  %v469_v63 = vmax.f32 %v431_v56, 0.0 }
 0x10e   : > { %v472_v62 = vmax.f32 %v442_v58, 0.0 }
 0x10f   : > { %v470_v0 = vmax.f32 %v434_v60, 0.0 }
 0x110   : > { %v482_v1 = vpack.c.bf16 %v472_v62, %v471_v61 }
 0x111   : > { %v481_v2 = vpack.c.bf16 %v470_v0, %v469_v63  ;;  %v824_v3 = vpop.f32.mrb[12].mxu0 }
 0x112   : > { %v455_v4 = vadd.f32 %v824_v3, %v734_v24  ;;  %v446_v5 = vpop.f32.mrb[13].mxu0 }
 0x113   : > { %v447_v6 = vadd.f32 %v734_v24, %v446_v5  ;;  %v825_v7 = vpop.f32.mrb[14].mxu0  ;;  %850 = vmatprep.mubr.bf16.mxu1 %v481_v2 }
 0x114   : > { %v458_v8 = vadd.f32 %v825_v7, %v734_v24  ;;  %v449_v9 = vpop.f32.mrb[15].mxu0  ;;  %851 = vmatmul.mubr.bf16.gmra.mrb[8].mxu1 %v482_v1  ;;  %v475_v11 = vmax.f32 %v455_v4, 0.0 }
 0x115   : > { %v450_v10 = vadd.f32 %v734_v24, %v449_v9  ;;  %v473_v13 = vmax.f32 %v447_v6, 0.0 }
 0x116   : > { %v476_v12 = vmax.f32 %v458_v8, 0.0 }
 0x117   : > { %v474_v14 = vmax.f32 %v450_v10, 0.0 }
 0x118   : > { %v484_v15 = vpack.c.bf16 %v476_v12, %v475_v11 }
 0x119   : > { %v483_v16 = vpack.c.bf16 %v474_v14, %v473_v13 }
 0x11b   : > { %854 = vmatprep.mubr.bf16.mxu1 %v483_v16 }
 0x11c   : > { %855 = vmatmul.mubr.bf16.gmra.mrb[12].mxu1 %v484_v15 }
 0x1d7   : > { %v844_v18 = vpop.f32.mrb[0].mxu1 }
 0x1d8   : > { %v599_v19 = vadd.f32 %v844_v18, %v751_v17  ;;  %v590_v20 = vpop.f32.mrb[1].mxu1 }
 0x1d9   : > { %v591_v21 = vadd.f32 %v751_v17, %v590_v20  ;;  %v845_v22 = vpop.f32.mrb[2].mxu1 }
 0x1da   : > { %655 = vst [vmem:[%s1010_s16 + $0x10] sm:$0xff] %v599_v19  ;;  %v602_v23 = vadd.f32 %v845_v22, %v751_v17  ;;  %v593_v24 = vpop.f32.mrb[3].mxu1 }
 0x1db   : > { %653 = vst [vmem:[%s1010_s16] sm:$0xff] %v591_v21  ;;  %v594_v25 = vadd.f32 %v751_v17, %v593_v24 }
 0x1dc   : > { %656 = vst [vmem:[%s1010_s16 + $0x18] sm:$0xff] %v602_v23 }
 0x1dd   : > { %654 = vst [vmem:[%s1010_s16 + $0x8] sm:$0xff] %v594_v25 }
 0x1df   : > { %v848_v26 = vpop.f32.mrb[4].mxu1 }
 0x1e0   : > { %v615_v27 = vadd.f32 %v848_v26, %v751_v17  ;;  %v606_v28 = vpop.f32.mrb[5].mxu1 }
 0x1e1   : > { %v607_v29 = vadd.f32 %v751_v17, %v606_v28  ;;  %v849_v30 = vpop.f32.mrb[6].mxu1 }
 0x1e2   : > { %659 = vst [vmem:[%s1010_s16 + $0x30] sm:$0xff] %v615_v27  ;;  %v618_v31 = vadd.f32 %v849_v30, %v751_v17  ;;  %v609_v32 = vpop.f32.mrb[7].mxu1 }
 0x1e3   : > { %657 = vst [vmem:[%s1010_s16 + $0x20] sm:$0xff] %v607_v29  ;;  %v610_v33 = vadd.f32 %v751_v17, %v609_v32 }
 0x1e4   : > { %660 = vst [vmem:[%s1010_s16 + $0x38] sm:$0xff] %v618_v31 }
 0x1e5   : > { %658 = vst [vmem:[%s1010_s16 + $0x28] sm:$0xff] %v610_v33 }
 0x1e7   : > { %v852_v34 = vpop.f32.mrb[8].mxu1 }
 0x1e8   : > { %v631_v35 = vadd.f32 %v852_v34, %v751_v17  ;;  %v622_v36 = vpop.f32.mrb[9].mxu1 }
 0x1e9   : > { %v623_v37 = vadd.f32 %v751_v17, %v622_v36  ;;  %v853_v38 = vpop.f32.mrb[10].mxu1 }
 0x1ea   : > { %663 = vst [vmem:[%s1010_s16 + $0x50] sm:$0xff] %v631_v35  ;;  %v634_v39 = vadd.f32 %v853_v38, %v751_v17  ;;  %v625_v40 = vpop.f32.mrb[11].mxu1 }
 0x1eb   : > { %661 = vst [vmem:[%s1010_s16 + $0x40] sm:$0xff] %v623_v37  ;;  %v626_v41 = vadd.f32 %v751_v17, %v625_v40 }
 0x1ec   : > { %664 = vst [vmem:[%s1010_s16 + $0x58] sm:$0xff] %v634_v39 }
 0x1ed   : > { %662 = vst [vmem:[%s1010_s16 + $0x48] sm:$0xff] %v626_v41 }
 0x1ef   : > { %v856_v42 = vpop.f32.mrb[12].mxu1 }
 0x1f0   : > { %v647_v43 = vadd.f32 %v856_v42, %v751_v17  ;;  %v638_v44 = vpop.f32.mrb[13].mxu1 }
 0x1f1   : > { %v639_v45 = vadd.f32 %v751_v17, %v638_v44  ;;  %v857_v46 = vpop.f32.mrb[14].mxu1 }
 0x1f2   : > { %667 = vst [vmem:[%s1010_s16 + $0x70] sm:$0xff] %v647_v43  ;;  %v650_v47 = vadd.f32 %v857_v46, %v751_v17  ;;  %v641_v48 = vpop.f32.mrb[15].mxu1 }
 0x1f3   : > { %665 = vst [vmem:[%s1010_s16 + $0x60] sm:$0xff] %v639_v45  ;;  %v642_v49 = vadd.f32 %v751_v17, %v641_v48 }
 0x1f4   : > { %668 = vst [vmem:[%s1010_s16 + $0x78] sm:$0xff] %v650_v47 }
 0x1f5   : > { %666 = vst [vmem:[%s1010_s16 + $0x68] sm:$0xff] %v642_v49 }
 0x1f6 PF: > { %s15_s18 = sadd.s32 1, %s896_s18  }
 0x1f7   : > { %p12_p4 = scmp.ge.s32.totalorder %s15_s18, 4  }
 0x1f9   :  { %14 = sbr.rel (!%p12_p4) target bundleno = 1 (0x1), region = 70 }

// kernel: faster_rcnn_trainer_forward.9
= control target key start
LH: loop header
LB: loop body
LE: loop exit
PB: predicated region body
PF: predicated region fallthrough
CT: control target
= control target key end

     0   :  { %s638_s21 = smov 0   ;;  %s689_s0 = inlined_call_operand.vmem [shape: f32[2,4,128], index: 0, kind: input, shape index: {}]   ;;  %s690_s1 = inlined_call_operand.vmem [shape: f32[2,4,128], index: 1, kind: input, shape index: {}]   ;;  %s691_s2 = inlined_call_operand.vmem [shape: f32[2,1,128], index: 2, kind: input, shape index: {}]   ;;  %s692_s3 = inlined_call_operand.vmem [shape: f32[2,5,128], index: 3, kind: input, shape index: {}]   ;;  %s693_s4 = inlined_call_operand.vmem [shape: s32[2,1,128], index: 4, kind: input, shape index: {}]   ;;  %s694_s5 = inlined_call_operand.vmem [shape: f32[2,1,128], index: 5, kind: input, shape index: {}]   ;;  %s695_s6 = inlined_call_operand.vmem [shape: f32[2,8,128], index: 6, kind: output, shape index: {}]  }
   0x1 LB: > { %s549_s22 = sadd.s32 4294967295, %s599_s21   ;;  %p553_p0 = scmp.ge.s32.totalorder %s599_s21, 1  ;;  %s599_s21 = sphi %s638_s21, %s16_s21  }
   0x2   : > { %p253_p1 = scmp.lt.s32.totalorder %s599_s21, 3 }
   0x4   : > { %p254_p2 = pnand %p553_p0, %p253_p1 }
   0x5   : > { %p298_p3 = scmp.lt.s32.totalorder (!%p254_p2), %s549_s22, 1  ;;  %vm340_vm0 = vcmask (!%p254_p2), 1040384   ;;  %v334_v0 = vlaneseq (!%p254_p2)  ;;  %vm370_vm1 = vcmask (!%p254_p2), 1044480   ;;  %vm351_vm3 = vcmask (!%p254_p2), 1043456   ;;  %s602_s20 = smov (!%p254_p2), 1.0  }
   0x6   : > { %257 = sbr.rel (%p254_p2) target bundleno = 356 (0x164), region = 44  ;;  %v601_v27 = vmov (!%p254_p2), 0.0  }
   0x7   : > { %v335_v5 = vshrl.u32 (!%p254_p2), %v334_v0, 7 }
   0x9   : > { %v336_v10 = vsub.s32 (!%p254_p2), 0, %v335_v5 }
   0xd   : > { %s697_s22 = smov (!%p298_p3, %s549_s22), 1 }
   0xe   : > { %s308_s25 = scalar_lea.vmem %s691_s2, %s697_s22  ;;  %s556_s26 = sshll.u32 %s697_s22, 3 }
   0xf   : > { %s312_s29 = scalar_lea.vmem %s692_s3, %s556_s26  ;;  %v327_v1 = vld [vmem:[%s308_s25] sm:$0x1]  ;;  %s554_s30 = sshll.u32 %s697_s22, 2 }
  0x10   : > { %v341_v2 = vsel %vm340_vm0, %v327_v1, 0.0  ;;  %v367_v3 = vld [vmem:[%s312_s29] sm:$0x1f]  ;;  %s301_s9 = scalar_lea.vmem %s689_s0, %s554_s30  ;;  %s305_s12 = scalar_lea.vmem %s690_s1, %s554_s30  ;;  %v337_v16 = vrot.slane %v327_v1, %v336_v10 }
  0x11   : > { %342 = vadd.xlane.f32.xlu0 %v341_v2  ;;  %v371_v4 = vsel %vm370_vm1, %v367_v3, -inf  ;;  %v323_v6 = vld [vmem:[%s305_s12] sm:$0xf]  ;;  %s315_s15 = scalar_lea.vmem %s693_s4, %s697_s22  ;;  %s318_s18 = scalar_lea.vmem %s694_s5, %s697_s22 }
  0x12   : > { %v324_v7 = vld [vmem:[%s301_s9] sm:$0xf]  ;;  %v372_v8 = vrot.slane %v371_v4, 4  ;;  %s322_s11 = scalar_lea.vmem %s695_s6, %s556_s26 }
  0x13   : > { %v325_v9 = vsub.f32 %v323_v6, %v324_v7  ;;  %v559_v26 = vld [vmem:[%s315_s15] ss:$0 sm:$0xff] }
  0x14   : > { %v373_v11 = vmax.f32 %v371_v4, %v372_v8  ;;  %vm397_vm4 = vcmp.eq.s32.totalorder %v335_v5, %v559_v26  ;;  %v369_v48 = vld [vmem:[%s318_s18] sm:$0x1] }
  0x15   : > { %v326_v12 = vand.u32 2147483647, %v325_v9  ;;  %v560_v28 = vsel %vm397_vm4, 1.0, %v601_v27  ;;  %v420_v52 = vsel %vm340_vm0, %v369_v48, 0.0 }
  0x16   : > { %v374_v13 = vrot.slane %v373_v11, 2  ;;  %v400_v29 = vmul.f32 %v560_v28, %v367_v3 }
  0x17   : > { %v329_v14 = vmul.f32 0.5, %v326_v12  ;;  %v558_v15 = vadd.f32 -0.5, %v326_v12  ;;  %vm328_vm2 = vcmp.lt.f32.partialorder %v326_v12, 1.0 }
  0x18   : > { %v375_v17 = vmax.f32 %v373_v11, %v374_v13  ;;  %v401_v33 = vsel %vm370_vm1, %v400_v29, 0.0 }
  0x19   : > { %v330_v18 = vmul.f32 %v329_v14, %v326_v12  ;;  %v402_v35 = vrot.slane %v401_v33, 4 }
  0x1a   : > { %v376_v19 = vrot.slane %v375_v17, 1 }
  0x1b   : > { %v332_v20 = vsel %vm328_vm2, %v330_v18, %v558_v15  ;;  %v403_v38 = vadd.f32 %v402_v35, %v401_v33 }
  0x1c   : > { %v339_v21 = vmul.f32 %v337_v16, %v332_v20  ;;  %v377_v22 = vmax.f32 %v375_v17, %v376_v19 }
  0x1d   : > { %v404_v41 = vrot.slane %v403_v38, 2 }
  0x1e   : > { %v352_v23 = vsel %vm351_vm3, %v339_v21, 0.0  ;;  %v378_v24 = vsub.f32 %v367_v3, %v377_v22 }
  0x1f   : > { %353 = vadd.xlane.f32.xlu0 %v352_v23  ;;  %v405_v42 = vadd.f32 %v404_v41, %v403_v38 }
  0x20   : > { %v379_v25 = vmul.f32 1.442695, %v378_v24 }
  0x21   : > { %v406_v43 = vrot.slane %v405_v42, 1 }
  0x22   : > { %585 = vpow2.f32 %v379_v25 }
  0x23   : > { %v407_v46 = vadd.f32 %v406_v43, %v405_v42 }
  0x2c   : > { %v586_v30 = vpop.eup %585 }
  0x2d   : > { %v381_v31 = vsel %vm370_vm1, %v586_v30, 0.0 }
  0x2e   : > { %v382_v32 = vrot.slane %v381_v31, 4 }
  0x30   : > { %v383_v34 = vadd.f32 %v382_v32, %v381_v31 }
  0x32   : > { %v384_v36 = vrot.slane %v383_v34, 2 }
  0x34   : > { %v385_v37 = vadd.f32 %v384_v36, %v383_v34 }
  0x36   : > { %v386_v39 = vrot.slane %v385_v37, 1 }
  0x38   : > { %v387_v40 = vadd.f32 %v386_v39, %v385_v37 }
  0x3a   : > { %587 = vlog2.f32 %v387_v40 }
  0x44   : > { %v588_v44 = vpop.eup %587 }
  0x45   : > { %v389_v45 = vmul.f32 0.6931472, %v588_v44 }
  0x47   : > { %v390_v47 = vadd.f32 %v389_v45, %v377_v22  ;;  %v436_v22 = vand.u32 127, %v334_v0 }
  0x49   : > { %v408_v49 = vsub.f32 %v390_v47, %v407_v46  ;;  %vm437_vm5 = vcmp.eq.s32.totalorder %v436_v22, 0  ;;  %vm440_vm6 = vcmp.eq.s32.totalorder %v436_v22, 1 }
  0x4b   : > { %v409_v50 = vmul.f32 %v408_v49, %v369_v48 }
  0x4d   : > { %v410_v51 = vsel %vm340_vm0, %v409_v50, 0.0 }
  0x4e   : > { %411 = vadd.xlane.f32.xlu1 %v410_v51 }
  0x52   : > { %421 = vadd.xlane.f32.xlu1 %v420_v52 }
  0x9e   : > { %v343_v53 = vpop.xlane.xlu0 %342 }
  0x9f   : > { %v344_v54 = vrot.slane %v343_v53, 4 }
  0xa1   : > { %v345_v55 = vadd.f32 %v344_v54, %v343_v53 }
  0xa3   : > { %v346_v56 = vrot.slane %v345_v55, 2 }
  0xa5   : > { %v347_v57 = vadd.f32 %v346_v56, %v345_v55 }
  0xa7   : > { %v348_v58 = vrot.slane %v347_v57, 1 }
  0xa9   : > { %v349_v59 = vadd.f32 %v348_v58, %v347_v57 }
  0xab   : > { %563 = vpush %v349_v59 }
  0xac   : > { %v354_v60 = vpop.xlane.xlu0 %353 }
  0xad   : > { %v355_v61 = vrot.slane %v354_v60, 4 }
  0xaf   : > { %v356_v62 = vadd.f32 %v355_v61, %v354_v60 }
  0xb1   : > { %v357_v63 = vrot.slane %v356_v62, 2 }
  0xb3   : > { %v358_v1 = vadd.f32 %v357_v63, %v356_v62 }
  0xb5   : > { %v359_v2 = vrot.slane %v358_v1, 1 }
  0xb7   : > { %v360_v3 = vadd.f32 %v359_v2, %v358_v1 }
  0xb9   : > { %565 = vpush %v360_v3 }
  0xdb   : > { %v412_v4 = vpop.xlane.xlu1 %411 }
  0xdc   : > { %v413_v5 = vrot.slane %v412_v4, 4  ;;  %s564_s19 = spop %563 }
  0xdd   : > { %s362_s23 = smax.f32 %s602_s20, %s564_s19 }
  0xde   : > { %v414_v6 = vadd.f32 %v413_v5, %v412_v4  ;;  %v363_v7 = vstv %s362_s23 }
  0xdf   : > { %589 = vrcp.f32 %v363_v7  ;;  %v422_v8 = vpop.xlane.xlu1 %421 }
  0xe0   : > { %v415_v9 = vrot.slane %v414_v6, 2  ;;  %v423_v10 = vrot.slane %v422_v8, 4 }
  0xe2   : > { %v424_v11 = vadd.f32 %v423_v10, %v422_v8  ;;  %v416_v12 = vadd.f32 %v415_v9, %v414_v6 }
  0xe4   : > { %v425_v13 = vrot.slane %v424_v11, 2  ;;  %v417_v14 = vrot.slane %v416_v12, 1 }
  0xe6   : > { %v426_v15 = vadd.f32 %v425_v13, %v424_v11  ;;  %v418_v18 = vadd.f32 %v417_v14, %v416_v12 }
  0xe8   : > { %v427_v16 = vrot.slane %v426_v15, 1 }
  0xe9   : > { %v590_v17 = vpop.eup %589 }
  0xea   : > { %567 = vpush %v590_v17  ;;  %v428_v19 = vadd.f32 %v427_v16, %v426_v15  ;;  %s566_s24 = spop %565 }
  0xeb   : > { %569 = vpush %v418_v18 }
  0xec   : > { %571 = vpush %v428_v19 }
 0x11b   : > { %s568_s25 = spop %567 }
 0x11c   : > { %s570_s27 = spop %569  ;;  %s366_s30 = smul.f32 %s568_s25, %s566_s24 }
 0x11d   : > { %s572_s28 = spop %571 }
 0x11e   : > { %s430_s29 = smax.f32 %s602_s20, %s572_s28  ;;  %v438_v23 = vstv %s366_s30 }
 0x11f   : > { %v431_v20 = vstv %s430_s29  ;;  %v439_v25 = vsel %vm437_vm5, %v438_v23, 0.0 }
 0x120   : > { %591 = vrcp.f32 %v431_v20 }
 0x12a   : > { %v592_v21 = vpop.eup %591 }
 0x12b   : > { %573 = vpush %v592_v21 }
 0x15c   : > { %s574_s7 = spop %573 }
 0x15d   : > { %s434_s8 = smul.f32 %s574_s7, %s570_s27 }
 0x15f   : > { %v441_v24 = vstv %s434_s8 }
 0x160   : > { %v442_v26 = vsel %vm440_vm6, %v441_v24, 0.0 }
 0x161   : > { %v443_v27 = vadd.f32 %v442_v26, %v439_v25 }
 0x163   : > { %444 = vst [vmem:[%s322_s11] sm:$0xff] %v443_v27 }
 0x164 PF: > { %s16_s21 = sadd.s32 1, %s599_s21  }
 0x165   : > { %p13_p4 = scmp.ge.s32.totalorder %s16_s21, 4  }
 0x167   :  { %15 = sbr.rel (!%p13_p4) target bundleno = 1 (0x1), region = 89 }

// kernel: faster_rcnn_trainer_forward.7
= control target key start
LH: loop header
LB: loop body
LE: loop exit
PB: predicated region body
PF: predicated region fallthrough
CT: control target
= control target key end

     0   :  { %s822_s21 = smov 0   ;;  %s996_s0 = inlined_call_operand.vmem [shape: f32[2,72,128], index: 0, kind: input, shape index: {}]   ;;  %s997_s1 = inlined_call_operand.vmem [shape: f32[2,72,128], index: 1, kind: input, shape index: {}]   ;;  %s998_s2 = inlined_call_operand.vmem [shape: f32[2,72,128], index: 2, kind: input, shape index: {}]   ;;  %s999_s3 = inlined_call_operand.vmem [shape: f32[2,18,128], index: 3, kind: input, shape index: {}]   ;;  %s1000_s4 = inlined_call_operand.vmem [shape: f32[2,18,128], index: 4, kind: input, shape index: {}]   ;;  %s1001_s5 = inlined_call_operand.vmem [shape: s32[2,18,128], index: 5, kind: input, shape index: {}]   ;;  %s1002_s6 = inlined_call_operand.vmem [shape: f32[2,8,128], index: 6, kind: output, shape index: {}]  }
   0x1 LB: > { %s705_s22 = sadd.s32 4294967295, %s783_s21   ;;  %p709_p0 = scmp.ge.s32.totalorder %s783_s21, 1  ;;  %s783_s21 = sphi %s822_s21, %s16_s21  }
   0x2   : > { %p262_p1 = scmp.lt.s32.totalorder %s783_s21, 3 }
   0x4   : > { %p263_p2 = pnand %p709_p0, %p262_p1 }
   0x5   : > { %p316_p3 = scmp.lt.s32.totalorder (!%p263_p2), %s705_s22, 1  ;;  %vm553_vm15 = vcmask (!%p263_p2), 1041408  }
   0x6   : > { %266 = sbr.rel (%p263_p2) target bundleno = 375 (0x177), region = 44 }
   0xd   : > { %s1004_s22 = smov (!%p316_p3, %s705_s22), 1 }
   0xe   : > { %s731_s23 = smul.u32 72, %s1004_s22 }
   0xf   : > { %s881_s9 = smul.u32 24, %s1004_s22 }
  0x10   : > { %s836_s26 = scalar_lea.vmem %s998_s2, %s731_s23  ;;  %s325_s29 = scalar_lea.vmem %s997_s1, %s731_s23 }
  0x11   : > { %v839_v0 = vld [vmem:[%s836_s26] sm:$0xff]  ;;  %v842_v1 = vld [vmem:[%s836_s26 + $0x8] sm:$0xff]  ;;  %v845_v2 = vld [vmem:[%s836_s26 + $0x10] sm:$0xff]  ;;  %s320_s8 = scalar_lea.vmem %s996_s0, %s731_s23  ;;  %s335_s12 = scalar_lea.vmem %s999_s3, %s881_s9 }
  0x12   : > { %v449_v3 = vadd.f32 %v842_v1, %v839_v0  ;;  %v850_v4 = vld [vmem:[%s836_s26 + $0x18] sm:$0xff]  ;;  %v854_v6 = vld [vmem:[%s836_s26 + $0x20] sm:$0xff]  ;;  %v864_v8 = vld [vmem:[%s836_s26 + $0x28] sm:$0xff]  ;;  %s340_s15 = scalar_lea.vmem %s1000_s4, %s881_s9  ;;  %s345_s18 = scalar_lea.vmem %s1001_s5, %s881_s9 }
  0x13   : > { %v867_v9 = vld [vmem:[%s836_s26 + $0x30] sm:$0xff]  ;;  %v350_v11 = vld [vmem:[%s325_s29] sm:$0xff]  ;;  %v351_v12 = vld [vmem:[%s325_s29 + $0x8] sm:$0xff]  ;;  %s786_s23 = smov 1.0  }
  0x14   : > { %v450_v5 = vadd.f32 %v449_v3, %v845_v2  ;;  %v359_v13 = vld [vmem:[%s320_s8] sm:$0xff]  ;;  %v360_v14 = vld [vmem:[%s320_s8 + $0x8] sm:$0xff]  ;;  %v871_v15 = vld [vmem:[%s836_s26 + $0x38] sm:$0xff] }
  0x15   : > { %v352_v17 = vld [vmem:[%s325_s29 + $0x10] sm:$0xff]  ;;  %v353_v18 = vld [vmem:[%s325_s29 + $0x18] sm:$0xff]  ;;  %v354_v19 = vld [vmem:[%s325_s29 + $0x20] sm:$0xff]  ;;  %v368_v26 = vsub.f32 %v350_v11, %v359_v13  ;;  %v369_v27 = vsub.f32 %v351_v12, %v360_v14 }
  0x16   : > { %v451_v7 = vadd.f32 %v450_v5, %v850_v4  ;;  %v355_v20 = vld [vmem:[%s325_s29 + $0x28] sm:$0xff]  ;;  %v361_v21 = vld [vmem:[%s320_s8 + $0x10] sm:$0xff]  ;;  %v362_v23 = vld [vmem:[%s320_s8 + $0x18] sm:$0xff] }
  0x17   : > { %v363_v24 = vld [vmem:[%s320_s8 + $0x20] sm:$0xff]  ;;  %v364_v25 = vld [vmem:[%s320_s8 + $0x28] sm:$0xff]  ;;  %v356_v30 = vld [vmem:[%s325_s29 + $0x30] sm:$0xff]  ;;  %v370_v33 = vsub.f32 %v352_v17, %v361_v21  ;;  %v371_v37 = vsub.f32 %v353_v18, %v362_v23  ;;  %v377_v41 = vand.u32 2147483647, %v368_v26 }
  0x18   : > { %v452_v10 = vadd.f32 %v451_v7, %v854_v6  ;;  %v876_v28 = vld [vmem:[%s836_s26 + $0x40] sm:$0xff]  ;;  %v357_v31 = vld [vmem:[%s325_s29 + $0x38] sm:$0xff]  ;;  %v365_v32 = vld [vmem:[%s320_s8 + $0x30] sm:$0xff]  ;;  %v372_v38 = vsub.f32 %v354_v19, %v363_v24  ;;  %v373_v39 = vsub.f32 %v355_v20, %v364_v25  ;;  %v378_v42 = vand.u32 2147483647, %v369_v27 }
  0x19   : > { %v358_v34 = vld [vmem:[%s325_s29 + $0x40] sm:$0xff]  ;;  %v366_v35 = vld [vmem:[%s320_s8 + $0x38] sm:$0xff]  ;;  %v374_v43 = vsub.f32 %v356_v30, %v365_v32  ;;  %v379_v46 = vand.u32 2147483647, %v370_v33  ;;  %v380_v47 = vand.u32 2147483647, %v371_v37 }
  0x1a   : > { %v453_v16 = vadd.f32 %v452_v10, %v864_v8  ;;  %v367_v36 = vld [vmem:[%s320_s8 + $0x40] sm:$0xff]  ;;  %v375_v44 = vsub.f32 %v357_v31, %v366_v35  ;;  %v883_v48 = vand.u32 2147483647, %v372_v38  ;;  %v885_v49 = vand.u32 2147483647, %v373_v39  ;;  %v911_v12 = vld [vmem:[%s335_s12 + $0x8] sm:$0xff] }
  0x1b   : > { %v376_v45 = vsub.f32 %v358_v34, %v367_v36  ;;  %v404_v50 = vmul.f32 0.5, %v377_v41  ;;  %v405_v51 = vmul.f32 0.5, %v378_v42  ;;  %v887_v52 = vand.u32 2147483647, %v374_v43  ;;  %v905_v3 = vld [vmem:[%s335_s12] sm:$0xff]  ;;  %v913_v13 = vld [vmem:[%s340_s15 + $0x8] sm:$0xff] }
  0x1c   : > { %v454_v22 = vadd.f32 %v453_v16, %v867_v9  ;;  %v889_v53 = vand.u32 2147483647, %v375_v44  ;;  %vm395_vm0 = vcmp.lt.f32.partialorder %v377_v41, 1.0  ;;  %v406_v55 = vmul.f32 0.5, %v379_v46  ;;  %v907_v5 = vld [vmem:[%s340_s15] sm:$0xff]  ;;  %s716_s8 = sshll.u32 %s1004_s22, 3 }
  0x1d   : > { %v891_v54 = vand.u32 2147483647, %v376_v45  ;;  %vm396_vm1 = vcmp.lt.f32.partialorder %v378_v42, 1.0  ;;  %v407_v56 = vmul.f32 0.5, %v380_v47  ;;  %v408_v57 = vmul.f32 0.5, %v883_v48 }
  0x1e   : > { %v455_v29 = vadd.f32 %v454_v22, %v871_v15  ;;  %v409_v58 = vmul.f32 0.5, %v885_v49  ;;  %v413_v59 = vmul.f32 %v404_v50, %v377_v41  ;;  %v414_v60 = vmul.f32 %v405_v51, %v378_v42  ;;  %v919_v19 = vld [vmem:[%s335_s12 + $0x10] sm:$0x3]  ;;  %s349_s12 = scalar_lea.vmem %s1002_s6, %s716_s8 }
  0x1f   : > { %v717_v61 = vadd.f32 -0.5, %v377_v41  ;;  %v718_v62 = vadd.f32 -0.5, %v378_v42  ;;  %vm397_vm2 = vcmp.lt.f32.partialorder %v379_v46, 1.0  ;;  %vm398_vm3 = vcmp.lt.f32.partialorder %v380_v47, 1.0  ;;  %v921_v20 = vld [vmem:[%s340_s15 + $0x10] sm:$0x3] }
  0x20   : > { %v456_v40 = vadd.f32 %v455_v29, %v876_v28  ;;  %vm399_vm4 = vcmp.lt.f32.partialorder %v883_v48, 1.0  ;;  %v410_v63 = vmul.f32 0.5, %v887_v52  ;;  %vm400_vm5 = vcmp.lt.f32.partialorder %v885_v49, 1.0 }
  0x21   : > { %v411_v7 = vmul.f32 0.5, %v889_v53  ;;  %v415_v10 = vmul.f32 %v406_v55, %v379_v46  ;;  %v719_v11 = vadd.f32 -0.5, %v379_v46  ;;  %vm401_vm6 = vcmp.lt.f32.partialorder %v887_v52, 1.0 }
  0x22   : > { %457 = vadd.xlane.f32.xlu0 %v456_v40  ;;  %v412_v14 = vmul.f32 0.5, %v891_v54  ;;  %v416_v16 = vmul.f32 %v407_v56, %v380_v47  ;;  %v417_v17 = vmul.f32 %v408_v57, %v883_v48  ;;  %v418_v18 = vmul.f32 %v409_v58, %v885_v49 }
  0x23   : > { %v720_v21 = vadd.f32 -0.5, %v380_v47  ;;  %v431_v22 = vsel %vm395_vm0, %v413_v59, %v717_v61  ;;  %v432_v23 = vsel %vm396_vm1, %v414_v60, %v718_v62  ;;  %v927_v24 = vmax.f32 %v905_v3, %v907_v5 }
  0x24   : > { %v419_v25 = vmul.f32 %v410_v63, %v887_v52  ;;  %v721_v26 = vadd.f32 -0.5, %v883_v48  ;;  %v722_v27 = vadd.f32 -0.5, %v885_v49  ;;  %v934_v29 = vmax.f32 %v911_v12, %v913_v13 }
  0x25   : > { %v433_v30 = vsel %vm397_vm2, %v415_v10, %v719_v11  ;;  %v939_v31 = vmax.f32 %v919_v19, %v921_v20  ;;  %v510_v32 = vsub.f32 %v905_v3, %v927_v24  ;;  %v519_v33 = vsub.f32 %v907_v5, %v927_v24 }
  0x26   : > { %v440_v34 = vmul.f32 %v431_v22, %v839_v0  ;;  %v441_v35 = vmul.f32 %v432_v23, %v842_v1  ;;  %v511_v36 = vsub.f32 %v911_v12, %v934_v29  ;;  %v520_v37 = vsub.f32 %v913_v13, %v934_v29 }
  0x27   : > { %v434_v38 = vsel %vm398_vm3, %v416_v16, %v720_v21  ;;  %v512_v39 = vsub.f32 %v919_v19, %v939_v31  ;;  %v513_v40 = vmul.f32 1.442695, %v510_v32  ;;  %v521_v41 = vsub.f32 %v921_v20, %v939_v31 }
  0x28   : > { %v723_v42 = vadd.f32 -0.5, %v887_v52  ;;  %v442_v0 = vmul.f32 %v433_v30, %v845_v2  ;;  %v515_v1 = vmul.f32 1.442695, %v511_v36  ;;  %v522_v43 = vmul.f32 1.442695, %v519_v33 }
  0x29   : > { %v435_v44 = vsel %vm399_vm4, %v417_v17, %v721_v26  ;;  %755 = vpow2.f32 %v513_v40  ;;  %v517_v45 = vmul.f32 1.442695, %v512_v39  ;;  %v524_v46 = vmul.f32 1.442695, %v520_v37 }
  0x2a   : > { %v443_v47 = vmul.f32 %v434_v38, %v850_v4  ;;  %757 = vpow2.f32 %v515_v1  ;;  %v526_v50 = vmul.f32 1.442695, %v521_v41  ;;  %v467_v51 = vadd.f32 %v441_v35, %v440_v34 }
  0x2b   : > { %v420_v55 = vmul.f32 %v411_v7, %v889_v53  ;;  %v724_v56 = vadd.f32 -0.5, %v889_v53  ;;  %v436_v2 = vsel %vm400_vm5, %v418_v18, %v722_v27  ;;  %759 = vpow2.f32 %v517_v45 }
  0x2c   : > { %vm402_vm7 = vcmp.lt.f32.partialorder %v889_v53, 1.0  ;;  %v444_v48 = vmul.f32 %v435_v44, %v854_v6  ;;  %761 = vpow2.f32 %v522_v43  ;;  %v468_v57 = vadd.f32 %v467_v51, %v442_v0 }
  0x2d   : > { %v421_v58 = vmul.f32 %v412_v14, %v891_v54  ;;  %v725_v4 = vadd.f32 -0.5, %v891_v54  ;;  %v437_v59 = vsel %vm401_vm6, %v419_v25, %v723_v42  ;;  %763 = vpow2.f32 %v524_v46  ;;  %v497_v25 = vld [vmem:[%s345_s18 + $0x10] sm:$0x3] }
  0x2e   : > { %vm403_vm8 = vcmp.lt.f32.partialorder %v891_v54, 1.0  ;;  %v445_v49 = vmul.f32 %v436_v2, %v864_v8  ;;  %765 = vpow2.f32 %v526_v50  ;;  %v469_v60 = vadd.f32 %v468_v57, %v443_v47 }
  0x2f   : > { %v438_v61 = vsel %vm402_vm7, %v420_v55, %v724_v56  ;;  %v446_v53 = vmul.f32 %v437_v59, %v867_v9  ;;  %v439_v62 = vsel %vm403_vm8, %v421_v58, %v725_v4  ;;  %vm542_vm12 = vcmp.eq.s32.totalorder %v497_v25, 1 }
  0x30   : > { %v470_v6 = vadd.f32 %v469_v60, %v444_v48  ;;  %v447_v63 = vmul.f32 %v438_v61, %v871_v15  ;;  %v448_v52 = vmul.f32 %v439_v62, %v876_v28  ;;  %v495_v15 = vld [vmem:[%s345_s18] sm:$0xff]  ;;  %v496_v28 = vld [vmem:[%s345_s18 + $0x8] sm:$0xff]  ;;  %vm500_vm14 = vcmp.ge.s32.totalorder %v497_v25, 0 }
  0x31   : > { %vm540_vm9 = vcmp.eq.s32.totalorder %v495_v15, 1  ;;  %vm541_vm10 = vcmp.eq.s32.totalorder %v496_v28, 1  ;;  %vm498_vm11 = vcmp.ge.s32.totalorder %v495_v15, 0  ;;  %vm499_vm13 = vcmp.ge.s32.totalorder %v496_v28, 0 }
  0x32   : > { %v471_v7 = vadd.f32 %v470_v6, %v445_v49  ;;  %v543_v34 = vsel %vm540_vm9, %v907_v5, %v905_v3  ;;  %v544_v37 = vsel %vm541_vm10, %v913_v13, %v911_v12  ;;  %v785_v38 = vmov 0.0  }
  0x33   : > { %v756_v10 = vpop.eup %755  ;;  %v726_v39 = vsel %vm498_vm11, 1.0, %v785_v38  ;;  %v545_v41 = vsel %vm542_vm12, %v921_v20, %v919_v19  ;;  %v727_v42 = vsel %vm499_vm13, 1.0, %v785_v38  ;;  %v728_v43 = vsel %vm500_vm14, 1.0, %v785_v38 }
  0x34   : > { %v758_v11 = vpop.eup %757  ;;  %v472_v14 = vadd.f32 %v471_v7, %v446_v53  ;;  %v565_v12 = vadd.f32 %v727_v42, %v726_v39  ;;  %v566_v47 = vsel %vm553_vm15, %v728_v43, 0.0 }
  0x35   : > { %v760_v16 = vpop.eup %759 }
  0x36   : > { %v762_v54 = vpop.eup %761  ;;  %v473_v17 = vadd.f32 %v472_v14, %v447_v63 }
  0x37   : > { %v764_v8 = vpop.eup %763  ;;  %v528_v18 = vadd.f32 %v762_v54, %v756_v10 }
  0x38   : > { %v766_v21 = vpop.eup %765  ;;  %v529_v22 = vadd.f32 %v764_v8, %v758_v11  ;;  %v474_v23 = vadd.f32 %v473_v17, %v448_v52 }
  0x39   : > { %v530_v9 = vadd.f32 %v766_v21, %v760_v16  ;;  %767 = vlog2.f32 %v528_v18 }
  0x3a   : > { %769 = vlog2.f32 %v529_v22  ;;  %475 = vadd.xlane.f32.xlu0 %v474_v23 }
  0x3b   : > { %771 = vlog2.f32 %v530_v9  ;;  %v582_v9 = vlaneseq }
  0x3d   : > { %v583_v15 = vand.u32 127, %v582_v9 }
  0x3f   : > { %vm584_vm0 = vcmp.eq.s32.totalorder %v583_v15, 0  ;;  %vm587_vm1 = vcmp.eq.s32.totalorder %v583_v15, 1 }
  0x43   : > { %v768_v26 = vpop.eup %767 }
  0x44   : > { %v770_v27 = vpop.eup %769  ;;  %v532_v30 = vmul.f32 0.6931472, %v768_v26 }
  0x45   : > { %v772_v32 = vpop.eup %771  ;;  %v534_v33 = vmul.f32 0.6931472, %v770_v27 }
  0x46   : > { %v536_v35 = vmul.f32 0.6931472, %v772_v32  ;;  %v537_v36 = vadd.f32 %v532_v30, %v927_v24 }
  0x47   : > { %v538_v40 = vadd.f32 %v534_v33, %v934_v29  ;;  %v567_v29 = vadd.f32 %v566_v47, %v565_v12 }
  0x48   : > { %v539_v0 = vadd.f32 %v536_v35, %v939_v31  ;;  %v546_v1 = vsub.f32 %v537_v36, %v543_v34 }
  0x49   : > { %v547_v3 = vsub.f32 %v538_v40, %v544_v37 }
  0x4a   : > { %v548_v5 = vsub.f32 %v539_v0, %v545_v41  ;;  %v549_v44 = vmul.f32 %v726_v39, %v546_v1 }
  0x4b   : > { %v550_v45 = vmul.f32 %v727_v42, %v547_v3 }
  0x4c   : > { %v551_v24 = vmul.f32 %v728_v43, %v548_v5 }
  0x4d   : > { %v552_v46 = vadd.f32 %v550_v45, %v549_v44 }
  0x4e   : > { %v554_v13 = vsel %vm553_vm15, %v551_v24, 0.0 }
  0x4f   : > { %v555_v50 = vadd.f32 %v554_v13, %v552_v46 }
  0x51   : > { %556 = vadd.xlane.f32.xlu1 %v555_v50 }
  0x55   : > { %568 = vadd.xlane.f32.xlu1 %v567_v29 }
  0xaf   : > { %v458_v19 = vpop.xlane.xlu0 %457 }
  0xb0   : > { %v459_v20 = vrot.slane %v458_v19, 4 }
  0xb2   : > { %v460_v51 = vadd.f32 %v459_v20, %v458_v19 }
  0xb4   : > { %v461_v31 = vrot.slane %v460_v51, 2 }
  0xb6   : > { %v462_v55 = vadd.f32 %v461_v31, %v460_v51 }
  0xb8   : > { %v463_v56 = vrot.slane %v462_v55, 1 }
  0xba   : > { %v464_v2 = vadd.f32 %v463_v56, %v462_v55 }
  0xbc   : > { %733 = vpush %v464_v2 }
  0xc7   : > { %v476_v48 = vpop.xlane.xlu0 %475 }
  0xc8   : > { %v477_v57 = vrot.slane %v476_v48, 4 }
  0xca   : > { %v478_v58 = vadd.f32 %v477_v57, %v476_v48 }
  0xcc   : > { %v479_v4 = vrot.slane %v478_v58, 2 }
  0xce   : > { %v480_v59 = vadd.f32 %v479_v4, %v478_v58 }
  0xd0   : > { %v481_v49 = vrot.slane %v480_v59, 1 }
  0xd2   : > { %v482_v60 = vadd.f32 %v481_v49, %v480_v59 }
  0xd4   : > { %735 = vpush %v482_v60 }
  0xde   : > { %v557_v61 = vpop.xlane.xlu1 %556 }
  0xdf   : > { %v558_v53 = vrot.slane %v557_v61, 4 }
  0xe1   : > { %v559_v62 = vadd.f32 %v558_v53, %v557_v61 }
  0xe2   : > { %v569_v6 = vpop.xlane.xlu1 %568 }
  0xe3   : > { %v570_v63 = vrot.slane %v569_v6, 4  ;;  %v560_v10 = vrot.slane %v559_v62, 2 }
  0xe5   : > { %v571_v7 = vadd.f32 %v570_v63, %v569_v6  ;;  %v561_v14 = vadd.f32 %v560_v10, %v559_v62 }
  0xe7   : > { %v572_v11 = vrot.slane %v571_v7, 2  ;;  %v562_v54 = vrot.slane %v561_v14, 1 }
  0xe9   : > { %v573_v16 = vadd.f32 %v572_v11, %v571_v7  ;;  %v563_v18 = vadd.f32 %v562_v54, %v561_v14 }
  0xeb   : > { %v574_v17 = vrot.slane %v573_v16, 1 }
  0xed   : > { %s734_s19 = spop %733  ;;  %v575_v21 = vadd.f32 %v574_v17, %v573_v16 }
  0xee   : > { %s466_s20 = smul.f32 0.25, %s734_s19 }
  0xf0   : > { %s484_s24 = smax.f32 %s786_s23, %s466_s20 }
  0xf1   : > { %v485_v52 = vstv %s484_s24 }
  0xf2   : > { %773 = vrcp.f32 %v485_v52 }
  0xfc   : > { %v774_v8 = vpop.eup %773 }
  0xfd   : > { %737 = vpush %v774_v8 }
  0xfe   : > { %739 = vpush %v563_v18 }
  0xff   : > { %741 = vpush %v575_v21 }
 0x105   : > { %s736_s25 = spop %735 }
 0x12e   : > { %s738_s26 = spop %737 }
 0x12f   : > { %s740_s27 = spop %739  ;;  %s488_s30 = smul.f32 %s738_s26, %s736_s25 }
 0x130   : > { %s742_s28 = spop %741 }
 0x131   : > { %s577_s29 = smax.f32 %s786_s23, %s742_s28  ;;  %v585_v28 = vstv %s488_s30 }
 0x132   : > { %v578_v22 = vstv %s577_s29  ;;  %v586_v26 = vsel %vm584_vm0, %v585_v28, 0.0 }
 0x133   : > { %775 = vrcp.f32 %v578_v22 }
 0x13d   : > { %v776_v23 = vpop.eup %775 }
 0x13e   : > { %743 = vpush %v776_v23 }
 0x16f   : > { %s744_s7 = spop %743 }
 0x170   : > { %s581_s9 = smul.f32 %s744_s7, %s740_s27 }
 0x172   : > { %v588_v25 = vstv %s581_s9 }
 0x173   : > { %v589_v27 = vsel %vm587_vm1, %v588_v25, 0.0 }
 0x174   : > { %v590_v30 = vadd.f32 %v589_v27, %v586_v26 }
 0x176   : > { %591 = vst [vmem:[%s349_s12] sm:$0xff] %v590_v30 }
 0x177 PF: > { %s16_s21 = sadd.s32 1, %s783_s21  }
 0x178   : > { %p13_p4 = scmp.ge.s32.totalorder %s16_s21, 4  }
 0x17a   :  { %15 = sbr.rel (!%p13_p4) target bundleno = 1 (0x1), region = 89 }

</bundles_post_ra>
